<compile_context>
chip_gen: v5e
topology: v5e:2x2
jax: 0.10.0
libtpu: 0.0.40
codegen_flags: <defaults>
</compile_context>

<pallas_src>
import jax
import jax.numpy as jnp
from jax import lax
from jax.experimental import pallas as pl
from jax.experimental.pallas import tpu as pltpu


# ----------------------------- Pallas kernel --------------------------------

def cnn_svhn_kernel(p1_ref, w1_ref, b1_ref, w2_ref, b2_ref, w3_ref, b3_ref,
                    fc1w_ref, fc1b_ref, fc2w_ref, fc2b_ref,
                    o_ref,
                    acc1_ref, pad2_ref, acc2_ref, pad3_ref, acc3_ref):
    """Whole CNNSVHN forward for one batch tile (BT images); everything stays in VMEM.

    p1_ref : (BT, 1024, 27) bf16  conv1 im2col patches (32x32 positions, K=9*3)
    w1_ref : (27, 32) bf16        conv1 weight (rows: ky*9 + kx*3 + ci)
    w2_ref : (3, 3, 32, 64) bf16  conv2 weight (HWIO)
    w3_ref : (3, 3, 64, 128) bf16 conv3 weight (HWIO)
    fc1w   : (2048, 512) bf16     rows pre-permuted to NHWC-flatten order
    fc2w   : (512, 10) bf16
    b*     : (1, C) f32
    o_ref  : (BT, 1, 10) f32
    """
    f32, bf16 = jnp.float32, jnp.bfloat16
    BT = acc1_ref.shape[0]
    XOFF = 8  # sublane-aligned column offset of the data inside the padded scratches

    def pool_bias_relu(acc_ref, b_ref):
        """relu(maxpool2x2(acc) + b); acc holds the bias-free conv output."""
        _, H, W, C = acc_ref.shape
        Hh, Wh = H // 2, W // 2
        p00 = acc_ref[:, pl.ds(0, Hh, stride=2), pl.ds(0, Wh, stride=2), :]
        p01 = acc_ref[:, pl.ds(0, Hh, stride=2), pl.ds(1, Wh, stride=2), :]
        p10 = acc_ref[:, pl.ds(1, Hh, stride=2), pl.ds(0, Wh, stride=2), :]
        p11 = acc_ref[:, pl.ds(1, Hh, stride=2), pl.ds(1, Wh, stride=2), :]
        m = jnp.maximum(jnp.maximum(p00, p01), jnp.maximum(p10, p11))
        return jnp.maximum(m + b_ref[...].reshape(1, 1, 1, C), 0.0)

    def conv3x3(pad_ref, w_ref, acc_ref):
        """3x3 'same' conv as 9 shifted (M,Cin)x(Cin,Cout) bf16 MXU matmuls.

        pad_ref: (BT, H+2, Wp, Cin), zeroed, data at [:, 1:H+1, XOFF:XOFF+W, :].
        acc_ref: (BT, H, W, Cout) f32 accumulator (pre-pool conv output).
        """
        _, H, W, Cout = acc_ref.shape
        Cin = pad_ref.shape[-1]
        for t in range(9):
            ky, kx = t // 3, t % 3
            tap = pad_ref[:, ky:ky + H, XOFF - 1 + kx:XOFF - 1 + kx + W, :]
            lhs = tap.reshape(BT * H * W, Cin).astype(bf16)
            d = jnp.dot(lhs, w_ref[ky, kx],
                        preferred_element_type=f32).reshape(BT, H, W, Cout)
            if t == 0:
                acc_ref[...] = d
            else:
                acc_ref[...] += d

    # ---- Block 1: conv1 as one K=27 im2col matmul, then pool + bias + ReLU. ----
    c1 = jnp.dot(p1_ref[...].reshape(BT * 32 * 32, 27), w1_ref[...],
                 preferred_element_type=f32)
    acc1_ref[...] = c1.reshape(BT, 32, 32, 32)
    a1 = pool_bias_relu(acc1_ref, b1_ref)                       # (BT, 16, 16, 32)

    # ---- Block 2: in-VMEM padding (aligned store), 9-tap conv, pool + bias + ReLU. ----
    pad2_ref[...] = jnp.zeros_like(pad2_ref)
    pad2_ref[:, 1:17, XOFF:XOFF + 16, :] = a1
    conv3x3(pad2_ref, w2_ref, acc2_ref)
    a2 = pool_bias_relu(acc2_ref, b2_ref)                       # (BT, 8, 8, 64)

    # ---- Block 3 ----
    pad3_ref[...] = jnp.zeros_like(pad3_ref)
    pad3_ref[:, 1:9, XOFF:XOFF + 8, :] = a2
    conv3x3(pad3_ref, w3_ref, acc3_ref)
    a3 = pool_bias_relu(acc3_ref, b3_ref).astype(bf16)          # (BT, 4, 4, 128)

    # ---- MLP: fc1 over the 16 spatial positions (fc1 rows pre-permuted to NHWC
    #      order), then ReLU and fc2. Avoids a lane-collapsing flatten in-kernel. ----
    h = None
    for r in range(16):
        i, j = r // 4, r % 4
        d = jnp.dot(a3[:, i, j, :], fc1w_ref[r * 128:(r + 1) * 128, :],
                    preferred_element_type=f32)
        h = d if h is None else h + d
    h = jnp.maximum(h + fc1b_ref[...], 0.0).astype(bf16)
    out = jnp.dot(h, fc2w_ref[...], preferred_element_type=f32) + fc2b_ref[...]
    o_ref[...] = out[:, None, :]


# ------------------------------ JAX wrappers --------------------------------

def _pick_batch_tile(B, cap=4):
    """Largest divisor of B that is <= cap while keeping >= 2 grid steps when B >= 2
    (so both TensorCores of a megacore chip get work)."""
    limit = min(cap, B if B == 1 else max(1, B // 2))
    for bt in range(limit, 0, -1):
        if B % bt == 0:
            return bt
    return 1


def _conv1_im2col(x_nhwc):
    """(B, 32, 32, 3) -> (B, 1024, 27) bf16 im2col patches for a 3x3 'same' conv.
    Patch channel order is ky*9 + kx*3 + ci, matching w1.reshape(27, 32)."""
    B, H, W, C = x_nhwc.shape
    xp = jnp.pad(x_nhwc, ((0, 0), (1, 1), (1, 1), (0, 0)))
    cols = [xp[:, ky:ky + H, kx:kx + W, :] for ky in range(3) for kx in range(3)]
    p = jnp.concatenate(cols, axis=-1)                          # (B, H, W, 9C)
    return p.reshape(B, H * W, 9 * C).astype(jnp.bfloat16)


@jax.jit
def cnn_svhn_forward(x_nchw, kp):
    x = jnp.transpose(x_nchw, (0, 2, 3, 1)).astype(jnp.float32)  # NCHW -> NHWC
    B = x.shape[0]
    patches = _conv1_im2col(x)                                   # (B, 1024, 27) bf16
    BT = _pick_batch_tile(B)
    grid = (B // BT,)
    const2 = lambda i: (0, 0)
    const4 = lambda i: (0, 0, 0, 0)

    out = pl.pallas_call(
        cnn_svhn_kernel,
        out_shape=jax.ShapeDtypeStruct((B, 1, 10), jnp.float32),
        grid_spec=pltpu.PrefetchScalarGridSpec(
            num_scalar_prefetch=0,
            grid=grid,
            in_specs=[
                pl.BlockSpec((BT, 1024, 27), lambda i: (i, 0, 0)),  # conv1 patches
                pl.BlockSpec((27, 32), const2),                     # w1
                pl.BlockSpec((1, 32), const2),                      # b1
                pl.BlockSpec((3, 3, 32, 64), const4),               # w2
                pl.BlockSpec((1, 64), const2),                      # b2
                pl.BlockSpec((3, 3, 64, 128), const4),              # w3
                pl.BlockSpec((1, 128), const2),                     # b3
                pl.BlockSpec((2048, 512), const2),                  # fc1_w (NHWC rows)
                pl.BlockSpec((1, 512), const2),                     # fc1_b
                pl.BlockSpec((512, 10), const2),                    # fc2_w
                pl.BlockSpec((1, 10), const2),                      # fc2_b
            ],
            out_specs=pl.BlockSpec((BT, 1, 10), lambda i: (i, 0, 0)),
            scratch_shapes=[
                pltpu.VMEM((BT, 32, 32, 32), jnp.float32),  # conv1 pre-pool
                pltpu.VMEM((BT, 18, 32, 32), jnp.float32),  # padded a1 (16x16x32)
                pltpu.VMEM((BT, 16, 16, 64), jnp.float32),  # conv2 pre-pool
                pltpu.VMEM((BT, 10, 24, 64), jnp.float32),  # padded a2 (8x8x64)
                pltpu.VMEM((BT, 8, 8, 128), jnp.float32),   # conv3 pre-pool
            ],
        ),
        compiler_params=pltpu.CompilerParams(
            dimension_semantics=("parallel",),
            vmem_limit_bytes=32 * 1024 * 1024),
    )(patches, kp["w1"], kp["b1"], kp["w2"], kp["b2"], kp["w3"], kp["b3"],
      kp["fc1_w"], kp["fc1_b"], kp["fc2_w"], kp["fc2_b"])
    return out.reshape(B, 10)


def prepare_params(params):
    """f32 reference params -> kernel params: bf16 matmul weights, (1,C) f32 biases,
    fc1 rows permuted from PyTorch's NCHW-flatten order to NHWC-flatten order."""
    fc1_nhwc = (params["fc1_w"].reshape(128, 4, 4, 512)
                .transpose(1, 2, 0, 3).reshape(128 * 4 * 4, 512))
    bf = jnp.bfloat16
    r = lambda b: b.reshape(1, -1).astype(jnp.float32)
    return {
        "w1": params["w1"].reshape(27, 32).astype(bf), "b1": r(params["b1"]),
        "w2": params["w2"].astype(bf), "b2": r(params["b2"]),
        "w3": params["w3"].astype(bf), "b3": r(params["b3"]),
        "fc1_w": fc1_nhwc.astype(bf), "fc1_b": r(params["fc1_b"]),
        "fc2_w": params["fc2_w"].astype(bf), "fc2_b": r(params["fc2_b"]),
    }


# --------------------------- pure-JAX reference ------------------------------

def _ref_block(x, w, b):
    y = lax.conv_general_dilated(
        x, w, window_strides=(1, 1), padding="SAME",
        dimension_numbers=("NHWC", "HWIO", "NHWC"))
    y = jnp.maximum(y + b, 0.0)
    return lax.reduce_window(y, -jnp.inf, lax.max,
                             (1, 2, 2, 1), (1, 2, 2, 1), "VALID")


def reference_forward(x_nchw, params):
    x = jnp.transpose(x_nchw, (0, 2, 3, 1)).astype(jnp.float32)
    x = _ref_block(x, params["w1"], params["b1"])
    x = _ref_block(x, params["w2"], params["b2"])
    x = _ref_block(x, params["w3"], params["b3"])
    B = x.shape[0]
    x = jnp.transpose(x, (0, 3, 1, 2)).reshape(B, 128 * 4 * 4)   # PyTorch NCHW flatten
    h = jnp.maximum(x @ params["fc1_w"] + params["fc1_b"], 0.0)
    return h @ params["fc2_w"] + params["fc2_b"]


# ---------------------------------- main -------------------------------------

def init_params(key):
    ks = jax.random.split(key, 10)

    def he(k, shape, fan_in):
        return jax.random.normal(k, shape, jnp.float32) * jnp.sqrt(2.0 / fan_in)

    return {
        "w1": he(ks[0], (3, 3, 3, 32), 3 * 9),
        "b1": jax.random.normal(ks[1], (32,), jnp.float32) * 0.01,
        "w2": he(ks[2], (3, 3, 32, 64), 32 * 9),
        "b2": jax.random.normal(ks[3], (64,), jnp.float32) * 0.01,
        "w3": he(ks[4], (3, 3, 64, 128), 64 * 9),
        "b3": jax.random.normal(ks[5], (128,), jnp.float32) * 0.01,
        "fc1_w": he(ks[6], (128 * 4 * 4, 512), 128 * 4 * 4),
        "fc1_b": jax.random.normal(ks[7], (512,), jnp.float32) * 0.01,
        "fc2_w": he(ks[8], (512, 10), 512),
        "fc2_b": jax.random.normal(ks[9], (10,), jnp.float32) * 0.01,
    }


if __name__ == "__main__":
    key = jax.random.PRNGKey(0)
    k_x, k_p = jax.random.split(key)
    # SVHN-shaped input (spatial must be 32x32 for the 128*4*4 flatten), small batch.
    x = jax.random.normal(k_x, (2, 3, 32, 32), jnp.float32)
    params = init_params(k_p)
    kparams = prepare_params(params)

    out = jax.block_until_ready(cnn_svhn_forward(x, kparams))
    assert out.shape == (2, 10), out.shape

    ref = jax.block_until_ready(reference_forward(x, params))
    err = float(jnp.max(jnp.abs(out - ref)))
    assert jnp.allclose(out, ref, atol=5e-2, rtol=5e-2), (
        f"Pallas output deviates from reference: max abs err = {err}")

    print("KERNEL_OK")
</pallas_src>

<mosaic_0001>
module attributes {stable_mosaic.version = 11 : i64} {
  func.func @cnn_svhn_kernel(%arg0: i32, %arg1: memref<1x1024x27xbf16, #tpu.memory_space<vmem>>, %arg2: memref<27x32xbf16, #tpu.memory_space<vmem>>, %arg3: memref<1x32xf32, #tpu.memory_space<vmem>>, %arg4: memref<3x3x32x64xbf16, #tpu.memory_space<vmem>>, %arg5: memref<1x64xf32, #tpu.memory_space<vmem>>, %arg6: memref<3x3x64x128xbf16, #tpu.memory_space<vmem>>, %arg7: memref<1x128xf32, #tpu.memory_space<vmem>>, %arg8: memref<2048x512xbf16, #tpu.memory_space<vmem>>, %arg9: memref<1x512xf32, #tpu.memory_space<vmem>>, %arg10: memref<512x10xbf16, #tpu.memory_space<vmem>>, %arg11: memref<1x10xf32, #tpu.memory_space<vmem>>, %arg12: memref<1x1x10xf32, #tpu.memory_space<vmem>>, %arg13: memref<1x32x32x32xf32, #tpu.memory_space<vmem>>, %arg14: memref<1x18x32x32xf32, #tpu.memory_space<vmem>>, %arg15: memref<1x16x16x64xf32, #tpu.memory_space<vmem>>, %arg16: memref<1x10x24x64xf32, #tpu.memory_space<vmem>>, %arg17: memref<1x8x8x128xf32, #tpu.memory_space<vmem>>) attributes {dimension_semantics = [#tpu.dimension_semantics<parallel>], iteration_bounds = array<i64: 2>, scalar_prefetch = 0 : i64, scratch_operands = 5 : i64, tpu.core_type = #tpu.core_type<tc>, window_params = [{transform_indices = @transform_0, window_bounds = array<i64: 1, 1024, 27>}, {pipeline_mode = #tpu.pipeline_mode<synchronous>, transform_indices = @transform_1, window_bounds = array<i64: 27, 32>}, {pipeline_mode = #tpu.pipeline_mode<synchronous>, transform_indices = @transform_2, window_bounds = array<i64: 1, 32>}, {pipeline_mode = #tpu.pipeline_mode<synchronous>, transform_indices = @transform_3, window_bounds = array<i64: 3, 3, 32, 64>}, {pipeline_mode = #tpu.pipeline_mode<synchronous>, transform_indices = @transform_4, window_bounds = array<i64: 1, 64>}, {pipeline_mode = #tpu.pipeline_mode<synchronous>, transform_indices = @transform_5, window_bounds = array<i64: 3, 3, 64, 128>}, {pipeline_mode = #tpu.pipeline_mode<synchronous>, transform_indices = @transform_6, window_bounds = array<i64: 1, 128>}, {pipeline_mode = #tpu.pipeline_mode<synchronous>, transform_indices = @transform_7, window_bounds = array<i64: 2048, 512>}, {pipeline_mode = #tpu.pipeline_mode<synchronous>, transform_indices = @transform_8, window_bounds = array<i64: 1, 512>}, {pipeline_mode = #tpu.pipeline_mode<synchronous>, transform_indices = @transform_9, window_bounds = array<i64: 512, 10>}, {pipeline_mode = #tpu.pipeline_mode<synchronous>, transform_indices = @transform_10, window_bounds = array<i64: 1, 10>}, {transform_indices = @transform_11, window_bounds = array<i64: 1, 1, 10>}]} {
    %c0 = arith.constant 0 : index
    %c0_0 = arith.constant 0 : index
    %c0_1 = arith.constant 0 : index
    %0 = vector.load %arg1[%c0, %c0_0, %c0_1] : memref<1x1024x27xbf16, #tpu.memory_space<vmem>>, vector<1x1024x27xbf16>
    %1 = vector.shape_cast %0 : vector<1x1024x27xbf16> to vector<1024x27xbf16>
    %c0_2 = arith.constant 0 : index
    %c0_3 = arith.constant 0 : index
    %2 = vector.load %arg2[%c0_2, %c0_3] : memref<27x32xbf16, #tpu.memory_space<vmem>>, vector<27x32xbf16>
    %cst = arith.constant dense<0.000000e+00> : vector<1024x32xf32>
    %3 = tpu.matmul %1, %2, %cst {dimension_numbers = #tpu.dot_dimension_numbers<[1], [0], [0], [1], [0, 0, 1, 1], [], []>} : vector<1024x27xbf16>, vector<27x32xbf16>, vector<1024x32xf32> -> vector<1024x32xf32>
    %4 = vector.shape_cast %3 : vector<1024x32xf32> to vector<1x32x32x32xf32>
    %c0_4 = arith.constant 0 : index
    %c0_5 = arith.constant 0 : index
    %c0_6 = arith.constant 0 : index
    %c0_7 = arith.constant 0 : index
    %5 = vector.load %arg13[%c0_4, %c0_5, %c0_6, %c0_7] : memref<1x32x32x32xf32, #tpu.memory_space<vmem>>, vector<1x32x32x32xf32>
    tpu.vector_store %arg13[%c0_4, %c0_5, %c0_6, %c0_7], %4 {strides = array<i32>} : memref<1x32x32x32xf32, #tpu.memory_space<vmem>>, vector<1x32x32x32xf32>,
    %c0_8 = arith.constant 0 : index
    %c0_9 = arith.constant 0 : index
    %c0_10 = arith.constant 0 : index
    %c0_11 = arith.constant 0 : index
    %6 = tpu.strided_load %arg13[%c0_8, %c0_9, %c0_10, %c0_11] {strides = array<i32: 1, 2, 2, 1>} : memref<1x32x32x32xf32, #tpu.memory_space<vmem>>, vector<1x16x16x32xf32>
    %c0_12 = arith.constant 0 : index
    %c0_13 = arith.constant 0 : index
    %c1 = arith.constant 1 : index
    %c0_14 = arith.constant 0 : index
    %7 = tpu.strided_load %arg13[%c0_12, %c0_13, %c1, %c0_14] {strides = array<i32: 1, 2, 2, 1>} : memref<1x32x32x32xf32, #tpu.memory_space<vmem>>, vector<1x16x16x32xf32>
    %c0_15 = arith.constant 0 : index
    %c1_16 = arith.constant 1 : index
    %c0_17 = arith.constant 0 : index
    %c0_18 = arith.constant 0 : index
    %8 = tpu.strided_load %arg13[%c0_15, %c1_16, %c0_17, %c0_18] {strides = array<i32: 1, 2, 2, 1>} : memref<1x32x32x32xf32, #tpu.memory_space<vmem>>, vector<1x16x16x32xf32>
    %c0_19 = arith.constant 0 : index
    %c1_20 = arith.constant 1 : index
    %c1_21 = arith.constant 1 : index
    %c0_22 = arith.constant 0 : index
    %9 = tpu.strided_load %arg13[%c0_19, %c1_20, %c1_21, %c0_22] {strides = array<i32: 1, 2, 2, 1>} : memref<1x32x32x32xf32, #tpu.memory_space<vmem>>, vector<1x16x16x32xf32>
    %10 = arith.maximumf %6, %7 : vector<1x16x16x32xf32>
    %11 = arith.maximumf %8, %9 : vector<1x16x16x32xf32>
    %12 = arith.maximumf %10, %11 : vector<1x16x16x32xf32>
    %c0_23 = arith.constant 0 : index
    %c0_24 = arith.constant 0 : index
    %13 = vector.load %arg3[%c0_23, %c0_24] : memref<1x32xf32, #tpu.memory_space<vmem>>, vector<1x32xf32>
    %14 = vector.shape_cast %13 : vector<1x32xf32> to vector<1x1x1x32xf32>
    %15 = vector.broadcast %14 : vector<1x1x1x32xf32> to vector<1x16x16x32xf32>
    %16 = arith.addf %12, %15 : vector<1x16x16x32xf32>
    %cst_25 = arith.constant 0.000000e+00 : f32
    %17 = vector.broadcast %cst_25 : f32 to vector<1x16x16x32xf32>
    %18 = arith.maximumf %16, %17 : vector<1x16x16x32xf32>
    %cst_26 = arith.constant 0.000000e+00 : f32
    %19 = vector.broadcast %cst_26 : f32 to vector<1x18x32x32xf32>
    %c0_27 = arith.constant 0 : index
    %c0_28 = arith.constant 0 : index
    %c0_29 = arith.constant 0 : index
    %c0_30 = arith.constant 0 : index
    %20 = vector.load %arg14[%c0_27, %c0_28, %c0_29, %c0_30] : memref<1x18x32x32xf32, #tpu.memory_space<vmem>>, vector<1x18x32x32xf32>
    tpu.vector_store %arg14[%c0_27, %c0_28, %c0_29, %c0_30], %19 {strides = array<i32>} : memref<1x18x32x32xf32, #tpu.memory_space<vmem>>, vector<1x18x32x32xf32>,
    %c0_31 = arith.constant 0 : index
    %c1_32 = arith.constant 1 : index
    %c8 = arith.constant 8 : index
    %c0_33 = arith.constant 0 : index
    %21 = vector.load %arg14[%c0_31, %c1_32, %c8, %c0_33] : memref<1x18x32x32xf32, #tpu.memory_space<vmem>>, vector<1x16x16x32xf32>
    tpu.vector_store %arg14[%c0_31, %c1_32, %c8, %c0_33], %18 {strides = array<i32>} : memref<1x18x32x32xf32, #tpu.memory_space<vmem>>, vector<1x16x16x32xf32>,
    %c0_34 = arith.constant 0 : index
    %c0_35 = arith.constant 0 : index
    %c7 = arith.constant 7 : index
    %c0_36 = arith.constant 0 : index
    %22 = vector.load %arg14[%c0_34, %c0_35, %c7, %c0_36] : memref<1x18x32x32xf32, #tpu.memory_space<vmem>>, vector<1x16x16x32xf32>
    %23 = vector.shape_cast %22 : vector<1x16x16x32xf32> to vector<256x32xf32>
    %24 = arith.truncf %23 : vector<256x32xf32> to vector<256x32xbf16>
    %c0_37 = arith.constant 0 : index
    %c0_38 = arith.constant 0 : index
    %c0_39 = arith.constant 0 : index
    %c0_40 = arith.constant 0 : index
    %25 = vector.load %arg4[%c0_37, %c0_38, %c0_39, %c0_40] : memref<3x3x32x64xbf16, #tpu.memory_space<vmem>>, vector<1x1x32x64xbf16>
    %26 = vector.shape_cast %25 : vector<1x1x32x64xbf16> to vector<32x64xbf16>
    %cst_41 = arith.constant dense<0.000000e+00> : vector<256x64xf32>
    %27 = tpu.matmul %24, %26, %cst_41 {dimension_numbers = #tpu.dot_dimension_numbers<[1], [0], [0], [1], [0, 0, 1, 1], [], []>} : vector<256x32xbf16>, vector<32x64xbf16>, vector<256x64xf32> -> vector<256x64xf32>
    %28 = vector.shape_cast %27 : vector<256x64xf32> to vector<1x16x16x64xf32>
    %c0_42 = arith.constant 0 : index
    %c0_43 = arith.constant 0 : index
    %c0_44 = arith.constant 0 : index
    %c0_45 = arith.constant 0 : index
    %29 = vector.load %arg15[%c0_42, %c0_43, %c0_44, %c0_45] : memref<1x16x16x64xf32, #tpu.memory_space<vmem>>, vector<1x16x16x64xf32>
    tpu.vector_store %arg15[%c0_42, %c0_43, %c0_44, %c0_45], %28 {strides = array<i32>} : memref<1x16x16x64xf32, #tpu.memory_space<vmem>>, vector<1x16x16x64xf32>,
    %c0_46 = arith.constant 0 : index
    %c0_47 = arith.constant 0 : index
    %c8_48 = arith.constant 8 : index
    %c0_49 = arith.constant 0 : index
    %30 = vector.load %arg14[%c0_46, %c0_47, %c8_48, %c0_49] : memref<1x18x32x32xf32, #tpu.memory_space<vmem>>, vector<1x16x16x32xf32>
    %31 = vector.shape_cast %30 : vector<1x16x16x32xf32> to vector<256x32xf32>
    %32 = arith.truncf %31 : vector<256x32xf32> to vector<256x32xbf16>
    %c0_50 = arith.constant 0 : index
    %c1_51 = arith.constant 1 : index
    %c0_52 = arith.constant 0 : index
    %c0_53 = arith.constant 0 : index
    %33 = vector.load %arg4[%c0_50, %c1_51, %c0_52, %c0_53] : memref<3x3x32x64xbf16, #tpu.memory_space<vmem>>, vector<1x1x32x64xbf16>
    %34 = vector.shape_cast %33 : vector<1x1x32x64xbf16> to vector<32x64xbf16>
    %cst_54 = arith.constant dense<0.000000e+00> : vector<256x64xf32>
    %35 = tpu.matmul %32, %34, %cst_54 {dimension_numbers = #tpu.dot_dimension_numbers<[1], [0], [0], [1], [0, 0, 1, 1], [], []>} : vector<256x32xbf16>, vector<32x64xbf16>, vector<256x64xf32> -> vector<256x64xf32>
    %36 = vector.shape_cast %35 : vector<256x64xf32> to vector<1x16x16x64xf32>
    %c0_55 = arith.constant 0 : index
    %c0_56 = arith.constant 0 : index
    %c0_57 = arith.constant 0 : index
    %c0_58 = arith.constant 0 : index
    %37 = vector.load %arg15[%c0_55, %c0_56, %c0_57, %c0_58] : memref<1x16x16x64xf32, #tpu.memory_space<vmem>>, vector<1x16x16x64xf32>
    %38 = arith.addf %37, %36 : vector<1x16x16x64xf32>
    %c0_59 = arith.constant 0 : index
    %c0_60 = arith.constant 0 : index
    %c0_61 = arith.constant 0 : index
    %c0_62 = arith.constant 0 : index
    %39 = vector.load %arg15[%c0_59, %c0_60, %c0_61, %c0_62] : memref<1x16x16x64xf32, #tpu.memory_space<vmem>>, vector<1x16x16x64xf32>
    tpu.vector_store %arg15[%c0_59, %c0_60, %c0_61, %c0_62], %38 {strides = array<i32>} : memref<1x16x16x64xf32, #tpu.memory_space<vmem>>, vector<1x16x16x64xf32>,
    %c0_63 = arith.constant 0 : index
    %c0_64 = arith.constant 0 : index
    %c9 = arith.constant 9 : index
    %c0_65 = arith.constant 0 : index
    %40 = vector.load %arg14[%c0_63, %c0_64, %c9, %c0_65] : memref<1x18x32x32xf32, #tpu.memory_space<vmem>>, vector<1x16x16x32xf32>
    %41 = vector.shape_cast %40 : vector<1x16x16x32xf32> to vector<256x32xf32>
    %42 = arith.truncf %41 : vector<256x32xf32> to vector<256x32xbf16>
    %c0_66 = arith.constant 0 : index
    %c2 = arith.constant 2 : index
    %c0_67 = arith.constant 0 : index
    %c0_68 = arith.constant 0 : index
    %43 = vector.load %arg4[%c0_66, %c2, %c0_67, %c0_68] : memref<3x3x32x64xbf16, #tpu.memory_space<vmem>>, vector<1x1x32x64xbf16>
    %44 = vector.shape_cast %43 : vector<1x1x32x64xbf16> to vector<32x64xbf16>
    %cst_69 = arith.constant dense<0.000000e+00> : vector<256x64xf32>
    %45 = tpu.matmul %42, %44, %cst_69 {dimension_numbers = #tpu.dot_dimension_numbers<[1], [0], [0], [1], [0, 0, 1, 1], [], []>} : vector<256x32xbf16>, vector<32x64xbf16>, vector<256x64xf32> -> vector<256x64xf32>
    %46 = vector.shape_cast %45 : vector<256x64xf32> to vector<1x16x16x64xf32>
    %c0_70 = arith.constant 0 : index
    %c0_71 = arith.constant 0 : index
    %c0_72 = arith.constant 0 : index
    %c0_73 = arith.constant 0 : index
    %47 = vector.load %arg15[%c0_70, %c0_71, %c0_72, %c0_73] : memref<1x16x16x64xf32, #tpu.memory_space<vmem>>, vector<1x16x16x64xf32>
    %48 = arith.addf %47, %46 : vector<1x16x16x64xf32>
    %c0_74 = arith.constant 0 : index
    %c0_75 = arith.constant 0 : index
    %c0_76 = arith.constant 0 : index
    %c0_77 = arith.constant 0 : index
    %49 = vector.load %arg15[%c0_74, %c0_75, %c0_76, %c0_77] : memref<1x16x16x64xf32, #tpu.memory_space<vmem>>, vector<1x16x16x64xf32>
    tpu.vector_store %arg15[%c0_74, %c0_75, %c0_76, %c0_77], %48 {strides = array<i32>} : memref<1x16x16x64xf32, #tpu.memory_space<vmem>>, vector<1x16x16x64xf32>,
    %c0_78 = arith.constant 0 : index
    %c1_79 = arith.constant 1 : index
    %c7_80 = arith.constant 7 : index
    %c0_81 = arith.constant 0 : index
    %50 = vector.load %arg14[%c0_78, %c1_79, %c7_80, %c0_81] : memref<1x18x32x32xf32, #tpu.memory_space<vmem>>, vector<1x16x16x32xf32>
    %51 = vector.shape_cast %50 : vector<1x16x16x32xf32> to vector<256x32xf32>
    %52 = arith.truncf %51 : vector<256x32xf32> to vector<256x32xbf16>
    %c1_82 = arith.constant 1 : index
    %c0_83 = arith.constant 0 : index
    %c0_84 = arith.constant 0 : index
    %c0_85 = arith.constant 0 : index
    %53 = vector.load %arg4[%c1_82, %c0_83, %c0_84, %c0_85] : memref<3x3x32x64xbf16, #tpu.memory_space<vmem>>, vector<1x1x32x64xbf16>
    %54 = vector.shape_cast %53 : vector<1x1x32x64xbf16> to vector<32x64xbf16>
    %cst_86 = arith.constant dense<0.000000e+00> : vector<256x64xf32>
    %55 = tpu.matmul %52, %54, %cst_86 {dimension_numbers = #tpu.dot_dimension_numbers<[1], [0], [0], [1], [0, 0, 1, 1], [], []>} : vector<256x32xbf16>, vector<32x64xbf16>, vector<256x64xf32> -> vector<256x64xf32>
    %56 = vector.shape_cast %55 : vector<256x64xf32> to vector<1x16x16x64xf32>
    %c0_87 = arith.constant 0 : index
    %c0_88 = arith.constant 0 : index
    %c0_89 = arith.constant 0 : index
    %c0_90 = arith.constant 0 : index
    %57 = vector.load %arg15[%c0_87, %c0_88, %c0_89, %c0_90] : memref<1x16x16x64xf32, #tpu.memory_space<vmem>>, vector<1x16x16x64xf32>
    %58 = arith.addf %57, %56 : vector<1x16x16x64xf32>
    %c0_91 = arith.constant 0 : index
    %c0_92 = arith.constant 0 : index
    %c0_93 = arith.constant 0 : index
    %c0_94 = arith.constant 0 : index
    %59 = vector.load %arg15[%c0_91, %c0_92, %c0_93, %c0_94] : memref<1x16x16x64xf32, #tpu.memory_space<vmem>>, vector<1x16x16x64xf32>
    tpu.vector_store %arg15[%c0_91, %c0_92, %c0_93, %c0_94], %58 {strides = array<i32>} : memref<1x16x16x64xf32, #tpu.memory_space<vmem>>, vector<1x16x16x64xf32>,
    %c0_95 = arith.constant 0 : index
    %c1_96 = arith.constant 1 : index
    %c8_97 = arith.constant 8 : index
    %c0_98 = arith.constant 0 : index
    %60 = vector.load %arg14[%c0_95, %c1_96, %c8_97, %c0_98] : memref<1x18x32x32xf32, #tpu.memory_space<vmem>>, vector<1x16x16x32xf32>
    %61 = vector.shape_cast %60 : vector<1x16x16x32xf32> to vector<256x32xf32>
    %62 = arith.truncf %61 : vector<256x32xf32> to vector<256x32xbf16>
    %c1_99 = arith.constant 1 : index
    %c1_100 = arith.constant 1 : index
    %c0_101 = arith.constant 0 : index
    %c0_102 = arith.constant 0 : index
    %63 = vector.load %arg4[%c1_99, %c1_100, %c0_101, %c0_102] : memref<3x3x32x64xbf16, #tpu.memory_space<vmem>>, vector<1x1x32x64xbf16>
    %64 = vector.shape_cast %63 : vector<1x1x32x64xbf16> to vector<32x64xbf16>
    %cst_103 = arith.constant dense<0.000000e+00> : vector<256x64xf32>
    %65 = tpu.matmul %62, %64, %cst_103 {dimension_numbers = #tpu.dot_dimension_numbers<[1], [0], [0], [1], [0, 0, 1, 1], [], []>} : vector<256x32xbf16>, vector<32x64xbf16>, vector<256x64xf32> -> vector<256x64xf32>
    %66 = vector.shape_cast %65 : vector<256x64xf32> to vector<1x16x16x64xf32>
    %c0_104 = arith.constant 0 : index
    %c0_105 = arith.constant 0 : index
    %c0_106 = arith.constant 0 : index
    %c0_107 = arith.constant 0 : index
    %67 = vector.load %arg15[%c0_104, %c0_105, %c0_106, %c0_107] : memref<1x16x16x64xf32, #tpu.memory_space<vmem>>, vector<1x16x16x64xf32>
    %68 = arith.addf %67, %66 : vector<1x16x16x64xf32>
    %c0_108 = arith.constant 0 : index
    %c0_109 = arith.constant 0 : index
    %c0_110 = arith.constant 0 : index
    %c0_111 = arith.constant 0 : index
    %69 = vector.load %arg15[%c0_108, %c0_109, %c0_110, %c0_111] : memref<1x16x16x64xf32, #tpu.memory_space<vmem>>, vector<1x16x16x64xf32>
    tpu.vector_store %arg15[%c0_108, %c0_109, %c0_110, %c0_111], %68 {strides = array<i32>} : memref<1x16x16x64xf32, #tpu.memory_space<vmem>>, vector<1x16x16x64xf32>,
    %c0_112 = arith.constant 0 : index
    %c1_113 = arith.constant 1 : index
    %c9_114 = arith.constant 9 : index
    %c0_115 = arith.constant 0 : index
    %70 = vector.load %arg14[%c0_112, %c1_113, %c9_114, %c0_115] : memref<1x18x32x32xf32, #tpu.memory_space<vmem>>, vector<1x16x16x32xf32>
    %71 = vector.shape_cast %70 : vector<1x16x16x32xf32> to vector<256x32xf32>
    %72 = arith.truncf %71 : vector<256x32xf32> to vector<256x32xbf16>
    %c1_116 = arith.constant 1 : index
    %c2_117 = arith.constant 2 : index
    %c0_118 = arith.constant 0 : index
    %c0_119 = arith.constant 0 : index
    %73 = vector.load %arg4[%c1_116, %c2_117, %c0_118, %c0_119] : memref<3x3x32x64xbf16, #tpu.memory_space<vmem>>, vector<1x1x32x64xbf16>
    %74 = vector.shape_cast %73 : vector<1x1x32x64xbf16> to vector<32x64xbf16>
    %cst_120 = arith.constant dense<0.000000e+00> : vector<256x64xf32>
    %75 = tpu.matmul %72, %74, %cst_120 {dimension_numbers = #tpu.dot_dimension_numbers<[1], [0], [0], [1], [0, 0, 1, 1], [], []>} : vector<256x32xbf16>, vector<32x64xbf16>, vector<256x64xf32> -> vector<256x64xf32>
    %76 = vector.shape_cast %75 : vector<256x64xf32> to vector<1x16x16x64xf32>
    %c0_121 = arith.constant 0 : index
    %c0_122 = arith.constant 0 : index
    %c0_123 = arith.constant 0 : index
    %c0_124 = arith.constant 0 : index
    %77 = vector.load %arg15[%c0_121, %c0_122, %c0_123, %c0_124] : memref<1x16x16x64xf32, #tpu.memory_space<vmem>>, vector<1x16x16x64xf32>
    %78 = arith.addf %77, %76 : vector<1x16x16x64xf32>
    %c0_125 = arith.constant 0 : index
    %c0_126 = arith.constant 0 : index
    %c0_127 = arith.constant 0 : index
    %c0_128 = arith.constant 0 : index
    %79 = vector.load %arg15[%c0_125, %c0_126, %c0_127, %c0_128] : memref<1x16x16x64xf32, #tpu.memory_space<vmem>>, vector<1x16x16x64xf32>
    tpu.vector_store %arg15[%c0_125, %c0_126, %c0_127, %c0_128], %78 {strides = array<i32>} : memref<1x16x16x64xf32, #tpu.memory_space<vmem>>, vector<1x16x16x64xf32>,
    %c0_129 = arith.constant 0 : index
    %c2_130 = arith.constant 2 : index
    %c7_131 = arith.constant 7 : index
    %c0_132 = arith.constant 0 : index
    %80 = vector.load %arg14[%c0_129, %c2_130, %c7_131, %c0_132] : memref<1x18x32x32xf32, #tpu.memory_space<vmem>>, vector<1x16x16x32xf32>
    %81 = vector.shape_cast %80 : vector<1x16x16x32xf32> to vector<256x32xf32>
    %82 = arith.truncf %81 : vector<256x32xf32> to vector<256x32xbf16>
    %c2_133 = arith.constant 2 : index
    %c0_134 = arith.constant 0 : index
    %c0_135 = arith.constant 0 : index
    %c0_136 = arith.constant 0 : index
    %83 = vector.load %arg4[%c2_133, %c0_134, %c0_135, %c0_136] : memref<3x3x32x64xbf16, #tpu.memory_space<vmem>>, vector<1x1x32x64xbf16>
    %84 = vector.shape_cast %83 : vector<1x1x32x64xbf16> to vector<32x64xbf16>
    %cst_137 = arith.constant dense<0.000000e+00> : vector<256x64xf32>
    %85 = tpu.matmul %82, %84, %cst_137 {dimension_numbers = #tpu.dot_dimension_numbers<[1], [0], [0], [1], [0, 0, 1, 1], [], []>} : vector<256x32xbf16>, vector<32x64xbf16>, vector<256x64xf32> -> vector<256x64xf32>
    %86 = vector.shape_cast %85 : vector<256x64xf32> to vector<1x16x16x64xf32>
    %c0_138 = arith.constant 0 : index
    %c0_139 = arith.constant 0 : index
    %c0_140 = arith.constant 0 : index
    %c0_141 = arith.constant 0 : index
    %87 = vector.load %arg15[%c0_138, %c0_139, %c0_140, %c0_141] : memref<1x16x16x64xf32, #tpu.memory_space<vmem>>, vector<1x16x16x64xf32>
    %88 = arith.addf %87, %86 : vector<1x16x16x64xf32>
    %c0_142 = arith.constant 0 : index
    %c0_143 = arith.constant 0 : index
    %c0_144 = arith.constant 0 : index
    %c0_145 = arith.constant 0 : index
    %89 = vector.load %arg15[%c0_142, %c0_143, %c0_144, %c0_145] : memref<1x16x16x64xf32, #tpu.memory_space<vmem>>, vector<1x16x16x64xf32>
    tpu.vector_store %arg15[%c0_142, %c0_143, %c0_144, %c0_145], %88 {strides = array<i32>} : memref<1x16x16x64xf32, #tpu.memory_space<vmem>>, vector<1x16x16x64xf32>,
    %c0_146 = arith.constant 0 : index
    %c2_147 = arith.constant 2 : index
    %c8_148 = arith.constant 8 : index
    %c0_149 = arith.constant 0 : index
    %90 = vector.load %arg14[%c0_146, %c2_147, %c8_148, %c0_149] : memref<1x18x32x32xf32, #tpu.memory_space<vmem>>, vector<1x16x16x32xf32>
    %91 = vector.shape_cast %90 : vector<1x16x16x32xf32> to vector<256x32xf32>
    %92 = arith.truncf %91 : vector<256x32xf32> to vector<256x32xbf16>
    %c2_150 = arith.constant 2 : index
    %c1_151 = arith.constant 1 : index
    %c0_152 = arith.constant 0 : index
    %c0_153 = arith.constant 0 : index
    %93 = vector.load %arg4[%c2_150, %c1_151, %c0_152, %c0_153] : memref<3x3x32x64xbf16, #tpu.memory_space<vmem>>, vector<1x1x32x64xbf16>
    %94 = vector.shape_cast %93 : vector<1x1x32x64xbf16> to vector<32x64xbf16>
    %cst_154 = arith.constant dense<0.000000e+00> : vector<256x64xf32>
    %95 = tpu.matmul %92, %94, %cst_154 {dimension_numbers = #tpu.dot_dimension_numbers<[1], [0], [0], [1], [0, 0, 1, 1], [], []>} : vector<256x32xbf16>, vector<32x64xbf16>, vector<256x64xf32> -> vector<256x64xf32>
    %96 = vector.shape_cast %95 : vector<256x64xf32> to vector<1x16x16x64xf32>
    %c0_155 = arith.constant 0 : index
    %c0_156 = arith.constant 0 : index
    %c0_157 = arith.constant 0 : index
    %c0_158 = arith.constant 0 : index
    %97 = vector.load %arg15[%c0_155, %c0_156, %c0_157, %c0_158] : memref<1x16x16x64xf32, #tpu.memory_space<vmem>>, vector<1x16x16x64xf32>
    %98 = arith.addf %97, %96 : vector<1x16x16x64xf32>
    %c0_159 = arith.constant 0 : index
    %c0_160 = arith.constant 0 : index
    %c0_161 = arith.constant 0 : index
    %c0_162 = arith.constant 0 : index
    %99 = vector.load %arg15[%c0_159, %c0_160, %c0_161, %c0_162] : memref<1x16x16x64xf32, #tpu.memory_space<vmem>>, vector<1x16x16x64xf32>
    tpu.vector_store %arg15[%c0_159, %c0_160, %c0_161, %c0_162], %98 {strides = array<i32>} : memref<1x16x16x64xf32, #tpu.memory_space<vmem>>, vector<1x16x16x64xf32>,
    %c0_163 = arith.constant 0 : index
    %c2_164 = arith.constant 2 : index
    %c9_165 = arith.constant 9 : index
    %c0_166 = arith.constant 0 : index
    %100 = vector.load %arg14[%c0_163, %c2_164, %c9_165, %c0_166] : memref<1x18x32x32xf32, #tpu.memory_space<vmem>>, vector<1x16x16x32xf32>
    %101 = vector.shape_cast %100 : vector<1x16x16x32xf32> to vector<256x32xf32>
    %102 = arith.truncf %101 : vector<256x32xf32> to vector<256x32xbf16>
    %c2_167 = arith.constant 2 : index
    %c2_168 = arith.constant 2 : index
    %c0_169 = arith.constant 0 : index
    %c0_170 = arith.constant 0 : index
    %103 = vector.load %arg4[%c2_167, %c2_168, %c0_169, %c0_170] : memref<3x3x32x64xbf16, #tpu.memory_space<vmem>>, vector<1x1x32x64xbf16>
    %104 = vector.shape_cast %103 : vector<1x1x32x64xbf16> to vector<32x64xbf16>
    %cst_171 = arith.constant dense<0.000000e+00> : vector<256x64xf32>
    %105 = tpu.matmul %102, %104, %cst_171 {dimension_numbers = #tpu.dot_dimension_numbers<[1], [0], [0], [1], [0, 0, 1, 1], [], []>} : vector<256x32xbf16>, vector<32x64xbf16>, vector<256x64xf32> -> vector<256x64xf32>
    %106 = vector.shape_cast %105 : vector<256x64xf32> to vector<1x16x16x64xf32>
    %c0_172 = arith.constant 0 : index
    %c0_173 = arith.constant 0 : index
    %c0_174 = arith.constant 0 : index
    %c0_175 = arith.constant 0 : index
    %107 = vector.load %arg15[%c0_172, %c0_173, %c0_174, %c0_175] : memref<1x16x16x64xf32, #tpu.memory_space<vmem>>, vector<1x16x16x64xf32>
    %108 = arith.addf %107, %106 : vector<1x16x16x64xf32>
    %c0_176 = arith.constant 0 : index
    %c0_177 = arith.constant 0 : index
    %c0_178 = arith.constant 0 : index
    %c0_179 = arith.constant 0 : index
    %109 = vector.load %arg15[%c0_176, %c0_177, %c0_178, %c0_179] : memref<1x16x16x64xf32, #tpu.memory_space<vmem>>, vector<1x16x16x64xf32>
    tpu.vector_store %arg15[%c0_176, %c0_177, %c0_178, %c0_179], %108 {strides = array<i32>} : memref<1x16x16x64xf32, #tpu.memory_space<vmem>>, vector<1x16x16x64xf32>,
    %c0_180 = arith.constant 0 : index
    %c0_181 = arith.constant 0 : index
    %c0_182 = arith.constant 0 : index
    %c0_183 = arith.constant 0 : index
    %110 = tpu.strided_load %arg15[%c0_180, %c0_181, %c0_182, %c0_183] {strides = array<i32: 1, 2, 2, 1>} : memref<1x16x16x64xf32, #tpu.memory_space<vmem>>, vector<1x8x8x64xf32>
    %c0_184 = arith.constant 0 : index
    %c0_185 = arith.constant 0 : index
    %c1_186 = arith.constant 1 : index
    %c0_187 = arith.constant 0 : index
    %111 = tpu.strided_load %arg15[%c0_184, %c0_185, %c1_186, %c0_187] {strides = array<i32: 1, 2, 2, 1>} : memref<1x16x16x64xf32, #tpu.memory_space<vmem>>, vector<1x8x8x64xf32>
    %c0_188 = arith.constant 0 : index
    %c1_189 = arith.constant 1 : index
    %c0_190 = arith.constant 0 : index
    %c0_191 = arith.constant 0 : index
    %112 = tpu.strided_load %arg15[%c0_188, %c1_189, %c0_190, %c0_191] {strides = array<i32: 1, 2, 2, 1>} : memref<1x16x16x64xf32, #tpu.memory_space<vmem>>, vector<1x8x8x64xf32>
    %c0_192 = arith.constant 0 : index
    %c1_193 = arith.constant 1 : index
    %c1_194 = arith.constant 1 : index
    %c0_195 = arith.constant 0 : index
    %113 = tpu.strided_load %arg15[%c0_192, %c1_193, %c1_194, %c0_195] {strides = array<i32: 1, 2, 2, 1>} : memref<1x16x16x64xf32, #tpu.memory_space<vmem>>, vector<1x8x8x64xf32>
    %114 = arith.maximumf %110, %111 : vector<1x8x8x64xf32>
    %115 = arith.maximumf %112, %113 : vector<1x8x8x64xf32>
    %116 = arith.maximumf %114, %115 : vector<1x8x8x64xf32>
    %c0_196 = arith.constant 0 : index
    %c0_197 = arith.constant 0 : index
    %117 = vector.load %arg5[%c0_196, %c0_197] : memref<1x64xf32, #tpu.memory_space<vmem>>, vector<1x64xf32>
    %118 = vector.shape_cast %117 : vector<1x64xf32> to vector<1x1x1x64xf32>
    %119 = vector.broadcast %118 : vector<1x1x1x64xf32> to vector<1x8x8x64xf32>
    %120 = arith.addf %116, %119 : vector<1x8x8x64xf32>
    %cst_198 = arith.constant 0.000000e+00 : f32
    %121 = vector.broadcast %cst_198 : f32 to vector<1x8x8x64xf32>
    %122 = arith.maximumf %120, %121 : vector<1x8x8x64xf32>
    %cst_199 = arith.constant 0.000000e+00 : f32
    %123 = vector.broadcast %cst_199 : f32 to vector<1x10x24x64xf32>
    %c0_200 = arith.constant 0 : index
    %c0_201 = arith.constant 0 : index
    %c0_202 = arith.constant 0 : index
    %c0_203 = arith.constant 0 : index
    %124 = vector.load %arg16[%c0_200, %c0_201, %c0_202, %c0_203] : memref<1x10x24x64xf32, #tpu.memory_space<vmem>>, vector<1x10x24x64xf32>
    tpu.vector_store %arg16[%c0_200, %c0_201, %c0_202, %c0_203], %123 {strides = array<i32>} : memref<1x10x24x64xf32, #tpu.memory_space<vmem>>, vector<1x10x24x64xf32>,
    %c0_204 = arith.constant 0 : index
    %c1_205 = arith.constant 1 : index
    %c8_206 = arith.constant 8 : index
    %c0_207 = arith.constant 0 : index
    %125 = vector.load %arg16[%c0_204, %c1_205, %c8_206, %c0_207] : memref<1x10x24x64xf32, #tpu.memory_space<vmem>>, vector<1x8x8x64xf32>
    tpu.vector_store %arg16[%c0_204, %c1_205, %c8_206, %c0_207], %122 {strides = array<i32>} : memref<1x10x24x64xf32, #tpu.memory_space<vmem>>, vector<1x8x8x64xf32>,
    %c0_208 = arith.constant 0 : index
    %c0_209 = arith.constant 0 : index
    %c7_210 = arith.constant 7 : index
    %c0_211 = arith.constant 0 : index
    %126 = vector.load %arg16[%c0_208, %c0_209, %c7_210, %c0_211] : memref<1x10x24x64xf32, #tpu.memory_space<vmem>>, vector<1x8x8x64xf32>
    %127 = vector.shape_cast %126 : vector<1x8x8x64xf32> to vector<64x64xf32>
    %128 = arith.truncf %127 : vector<64x64xf32> to vector<64x64xbf16>
    %c0_212 = arith.constant 0 : index
    %c0_213 = arith.constant 0 : index
    %c0_214 = arith.constant 0 : index
    %c0_215 = arith.constant 0 : index
    %129 = vector.load %arg6[%c0_212, %c0_213, %c0_214, %c0_215] : memref<3x3x64x128xbf16, #tpu.memory_space<vmem>>, vector<1x1x64x128xbf16>
    %130 = vector.shape_cast %129 : vector<1x1x64x128xbf16> to vector<64x128xbf16>
    %cst_216 = arith.constant dense<0.000000e+00> : vector<64x128xf32>
    %131 = tpu.matmul %128, %130, %cst_216 {dimension_numbers = #tpu.dot_dimension_numbers<[1], [0], [0], [1], [0, 0, 1, 1], [], []>} : vector<64x64xbf16>, vector<64x128xbf16>, vector<64x128xf32> -> vector<64x128xf32>
    %132 = vector.shape_cast %131 : vector<64x128xf32> to vector<1x8x8x128xf32>
    %c0_217 = arith.constant 0 : index
    %c0_218 = arith.constant 0 : index
    %c0_219 = arith.constant 0 : index
    %c0_220 = arith.constant 0 : index
    %133 = vector.load %arg17[%c0_217, %c0_218, %c0_219, %c0_220] : memref<1x8x8x128xf32, #tpu.memory_space<vmem>>, vector<1x8x8x128xf32>
    tpu.vector_store %arg17[%c0_217, %c0_218, %c0_219, %c0_220], %132 {strides = array<i32>} : memref<1x8x8x128xf32, #tpu.memory_space<vmem>>, vector<1x8x8x128xf32>,
    %c0_221 = arith.constant 0 : index
    %c0_222 = arith.constant 0 : index
    %c8_223 = arith.constant 8 : index
    %c0_224 = arith.constant 0 : index
    %134 = vector.load %arg16[%c0_221, %c0_222, %c8_223, %c0_224] : memref<1x10x24x64xf32, #tpu.memory_space<vmem>>, vector<1x8x8x64xf32>
    %135 = vector.shape_cast %134 : vector<1x8x8x64xf32> to vector<64x64xf32>
    %136 = arith.truncf %135 : vector<64x64xf32> to vector<64x64xbf16>
    %c0_225 = arith.constant 0 : index
    %c1_226 = arith.constant 1 : index
    %c0_227 = arith.constant 0 : index
    %c0_228 = arith.constant 0 : index
    %137 = vector.load %arg6[%c0_225, %c1_226, %c0_227, %c0_228] : memref<3x3x64x128xbf16, #tpu.memory_space<vmem>>, vector<1x1x64x128xbf16>
    %138 = vector.shape_cast %137 : vector<1x1x64x128xbf16> to vector<64x128xbf16>
    %cst_229 = arith.constant dense<0.000000e+00> : vector<64x128xf32>
    %139 = tpu.matmul %136, %138, %cst_229 {dimension_numbers = #tpu.dot_dimension_numbers<[1], [0], [0], [1], [0, 0, 1, 1], [], []>} : vector<64x64xbf16>, vector<64x128xbf16>, vector<64x128xf32> -> vector<64x128xf32>
    %140 = vector.shape_cast %139 : vector<64x128xf32> to vector<1x8x8x128xf32>
    %c0_230 = arith.constant 0 : index
    %c0_231 = arith.constant 0 : index
    %c0_232 = arith.constant 0 : index
    %c0_233 = arith.constant 0 : index
    %141 = vector.load %arg17[%c0_230, %c0_231, %c0_232, %c0_233] : memref<1x8x8x128xf32, #tpu.memory_space<vmem>>, vector<1x8x8x128xf32>
    %142 = arith.addf %141, %140 : vector<1x8x8x128xf32>
    %c0_234 = arith.constant 0 : index
    %c0_235 = arith.constant 0 : index
    %c0_236 = arith.constant 0 : index
    %c0_237 = arith.constant 0 : index
    %143 = vector.load %arg17[%c0_234, %c0_235, %c0_236, %c0_237] : memref<1x8x8x128xf32, #tpu.memory_space<vmem>>, vector<1x8x8x128xf32>
    tpu.vector_store %arg17[%c0_234, %c0_235, %c0_236, %c0_237], %142 {strides = array<i32>} : memref<1x8x8x128xf32, #tpu.memory_space<vmem>>, vector<1x8x8x128xf32>,
    %c0_238 = arith.constant 0 : index
    %c0_239 = arith.constant 0 : index
    %c9_240 = arith.constant 9 : index
    %c0_241 = arith.constant 0 : index
    %144 = vector.load %arg16[%c0_238, %c0_239, %c9_240, %c0_241] : memref<1x10x24x64xf32, #tpu.memory_space<vmem>>, vector<1x8x8x64xf32>
    %145 = vector.shape_cast %144 : vector<1x8x8x64xf32> to vector<64x64xf32>
    %146 = arith.truncf %145 : vector<64x64xf32> to vector<64x64xbf16>
    %c0_242 = arith.constant 0 : index
    %c2_243 = arith.constant 2 : index
    %c0_244 = arith.constant 0 : index
    %c0_245 = arith.constant 0 : index
    %147 = vector.load %arg6[%c0_242, %c2_243, %c0_244, %c0_245] : memref<3x3x64x128xbf16, #tpu.memory_space<vmem>>, vector<1x1x64x128xbf16>
    %148 = vector.shape_cast %147 : vector<1x1x64x128xbf16> to vector<64x128xbf16>
    %cst_246 = arith.constant dense<0.000000e+00> : vector<64x128xf32>
    %149 = tpu.matmul %146, %148, %cst_246 {dimension_numbers = #tpu.dot_dimension_numbers<[1], [0], [0], [1], [0, 0, 1, 1], [], []>} : vector<64x64xbf16>, vector<64x128xbf16>, vector<64x128xf32> -> vector<64x128xf32>
    %150 = vector.shape_cast %149 : vector<64x128xf32> to vector<1x8x8x128xf32>
    %c0_247 = arith.constant 0 : index
    %c0_248 = arith.constant 0 : index
    %c0_249 = arith.constant 0 : index
    %c0_250 = arith.constant 0 : index
    %151 = vector.load %arg17[%c0_247, %c0_248, %c0_249, %c0_250] : memref<1x8x8x128xf32, #tpu.memory_space<vmem>>, vector<1x8x8x128xf32>
    %152 = arith.addf %151, %150 : vector<1x8x8x128xf32>
    %c0_251 = arith.constant 0 : index
    %c0_252 = arith.constant 0 : index
    %c0_253 = arith.constant 0 : index
    %c0_254 = arith.constant 0 : index
    %153 = vector.load %arg17[%c0_251, %c0_252, %c0_253, %c0_254] : memref<1x8x8x128xf32, #tpu.memory_space<vmem>>, vector<1x8x8x128xf32>
    tpu.vector_store %arg17[%c0_251, %c0_252, %c0_253, %c0_254], %152 {strides = array<i32>} : memref<1x8x8x128xf32, #tpu.memory_space<vmem>>, vector<1x8x8x128xf32>,
    %c0_255 = arith.constant 0 : index
    %c1_256 = arith.constant 1 : index
    %c7_257 = arith.constant 7 : index
    %c0_258 = arith.constant 0 : index
    %154 = vector.load %arg16[%c0_255, %c1_256, %c7_257, %c0_258] : memref<1x10x24x64xf32, #tpu.memory_space<vmem>>, vector<1x8x8x64xf32>
    %155 = vector.shape_cast %154 : vector<1x8x8x64xf32> to vector<64x64xf32>
    %156 = arith.truncf %155 : vector<64x64xf32> to vector<64x64xbf16>
    %c1_259 = arith.constant 1 : index
    %c0_260 = arith.constant 0 : index
    %c0_261 = arith.constant 0 : index
    %c0_262 = arith.constant 0 : index
    %157 = vector.load %arg6[%c1_259, %c0_260, %c0_261, %c0_262] : memref<3x3x64x128xbf16, #tpu.memory_space<vmem>>, vector<1x1x64x128xbf16>
    %158 = vector.shape_cast %157 : vector<1x1x64x128xbf16> to vector<64x128xbf16>
    %cst_263 = arith.constant dense<0.000000e+00> : vector<64x128xf32>
    %159 = tpu.matmul %156, %158, %cst_263 {dimension_numbers = #tpu.dot_dimension_numbers<[1], [0], [0], [1], [0, 0, 1, 1], [], []>} : vector<64x64xbf16>, vector<64x128xbf16>, vector<64x128xf32> -> vector<64x128xf32>
    %160 = vector.shape_cast %159 : vector<64x128xf32> to vector<1x8x8x128xf32>
    %c0_264 = arith.constant 0 : index
    %c0_265 = arith.constant 0 : index
    %c0_266 = arith.constant 0 : index
    %c0_267 = arith.constant 0 : index
    %161 = vector.load %arg17[%c0_264, %c0_265, %c0_266, %c0_267] : memref<1x8x8x128xf32, #tpu.memory_space<vmem>>, vector<1x8x8x128xf32>
    %162 = arith.addf %161, %160 : vector<1x8x8x128xf32>
    %c0_268 = arith.constant 0 : index
    %c0_269 = arith.constant 0 : index
    %c0_270 = arith.constant 0 : index
    %c0_271 = arith.constant 0 : index
    %163 = vector.load %arg17[%c0_268, %c0_269, %c0_270, %c0_271] : memref<1x8x8x128xf32, #tpu.memory_space<vmem>>, vector<1x8x8x128xf32>
    tpu.vector_store %arg17[%c0_268, %c0_269, %c0_270, %c0_271], %162 {strides = array<i32>} : memref<1x8x8x128xf32, #tpu.memory_space<vmem>>, vector<1x8x8x128xf32>,
    %c0_272 = arith.constant 0 : index
    %c1_273 = arith.constant 1 : index
    %c8_274 = arith.constant 8 : index
    %c0_275 = arith.constant 0 : index
    %164 = vector.load %arg16[%c0_272, %c1_273, %c8_274, %c0_275] : memref<1x10x24x64xf32, #tpu.memory_space<vmem>>, vector<1x8x8x64xf32>
    %165 = vector.shape_cast %164 : vector<1x8x8x64xf32> to vector<64x64xf32>
    %166 = arith.truncf %165 : vector<64x64xf32> to vector<64x64xbf16>
    %c1_276 = arith.constant 1 : index
    %c1_277 = arith.constant 1 : index
    %c0_278 = arith.constant 0 : index
    %c0_279 = arith.constant 0 : index
    %167 = vector.load %arg6[%c1_276, %c1_277, %c0_278, %c0_279] : memref<3x3x64x128xbf16, #tpu.memory_space<vmem>>, vector<1x1x64x128xbf16>
    %168 = vector.shape_cast %167 : vector<1x1x64x128xbf16> to vector<64x128xbf16>
    %cst_280 = arith.constant dense<0.000000e+00> : vector<64x128xf32>
    %169 = tpu.matmul %166, %168, %cst_280 {dimension_numbers = #tpu.dot_dimension_numbers<[1], [0], [0], [1], [0, 0, 1, 1], [], []>} : vector<64x64xbf16>, vector<64x128xbf16>, vector<64x128xf32> -> vector<64x128xf32>
    %170 = vector.shape_cast %169 : vector<64x128xf32> to vector<1x8x8x128xf32>
    %c0_281 = arith.constant 0 : index
    %c0_282 = arith.constant 0 : index
    %c0_283 = arith.constant 0 : index
    %c0_284 = arith.constant 0 : index
    %171 = vector.load %arg17[%c0_281, %c0_282, %c0_283, %c0_284] : memref<1x8x8x128xf32, #tpu.memory_space<vmem>>, vector<1x8x8x128xf32>
    %172 = arith.addf %171, %170 : vector<1x8x8x128xf32>
    %c0_285 = arith.constant 0 : index
    %c0_286 = arith.constant 0 : index
    %c0_287 = arith.constant 0 : index
    %c0_288 = arith.constant 0 : index
    %173 = vector.load %arg17[%c0_285, %c0_286, %c0_287, %c0_288] : memref<1x8x8x128xf32, #tpu.memory_space<vmem>>, vector<1x8x8x128xf32>
    tpu.vector_store %arg17[%c0_285, %c0_286, %c0_287, %c0_288], %172 {strides = array<i32>} : memref<1x8x8x128xf32, #tpu.memory_space<vmem>>, vector<1x8x8x128xf32>,
    %c0_289 = arith.constant 0 : index
    %c1_290 = arith.constant 1 : index
    %c9_291 = arith.constant 9 : index
    %c0_292 = arith.constant 0 : index
    %174 = vector.load %arg16[%c0_289, %c1_290, %c9_291, %c0_292] : memref<1x10x24x64xf32, #tpu.memory_space<vmem>>, vector<1x8x8x64xf32>
    %175 = vector.shape_cast %174 : vector<1x8x8x64xf32> to vector<64x64xf32>
    %176 = arith.truncf %175 : vector<64x64xf32> to vector<64x64xbf16>
    %c1_293 = arith.constant 1 : index
    %c2_294 = arith.constant 2 : index
    %c0_295 = arith.constant 0 : index
    %c0_296 = arith.constant 0 : index
    %177 = vector.load %arg6[%c1_293, %c2_294, %c0_295, %c0_296] : memref<3x3x64x128xbf16, #tpu.memory_space<vmem>>, vector<1x1x64x128xbf16>
    %178 = vector.shape_cast %177 : vector<1x1x64x128xbf16> to vector<64x128xbf16>
    %cst_297 = arith.constant dense<0.000000e+00> : vector<64x128xf32>
    %179 = tpu.matmul %176, %178, %cst_297 {dimension_numbers = #tpu.dot_dimension_numbers<[1], [0], [0], [1], [0, 0, 1, 1], [], []>} : vector<64x64xbf16>, vector<64x128xbf16>, vector<64x128xf32> -> vector<64x128xf32>
    %180 = vector.shape_cast %179 : vector<64x128xf32> to vector<1x8x8x128xf32>
    %c0_298 = arith.constant 0 : index
    %c0_299 = arith.constant 0 : index
    %c0_300 = arith.constant 0 : index
    %c0_301 = arith.constant 0 : index
    %181 = vector.load %arg17[%c0_298, %c0_299, %c0_300, %c0_301] : memref<1x8x8x128xf32, #tpu.memory_space<vmem>>, vector<1x8x8x128xf32>
    %182 = arith.addf %181, %180 : vector<1x8x8x128xf32>
    %c0_302 = arith.constant 0 : index
    %c0_303 = arith.constant 0 : index
    %c0_304 = arith.constant 0 : index
    %c0_305 = arith.constant 0 : index
    %183 = vector.load %arg17[%c0_302, %c0_303, %c0_304, %c0_305] : memref<1x8x8x128xf32, #tpu.memory_space<vmem>>, vector<1x8x8x128xf32>
    tpu.vector_store %arg17[%c0_302, %c0_303, %c0_304, %c0_305], %182 {strides = array<i32>} : memref<1x8x8x128xf32, #tpu.memory_space<vmem>>, vector<1x8x8x128xf32>,
    %c0_306 = arith.constant 0 : index
    %c2_307 = arith.constant 2 : index
    %c7_308 = arith.constant 7 : index
    %c0_309 = arith.constant 0 : index
    %184 = vector.load %arg16[%c0_306, %c2_307, %c7_308, %c0_309] : memref<1x10x24x64xf32, #tpu.memory_space<vmem>>, vector<1x8x8x64xf32>
    %185 = vector.shape_cast %184 : vector<1x8x8x64xf32> to vector<64x64xf32>
    %186 = arith.truncf %185 : vector<64x64xf32> to vector<64x64xbf16>
    %c2_310 = arith.constant 2 : index
    %c0_311 = arith.constant 0 : index
    %c0_312 = arith.constant 0 : index
    %c0_313 = arith.constant 0 : index
    %187 = vector.load %arg6[%c2_310, %c0_311, %c0_312, %c0_313] : memref<3x3x64x128xbf16, #tpu.memory_space<vmem>>, vector<1x1x64x128xbf16>
    %188 = vector.shape_cast %187 : vector<1x1x64x128xbf16> to vector<64x128xbf16>
    %cst_314 = arith.constant dense<0.000000e+00> : vector<64x128xf32>
    %189 = tpu.matmul %186, %188, %cst_314 {dimension_numbers = #tpu.dot_dimension_numbers<[1], [0], [0], [1], [0, 0, 1, 1], [], []>} : vector<64x64xbf16>, vector<64x128xbf16>, vector<64x128xf32> -> vector<64x128xf32>
    %190 = vector.shape_cast %189 : vector<64x128xf32> to vector<1x8x8x128xf32>
    %c0_315 = arith.constant 0 : index
    %c0_316 = arith.constant 0 : index
    %c0_317 = arith.constant 0 : index
    %c0_318 = arith.constant 0 : index
    %191 = vector.load %arg17[%c0_315, %c0_316, %c0_317, %c0_318] : memref<1x8x8x128xf32, #tpu.memory_space<vmem>>, vector<1x8x8x128xf32>
    %192 = arith.addf %191, %190 : vector<1x8x8x128xf32>
    %c0_319 = arith.constant 0 : index
    %c0_320 = arith.constant 0 : index
    %c0_321 = arith.constant 0 : index
    %c0_322 = arith.constant 0 : index
    %193 = vector.load %arg17[%c0_319, %c0_320, %c0_321, %c0_322] : memref<1x8x8x128xf32, #tpu.memory_space<vmem>>, vector<1x8x8x128xf32>
    tpu.vector_store %arg17[%c0_319, %c0_320, %c0_321, %c0_322], %192 {strides = array<i32>} : memref<1x8x8x128xf32, #tpu.memory_space<vmem>>, vector<1x8x8x128xf32>,
    %c0_323 = arith.constant 0 : index
    %c2_324 = arith.constant 2 : index
    %c8_325 = arith.constant 8 : index
    %c0_326 = arith.constant 0 : index
    %194 = vector.load %arg16[%c0_323, %c2_324, %c8_325, %c0_326] : memref<1x10x24x64xf32, #tpu.memory_space<vmem>>, vector<1x8x8x64xf32>
    %195 = vector.shape_cast %194 : vector<1x8x8x64xf32> to vector<64x64xf32>
    %196 = arith.truncf %195 : vector<64x64xf32> to vector<64x64xbf16>
    %c2_327 = arith.constant 2 : index
    %c1_328 = arith.constant 1 : index
    %c0_329 = arith.constant 0 : index
    %c0_330 = arith.constant 0 : index
    %197 = vector.load %arg6[%c2_327, %c1_328, %c0_329, %c0_330] : memref<3x3x64x128xbf16, #tpu.memory_space<vmem>>, vector<1x1x64x128xbf16>
    %198 = vector.shape_cast %197 : vector<1x1x64x128xbf16> to vector<64x128xbf16>
    %cst_331 = arith.constant dense<0.000000e+00> : vector<64x128xf32>
    %199 = tpu.matmul %196, %198, %cst_331 {dimension_numbers = #tpu.dot_dimension_numbers<[1], [0], [0], [1], [0, 0, 1, 1], [], []>} : vector<64x64xbf16>, vector<64x128xbf16>, vector<64x128xf32> -> vector<64x128xf32>
    %200 = vector.shape_cast %199 : vector<64x128xf32> to vector<1x8x8x128xf32>
    %c0_332 = arith.constant 0 : index
    %c0_333 = arith.constant 0 : index
    %c0_334 = arith.constant 0 : index
    %c0_335 = arith.constant 0 : index
    %201 = vector.load %arg17[%c0_332, %c0_333, %c0_334, %c0_335] : memref<1x8x8x128xf32, #tpu.memory_space<vmem>>, vector<1x8x8x128xf32>
    %202 = arith.addf %201, %200 : vector<1x8x8x128xf32>
    %c0_336 = arith.constant 0 : index
    %c0_337 = arith.constant 0 : index
    %c0_338 = arith.constant 0 : index
    %c0_339 = arith.constant 0 : index
    %203 = vector.load %arg17[%c0_336, %c0_337, %c0_338, %c0_339] : memref<1x8x8x128xf32, #tpu.memory_space<vmem>>, vector<1x8x8x128xf32>
    tpu.vector_store %arg17[%c0_336, %c0_337, %c0_338, %c0_339], %202 {strides = array<i32>} : memref<1x8x8x128xf32, #tpu.memory_space<vmem>>, vector<1x8x8x128xf32>,
    %c0_340 = arith.constant 0 : index
    %c2_341 = arith.constant 2 : index
    %c9_342 = arith.constant 9 : index
    %c0_343 = arith.constant 0 : index
    %204 = vector.load %arg16[%c0_340, %c2_341, %c9_342, %c0_343] : memref<1x10x24x64xf32, #tpu.memory_space<vmem>>, vector<1x8x8x64xf32>
    %205 = vector.shape_cast %204 : vector<1x8x8x64xf32> to vector<64x64xf32>
    %206 = arith.truncf %205 : vector<64x64xf32> to vector<64x64xbf16>
    %c2_344 = arith.constant 2 : index
    %c2_345 = arith.constant 2 : index
    %c0_346 = arith.constant 0 : index
    %c0_347 = arith.constant 0 : index
    %207 = vector.load %arg6[%c2_344, %c2_345, %c0_346, %c0_347] : memref<3x3x64x128xbf16, #tpu.memory_space<vmem>>, vector<1x1x64x128xbf16>
    %208 = vector.shape_cast %207 : vector<1x1x64x128xbf16> to vector<64x128xbf16>
    %cst_348 = arith.constant dense<0.000000e+00> : vector<64x128xf32>
    %209 = tpu.matmul %206, %208, %cst_348 {dimension_numbers = #tpu.dot_dimension_numbers<[1], [0], [0], [1], [0, 0, 1, 1], [], []>} : vector<64x64xbf16>, vector<64x128xbf16>, vector<64x128xf32> -> vector<64x128xf32>
    %210 = vector.shape_cast %209 : vector<64x128xf32> to vector<1x8x8x128xf32>
    %c0_349 = arith.constant 0 : index
    %c0_350 = arith.constant 0 : index
    %c0_351 = arith.constant 0 : index
    %c0_352 = arith.constant 0 : index
    %211 = vector.load %arg17[%c0_349, %c0_350, %c0_351, %c0_352] : memref<1x8x8x128xf32, #tpu.memory_space<vmem>>, vector<1x8x8x128xf32>
    %212 = arith.addf %211, %210 : vector<1x8x8x128xf32>
    %c0_353 = arith.constant 0 : index
    %c0_354 = arith.constant 0 : index
    %c0_355 = arith.constant 0 : index
    %c0_356 = arith.constant 0 : index
    %213 = vector.load %arg17[%c0_353, %c0_354, %c0_355, %c0_356] : memref<1x8x8x128xf32, #tpu.memory_space<vmem>>, vector<1x8x8x128xf32>
    tpu.vector_store %arg17[%c0_353, %c0_354, %c0_355, %c0_356], %212 {strides = array<i32>} : memref<1x8x8x128xf32, #tpu.memory_space<vmem>>, vector<1x8x8x128xf32>,
    %c0_357 = arith.constant 0 : index
    %c0_358 = arith.constant 0 : index
    %c0_359 = arith.constant 0 : index
    %c0_360 = arith.constant 0 : index
    %214 = tpu.strided_load %arg17[%c0_357, %c0_358, %c0_359, %c0_360] {strides = array<i32: 1, 2, 2, 1>} : memref<1x8x8x128xf32, #tpu.memory_space<vmem>>, vector<1x4x4x128xf32>
    %c0_361 = arith.constant 0 : index
    %c0_362 = arith.constant 0 : index
    %c1_363 = arith.constant 1 : index
    %c0_364 = arith.constant 0 : index
    %215 = tpu.strided_load %arg17[%c0_361, %c0_362, %c1_363, %c0_364] {strides = array<i32: 1, 2, 2, 1>} : memref<1x8x8x128xf32, #tpu.memory_space<vmem>>, vector<1x4x4x128xf32>
    %c0_365 = arith.constant 0 : index
    %c1_366 = arith.constant 1 : index
    %c0_367 = arith.constant 0 : index
    %c0_368 = arith.constant 0 : index
    %216 = tpu.strided_load %arg17[%c0_365, %c1_366, %c0_367, %c0_368] {strides = array<i32: 1, 2, 2, 1>} : memref<1x8x8x128xf32, #tpu.memory_space<vmem>>, vector<1x4x4x128xf32>
    %c0_369 = arith.constant 0 : index
    %c1_370 = arith.constant 1 : index
    %c1_371 = arith.constant 1 : index
    %c0_372 = arith.constant 0 : index
    %217 = tpu.strided_load %arg17[%c0_369, %c1_370, %c1_371, %c0_372] {strides = array<i32: 1, 2, 2, 1>} : memref<1x8x8x128xf32, #tpu.memory_space<vmem>>, vector<1x4x4x128xf32>
    %218 = arith.maximumf %214, %215 : vector<1x4x4x128xf32>
    %219 = arith.maximumf %216, %217 : vector<1x4x4x128xf32>
    %220 = arith.maximumf %218, %219 : vector<1x4x4x128xf32>
    %c0_373 = arith.constant 0 : index
    %c0_374 = arith.constant 0 : index
    %221 = vector.load %arg7[%c0_373, %c0_374] : memref<1x128xf32, #tpu.memory_space<vmem>>, vector<1x128xf32>
    %222 = vector.shape_cast %221 : vector<1x128xf32> to vector<1x1x1x128xf32>
    %223 = vector.broadcast %222 : vector<1x1x1x128xf32> to vector<1x4x4x128xf32>
    %224 = arith.addf %220, %223 : vector<1x4x4x128xf32>
    %cst_375 = arith.constant 0.000000e+00 : f32
    %225 = vector.broadcast %cst_375 : f32 to vector<1x4x4x128xf32>
    %226 = arith.maximumf %224, %225 : vector<1x4x4x128xf32>
    %227 = arith.truncf %226 : vector<1x4x4x128xf32> to vector<1x4x4x128xbf16>
    %228 = vector.extract_strided_slice %227 {offsets = [0, 0, 0, 0], sizes = [1, 1, 1, 128], strides = [1, 1, 1, 1]} : vector<1x4x4x128xbf16> to vector<1x1x1x128xbf16>
    %229 = vector.shape_cast %228 : vector<1x1x1x128xbf16> to vector<1x128xbf16>
    %c0_376 = arith.constant 0 : index
    %c0_377 = arith.constant 0 : index
    %230 = vector.load %arg8[%c0_376, %c0_377] : memref<2048x512xbf16, #tpu.memory_space<vmem>>, vector<128x512xbf16>
    %cst_378 = arith.constant dense<0.000000e+00> : vector<1x512xf32>
    %231 = tpu.matmul %229, %230, %cst_378 {dimension_numbers = #tpu.dot_dimension_numbers<[1], [0], [0], [1], [0, 0, 1, 1], [], []>} : vector<1x128xbf16>, vector<128x512xbf16>, vector<1x512xf32> -> vector<1x512xf32>
    %232 = vector.extract_strided_slice %227 {offsets = [0, 0, 1, 0], sizes = [1, 1, 1, 128], strides = [1, 1, 1, 1]} : vector<1x4x4x128xbf16> to vector<1x1x1x128xbf16>
    %233 = vector.shape_cast %232 : vector<1x1x1x128xbf16> to vector<1x128xbf16>
    %c128 = arith.constant 128 : index
    %c0_379 = arith.constant 0 : index
    %234 = vector.load %arg8[%c128, %c0_379] : memref<2048x512xbf16, #tpu.memory_space<vmem>>, vector<128x512xbf16>
    %cst_380 = arith.constant dense<0.000000e+00> : vector<1x512xf32>
    %235 = tpu.matmul %233, %234, %cst_380 {dimension_numbers = #tpu.dot_dimension_numbers<[1], [0], [0], [1], [0, 0, 1, 1], [], []>} : vector<1x128xbf16>, vector<128x512xbf16>, vector<1x512xf32> -> vector<1x512xf32>
    %236 = arith.addf %231, %235 : vector<1x512xf32>
    %237 = vector.extract_strided_slice %227 {offsets = [0, 0, 2, 0], sizes = [1, 1, 1, 128], strides = [1, 1, 1, 1]} : vector<1x4x4x128xbf16> to vector<1x1x1x128xbf16>
    %238 = vector.shape_cast %237 : vector<1x1x1x128xbf16> to vector<1x128xbf16>
    %c256 = arith.constant 256 : index
    %c0_381 = arith.constant 0 : index
    %239 = vector.load %arg8[%c256, %c0_381] : memref<2048x512xbf16, #tpu.memory_space<vmem>>, vector<128x512xbf16>
    %cst_382 = arith.constant dense<0.000000e+00> : vector<1x512xf32>
    %240 = tpu.matmul %238, %239, %cst_382 {dimension_numbers = #tpu.dot_dimension_numbers<[1], [0], [0], [1], [0, 0, 1, 1], [], []>} : vector<1x128xbf16>, vector<128x512xbf16>, vector<1x512xf32> -> vector<1x512xf32>
    %241 = arith.addf %236, %240 : vector<1x512xf32>
    %242 = vector.extract_strided_slice %227 {offsets = [0, 0, 3, 0], sizes = [1, 1, 1, 128], strides = [1, 1, 1, 1]} : vector<1x4x4x128xbf16> to vector<1x1x1x128xbf16>
    %243 = vector.shape_cast %242 : vector<1x1x1x128xbf16> to vector<1x128xbf16>
    %c384 = arith.constant 384 : index
    %c0_383 = arith.constant 0 : index
    %244 = vector.load %arg8[%c384, %c0_383] : memref<2048x512xbf16, #tpu.memory_space<vmem>>, vector<128x512xbf16>
    %cst_384 = arith.constant dense<0.000000e+00> : vector<1x512xf32>
    %245 = tpu.matmul %243, %244, %cst_384 {dimension_numbers = #tpu.dot_dimension_numbers<[1], [0], [0], [1], [0, 0, 1, 1], [], []>} : vector<1x128xbf16>, vector<128x512xbf16>, vector<1x512xf32> -> vector<1x512xf32>
    %246 = arith.addf %241, %245 : vector<1x512xf32>
    %247 = vector.extract_strided_slice %227 {offsets = [0, 1, 0, 0], sizes = [1, 1, 1, 128], strides = [1, 1, 1, 1]} : vector<1x4x4x128xbf16> to vector<1x1x1x128xbf16>
    %248 = vector.shape_cast %247 : vector<1x1x1x128xbf16> to vector<1x128xbf16>
    %c512 = arith.constant 512 : index
    %c0_385 = arith.constant 0 : index
    %249 = vector.load %arg8[%c512, %c0_385] : memref<2048x512xbf16, #tpu.memory_space<vmem>>, vector<128x512xbf16>
    %cst_386 = arith.constant dense<0.000000e+00> : vector<1x512xf32>
    %250 = tpu.matmul %248, %249, %cst_386 {dimension_numbers = #tpu.dot_dimension_numbers<[1], [0], [0], [1], [0, 0, 1, 1], [], []>} : vector<1x128xbf16>, vector<128x512xbf16>, vector<1x512xf32> -> vector<1x512xf32>
    %251 = arith.addf %246, %250 : vector<1x512xf32>
    %252 = vector.extract_strided_slice %227 {offsets = [0, 1, 1, 0], sizes = [1, 1, 1, 128], strides = [1, 1, 1, 1]} : vector<1x4x4x128xbf16> to vector<1x1x1x128xbf16>
    %253 = vector.shape_cast %252 : vector<1x1x1x128xbf16> to vector<1x128xbf16>
    %c640 = arith.constant 640 : index
    %c0_387 = arith.constant 0 : index
    %254 = vector.load %arg8[%c640, %c0_387] : memref<2048x512xbf16, #tpu.memory_space<vmem>>, vector<128x512xbf16>
    %cst_388 = arith.constant dense<0.000000e+00> : vector<1x512xf32>
    %255 = tpu.matmul %253, %254, %cst_388 {dimension_numbers = #tpu.dot_dimension_numbers<[1], [0], [0], [1], [0, 0, 1, 1], [], []>} : vector<1x128xbf16>, vector<128x512xbf16>, vector<1x512xf32> -> vector<1x512xf32>
    %256 = arith.addf %251, %255 : vector<1x512xf32>
    %257 = vector.extract_strided_slice %227 {offsets = [0, 1, 2, 0], sizes = [1, 1, 1, 128], strides = [1, 1, 1, 1]} : vector<1x4x4x128xbf16> to vector<1x1x1x128xbf16>
    %258 = vector.shape_cast %257 : vector<1x1x1x128xbf16> to vector<1x128xbf16>
    %c768 = arith.constant 768 : index
    %c0_389 = arith.constant 0 : index
    %259 = vector.load %arg8[%c768, %c0_389] : memref<2048x512xbf16, #tpu.memory_space<vmem>>, vector<128x512xbf16>
    %cst_390 = arith.constant dense<0.000000e+00> : vector<1x512xf32>
    %260 = tpu.matmul %258, %259, %cst_390 {dimension_numbers = #tpu.dot_dimension_numbers<[1], [0], [0], [1], [0, 0, 1, 1], [], []>} : vector<1x128xbf16>, vector<128x512xbf16>, vector<1x512xf32> -> vector<1x512xf32>
    %261 = arith.addf %256, %260 : vector<1x512xf32>
    %262 = vector.extract_strided_slice %227 {offsets = [0, 1, 3, 0], sizes = [1, 1, 1, 128], strides = [1, 1, 1, 1]} : vector<1x4x4x128xbf16> to vector<1x1x1x128xbf16>
    %263 = vector.shape_cast %262 : vector<1x1x1x128xbf16> to vector<1x128xbf16>
    %c896 = arith.constant 896 : index
    %c0_391 = arith.constant 0 : index
    %264 = vector.load %arg8[%c896, %c0_391] : memref<2048x512xbf16, #tpu.memory_space<vmem>>, vector<128x512xbf16>
    %cst_392 = arith.constant dense<0.000000e+00> : vector<1x512xf32>
    %265 = tpu.matmul %263, %264, %cst_392 {dimension_numbers = #tpu.dot_dimension_numbers<[1], [0], [0], [1], [0, 0, 1, 1], [], []>} : vector<1x128xbf16>, vector<128x512xbf16>, vector<1x512xf32> -> vector<1x512xf32>
    %266 = arith.addf %261, %265 : vector<1x512xf32>
    %267 = vector.extract_strided_slice %227 {offsets = [0, 2, 0, 0], sizes = [1, 1, 1, 128], strides = [1, 1, 1, 1]} : vector<1x4x4x128xbf16> to vector<1x1x1x128xbf16>
    %268 = vector.shape_cast %267 : vector<1x1x1x128xbf16> to vector<1x128xbf16>
    %c1024 = arith.constant 1024 : index
    %c0_393 = arith.constant 0 : index
    %269 = vector.load %arg8[%c1024, %c0_393] : memref<2048x512xbf16, #tpu.memory_space<vmem>>, vector<128x512xbf16>
    %cst_394 = arith.constant dense<0.000000e+00> : vector<1x512xf32>
    %270 = tpu.matmul %268, %269, %cst_394 {dimension_numbers = #tpu.dot_dimension_numbers<[1], [0], [0], [1], [0, 0, 1, 1], [], []>} : vector<1x128xbf16>, vector<128x512xbf16>, vector<1x512xf32> -> vector<1x512xf32>
    %271 = arith.addf %266, %270 : vector<1x512xf32>
    %272 = vector.extract_strided_slice %227 {offsets = [0, 2, 1, 0], sizes = [1, 1, 1, 128], strides = [1, 1, 1, 1]} : vector<1x4x4x128xbf16> to vector<1x1x1x128xbf16>
    %273 = vector.shape_cast %272 : vector<1x1x1x128xbf16> to vector<1x128xbf16>
    %c1152 = arith.constant 1152 : index
    %c0_395 = arith.constant 0 : index
    %274 = vector.load %arg8[%c1152, %c0_395] : memref<2048x512xbf16, #tpu.memory_space<vmem>>, vector<128x512xbf16>
    %cst_396 = arith.constant dense<0.000000e+00> : vector<1x512xf32>
    %275 = tpu.matmul %273, %274, %cst_396 {dimension_numbers = #tpu.dot_dimension_numbers<[1], [0], [0], [1], [0, 0, 1, 1], [], []>} : vector<1x128xbf16>, vector<128x512xbf16>, vector<1x512xf32> -> vector<1x512xf32>
    %276 = arith.addf %271, %275 : vector<1x512xf32>
    %277 = vector.extract_strided_slice %227 {offsets = [0, 2, 2, 0], sizes = [1, 1, 1, 128], strides = [1, 1, 1, 1]} : vector<1x4x4x128xbf16> to vector<1x1x1x128xbf16>
    %278 = vector.shape_cast %277 : vector<1x1x1x128xbf16> to vector<1x128xbf16>
    %c1280 = arith.constant 1280 : index
    %c0_397 = arith.constant 0 : index
    %279 = vector.load %arg8[%c1280, %c0_397] : memref<2048x512xbf16, #tpu.memory_space<vmem>>, vector<128x512xbf16>
    %cst_398 = arith.constant dense<0.000000e+00> : vector<1x512xf32>
    %280 = tpu.matmul %278, %279, %cst_398 {dimension_numbers = #tpu.dot_dimension_numbers<[1], [0], [0], [1], [0, 0, 1, 1], [], []>} : vector<1x128xbf16>, vector<128x512xbf16>, vector<1x512xf32> -> vector<1x512xf32>
    %281 = arith.addf %276, %280 : vector<1x512xf32>
    %282 = vector.extract_strided_slice %227 {offsets = [0, 2, 3, 0], sizes = [1, 1, 1, 128], strides = [1, 1, 1, 1]} : vector<1x4x4x128xbf16> to vector<1x1x1x128xbf16>
    %283 = vector.shape_cast %282 : vector<1x1x1x128xbf16> to vector<1x128xbf16>
    %c1408 = arith.constant 1408 : index
    %c0_399 = arith.constant 0 : index
    %284 = vector.load %arg8[%c1408, %c0_399] : memref<2048x512xbf16, #tpu.memory_space<vmem>>, vector<128x512xbf16>
    %cst_400 = arith.constant dense<0.000000e+00> : vector<1x512xf32>
    %285 = tpu.matmul %283, %284, %cst_400 {dimension_numbers = #tpu.dot_dimension_numbers<[1], [0], [0], [1], [0, 0, 1, 1], [], []>} : vector<1x128xbf16>, vector<128x512xbf16>, vector<1x512xf32> -> vector<1x512xf32>
    %286 = arith.addf %281, %285 : vector<1x512xf32>
    %287 = vector.extract_strided_slice %227 {offsets = [0, 3, 0, 0], sizes = [1, 1, 1, 128], strides = [1, 1, 1, 1]} : vector<1x4x4x128xbf16> to vector<1x1x1x128xbf16>
    %288 = vector.shape_cast %287 : vector<1x1x1x128xbf16> to vector<1x128xbf16>
    %c1536 = arith.constant 1536 : index
    %c0_401 = arith.constant 0 : index
    %289 = vector.load %arg8[%c1536, %c0_401] : memref<2048x512xbf16, #tpu.memory_space<vmem>>, vector<128x512xbf16>
    %cst_402 = arith.constant dense<0.000000e+00> : vector<1x512xf32>
    %290 = tpu.matmul %288, %289, %cst_402 {dimension_numbers = #tpu.dot_dimension_numbers<[1], [0], [0], [1], [0, 0, 1, 1], [], []>} : vector<1x128xbf16>, vector<128x512xbf16>, vector<1x512xf32> -> vector<1x512xf32>
    %291 = arith.addf %286, %290 : vector<1x512xf32>
    %292 = vector.extract_strided_slice %227 {offsets = [0, 3, 1, 0], sizes = [1, 1, 1, 128], strides = [1, 1, 1, 1]} : vector<1x4x4x128xbf16> to vector<1x1x1x128xbf16>
    %293 = vector.shape_cast %292 : vector<1x1x1x128xbf16> to vector<1x128xbf16>
    %c1664 = arith.constant 1664 : index
    %c0_403 = arith.constant 0 : index
    %294 = vector.load %arg8[%c1664, %c0_403] : memref<2048x512xbf16, #tpu.memory_space<vmem>>, vector<128x512xbf16>
    %cst_404 = arith.constant dense<0.000000e+00> : vector<1x512xf32>
    %295 = tpu.matmul %293, %294, %cst_404 {dimension_numbers = #tpu.dot_dimension_numbers<[1], [0], [0], [1], [0, 0, 1, 1], [], []>} : vector<1x128xbf16>, vector<128x512xbf16>, vector<1x512xf32> -> vector<1x512xf32>
    %296 = arith.addf %291, %295 : vector<1x512xf32>
    %297 = vector.extract_strided_slice %227 {offsets = [0, 3, 2, 0], sizes = [1, 1, 1, 128], strides = [1, 1, 1, 1]} : vector<1x4x4x128xbf16> to vector<1x1x1x128xbf16>
    %298 = vector.shape_cast %297 : vector<1x1x1x128xbf16> to vector<1x128xbf16>
    %c1792 = arith.constant 1792 : index
    %c0_405 = arith.constant 0 : index
    %299 = vector.load %arg8[%c1792, %c0_405] : memref<2048x512xbf16, #tpu.memory_space<vmem>>, vector<128x512xbf16>
    %cst_406 = arith.constant dense<0.000000e+00> : vector<1x512xf32>
    %300 = tpu.matmul %298, %299, %cst_406 {dimension_numbers = #tpu.dot_dimension_numbers<[1], [0], [0], [1], [0, 0, 1, 1], [], []>} : vector<1x128xbf16>, vector<128x512xbf16>, vector<1x512xf32> -> vector<1x512xf32>
    %301 = arith.addf %296, %300 : vector<1x512xf32>
    %302 = vector.extract_strided_slice %227 {offsets = [0, 3, 3, 0], sizes = [1, 1, 1, 128], strides = [1, 1, 1, 1]} : vector<1x4x4x128xbf16> to vector<1x1x1x128xbf16>
    %303 = vector.shape_cast %302 : vector<1x1x1x128xbf16> to vector<1x128xbf16>
    %c1920 = arith.constant 1920 : index
    %c0_407 = arith.constant 0 : index
    %304 = vector.load %arg8[%c1920, %c0_407] : memref<2048x512xbf16, #tpu.memory_space<vmem>>, vector<128x512xbf16>
    %cst_408 = arith.constant dense<0.000000e+00> : vector<1x512xf32>
    %305 = tpu.matmul %303, %304, %cst_408 {dimension_numbers = #tpu.dot_dimension_numbers<[1], [0], [0], [1], [0, 0, 1, 1], [], []>} : vector<1x128xbf16>, vector<128x512xbf16>, vector<1x512xf32> -> vector<1x512xf32>
    %306 = arith.addf %301, %305 : vector<1x512xf32>
    %c0_409 = arith.constant 0 : index
    %c0_410 = arith.constant 0 : index
    %307 = vector.load %arg9[%c0_409, %c0_410] : memref<1x512xf32, #tpu.memory_space<vmem>>, vector<1x512xf32>
    %308 = arith.addf %306, %307 : vector<1x512xf32>
    %cst_411 = arith.constant 0.000000e+00 : f32
    %309 = vector.broadcast %cst_411 : f32 to vector<1x512xf32>
    %310 = arith.maximumf %308, %309 : vector<1x512xf32>
    %311 = arith.truncf %310 : vector<1x512xf32> to vector<1x512xbf16>
    %c0_412 = arith.constant 0 : index
    %c0_413 = arith.constant 0 : index
    %312 = vector.load %arg10[%c0_412, %c0_413] : memref<512x10xbf16, #tpu.memory_space<vmem>>, vector<512x10xbf16>
    %cst_414 = arith.constant dense<0.000000e+00> : vector<1x10xf32>
    %313 = tpu.matmul %311, %312, %cst_414 {dimension_numbers = #tpu.dot_dimension_numbers<[1], [0], [0], [1], [0, 0, 1, 1], [], []>} : vector<1x512xbf16>, vector<512x10xbf16>, vector<1x10xf32> -> vector<1x10xf32>
    %c0_415 = arith.constant 0 : index
    %c0_416 = arith.constant 0 : index
    %314 = vector.load %arg11[%c0_415, %c0_416] : memref<1x10xf32, #tpu.memory_space<vmem>>, vector<1x10xf32>
    %315 = arith.addf %313, %314 : vector<1x10xf32>
    %316 = vector.shape_cast %315 : vector<1x10xf32> to vector<1x1x10xf32>
    %c0_417 = arith.constant 0 : index
    %c0_418 = arith.constant 0 : index
    %c0_419 = arith.constant 0 : index
    %317 = vector.load %arg12[%c0_417, %c0_418, %c0_419] : memref<1x1x10xf32, #tpu.memory_space<vmem>>, vector<1x1x10xf32>
    tpu.vector_store %arg12[%c0_417, %c0_418, %c0_419], %316 {strides = array<i32>} : memref<1x1x10xf32, #tpu.memory_space<vmem>>, vector<1x1x10xf32>,
    return
  }
  func.func @transform_0(%arg0: i32) -> (i32, i32, i32) {
    %c0_i32 = arith.constant 0 : i32
    %c0_i32_0 = arith.constant 0 : i32
    %c0_i32_1 = arith.constant 0 : i32
    return %arg0, %c0_i32, %c0_i32_0 : i32, i32, i32
  }
  func.func @transform_1(%arg0: i32) -> (i32, i32) {
    %c0_i32 = arith.constant 0 : i32
    %c0_i32_0 = arith.constant 0 : i32
    %c0_i32_1 = arith.constant 0 : i32
    return %c0_i32, %c0_i32_0 : i32, i32
  }
  func.func @transform_2(%arg0: i32) -> (i32, i32) {
    %c0_i32 = arith.constant 0 : i32
    %c0_i32_0 = arith.constant 0 : i32
    %c0_i32_1 = arith.constant 0 : i32
    return %c0_i32, %c0_i32_0 : i32, i32
  }
  func.func @transform_3(%arg0: i32) -> (i32, i32, i32, i32) {
    %c0_i32 = arith.constant 0 : i32
    %c0_i32_0 = arith.constant 0 : i32
    %c0_i32_1 = arith.constant 0 : i32
    %c0_i32_2 = arith.constant 0 : i32
    %c0_i32_3 = arith.constant 0 : i32
    return %c0_i32, %c0_i32_0, %c0_i32_1, %c0_i32_2 : i32, i32, i32, i32
  }
  func.func @transform_4(%arg0: i32) -> (i32, i32) {
    %c0_i32 = arith.constant 0 : i32
    %c0_i32_0 = arith.constant 0 : i32
    %c0_i32_1 = arith.constant 0 : i32
    return %c0_i32, %c0_i32_0 : i32, i32
  }
  func.func @transform_5(%arg0: i32) -> (i32, i32, i32, i32) {
    %c0_i32 = arith.constant 0 : i32
    %c0_i32_0 = arith.constant 0 : i32
    %c0_i32_1 = arith.constant 0 : i32
    %c0_i32_2 = arith.constant 0 : i32
    %c0_i32_3 = arith.constant 0 : i32
    return %c0_i32, %c0_i32_0, %c0_i32_1, %c0_i32_2 : i32, i32, i32, i32
  }
  func.func @transform_6(%arg0: i32) -> (i32, i32) {
    %c0_i32 = arith.constant 0 : i32
    %c0_i32_0 = arith.constant 0 : i32
    %c0_i32_1 = arith.constant 0 : i32
    return %c0_i32, %c0_i32_0 : i32, i32
  }
  func.func @transform_7(%arg0: i32) -> (i32, i32) {
    %c0_i32 = arith.constant 0 : i32
    %c0_i32_0 = arith.constant 0 : i32
    %c0_i32_1 = arith.constant 0 : i32
    return %c0_i32, %c0_i32_0 : i32, i32
  }
  func.func @transform_8(%arg0: i32) -> (i32, i32) {
    %c0_i32 = arith.constant 0 : i32
    %c0_i32_0 = arith.constant 0 : i32
    %c0_i32_1 = arith.constant 0 : i32
    return %c0_i32, %c0_i32_0 : i32, i32
  }
  func.func @transform_9(%arg0: i32) -> (i32, i32) {
    %c0_i32 = arith.constant 0 : i32
    %c0_i32_0 = arith.constant 0 : i32
    %c0_i32_1 = arith.constant 0 : i32
    return %c0_i32, %c0_i32_0 : i32, i32
  }
  func.func @transform_10(%arg0: i32) -> (i32, i32) {
    %c0_i32 = arith.constant 0 : i32
    %c0_i32_0 = arith.constant 0 : i32
    %c0_i32_1 = arith.constant 0 : i32
    return %c0_i32, %c0_i32_0 : i32, i32
  }
  func.func @transform_11(%arg0: i32) -> (i32, i32, i32) {
    %c0_i32 = arith.constant 0 : i32
    %c0_i32_0 = arith.constant 0 : i32
    %c0_i32_1 = arith.constant 0 : i32
    return %arg0, %c0_i32, %c0_i32_0 : i32, i32, i32
  }
}

</mosaic_0001>

<bundles_post_ra>
// kernel: cnn_svhn_forward.1
= control target key start
LH: loop header
LB: loop body
LE: loop exit
PB: predicated region body
PF: predicated region fallthrough
CT: control target
= control target key end

     0   :  { %s19370_s0 = inlined_call_operand.vmem [shape: bf16[2,1024,27], index: 0, kind: input, shape index: {}]   ;;  %s19371_s1 = inlined_call_operand.vmem [shape: bf16[27,32], index: 1, kind: input, shape index: {}]   ;;  %s19372_s2 = inlined_call_operand.vmem [shape: f32[1,32], index: 2, kind: input, shape index: {}]   ;;  %s19373_s3 = inlined_call_operand.vmem [shape: bf16[3,3,32,64], index: 3, kind: input, shape index: {}]   ;;  %s19374_s4 = inlined_call_operand.vmem [shape: f32[1,64], index: 4, kind: input, shape index: {}]   ;;  %s19375_s5 = inlined_call_operand.hbm [shape: bf16[3,3,64,128], index: 5, kind: input, shape index: {}]   ;;  %s19376_s6 = inlined_call_operand.vmem [shape: f32[1,128], index: 6, kind: input, shape index: {}]   ;;  %s19377_s7 = inlined_call_operand.vmem [shape: bf16[2048,512], index: 7, kind: input, shape index: {}]   ;;  %s19378_s8 = inlined_call_operand.vmem [shape: f32[1,512], index: 8, kind: input, shape index: {}]   ;;  %s19379_s9 = inlined_call_operand.vmem [shape: bf16[512,10], index: 9, kind: input, shape index: {}]   ;;  %s19380_s10 = inlined_call_operand.vmem [shape: f32[1,10], index: 10, kind: input, shape index: {}]   ;;  %s19381_s11 = inlined_call_operand.hbm [shape: f32[2,1,10], index: 11, kind: output, shape index: {}]  }
   0x1   :  { %19382 = sst [smem:[#allocation13_spill]] %s19370_s0 }
   0x2   :  { %19383 = sst [smem:[#allocation14_spill]] %s19375_s5 }
   0x3   :  { %16 = vsyncpa [#allocation8], 0 }
   0x4   :  { %17 = vsyncpa [#allocation9], 0 }
   0x5   :  { %19 = vsyncpa [#allocation9 + $0x1], 0  ;;  %s14182_s17 = smov 0   ;;  %s14184_s18 = smov 0  }
   0x6   :  { %s14186_s19 = smov 0   ;;  %s14188_s20 = smov 0  }
   0x7 LB: > { %s14203_s21 = sadd.s32 4294967295, %s14115_s20   ;;  %s10347_s22 = sadd.s32 4294967294, %s14115_s20   ;;  %s14115_s20 = sphi %s14188_s20, %s19391_s20   ;;  %s14111_s19 = sphi %s14186_s19, %s19390_s19   ;;  %s14107_s18 = sphi %s14184_s18, %s19389_s18   ;;  %s14103_s17 = sphi %s14182_s17, %s19388_s17  }
   0x8   : > { %s14207_s23 = sadd.s32 1, %s14115_s20   ;;  %s268_s24 = sadd.s32 1, %s14111_s19 }
   0x9   : > { %s265_s25 = ssub.s32 %s14115_s20, %s14207_s23  ;;  %p278_p0 = scmp.ne.s32.totalorder %s14111_s19, %s14107_s18 }
   0xa   : > { %p266_p1 = scmp.eq.s32.totalorder %s265_s25, 0  ;;  %p279_p2 = scmp.eq.s32.totalorder %s14203_s21, 1 }
   0xb   : > { %p284_p3 = scmp.ne.s32.totalorder %s14107_s18, %s14103_s17  ;;  %p285_p4 = scmp.eq.s32.totalorder %s10347_s22, 1 }
   0xc   : > { %s14218_s26 = scalar_select %p266_p1, %s14111_s19, %s268_s24  }
   0xd   : > { %p14220_p5 = por %p279_p2, %p278_p0  ;;  %p14224_p6 = por %p285_p4, %p284_p3 }
   0xe   : > { %p10348_p7 = scmp.ge.s32.totalorder %s14115_s20, 1  ;;  %p292_p8 = scmp.lt.s32.totalorder %s14115_s20, 3 }
   0xf   : > { %p13972_p9 = scmp.eq.s32.totalorder %s14203_s21, 0  ;;  %s19386_s5 = sld [smem:[#allocation14_spill]] }
  0x10   : > { %p293_p10 = pnand %p10348_p7, %p292_p8  ;;  %s14117_s13 = smov [#allocation7]  }
  0x11   : > { %s317_s14 = sshll.u32 %s14117_s13, 4  ;;  %s14118_s15 = smov 64   ;;  %s318_s14 = int_to_ptr.vmem [resolvable:$true] %s317_s14 }
  0x12   : > { %p13964_p11 = pneg %p293_p10  ;;  %s14119_s16 = smov 4  }
  0x13   : > { %356 = sbr.rel (%p293_p10) target bundleno = 3045 (0xbe5), region = 64 }
  0x14   : > { %p13965_p12 = pnand %p13972_p9, %p13964_p11 }
  0x15   : > { %s315_s12 = sshll.u32 %s19386_s5, 4  ;;  %s316_s12 = int_to_ptr.hbm [resolvable:$true] %s315_s12 }
  0x16   : > { %13967 = dma.hbm_to_vmem [thread:$0]  (!%p13965_p12), %s316_s12, 4608, %s318_s14, [#allocation8], %s14118_s15, %s14118_s15, %s14119_s16  }
  0x18   : > { %14094 = dma.done.wait (%p13972_p9), [#allocation8], 4608  }
  0x19   : > { %14096 = vsyncadd (%p13972_p9), [#allocation8], 4294962688  ;;  %p396_p13 = scmp.lt.s32.totalorder %s14203_s21, 1  ;;  %vm1058_vm0 = vcmask 1044480   ;;  %vm1059_vm1 = vcmask 1045504   ;;  %v14120_v0 = vmov 65535   ;;  %s10191_s16 = scalar_lea.hbm %s19381_s11, %s14203_s21 }
  0x1a   : > { %v1060_v1 = vsel %vm1058_vm0, 4294967295, %v14120_v0  ;;  %v10617_v2 = vld [vmem:[%s19371_s1 + $0x8] sm:$0xf]  ;;  %v13355_v3 = vld [vmem:[%s19371_s1 + $0x8] sm:$0x30]  ;;  %v13354_v7 = vld [vmem:[%s19371_s1] sm:$0xff] }
  0x1b   : > { %s397_s22 = scalar_select %p396_p13, %s14203_s21, 1  ;;  %v1061_v4 = vsel %vm1059_vm1, %v1060_v1, 0  ;;  %v10618_v5 = vor.u32 %v13355_v3, %v10617_v2  ;;  %vm865_vm2 = vcmask 220160   ;;  %vm1394_vm3 = vcmask 261120   ;;  %v13357_v24 = vld [vmem:[%s19373_s3 + $0x8] sm:$0xff]  ;;  %v13359_v25 = vld [vmem:[%s19373_s3 + $0x18] sm:$0xff] }
  0x1c   : > { %s19387_s0 = sld [smem:[#allocation13_spill]]  ;;  %v14121_v23 = vmov 0.0   ;;  %2165 = vmatpush.bf16.msra.mxu1 %v13357_v24  ;;  %13956 = vmatpush.bf16.msra.mxu3 %v13357_v24  ;;  %v13356_v26 = vld [vmem:[%s19373_s3] sm:$0xff]  ;;  %v13358_v27 = vld [vmem:[%s19373_s3 + $0x10] sm:$0xff]  ;;  %vm2248_vm4 = vcmask 523264   ;;  %s394_s13 = sand.u32 1, %s14107_s18  }
  0x1d   : > { %s13289_s12 = sshll.u32 %s397_s22, 9  ;;  %v1063_v6 = vand.u32 %v10618_v5, %v1061_v4  ;;  %1942 = vst.msk [vmem:[#allocation3] sm:$0xff] %vm1394_vm3, %v14121_v23  ;;  %v14432_v59 = vld [vmem:[%s19372_s2] ss:$0 sm:$0xff]  ;;  %s395_s22 = scalar_lea.vmem [#allocation10], %s394_s13  ;;  %vm10180_vm5 = vcmask 73728  }
  0x1e   : > { %1943 = vst.msk [vmem:[#allocation3 + $0x8] sm:$0xff] %vm1394_vm3, %v14121_v23  ;;  %s10193_s24 = sshll.u32 %s395_s22, 4  ;;  %s10183_s25 = scalar_lea.sflag [#allocation9], %s394_s13  ;;  %s10194_s24 = int_to_ptr.vmem [resolvable:$true] %s10193_s24 }
  0x1f   : > { %1071 = vmatpush.bf16.msra.mxu0 %v1063_v6  ;;  %13954 = vmatpush.bf16.msra.mxu2 %v1063_v6  ;;  %1944 = vst.msk [vmem:[#allocation3 + $0x10] sm:$0xff] %vm1394_vm3, %v14121_v23 }
  0x20   : > { %1945 = vst.msk [vmem:[#allocation3 + $0x18] sm:$0xff] %vm1394_vm3, %v14121_v23  ;;  %2166 = vmatpush.bf16.msra.mxu1 %v13356_v26  ;;  %13957 = vmatpush.bf16.msra.mxu3 %v13356_v26 }
  0x21   : > { %1946 = vst.msk [vmem:[#allocation3 + $0x20] sm:$0xff] %vm1394_vm3, %v14121_v23 }
  0x22   : > { %s14254_s5 = scalar_lea.vmem %s19387_s0, %s13289_s12  ;;  %1947 = vst.msk [vmem:[#allocation3 + $0x28] sm:$0xff] %vm1394_vm3, %v14121_v23  ;;  %s10195_s0 = sshll.u32 %s10191_s16, 4  ;;  %s10196_s0 = int_to_ptr.hbm [resolvable:$true] %s10195_s0 }
  0x23   : > { %v13290_v8 = vld [vmem:[%s14254_s5] sm:$0xff]  ;;  %1072 = vmatpush.bf16.msra.mxu0 %v13354_v7  ;;  %13955 = vmatpush.bf16.msra.mxu2 %v13354_v7  ;;  %v13291_v9 = vld [vmem:[%s14254_s5 + $0x8] sm:$0xff]  ;;  %v13292_v10 = vld [vmem:[%s14254_s5 + $0x10] sm:$0xff]  ;;  %1948 = vst.msk [vmem:[#allocation3 + $0x30] sm:$0xff] %vm1394_vm3, %v14121_v23  ;;  %s14063_s29 = sshra.s32 %s10196_s0, 4  ;;  %s14064_s29 = int_to_ptr.hbm [resolvable:$true] %s14063_s29 }
  0x24   : > { %v13293_v11 = vld [vmem:[%s14254_s5 + $0x18] sm:$0xff]  ;;  %v13294_v12 = vld [vmem:[%s14254_s5 + $0x20] sm:$0xff]  ;;  %v13295_v13 = vld [vmem:[%s14254_s5 + $0x28] sm:$0xff]  ;;  %1949 = vst.msk [vmem:[#allocation3 + $0x38] sm:$0xff] %vm1394_vm3, %v14121_v23  ;;  %s14065_s30 = scalar_lea.hbm %s14064_s29, 1  ;;  %p14070_p3 = scmp.lt.s32.totalorder %s14064_s29, %s19381_s11 }
  0x25   : > { %v13296_v14 = vld [vmem:[%s14254_s5 + $0x30] sm:$0xff]  ;;  %v13297_v15 = vld [vmem:[%s14254_s5 + $0x38] sm:$0xff]  ;;  %v13298_v16 = vld [vmem:[%s14254_s5 + $0x40] sm:$0xff]  ;;  %1950 = vst.msk [vmem:[#allocation3 + $0x40] sm:$0xff] %vm1394_vm3, %v14121_v23  ;;  %p14066_p0 = scmp.ne.s32.totalorder %s14064_s29, %s14065_s30 }
  0x26   : > { %10619 = vmatmul.msk.bf16.vlgmr.msra.gmra.mxu0 %vm865_vm2, %v13290_v8  ;;  %v13299_v19 = vld [vmem:[%s14254_s5 + $0x48] sm:$0xff]  ;;  %v13353_v21 = vld [vmem:[%s14254_s5 + $0x1f8] sm:$0xff]  ;;  %v13300_v28 = vld [vmem:[%s14254_s5 + $0x50] sm:$0xff]  ;;  %1951 = vst.msk [vmem:[#allocation3 + $0x48] sm:$0xff] %vm1394_vm3, %v14121_v23 }
  0x27   : > { %10682 = vmatmul.msk.bf16.vlgmr.msra.gmra.mxu2 %vm865_vm2, %v13353_v21  ;;  %v2047_v30 = vld [vmem:[#allocation3 + $0x7] sm:$0xff]  ;;  %v2048_v32 = vld [vmem:[#allocation3 + $0xf] sm:$0xff]  ;;  %1952 = vst.msk [vmem:[#allocation3 + $0x50] sm:$0xff] %vm1394_vm3, %v14121_v23  ;;  %v13301_v37 = vld [vmem:[%s14254_s5 + $0x58] sm:$0xff]  ;;  %p14067_p1 = pnand %p14066_p0, %p14220_p5 }
  0x28   : > { %2400 = vmatpush.bf16.msrb.mxu2 %v13359_v25  ;;  %v2281_v31 = vld [vmem:[#allocation3 + $0x8] sm:$0xff]  ;;  %v2282_v33 = vld [vmem:[#allocation3 + $0x10] sm:$0xff]  ;;  %v2079_v34 = vpack.c.bf16 %v2048_v32, %v2047_v30  ;;  %1953 = vst.msk [vmem:[#allocation3 + $0x58] sm:$0xff] %vm1394_vm3, %v14121_v23  ;;  %v13302_v40 = vld [vmem:[%s14254_s5 + $0x60] sm:$0xff] }
  0x29   : > { %v2313_v35 = vpack.c.bf16 %v2282_v33, %v2281_v31  ;;  %1954 = vst.msk [vmem:[#allocation3 + $0x60] sm:$0xff] %vm1394_vm3, %v14121_v23  ;;  %v13303_v44 = vld [vmem:[%s14254_s5 + $0x68] sm:$0xff]  ;;  %v13304_v63 = vld [vmem:[%s14254_s5 + $0x70] sm:$0xff]  ;;  %v13306_v25 = vld [vmem:[%s14254_s5 + $0x80] sm:$0xff]  ;;  %p14068_p2 = pneg %p14067_p1 }
  0x2a   : > { %10691 = vmatmul.msk.bf16.vlgmr.msra.gmra.mxu1 %vm1394_vm3, %v2079_v34  ;;  %1955 = vst.msk [vmem:[#allocation3 + $0x68] sm:$0xff] %vm1394_vm3, %v14121_v23 }
  0x2b   : > { %1956 = vst.msk [vmem:[#allocation3 + $0x70] sm:$0xff] %vm1394_vm3, %v14121_v23 }
  0x2c   : > { %2401 = vmatpush.bf16.msrb.mxu2 %v13358_v27  ;;  %1957 = vst.msk [vmem:[#allocation3 + $0x78] sm:$0xff] %vm1394_vm3, %v14121_v23 }
  0x2d   : > { %1958 = vst.msk [vmem:[#allocation3 + $0x80] sm:$0xff] %vm1394_vm3, %v14121_v23 }
  0x2e   : > { %1959 = vst.msk [vmem:[#allocation3 + $0x88] sm:$0xff] %vm1394_vm3, %v14121_v23 }
  0x2f   : > { %1960 = vst.msk [vmem:[#allocation3 + $0x90] sm:$0xff] %vm1394_vm3, %v14121_v23 }
  0x30   : > { %1961 = vst.msk [vmem:[#allocation3 + $0x98] sm:$0xff] %vm1394_vm3, %v14121_v23 }
  0x31   : > { %1962 = vst.msk [vmem:[#allocation3 + $0xa0] sm:$0xff] %vm1394_vm3, %v14121_v23 }
  0x32   : > { %1963 = vst.msk [vmem:[#allocation3 + $0xa8] sm:$0xff] %vm1394_vm3, %v14121_v23 }
  0x33   : > { %1964 = vst.msk [vmem:[#allocation3 + $0xb0] sm:$0xff] %vm1394_vm3, %v14121_v23 }
  0x34   : > { %1965 = vst.msk [vmem:[#allocation3 + $0xb8] sm:$0xff] %vm1394_vm3, %v14121_v23 }
  0x35   : > { %1966 = vst.msk [vmem:[#allocation3 + $0xc0] sm:$0xff] %vm1394_vm3, %v14121_v23 }
  0x36   : > { %10620 = vmatmul.msk.bf16.gmra.mxu0 %vm865_vm2, %v13291_v9  ;;  %1967 = vst.msk [vmem:[#allocation3 + $0xc8] sm:$0xff] %vm1394_vm3, %v14121_v23 }
  0x37   : > { %10719 = vmatmul.msk.bf16.vlgmr.msrb.gmra.mxu2 %vm1394_vm3, %v2313_v35  ;;  %1968 = vst.msk [vmem:[#allocation3 + $0xd0] sm:$0xff] %vm1394_vm3, %v14121_v23  ;;  %v13307_v35 = vld [vmem:[%s14254_s5 + $0x88] sm:$0xff] }
  0x38   : > { %1969 = vst.msk [vmem:[#allocation3 + $0xd8] sm:$0xff] %vm1394_vm3, %v14121_v23 }
  0x39   : > { %1970 = vst.msk [vmem:[#allocation3 + $0xe0] sm:$0xff] %vm1394_vm3, %v14121_v23 }
  0x3a   : > { %1971 = vst.msk [vmem:[#allocation3 + $0xe8] sm:$0xff] %vm1394_vm3, %v14121_v23 }
  0x3b   : > { %1972 = vst.msk [vmem:[#allocation3 + $0xf0] sm:$0xff] %vm1394_vm3, %v14121_v23 }
  0x3c   : > { %1973 = vst.msk [vmem:[#allocation3 + $0xf8] sm:$0xff] %vm1394_vm3, %v14121_v23 }
  0x3d   : > { %1974 = vst.msk [vmem:[#allocation3 + $0x100] sm:$0xff] %vm1394_vm3, %v14121_v23 }
  0x3e   : > { %1975 = vst.msk [vmem:[#allocation3 + $0x108] sm:$0xff] %vm1394_vm3, %v14121_v23 }
  0x3f   : > { %1976 = vst.msk [vmem:[#allocation3 + $0x110] sm:$0xff] %vm1394_vm3, %v14121_v23 }
  0x40   : > { %1977 = vst.msk [vmem:[#allocation3 + $0x118] sm:$0xff] %vm1394_vm3, %v14121_v23 }
  0x41   : > { %1978 = vst.msk [vmem:[#allocation3 + $0x120] sm:$0xff] %vm1394_vm3, %v14121_v23 }
  0x42   : > { %1979 = vst.msk [vmem:[#allocation3 + $0x128] sm:$0xff] %vm1394_vm3, %v14121_v23 }
  0x43   : > { %1980 = vst.msk [vmem:[#allocation3 + $0x130] sm:$0xff] %vm1394_vm3, %v14121_v23 }
  0x44   : > { %1981 = vst.msk [vmem:[#allocation3 + $0x138] sm:$0xff] %vm1394_vm3, %v14121_v23 }
  0x45   : > { %1982 = vst.msk [vmem:[#allocation3 + $0x140] sm:$0xff] %vm1394_vm3, %v14121_v23 }
  0x46   : > { %10621 = vmatmul.msk.bf16.gmra.mxu0 %vm865_vm2, %v13292_v10  ;;  %1983 = vst.msk [vmem:[#allocation3 + $0x148] sm:$0xff] %vm1394_vm3, %v14121_v23  ;;  %v13305_v10 = vld [vmem:[%s14254_s5 + $0x78] sm:$0xff] }
  0x47   : > { %1984 = vst.msk [vmem:[#allocation3 + $0x150] sm:$0xff] %vm1394_vm3, %v14121_v23 }
  0x48   : > { %1985 = vst.msk [vmem:[#allocation3 + $0x158] sm:$0xff] %vm1394_vm3, %v14121_v23 }
  0x49   : > { %1986 = vst.msk [vmem:[#allocation3 + $0x160] sm:$0xff] %vm1394_vm3, %v14121_v23 }
  0x4a   : > { %1987 = vst.msk [vmem:[#allocation3 + $0x168] sm:$0xff] %vm1394_vm3, %v14121_v23 }
  0x4b   : > { %1988 = vst.msk [vmem:[#allocation3 + $0x170] sm:$0xff] %vm1394_vm3, %v14121_v23 }
  0x4c   : > { %1989 = vst.msk [vmem:[#allocation3 + $0x178] sm:$0xff] %vm1394_vm3, %v14121_v23 }
  0x4d   : > { %1990 = vst.msk [vmem:[#allocation3 + $0x180] sm:$0xff] %vm1394_vm3, %v14121_v23 }
  0x4e   : > { %1991 = vst.msk [vmem:[#allocation3 + $0x188] sm:$0xff] %vm1394_vm3, %v14121_v23 }
  0x4f   : > { %1992 = vst.msk [vmem:[#allocation3 + $0x190] sm:$0xff] %vm1394_vm3, %v14121_v23 }
  0x50   : > { %1993 = vst.msk [vmem:[#allocation3 + $0x198] sm:$0xff] %vm1394_vm3, %v14121_v23 }
  0x51   : > { %1994 = vst.msk [vmem:[#allocation3 + $0x1a0] sm:$0xff] %vm1394_vm3, %v14121_v23 }
  0x52   : > { %1995 = vst.msk [vmem:[#allocation3 + $0x1a8] sm:$0xff] %vm1394_vm3, %v14121_v23 }
  0x53   : > { %1996 = vst.msk [vmem:[#allocation3 + $0x1b0] sm:$0xff] %vm1394_vm3, %v14121_v23 }
  0x54   : > { %1997 = vst.msk [vmem:[#allocation3 + $0x1b8] sm:$0xff] %vm1394_vm3, %v14121_v23 }
  0x55   : > { %1998 = vst.msk [vmem:[#allocation3 + $0x1c0] sm:$0xff] %vm1394_vm3, %v14121_v23 }
  0x56   : > { %10622 = vmatmul.msk.bf16.gmra.mxu0 %vm865_vm2, %v13293_v11  ;;  %1999 = vst.msk [vmem:[#allocation3 + $0x1c8] sm:$0xff] %vm1394_vm3, %v14121_v23 }
  0x57   : > { %2000 = vst.msk [vmem:[#allocation3 + $0x1d0] sm:$0xff] %vm1394_vm3, %v14121_v23 }
  0x58   : > { %2001 = vst.msk [vmem:[#allocation3 + $0x1d8] sm:$0xff] %vm1394_vm3, %v14121_v23 }
  0x59   : > { %2002 = vst.msk [vmem:[#allocation3 + $0x1e0] sm:$0xff] %vm1394_vm3, %v14121_v23 }
  0x5a   : > { %2003 = vst.msk [vmem:[#allocation3 + $0x1e8] sm:$0xff] %vm1394_vm3, %v14121_v23 }
  0x5b   : > { %2004 = vst.msk [vmem:[#allocation3 + $0x1f0] sm:$0xff] %vm1394_vm3, %v14121_v23 }
  0x5c   : > { %2005 = vst.msk [vmem:[#allocation3 + $0x1f8] sm:$0xff] %vm1394_vm3, %v14121_v23 }
  0x5d   : > { %2006 = vst.msk [vmem:[#allocation3 + $0x200] sm:$0xff] %vm1394_vm3, %v14121_v23 }
  0x5e   : > { %2007 = vst.msk [vmem:[#allocation3 + $0x208] sm:$0xff] %vm1394_vm3, %v14121_v23 }
  0x5f   : > { %2008 = vst.msk [vmem:[#allocation3 + $0x210] sm:$0xff] %vm1394_vm3, %v14121_v23 }
  0x60   : > { %2009 = vst.msk [vmem:[#allocation3 + $0x218] sm:$0xff] %vm1394_vm3, %v14121_v23 }
  0x61   : > { %2010 = vst.msk [vmem:[#allocation3 + $0x220] sm:$0xff] %vm1394_vm3, %v14121_v23 }
  0x62   : > { %2011 = vst.msk [vmem:[#allocation3 + $0x228] sm:$0xff] %vm1394_vm3, %v14121_v23 }
  0x63   : > { %2012 = vst.msk [vmem:[#allocation3 + $0x230] sm:$0xff] %vm1394_vm3, %v14121_v23 }
  0x64   : > { %2013 = vst.msk [vmem:[#allocation3 + $0x238] sm:$0xff] %vm1394_vm3, %v14121_v23 }
  0x65   : > { %4773 = vst.msk [vmem:[#allocation5] sm:$0xff] %vm2248_vm4, %v14121_v23 }
  0x66   : > { %10623 = vmatmul.msk.bf16.gmra.mxu0 %vm865_vm2, %v13294_v12  ;;  %4774 = vst.msk [vmem:[#allocation5 + $0x8] sm:$0xff] %vm2248_vm4, %v14121_v23 }
  0x67   : > { %4775 = vst.msk [vmem:[#allocation5 + $0x10] sm:$0xff] %vm2248_vm4, %v14121_v23 }
  0x68   : > { %4776 = vst.msk [vmem:[#allocation5 + $0x18] sm:$0xff] %vm2248_vm4, %v14121_v23 }
  0x69   : > { %4777 = vst.msk [vmem:[#allocation5 + $0x20] sm:$0xff] %vm2248_vm4, %v14121_v23 }
  0x6a   : > { %4778 = vst.msk [vmem:[#allocation5 + $0x28] sm:$0xff] %vm2248_vm4, %v14121_v23 }
  0x6b   : > { %4779 = vst.msk [vmem:[#allocation5 + $0x30] sm:$0xff] %vm2248_vm4, %v14121_v23 }
  0x6c   : > { %4780 = vst.msk [vmem:[#allocation5 + $0x38] sm:$0xff] %vm2248_vm4, %v14121_v23 }
  0x6d   : > { %4781 = vst.msk [vmem:[#allocation5 + $0x40] sm:$0xff] %vm2248_vm4, %v14121_v23 }
  0x6e   : > { %4782 = vst.msk [vmem:[#allocation5 + $0x48] sm:$0xff] %vm2248_vm4, %v14121_v23 }
  0x6f   : > { %4783 = vst.msk [vmem:[#allocation5 + $0x50] sm:$0xff] %vm2248_vm4, %v14121_v23 }
  0x70   : > { %4784 = vst.msk [vmem:[#allocation5 + $0x58] sm:$0xff] %vm2248_vm4, %v14121_v23 }
  0x71   : > { %4785 = vst.msk [vmem:[#allocation5 + $0x60] sm:$0xff] %vm2248_vm4, %v14121_v23 }
  0x72   : > { %4786 = vst.msk [vmem:[#allocation5 + $0x68] sm:$0xff] %vm2248_vm4, %v14121_v23 }
  0x73   : > { %4787 = vst.msk [vmem:[#allocation5 + $0x70] sm:$0xff] %vm2248_vm4, %v14121_v23 }
  0x74   : > { %4788 = vst.msk [vmem:[#allocation5 + $0x78] sm:$0xff] %vm2248_vm4, %v14121_v23 }
  0x75   : > { %4789 = vst.msk [vmem:[#allocation5 + $0x80] sm:$0xff] %vm2248_vm4, %v14121_v23 }
  0x76   : > { %10624 = vmatmul.msk.bf16.gmra.mxu0 %vm865_vm2, %v13295_v13  ;;  %4790 = vst.msk [vmem:[#allocation5 + $0x88] sm:$0xff] %vm2248_vm4, %v14121_v23 }
  0x77   : > { %4791 = vst.msk [vmem:[#allocation5 + $0x90] sm:$0xff] %vm2248_vm4, %v14121_v23 }
  0x78   : > { %4792 = vst.msk [vmem:[#allocation5 + $0x98] sm:$0xff] %vm2248_vm4, %v14121_v23 }
  0x79   : > { %4793 = vst.msk [vmem:[#allocation5 + $0xa0] sm:$0xff] %vm2248_vm4, %v14121_v23 }
  0x7a   : > { %4794 = vst.msk [vmem:[#allocation5 + $0xa8] sm:$0xff] %vm2248_vm4, %v14121_v23 }
  0x7b   : > { %4795 = vst.msk [vmem:[#allocation5 + $0xb0] sm:$0xff] %vm2248_vm4, %v14121_v23 }
  0x7c   : > { %4796 = vst.msk [vmem:[#allocation5 + $0xb8] sm:$0xff] %vm2248_vm4, %v14121_v23 }
  0x7d   : > { %4797 = vst.msk [vmem:[#allocation5 + $0xc0] sm:$0xff] %vm2248_vm4, %v14121_v23 }
  0x7e   : > { %4798 = vst.msk [vmem:[#allocation5 + $0xc8] sm:$0xff] %vm2248_vm4, %v14121_v23 }
  0x7f   : > { %4799 = vst.msk [vmem:[#allocation5 + $0xd0] sm:$0xff] %vm2248_vm4, %v14121_v23 }
  0x80   : > { %4800 = vst.msk [vmem:[#allocation5 + $0xd8] sm:$0xff] %vm2248_vm4, %v14121_v23 }
  0x81   : > { %4801 = vst.msk [vmem:[#allocation5 + $0xe0] sm:$0xff] %vm2248_vm4, %v14121_v23 }
  0x82   : > { %4802 = vst.msk [vmem:[#allocation5 + $0xe8] sm:$0xff] %vm2248_vm4, %v14121_v23 }
  0x86   : > { %10625 = vmatmul.msk.bf16.gmra.mxu0 %vm865_vm2, %v13296_v14 }
  0x96   : > { %10626 = vmatmul.msk.bf16.gmra.mxu0 %vm865_vm2, %v13297_v15 }
  0xa3   : > { %v1074_v17 = vpop.f32.mrf.mxu0 }
  0xa4   : > { %1395 = vst.msk [vmem:[#allocation2] sm:$0xff] %vm1394_vm3, %v1074_v17 }
  0xa6   : > { %10627 = vmatmul.msk.bf16.gmra.mxu0 %vm865_vm2, %v13298_v16 }
  0xab   : > { %v1076_v18 = vpop.f32.mrf.mxu0 }
  0xac   : > { %1396 = vst.msk [vmem:[#allocation2 + $0x8] sm:$0xff] %vm1394_vm3, %v1076_v18 }
  0xb3   : > { %v1079_v20 = vpop.f32.mrf.mxu0  ;;  %v1523_v49 = vld [vmem:[#allocation2] ss:$2 sm:$0xff]  ;;  %v1587_v50 = vld [vmem:[#allocation2 + $0x1] ss:$2 sm:$0xff] }
  0xb4   : > { %1397 = vst.msk [vmem:[#allocation2 + $0x10] sm:$0xff] %vm1394_vm3, %v1079_v20  ;;  %v1778_v55 = vmax.f32 %v1523_v49, %v1587_v50  ;;  %v2168_v49 = vpop.f32.mrf.mxu1 }
  0xb5   : > { %2249 = vst.msk [vmem:[#allocation4] sm:$0xff] %vm2248_vm4, %v2168_v49 }
  0xb6   : > { %10628 = vmatmul.msk.bf16.gmra.mxu0 %vm865_vm2, %v13299_v19 }
  0xbb   : > { %v1081_v22 = vpop.f32.mrf.mxu0 }
  0xbc   : > { %1398 = vst.msk [vmem:[#allocation2 + $0x18] sm:$0xff] %vm1394_vm3, %v1081_v22 }
  0xc3   : > { %v1084_v29 = vpop.f32.mrf.mxu0  ;;  %v1525_v51 = vld [vmem:[#allocation2 + $0x10] ss:$2 sm:$0xff]  ;;  %v1589_v52 = vld [vmem:[#allocation2 + $0x11] ss:$2 sm:$0xff] }
  0xc4   : > { %1399 = vst.msk [vmem:[#allocation2 + $0x20] sm:$0xff] %vm1394_vm3, %v1084_v29  ;;  %v1779_v57 = vmax.f32 %v1525_v51, %v1589_v52  ;;  %v13309_v52 = vld [vmem:[%s14254_s5 + $0x98] sm:$0xff] }
  0xc6   : > { %10629 = vmatmul.msk.bf16.gmra.mxu0 %vm865_vm2, %v13300_v28 }
  0xcb   : > { %v1086_v36 = vpop.f32.mrf.mxu0 }
  0xcc   : > { %1400 = vst.msk [vmem:[#allocation2 + $0x28] sm:$0xff] %vm1394_vm3, %v1086_v36 }
  0xd3   : > { %v1089_v38 = vpop.f32.mrf.mxu0  ;;  %v1651_v45 = vld [vmem:[#allocation2 + $0x20] ss:$2 sm:$0xff]  ;;  %v1715_v46 = vld [vmem:[#allocation2 + $0x21] ss:$2 sm:$0xff] }
  0xd4   : > { %1401 = vst.msk [vmem:[#allocation2 + $0x30] sm:$0xff] %vm1394_vm3, %v1089_v38  ;;  %v1810_v53 = vmax.f32 %v1651_v45, %v1715_v46  ;;  %v13308_v45 = vld [vmem:[%s14254_s5 + $0x90] sm:$0xff] }
  0xd6   : > { %10630 = vmatmul.msk.bf16.gmra.mxu0 %vm865_vm2, %v13301_v37  ;;  %v1842_v58 = vmax.f32 %v1778_v55, %v1810_v53 }
  0xd8   : > { %v1878_v61 = vadd.f32 %v14432_v59, %v1842_v58 }
  0xda   : > { %v1910_v1 = vmax.f32 %v1878_v61, 0.0 }
  0xdb   : > { %v1091_v39 = vpop.f32.mrf.mxu0 }
  0xdc   : > { %1402 = vst.msk [vmem:[#allocation2 + $0x38] sm:$0xff] %vm1394_vm3, %v1091_v39 }
  0xdd   : > { %2015 = vst.msk [vmem:[#allocation3 + $0x28] sm:$0xff] %vm1394_vm3, %v1910_v1  ;;  %v13310_v1 = vld [vmem:[%s14254_s5 + $0xa0] sm:$0xff] }
  0xe3   : > { %v1094_v41 = vpop.f32.mrf.mxu0  ;;  %v1653_v47 = vld [vmem:[#allocation2 + $0x30] ss:$2 sm:$0xff]  ;;  %v1717_v48 = vld [vmem:[#allocation2 + $0x31] ss:$2 sm:$0xff] }
  0xe4   : > { %1403 = vst.msk [vmem:[#allocation2 + $0x40] sm:$0xff] %vm1394_vm3, %v1094_v41  ;;  %v1811_v54 = vmax.f32 %v1653_v47, %v1717_v48  ;;  %v2049_v4 = vld [vmem:[#allocation3 + $0x27] sm:$0xff] }
  0xe5   : > { %v2283_v6 = vld [vmem:[#allocation3 + $0x28] sm:$0xff] }
  0xe6   : > { %10631 = vmatmul.msk.bf16.gmra.mxu0 %vm865_vm2, %v13302_v40  ;;  %v1843_v60 = vmax.f32 %v1779_v57, %v1811_v54 }
  0xe8   : > { %v1879_v62 = vadd.f32 %v14432_v59, %v1843_v60 }
  0xea   : > { %v1911_v2 = vmax.f32 %v1879_v62, 0.0 }
  0xeb   : > { %v1096_v42 = vpop.f32.mrf.mxu0 }
  0xec   : > { %2016 = vst.msk [vmem:[#allocation3 + $0x30] sm:$0xff] %vm1394_vm3, %v1911_v2 }
  0xed   : > { %1404 = vst.msk [vmem:[#allocation2 + $0x48] sm:$0xff] %vm1394_vm3, %v1096_v42 }
  0xf3   : > { %v1099_v43 = vpop.f32.mrf.mxu0  ;;  %v2050_v5 = vld [vmem:[#allocation3 + $0x2f] sm:$0xff] }
  0xf4   : > { %1405 = vst.msk [vmem:[#allocation2 + $0x50] sm:$0xff] %vm1394_vm3, %v1099_v43  ;;  %v2284_v7 = vld [vmem:[#allocation3 + $0x30] sm:$0xff]  ;;  %v2080_v8 = vpack.c.bf16 %v2050_v5, %v2049_v4  ;;  %v1527_v12 = vld [vmem:[#allocation2 + $0x40] ss:$2 sm:$0xff]  ;;  %v1591_v13 = vld [vmem:[#allocation2 + $0x41] ss:$2 sm:$0xff] }
  0xf5   : > { %v2314_v9 = vpack.c.bf16 %v2284_v7, %v2283_v6  ;;  %v1780_v16 = vmax.f32 %v1527_v12, %v1591_v13 }
  0xf6   : > { %10632 = vmatmul.msk.bf16.gmra.mxu0 %vm865_vm2, %v13303_v44  ;;  %10692 = vmatmul.msk.bf16.gmra.mxu1 %vm1394_vm3, %v2080_v8  ;;  %v1389_v44 = vpop.f32.mrf.mxu2 }
  0xf7   : > { %10720 = vmatmul.msk.bf16.gmra.mxu2 %vm1394_vm3, %v2314_v9  ;;  %1521 = vst.msk [vmem:[#allocation2 + $0x3f0] sm:$0xff] %vm1394_vm3, %v1389_v44 }
  0xfb   : > { %v1101_v56 = vpop.f32.mrf.mxu0 }
  0xfc   : > { %1406 = vst.msk [vmem:[#allocation2 + $0x58] sm:$0xff] %vm1394_vm3, %v1101_v56 }
  0xfe   : > { %v1391_v48 = vpop.f32.mrf.mxu2 }
  0xff   : > { %1522 = vst.msk [vmem:[#allocation2 + $0x3f8] sm:$0xff] %vm1394_vm3, %v1391_v48 }
 0x103   : > { %v1104_v0 = vpop.f32.mrf.mxu0  ;;  %v1529_v22 = vld [vmem:[#allocation2 + $0x50] ss:$2 sm:$0xff]  ;;  %v1593_v24 = vld [vmem:[#allocation2 + $0x51] ss:$2 sm:$0xff] }
 0x104   : > { %1407 = vst.msk [vmem:[#allocation2 + $0x60] sm:$0xff] %vm1394_vm3, %v1104_v0  ;;  %v1781_v29 = vmax.f32 %v1529_v22, %v1593_v24 }
 0x106   : > { %10633 = vmatmul.msk.bf16.gmra.mxu0 %vm865_vm2, %v13304_v63  ;;  %v2403_v12 = vpop.f32.mrf.mxu2 }
 0x10b   : > { %v1106_v3 = vpop.f32.mrf.mxu0 }
 0x10c   : > { %1408 = vst.msk [vmem:[#allocation2 + $0x68] sm:$0xff] %vm1394_vm3, %v1106_v3 }
 0x10e   : > { %v2405_v23 = vpop.f32.mrf.mxu2 }
 0x113   : > { %v1109_v11 = vpop.f32.mrf.mxu0  ;;  %v1655_v14 = vld [vmem:[#allocation2 + $0x60] ss:$2 sm:$0xff]  ;;  %v1719_v15 = vld [vmem:[#allocation2 + $0x61] ss:$2 sm:$0xff] }
 0x114   : > { %1409 = vst.msk [vmem:[#allocation2 + $0x70] sm:$0xff] %vm1394_vm3, %v1109_v11  ;;  %v1812_v17 = vmax.f32 %v1655_v14, %v1719_v15  ;;  %v2483_v11 = vld [vmem:[#allocation4] sm:$0xff]  ;;  %v13311_v14 = vld [vmem:[%s14254_s5 + $0xa8] sm:$0xff] }
 0x115   : > { %v2515_v13 = vadd.f32 %v2483_v11, %v2403_v12 }
 0x116   : > { %10634 = vmatmul.msk.bf16.gmra.mxu0 %vm865_vm2, %v13305_v10  ;;  %v1844_v18 = vmax.f32 %v1780_v16, %v1812_v17  ;;  %v2170_v17 = vpop.f32.mrf.mxu1 }
 0x117   : > { %2547 = vst.msk [vmem:[#allocation4] sm:$0xff] %vm2248_vm4, %v2515_v13  ;;  %v13316_v13 = vld [vmem:[%s14254_s5 + $0xd0] sm:$0xff] }
 0x118   : > { %v1880_v19 = vadd.f32 %v14432_v59, %v1844_v18  ;;  %2250 = vst.msk [vmem:[#allocation4 + $0x8] sm:$0xff] %vm2248_vm4, %v2170_v17 }
 0x11a   : > { %v1912_v21 = vmax.f32 %v1880_v19, 0.0 }
 0x11b   : > { %v1111_v20 = vpop.f32.mrf.mxu0 }
 0x11c   : > { %1410 = vst.msk [vmem:[#allocation2 + $0x78] sm:$0xff] %vm1394_vm3, %v1111_v20 }
 0x11d   : > { %2017 = vst.msk [vmem:[#allocation3 + $0x48] sm:$0xff] %vm1394_vm3, %v1912_v21 }
 0x11f   : > { %v2484_v24 = vld [vmem:[#allocation4 + $0x8] sm:$0xff] }
 0x123   : > { %v1657_v26 = vld [vmem:[#allocation2 + $0x70] ss:$2 sm:$0xff]  ;;  %v1721_v27 = vld [vmem:[#allocation2 + $0x71] ss:$2 sm:$0xff]  ;;  %v1114_v28 = vpop.f32.mrf.mxu0 }
 0x124   : > { %v1813_v30 = vmax.f32 %v1657_v26, %v1721_v27  ;;  %1411 = vst.msk [vmem:[#allocation2 + $0x80] sm:$0xff] %vm1394_vm3, %v1114_v28  ;;  %v2051_v36 = vld [vmem:[#allocation3 + $0x47] sm:$0xff]  ;;  %v2516_v26 = vadd.f32 %v2484_v24, %v2405_v23  ;;  %v13312_v28 = vld [vmem:[%s14254_s5 + $0xb0] sm:$0xff] }
 0x125   : > { %v2285_v39 = vld [vmem:[#allocation3 + $0x48] sm:$0xff] }
 0x126   : > { %v1845_v31 = vmax.f32 %v1781_v29, %v1813_v30  ;;  %10635 = vmatmul.msk.bf16.gmra.mxu0 %vm865_vm2, %v13306_v25  ;;  %2548 = vst.msk [vmem:[#allocation4 + $0x8] sm:$0xff] %vm2248_vm4, %v2516_v26 }
 0x128   : > { %v1881_v32 = vadd.f32 %v14432_v59, %v1845_v31 }
 0x12a   : > { %v1913_v33 = vmax.f32 %v1881_v32, 0.0 }
 0x12b   : > { %v1116_v34 = vpop.f32.mrf.mxu0 }
 0x12c   : > { %2018 = vst.msk [vmem:[#allocation3 + $0x50] sm:$0xff] %vm1394_vm3, %v1913_v33  ;;  %v13313_v33 = vld [vmem:[%s14254_s5 + $0xb8] sm:$0xff] }
 0x12d   : > { %1412 = vst.msk [vmem:[#allocation2 + $0x88] sm:$0xff] %vm1394_vm3, %v1116_v34 }
 0x133   : > { %v1119_v37 = vpop.f32.mrf.mxu0  ;;  %v2052_v38 = vld [vmem:[#allocation3 + $0x4f] sm:$0xff] }
 0x134   : > { %v2286_v40 = vld [vmem:[#allocation3 + $0x50] sm:$0xff]  ;;  %1413 = vst.msk [vmem:[#allocation2 + $0x90] sm:$0xff] %vm1394_vm3, %v1119_v37  ;;  %v2081_v41 = vpack.c.bf16 %v2052_v38, %v2051_v36  ;;  %v1531_v50 = vld [vmem:[#allocation2 + $0x80] ss:$2 sm:$0xff]  ;;  %v1595_v51 = vld [vmem:[#allocation2 + $0x81] ss:$2 sm:$0xff] }
 0x135   : > { %v2315_v42 = vpack.c.bf16 %v2286_v40, %v2285_v39  ;;  %v1782_v56 = vmax.f32 %v1531_v50, %v1595_v51  ;;  %v13314_v50 = vld [vmem:[%s14254_s5 + $0xc0] sm:$0xff] }
 0x136   : > { %10636 = vmatmul.msk.bf16.gmra.mxu0 %vm865_vm2, %v13307_v35  ;;  %10693 = vmatmul.msk.bf16.gmra.mxu1 %vm1394_vm3, %v2081_v41 }
 0x137   : > { %10721 = vmatmul.msk.bf16.gmra.mxu2 %vm1394_vm3, %v2315_v42 }
 0x13b   : > { %v1121_v43 = vpop.f32.mrf.mxu0 }
 0x13c   : > { %1414 = vst.msk [vmem:[#allocation2 + $0x98] sm:$0xff] %vm1394_vm3, %v1121_v43 }
 0x143   : > { %v1124_v46 = vpop.f32.mrf.mxu0  ;;  %v1533_v63 = vld [vmem:[#allocation2 + $0x90] ss:$2 sm:$0xff]  ;;  %v1597_v0 = vld [vmem:[#allocation2 + $0x91] ss:$2 sm:$0xff] }
 0x144   : > { %1415 = vst.msk [vmem:[#allocation2 + $0xa0] sm:$0xff] %vm1394_vm3, %v1124_v46  ;;  %v1783_v5 = vmax.f32 %v1533_v63, %v1597_v0  ;;  %v13315_v63 = vld [vmem:[%s14254_s5 + $0xc8] sm:$0xff] }
 0x146   : > { %10637 = vmatmul.msk.bf16.gmra.mxu0 %vm865_vm2, %v13308_v45 }
 0x14b   : > { %v1126_v47 = vpop.f32.mrf.mxu0 }
 0x14c   : > { %1416 = vst.msk [vmem:[#allocation2 + $0xa8] sm:$0xff] %vm1394_vm3, %v1126_v47 }
 0x153   : > { %v1659_v53 = vld [vmem:[#allocation2 + $0xa0] ss:$2 sm:$0xff]  ;;  %v1723_v54 = vld [vmem:[#allocation2 + $0xa1] ss:$2 sm:$0xff]  ;;  %v1129_v55 = vpop.f32.mrf.mxu0 }
 0x154   : > { %v1814_v57 = vmax.f32 %v1659_v53, %v1723_v54  ;;  %1417 = vst.msk [vmem:[#allocation2 + $0xb0] sm:$0xff] %vm1394_vm3, %v1129_v55 }
 0x156   : > { %v1846_v58 = vmax.f32 %v1782_v56, %v1814_v57  ;;  %10638 = vmatmul.msk.bf16.gmra.mxu0 %vm865_vm2, %v13309_v52 }
 0x158   : > { %v1882_v60 = vadd.f32 %v14432_v59, %v1846_v58 }
 0x15a   : > { %v1914_v61 = vmax.f32 %v1882_v60, 0.0 }
 0x15b   : > { %v1131_v62 = vpop.f32.mrf.mxu0 }
 0x15c   : > { %2019 = vst.msk [vmem:[#allocation3 + $0x68] sm:$0xff] %vm1394_vm3, %v1914_v61 }
 0x15d   : > { %1418 = vst.msk [vmem:[#allocation2 + $0xb8] sm:$0xff] %vm1394_vm3, %v1131_v62 }
 0x163   : > { %v1134_v2 = vpop.f32.mrf.mxu0  ;;  %v2053_v16 = vld [vmem:[#allocation3 + $0x67] sm:$0xff] }
 0x164   : > { %v1661_v3 = vld [vmem:[#allocation2 + $0xb0] ss:$2 sm:$0xff]  ;;  %v1725_v4 = vld [vmem:[#allocation2 + $0xb1] ss:$2 sm:$0xff]  ;;  %1419 = vst.msk [vmem:[#allocation2 + $0xc0] sm:$0xff] %vm1394_vm3, %v1134_v2  ;;  %v2287_v19 = vld [vmem:[#allocation3 + $0x68] sm:$0xff] }
 0x165   : > { %v1815_v6 = vmax.f32 %v1661_v3, %v1725_v4 }
 0x166   : > { %10639 = vmatmul.msk.bf16.gmra.mxu0 %vm865_vm2, %v13310_v1 }
 0x167   : > { %v1847_v7 = vmax.f32 %v1783_v5, %v1815_v6 }
 0x169   : > { %v1883_v8 = vadd.f32 %v14432_v59, %v1847_v7 }
 0x16b   : > { %v1915_v9 = vmax.f32 %v1883_v8, 0.0  ;;  %v1136_v10 = vpop.f32.mrf.mxu0 }
 0x16c   : > { %1420 = vst.msk [vmem:[#allocation2 + $0xc8] sm:$0xff] %vm1394_vm3, %v1136_v10 }
 0x16d   : > { %2020 = vst.msk [vmem:[#allocation3 + $0x70] sm:$0xff] %vm1394_vm3, %v1915_v9 }
 0x173   : > { %v1139_v15 = vpop.f32.mrf.mxu0  ;;  %v2173_v30 = vpop.f32.mrf.mxu1  ;;  %v1535_v31 = vld [vmem:[#allocation2 + $0xc0] ss:$2 sm:$0xff]  ;;  %v1599_v32 = vld [vmem:[#allocation2 + $0xc1] ss:$2 sm:$0xff] }
 0x174   : > { %v2054_v18 = vld [vmem:[#allocation3 + $0x6f] sm:$0xff]  ;;  %1421 = vst.msk [vmem:[#allocation2 + $0xd0] sm:$0xff] %vm1394_vm3, %v1139_v15  ;;  %v1784_v37 = vmax.f32 %v1535_v31, %v1599_v32  ;;  %v13318_v31 = vld [vmem:[%s14254_s5 + $0xe0] sm:$0xff] }
 0x175   : > { %v2288_v20 = vld [vmem:[#allocation3 + $0x70] sm:$0xff]  ;;  %v2082_v21 = vpack.c.bf16 %v2054_v18, %v2053_v16  ;;  %2251 = vst.msk [vmem:[#allocation4 + $0x10] sm:$0xff] %vm2248_vm4, %v2173_v30 }
 0x176   : > { %v2316_v22 = vpack.c.bf16 %v2288_v20, %v2287_v19  ;;  %10640 = vmatmul.msk.bf16.gmra.mxu0 %vm865_vm2, %v13311_v14 }
 0x177   : > { %10694 = vmatmul.msk.bf16.gmra.mxu1 %vm1394_vm3, %v2082_v21  ;;  %v13317_v21 = vld [vmem:[%s14254_s5 + $0xd8] sm:$0xff] }
 0x178   : > { %10722 = vmatmul.msk.bf16.gmra.mxu2 %vm1394_vm3, %v2316_v22 }
 0x17a   : > { %v2408_v39 = vpop.f32.mrf.mxu2 }
 0x17b   : > { %v1141_v25 = vpop.f32.mrf.mxu0  ;;  %v2175_v42 = vpop.f32.mrf.mxu1 }
 0x17c   : > { %1422 = vst.msk [vmem:[#allocation2 + $0xd8] sm:$0xff] %vm1394_vm3, %v1141_v25  ;;  %v2485_v41 = vld [vmem:[#allocation4 + $0x10] sm:$0xff] }
 0x17d   : > { %v2517_v44 = vadd.f32 %v2485_v41, %v2408_v39  ;;  %2252 = vst.msk [vmem:[#allocation4 + $0x18] sm:$0xff] %vm2248_vm4, %v2175_v42 }
 0x17f   : > { %2549 = vst.msk [vmem:[#allocation4 + $0x10] sm:$0xff] %vm2248_vm4, %v2517_v44 }
 0x182   : > { %v2410_v47 = vpop.f32.mrf.mxu2 }
 0x183   : > { %v1144_v27 = vpop.f32.mrf.mxu0  ;;  %v1537_v51 = vld [vmem:[#allocation2 + $0xd0] ss:$2 sm:$0xff]  ;;  %v1601_v52 = vld [vmem:[#allocation2 + $0xd1] ss:$2 sm:$0xff] }
 0x184   : > { %1423 = vst.msk [vmem:[#allocation2 + $0xe0] sm:$0xff] %vm1394_vm3, %v1144_v27  ;;  %v2486_v48 = vld [vmem:[#allocation4 + $0x18] sm:$0xff]  ;;  %v1785_v56 = vmax.f32 %v1537_v51, %v1601_v52 }
 0x185   : > { %v2518_v49 = vadd.f32 %v2486_v48, %v2410_v47 }
 0x186   : > { %10641 = vmatmul.msk.bf16.gmra.mxu0 %vm865_vm2, %v13312_v28 }
 0x187   : > { %2550 = vst.msk [vmem:[#allocation4 + $0x18] sm:$0xff] %vm2248_vm4, %v2518_v49 }
 0x18b   : > { %v1146_v29 = vpop.f32.mrf.mxu0 }
 0x18c   : > { %1424 = vst.msk [vmem:[#allocation2 + $0xe8] sm:$0xff] %vm1394_vm3, %v1146_v29 }
 0x193   : > { %v1663_v34 = vld [vmem:[#allocation2 + $0xe0] ss:$2 sm:$0xff]  ;;  %v1727_v35 = vld [vmem:[#allocation2 + $0xe1] ss:$2 sm:$0xff]  ;;  %v1149_v36 = vpop.f32.mrf.mxu0 }
 0x194   : > { %v1816_v38 = vmax.f32 %v1663_v34, %v1727_v35  ;;  %1425 = vst.msk [vmem:[#allocation2 + $0xf0] sm:$0xff] %vm1394_vm3, %v1149_v36 }
 0x196   : > { %10642 = vmatmul.msk.bf16.gmra.mxu0 %vm865_vm2, %v13313_v33  ;;  %v1848_v40 = vmax.f32 %v1784_v37, %v1816_v38 }
 0x198   : > { %v1884_v43 = vadd.f32 %v14432_v59, %v1848_v40 }
 0x19a   : > { %v1916_v45 = vmax.f32 %v1884_v43, 0.0  ;;  %v13319_v43 = vld [vmem:[%s14254_s5 + $0xe8] sm:$0xff] }
 0x19b   : > { %v1151_v46 = vpop.f32.mrf.mxu0 }
 0x19c   : > { %2021 = vst.msk [vmem:[#allocation3 + $0x88] sm:$0xff] %vm1394_vm3, %v1916_v45 }
 0x19d   : > { %1426 = vst.msk [vmem:[#allocation2 + $0xf8] sm:$0xff] %vm1394_vm3, %v1151_v46 }
 0x1a3   : > { %v1154_v53 = vpop.f32.mrf.mxu0  ;;  %v2055_v2 = vld [vmem:[#allocation3 + $0x87] sm:$0xff] }
 0x1a4   : > { %v1665_v54 = vld [vmem:[#allocation2 + $0xf0] ss:$2 sm:$0xff]  ;;  %v1729_v55 = vld [vmem:[#allocation2 + $0xf1] ss:$2 sm:$0xff]  ;;  %1427 = vst.msk [vmem:[#allocation2 + $0x100] sm:$0xff] %vm1394_vm3, %v1154_v53  ;;  %v2289_v4 = vld [vmem:[#allocation3 + $0x88] sm:$0xff] }
 0x1a5   : > { %v1817_v57 = vmax.f32 %v1665_v54, %v1729_v55 }
 0x1a6   : > { %10643 = vmatmul.msk.bf16.gmra.mxu0 %vm865_vm2, %v13314_v50 }
 0x1a7   : > { %v1849_v58 = vmax.f32 %v1785_v56, %v1817_v57  ;;  %v13320_v57 = vld [vmem:[%s14254_s5 + $0xf0] sm:$0xff] }
 0x1a9   : > { %v1885_v60 = vadd.f32 %v14432_v59, %v1849_v58 }
 0x1ab   : > { %v1917_v61 = vmax.f32 %v1885_v60, 0.0  ;;  %v1156_v62 = vpop.f32.mrf.mxu0 }
 0x1ac   : > { %1428 = vst.msk [vmem:[#allocation2 + $0x108] sm:$0xff] %vm1394_vm3, %v1156_v62 }
 0x1ad   : > { %2022 = vst.msk [vmem:[#allocation3 + $0x90] sm:$0xff] %vm1394_vm3, %v1917_v61 }
 0x1b3   : > { %v2178_v0 = vpop.f32.mrf.mxu1  ;;  %v1159_v1 = vpop.f32.mrf.mxu0  ;;  %v1539_v19 = vld [vmem:[#allocation2 + $0x100] ss:$2 sm:$0xff]  ;;  %v1603_v20 = vld [vmem:[#allocation2 + $0x101] ss:$2 sm:$0xff] }
 0x1b4   : > { %2253 = vst.msk [vmem:[#allocation4 + $0x20] sm:$0xff] %vm2248_vm4, %v2178_v0  ;;  %v2056_v3 = vld [vmem:[#allocation3 + $0x8f] sm:$0xff]  ;;  %v1786_v25 = vmax.f32 %v1539_v19, %v1603_v20 }
 0x1b5   : > { %1429 = vst.msk [vmem:[#allocation2 + $0x110] sm:$0xff] %vm1394_vm3, %v1159_v1  ;;  %v2290_v5 = vld [vmem:[#allocation3 + $0x90] sm:$0xff]  ;;  %v2083_v6 = vpack.c.bf16 %v2056_v3, %v2055_v2  ;;  %v13321_v2 = vld [vmem:[%s14254_s5 + $0xf8] sm:$0xff] }
 0x1b6   : > { %10644 = vmatmul.msk.bf16.gmra.mxu0 %vm865_vm2, %v13315_v63  ;;  %v2317_v7 = vpack.c.bf16 %v2290_v5, %v2289_v4 }
 0x1b7   : > { %10695 = vmatmul.msk.bf16.gmra.mxu1 %vm1394_vm3, %v2083_v6 }
 0x1b8   : > { %10723 = vmatmul.msk.bf16.gmra.mxu2 %vm1394_vm3, %v2317_v7 }
 0x1ba   : > { %v2413_v8 = vpop.f32.mrf.mxu2 }
 0x1bb   : > { %v2487_v9 = vld [vmem:[#allocation4 + $0x20] sm:$0xff]  ;;  %v2180_v10 = vpop.f32.mrf.mxu1  ;;  %v1161_v12 = vpop.f32.mrf.mxu0 }
 0x1bc   : > { %v2519_v11 = vadd.f32 %v2487_v9, %v2413_v8  ;;  %2254 = vst.msk [vmem:[#allocation4 + $0x28] sm:$0xff] %vm2248_vm4, %v2180_v10 }
 0x1bd   : > { %1430 = vst.msk [vmem:[#allocation2 + $0x118] sm:$0xff] %vm1394_vm3, %v1161_v12  ;;  %v13322_v12 = vld [vmem:[%s14254_s5 + $0x100] sm:$0xff] }
 0x1be   : > { %2551 = vst.msk [vmem:[#allocation4 + $0x20] sm:$0xff] %vm2248_vm4, %v2519_v11 }
 0x1c2   : > { %v2415_v14 = vpop.f32.mrf.mxu2 }
 0x1c3   : > { %v2488_v15 = vld [vmem:[#allocation4 + $0x28] sm:$0xff]  ;;  %v1164_v17 = vpop.f32.mrf.mxu0 }
 0x1c4   : > { %v2520_v16 = vadd.f32 %v2488_v15, %v2415_v14  ;;  %1431 = vst.msk [vmem:[#allocation2 + $0x120] sm:$0xff] %vm1394_vm3, %v1164_v17  ;;  %v1541_v32 = vld [vmem:[#allocation2 + $0x110] ss:$2 sm:$0xff]  ;;  %v1605_v33 = vld [vmem:[#allocation2 + $0x111] ss:$2 sm:$0xff] }
 0x1c5   : > { %v1787_v37 = vmax.f32 %v1541_v32, %v1605_v33 }
 0x1c6   : > { %2552 = vst.msk [vmem:[#allocation4 + $0x28] sm:$0xff] %vm2248_vm4, %v2520_v16  ;;  %10645 = vmatmul.msk.bf16.gmra.mxu0 %vm865_vm2, %v13316_v13 }
 0x1cb   : > { %v1166_v18 = vpop.f32.mrf.mxu0 }
 0x1cc   : > { %1432 = vst.msk [vmem:[#allocation2 + $0x128] sm:$0xff] %vm1394_vm3, %v1166_v18 }
 0x1d3   : > { %v1667_v22 = vld [vmem:[#allocation2 + $0x120] ss:$2 sm:$0xff]  ;;  %v1731_v23 = vld [vmem:[#allocation2 + $0x121] ss:$2 sm:$0xff]  ;;  %v1169_v24 = vpop.f32.mrf.mxu0 }
 0x1d4   : > { %v1818_v26 = vmax.f32 %v1667_v22, %v1731_v23  ;;  %1433 = vst.msk [vmem:[#allocation2 + $0x130] sm:$0xff] %vm1394_vm3, %v1169_v24  ;;  %v13323_v24 = vld [vmem:[%s14254_s5 + $0x108] sm:$0xff] }
 0x1d6   : > { %10646 = vmatmul.msk.bf16.gmra.mxu0 %vm865_vm2, %v13317_v21  ;;  %v1850_v27 = vmax.f32 %v1786_v25, %v1818_v26 }
 0x1d8   : > { %v1886_v28 = vadd.f32 %v14432_v59, %v1850_v27 }
 0x1da   : > { %v1918_v29 = vmax.f32 %v1886_v28, 0.0 }
 0x1db   : > { %v1171_v30 = vpop.f32.mrf.mxu0 }
 0x1dc   : > { %2023 = vst.msk [vmem:[#allocation3 + $0xa8] sm:$0xff] %vm1394_vm3, %v1918_v29 }
 0x1dd   : > { %1434 = vst.msk [vmem:[#allocation2 + $0x138] sm:$0xff] %vm1394_vm3, %v1171_v30 }
 0x1e3   : > { %v1174_v34 = vpop.f32.mrf.mxu0  ;;  %v2057_v46 = vld [vmem:[#allocation3 + $0xa7] sm:$0xff] }
 0x1e4   : > { %v1669_v35 = vld [vmem:[#allocation2 + $0x130] ss:$2 sm:$0xff]  ;;  %v1733_v36 = vld [vmem:[#allocation2 + $0x131] ss:$2 sm:$0xff]  ;;  %1435 = vst.msk [vmem:[#allocation2 + $0x140] sm:$0xff] %vm1394_vm3, %v1174_v34  ;;  %v2291_v48 = vld [vmem:[#allocation3 + $0xa8] sm:$0xff] }
 0x1e5   : > { %v1819_v38 = vmax.f32 %v1669_v35, %v1733_v36 }
 0x1e6   : > { %10647 = vmatmul.msk.bf16.gmra.mxu0 %vm865_vm2, %v13318_v31 }
 0x1e7   : > { %v1851_v39 = vmax.f32 %v1787_v37, %v1819_v38  ;;  %v13324_v38 = vld [vmem:[%s14254_s5 + $0x110] sm:$0xff] }
 0x1e9   : > { %v1887_v40 = vadd.f32 %v14432_v59, %v1851_v39 }
 0x1eb   : > { %v1919_v41 = vmax.f32 %v1887_v40, 0.0  ;;  %v1176_v42 = vpop.f32.mrf.mxu0 }
 0x1ec   : > { %1436 = vst.msk [vmem:[#allocation2 + $0x148] sm:$0xff] %vm1394_vm3, %v1176_v42 }
 0x1ed   : > { %2024 = vst.msk [vmem:[#allocation3 + $0xb0] sm:$0xff] %vm1394_vm3, %v1919_v41 }
 0x1f3   : > { %v1179_v44 = vpop.f32.mrf.mxu0  ;;  %v1543_v0 = vld [vmem:[#allocation2 + $0x140] ss:$2 sm:$0xff]  ;;  %v1607_v1 = vld [vmem:[#allocation2 + $0x141] ss:$2 sm:$0xff] }
 0x1f4   : > { %v2183_v45 = vpop.f32.mrf.mxu1  ;;  %1437 = vst.msk [vmem:[#allocation2 + $0x150] sm:$0xff] %vm1394_vm3, %v1179_v44  ;;  %v2058_v47 = vld [vmem:[#allocation3 + $0xaf] sm:$0xff]  ;;  %v1788_v6 = vmax.f32 %v1543_v0, %v1607_v1 }
 0x1f5   : > { %v2292_v49 = vld [vmem:[#allocation3 + $0xb0] sm:$0xff]  ;;  %2255 = vst.msk [vmem:[#allocation4 + $0x30] sm:$0xff] %vm2248_vm4, %v2183_v45  ;;  %v2084_v50 = vpack.c.bf16 %v2058_v47, %v2057_v46  ;;  %v13325_v46 = vld [vmem:[%s14254_s5 + $0x118] sm:$0xff] }
 0x1f6   : > { %10648 = vmatmul.msk.bf16.gmra.mxu0 %vm865_vm2, %v13319_v43  ;;  %v2318_v51 = vpack.c.bf16 %v2292_v49, %v2291_v48 }
 0x1f7   : > { %10696 = vmatmul.msk.bf16.gmra.mxu1 %vm1394_vm3, %v2084_v50 }
 0x1f8   : > { %10724 = vmatmul.msk.bf16.gmra.mxu2 %vm1394_vm3, %v2318_v51 }
 0x1fb   : > { %v2418_v52 = vpop.f32.mrf.mxu2  ;;  %v1181_v53 = vpop.f32.mrf.mxu0 }
 0x1fc   : > { %v2185_v54 = vpop.f32.mrf.mxu1  ;;  %v2489_v55 = vld [vmem:[#allocation4 + $0x30] sm:$0xff]  ;;  %1438 = vst.msk [vmem:[#allocation2 + $0x158] sm:$0xff] %vm1394_vm3, %v1181_v53 }
 0x1fd   : > { %v2521_v56 = vadd.f32 %v2489_v55, %v2418_v52  ;;  %2256 = vst.msk [vmem:[#allocation4 + $0x38] sm:$0xff] %vm2248_vm4, %v2185_v54 }
 0x1ff   : > { %2553 = vst.msk [vmem:[#allocation4 + $0x30] sm:$0xff] %vm2248_vm4, %v2521_v56  ;;  %v13326_v56 = vld [vmem:[%s14254_s5 + $0x120] sm:$0xff] }
 0x203   : > { %v1184_v58 = vpop.f32.mrf.mxu0  ;;  %v2420_v60 = vpop.f32.mrf.mxu2  ;;  %v1545_v13 = vld [vmem:[#allocation2 + $0x150] ss:$2 sm:$0xff]  ;;  %v1609_v14 = vld [vmem:[#allocation2 + $0x151] ss:$2 sm:$0xff] }
 0x204   : > { %v2490_v61 = vld [vmem:[#allocation4 + $0x38] sm:$0xff]  ;;  %1439 = vst.msk [vmem:[#allocation2 + $0x160] sm:$0xff] %vm1394_vm3, %v1184_v58  ;;  %v1789_v18 = vmax.f32 %v1545_v13, %v1609_v14 }
 0x205   : > { %v2522_v62 = vadd.f32 %v2490_v61, %v2420_v60 }
 0x206   : > { %10649 = vmatmul.msk.bf16.gmra.mxu0 %vm865_vm2, %v13320_v57 }
 0x207   : > { %2554 = vst.msk [vmem:[#allocation4 + $0x38] sm:$0xff] %vm2248_vm4, %v2522_v62 }
 0x20b   : > { %v1186_v63 = vpop.f32.mrf.mxu0 }
 0x20c   : > { %1440 = vst.msk [vmem:[#allocation2 + $0x168] sm:$0xff] %vm1394_vm3, %v1186_v63 }
 0x213   : > { %v1671_v3 = vld [vmem:[#allocation2 + $0x160] ss:$2 sm:$0xff]  ;;  %v1735_v4 = vld [vmem:[#allocation2 + $0x161] ss:$2 sm:$0xff]  ;;  %v1189_v5 = vpop.f32.mrf.mxu0 }
 0x214   : > { %v1820_v7 = vmax.f32 %v1671_v3, %v1735_v4  ;;  %1441 = vst.msk [vmem:[#allocation2 + $0x170] sm:$0xff] %vm1394_vm3, %v1189_v5  ;;  %v13327_v5 = vld [vmem:[%s14254_s5 + $0x128] sm:$0xff] }
 0x216   : > { %10650 = vmatmul.msk.bf16.gmra.mxu0 %vm865_vm2, %v13321_v2  ;;  %v1852_v8 = vmax.f32 %v1788_v6, %v1820_v7 }
 0x218   : > { %v1888_v9 = vadd.f32 %v14432_v59, %v1852_v8 }
 0x21a   : > { %v1920_v10 = vmax.f32 %v1888_v9, 0.0 }
 0x21b   : > { %v1191_v11 = vpop.f32.mrf.mxu0 }
 0x21c   : > { %2025 = vst.msk [vmem:[#allocation3 + $0xc8] sm:$0xff] %vm1394_vm3, %v1920_v10 }
 0x21d   : > { %1442 = vst.msk [vmem:[#allocation2 + $0x178] sm:$0xff] %vm1394_vm3, %v1191_v11 }
 0x223   : > { %v1194_v15 = vpop.f32.mrf.mxu0  ;;  %v2059_v26 = vld [vmem:[#allocation3 + $0xc7] sm:$0xff] }
 0x224   : > { %v1673_v16 = vld [vmem:[#allocation2 + $0x170] ss:$2 sm:$0xff]  ;;  %v1737_v17 = vld [vmem:[#allocation2 + $0x171] ss:$2 sm:$0xff]  ;;  %1443 = vst.msk [vmem:[#allocation2 + $0x180] sm:$0xff] %vm1394_vm3, %v1194_v15  ;;  %v2293_v29 = vld [vmem:[#allocation3 + $0xc8] sm:$0xff] }
 0x225   : > { %v1821_v19 = vmax.f32 %v1673_v16, %v1737_v17 }
 0x226   : > { %10651 = vmatmul.msk.bf16.gmra.mxu0 %vm865_vm2, %v13322_v12 }
 0x227   : > { %v1853_v20 = vmax.f32 %v1789_v18, %v1821_v19  ;;  %v13328_v19 = vld [vmem:[%s14254_s5 + $0x130] sm:$0xff] }
 0x229   : > { %v1889_v21 = vadd.f32 %v14432_v59, %v1853_v20 }
 0x22b   : > { %v1921_v22 = vmax.f32 %v1889_v21, 0.0  ;;  %v1196_v23 = vpop.f32.mrf.mxu0 }
 0x22c   : > { %1444 = vst.msk [vmem:[#allocation2 + $0x188] sm:$0xff] %vm1394_vm3, %v1196_v23 }
 0x22d   : > { %2026 = vst.msk [vmem:[#allocation3 + $0xd0] sm:$0xff] %vm1394_vm3, %v1921_v22 }
 0x233   : > { %v1199_v25 = vpop.f32.mrf.mxu0  ;;  %v1547_v44 = vld [vmem:[#allocation2 + $0x180] ss:$2 sm:$0xff]  ;;  %v1611_v45 = vld [vmem:[#allocation2 + $0x181] ss:$2 sm:$0xff] }
 0x234   : > { %1445 = vst.msk [vmem:[#allocation2 + $0x190] sm:$0xff] %vm1394_vm3, %v1199_v25  ;;  %v2188_v27 = vpop.f32.mrf.mxu1  ;;  %v2060_v28 = vld [vmem:[#allocation3 + $0xcf] sm:$0xff]  ;;  %v1790_v50 = vmax.f32 %v1547_v44, %v1611_v45 }
 0x235   : > { %v2294_v30 = vld [vmem:[#allocation3 + $0xd0] sm:$0xff]  ;;  %2257 = vst.msk [vmem:[#allocation4 + $0x40] sm:$0xff] %vm2248_vm4, %v2188_v27  ;;  %v2085_v31 = vpack.c.bf16 %v2060_v28, %v2059_v26  ;;  %v13329_v27 = vld [vmem:[%s14254_s5 + $0x138] sm:$0xff] }
 0x236   : > { %10652 = vmatmul.msk.bf16.gmra.mxu0 %vm865_vm2, %v13323_v24  ;;  %v2319_v32 = vpack.c.bf16 %v2294_v30, %v2293_v29 }
 0x237   : > { %10697 = vmatmul.msk.bf16.gmra.mxu1 %vm1394_vm3, %v2085_v31 }
 0x238   : > { %10725 = vmatmul.msk.bf16.gmra.mxu2 %vm1394_vm3, %v2319_v32 }
 0x23b   : > { %v2423_v33 = vpop.f32.mrf.mxu2  ;;  %v1201_v34 = vpop.f32.mrf.mxu0 }
 0x23c   : > { %v2491_v35 = vld [vmem:[#allocation4 + $0x40] sm:$0xff]  ;;  %1446 = vst.msk [vmem:[#allocation2 + $0x198] sm:$0xff] %vm1394_vm3, %v1201_v34  ;;  %v2190_v36 = vpop.f32.mrf.mxu1 }
 0x23d   : > { %v2523_v37 = vadd.f32 %v2491_v35, %v2423_v33  ;;  %2258 = vst.msk [vmem:[#allocation4 + $0x48] sm:$0xff] %vm2248_vm4, %v2190_v36 }
 0x23f   : > { %2555 = vst.msk [vmem:[#allocation4 + $0x40] sm:$0xff] %vm2248_vm4, %v2523_v37  ;;  %v13330_v37 = vld [vmem:[%s14254_s5 + $0x140] sm:$0xff] }
 0x243   : > { %v1204_v39 = vpop.f32.mrf.mxu0  ;;  %v2425_v40 = vpop.f32.mrf.mxu2  ;;  %v1549_v57 = vld [vmem:[#allocation2 + $0x190] ss:$2 sm:$0xff]  ;;  %v1613_v58 = vld [vmem:[#allocation2 + $0x191] ss:$2 sm:$0xff] }
 0x244   : > { %v2492_v41 = vld [vmem:[#allocation4 + $0x48] sm:$0xff]  ;;  %1447 = vst.msk [vmem:[#allocation2 + $0x1a0] sm:$0xff] %vm1394_vm3, %v1204_v39  ;;  %v1791_v63 = vmax.f32 %v1549_v57, %v1613_v58 }
 0x245   : > { %v2524_v42 = vadd.f32 %v2492_v41, %v2425_v40 }
 0x246   : > { %10653 = vmatmul.msk.bf16.gmra.mxu0 %vm865_vm2, %v13324_v38 }
 0x247   : > { %2556 = vst.msk [vmem:[#allocation4 + $0x48] sm:$0xff] %vm2248_vm4, %v2524_v42 }
 0x24b   : > { %v1206_v43 = vpop.f32.mrf.mxu0 }
 0x24c   : > { %1448 = vst.msk [vmem:[#allocation2 + $0x1a8] sm:$0xff] %vm1394_vm3, %v1206_v43 }
 0x253   : > { %v1675_v47 = vld [vmem:[#allocation2 + $0x1a0] ss:$2 sm:$0xff]  ;;  %v1739_v48 = vld [vmem:[#allocation2 + $0x1a1] ss:$2 sm:$0xff]  ;;  %v1209_v49 = vpop.f32.mrf.mxu0 }
 0x254   : > { %v1822_v51 = vmax.f32 %v1675_v47, %v1739_v48  ;;  %1449 = vst.msk [vmem:[#allocation2 + $0x1b0] sm:$0xff] %vm1394_vm3, %v1209_v49  ;;  %v13331_v49 = vld [vmem:[%s14254_s5 + $0x148] sm:$0xff] }
 0x256   : > { %10654 = vmatmul.msk.bf16.gmra.mxu0 %vm865_vm2, %v13325_v46  ;;  %v1854_v52 = vmax.f32 %v1790_v50, %v1822_v51 }
 0x258   : > { %v1890_v53 = vadd.f32 %v14432_v59, %v1854_v52 }
 0x25a   : > { %v1922_v54 = vmax.f32 %v1890_v53, 0.0 }
 0x25b   : > { %v1211_v55 = vpop.f32.mrf.mxu0 }
 0x25c   : > { %2027 = vst.msk [vmem:[#allocation3 + $0xe8] sm:$0xff] %vm1394_vm3, %v1922_v54 }
 0x25d   : > { %1450 = vst.msk [vmem:[#allocation2 + $0x1b8] sm:$0xff] %vm1394_vm3, %v1211_v55 }
 0x263   : > { %v1214_v60 = vpop.f32.mrf.mxu0  ;;  %v2061_v7 = vld [vmem:[#allocation3 + $0xe7] sm:$0xff] }
 0x264   : > { %v1677_v61 = vld [vmem:[#allocation2 + $0x1b0] ss:$2 sm:$0xff]  ;;  %v1741_v62 = vld [vmem:[#allocation2 + $0x1b1] ss:$2 sm:$0xff]  ;;  %1451 = vst.msk [vmem:[#allocation2 + $0x1c0] sm:$0xff] %vm1394_vm3, %v1214_v60  ;;  %v2295_v10 = vld [vmem:[#allocation3 + $0xe8] sm:$0xff] }
 0x265   : > { %v1823_v0 = vmax.f32 %v1677_v61, %v1741_v62 }
 0x266   : > { %10655 = vmatmul.msk.bf16.gmra.mxu0 %vm865_vm2, %v13326_v56 }
 0x267   : > { %v1855_v1 = vmax.f32 %v1791_v63, %v1823_v0  ;;  %v13332_v63 = vld [vmem:[%s14254_s5 + $0x150] sm:$0xff] }
 0x269   : > { %v1891_v2 = vadd.f32 %v14432_v59, %v1855_v1 }
 0x26b   : > { %v1923_v3 = vmax.f32 %v1891_v2, 0.0  ;;  %v1216_v4 = vpop.f32.mrf.mxu0 }
 0x26c   : > { %1452 = vst.msk [vmem:[#allocation2 + $0x1c8] sm:$0xff] %vm1394_vm3, %v1216_v4 }
 0x26d   : > { %2028 = vst.msk [vmem:[#allocation3 + $0xf0] sm:$0xff] %vm1394_vm3, %v1923_v3 }
 0x273   : > { %v1219_v6 = vpop.f32.mrf.mxu0  ;;  %v1551_v25 = vld [vmem:[#allocation2 + $0x1c0] ss:$2 sm:$0xff]  ;;  %v1615_v26 = vld [vmem:[#allocation2 + $0x1c1] ss:$2 sm:$0xff] }
 0x274   : > { %1453 = vst.msk [vmem:[#allocation2 + $0x1d0] sm:$0xff] %vm1394_vm3, %v1219_v6  ;;  %v2193_v8 = vpop.f32.mrf.mxu1  ;;  %v2062_v9 = vld [vmem:[#allocation3 + $0xef] sm:$0xff]  ;;  %v1792_v31 = vmax.f32 %v1551_v25, %v1615_v26 }
 0x275   : > { %v2296_v11 = vld [vmem:[#allocation3 + $0xf0] sm:$0xff]  ;;  %2259 = vst.msk [vmem:[#allocation4 + $0x50] sm:$0xff] %vm2248_vm4, %v2193_v8  ;;  %v2086_v12 = vpack.c.bf16 %v2062_v9, %v2061_v7  ;;  %v13333_v7 = vld [vmem:[%s14254_s5 + $0x158] sm:$0xff] }
 0x276   : > { %10656 = vmatmul.msk.bf16.gmra.mxu0 %vm865_vm2, %v13327_v5  ;;  %v2320_v13 = vpack.c.bf16 %v2296_v11, %v2295_v10 }
 0x277   : > { %10698 = vmatmul.msk.bf16.gmra.mxu1 %vm1394_vm3, %v2086_v12 }
 0x278   : > { %10726 = vmatmul.msk.bf16.gmra.mxu2 %vm1394_vm3, %v2320_v13 }
 0x27b   : > { %v2428_v14 = vpop.f32.mrf.mxu2  ;;  %v1221_v15 = vpop.f32.mrf.mxu0 }
 0x27c   : > { %v2493_v16 = vld [vmem:[#allocation4 + $0x50] sm:$0xff]  ;;  %1454 = vst.msk [vmem:[#allocation2 + $0x1d8] sm:$0xff] %vm1394_vm3, %v1221_v15  ;;  %v2195_v17 = vpop.f32.mrf.mxu1 }
 0x27d   : > { %v2525_v18 = vadd.f32 %v2493_v16, %v2428_v14  ;;  %2260 = vst.msk [vmem:[#allocation4 + $0x58] sm:$0xff] %vm2248_vm4, %v2195_v17  ;;  %v14721_v14 = vld [vmem:[%s19372_s2] ss:$0 sm:$0xff] }
 0x27f   : > { %2557 = vst.msk [vmem:[#allocation4 + $0x50] sm:$0xff] %vm2248_vm4, %v2525_v18  ;;  %v13334_v18 = vld [vmem:[%s14254_s5 + $0x160] sm:$0xff] }
 0x283   : > { %v1224_v20 = vpop.f32.mrf.mxu0  ;;  %v2430_v21 = vpop.f32.mrf.mxu2  ;;  %v1553_v38 = vld [vmem:[#allocation2 + $0x1d0] ss:$2 sm:$0xff]  ;;  %v1617_v39 = vld [vmem:[#allocation2 + $0x1d1] ss:$2 sm:$0xff] }
 0x284   : > { %v2494_v22 = vld [vmem:[#allocation4 + $0x58] sm:$0xff]  ;;  %1455 = vst.msk [vmem:[#allocation2 + $0x1e0] sm:$0xff] %vm1394_vm3, %v1224_v20  ;;  %v1793_v43 = vmax.f32 %v1553_v38, %v1617_v39 }
 0x285   : > { %v2526_v23 = vadd.f32 %v2494_v22, %v2430_v21 }
 0x286   : > { %10657 = vmatmul.msk.bf16.gmra.mxu0 %vm865_vm2, %v13328_v19 }
 0x287   : > { %2558 = vst.msk [vmem:[#allocation4 + $0x58] sm:$0xff] %vm2248_vm4, %v2526_v23 }
 0x28b   : > { %v1226_v24 = vpop.f32.mrf.mxu0 }
 0x28c   : > { %1456 = vst.msk [vmem:[#allocation2 + $0x1e8] sm:$0xff] %vm1394_vm3, %v1226_v24 }
 0x293   : > { %v1679_v28 = vld [vmem:[#allocation2 + $0x1e0] ss:$2 sm:$0xff]  ;;  %v1743_v29 = vld [vmem:[#allocation2 + $0x1e1] ss:$2 sm:$0xff]  ;;  %v1229_v30 = vpop.f32.mrf.mxu0 }
 0x294   : > { %v1824_v32 = vmax.f32 %v1679_v28, %v1743_v29  ;;  %1457 = vst.msk [vmem:[#allocation2 + $0x1f0] sm:$0xff] %vm1394_vm3, %v1229_v30  ;;  %v13335_v30 = vld [vmem:[%s14254_s5 + $0x168] sm:$0xff] }
 0x296   : > { %10658 = vmatmul.msk.bf16.gmra.mxu0 %vm865_vm2, %v13329_v27  ;;  %v1856_v33 = vmax.f32 %v1792_v31, %v1824_v32 }
 0x298   : > { %v1892_v34 = vadd.f32 %v14432_v59, %v1856_v33 }
 0x29a   : > { %v1924_v35 = vmax.f32 %v1892_v34, 0.0 }
 0x29b   : > { %v1231_v36 = vpop.f32.mrf.mxu0 }
 0x29c   : > { %2029 = vst.msk [vmem:[#allocation3 + $0x108] sm:$0xff] %vm1394_vm3, %v1924_v35 }
 0x29d   : > { %1458 = vst.msk [vmem:[#allocation2 + $0x1f8] sm:$0xff] %vm1394_vm3, %v1231_v36 }
 0x2a3   : > { %v1234_v40 = vpop.f32.mrf.mxu0  ;;  %v2063_v51 = vld [vmem:[#allocation3 + $0x107] sm:$0xff] }
 0x2a4   : > { %v1681_v41 = vld [vmem:[#allocation2 + $0x1f0] ss:$2 sm:$0xff]  ;;  %v1745_v42 = vld [vmem:[#allocation2 + $0x1f1] ss:$2 sm:$0xff]  ;;  %1459 = vst.msk [vmem:[#allocation2 + $0x200] sm:$0xff] %vm1394_vm3, %v1234_v40  ;;  %v2297_v54 = vld [vmem:[#allocation3 + $0x108] sm:$0xff] }
 0x2a5   : > { %v1825_v44 = vmax.f32 %v1681_v41, %v1745_v42 }
 0x2a6   : > { %10659 = vmatmul.msk.bf16.gmra.mxu0 %vm865_vm2, %v13330_v37 }
 0x2a7   : > { %v1857_v45 = vmax.f32 %v1793_v43, %v1825_v44  ;;  %v13336_v44 = vld [vmem:[%s14254_s5 + $0x170] sm:$0xff] }
 0x2a9   : > { %v1893_v46 = vadd.f32 %v14432_v59, %v1857_v45 }
 0x2ab   : > { %v1925_v47 = vmax.f32 %v1893_v46, 0.0  ;;  %v1236_v48 = vpop.f32.mrf.mxu0 }
 0x2ac   : > { %1460 = vst.msk [vmem:[#allocation2 + $0x208] sm:$0xff] %vm1394_vm3, %v1236_v48 }
 0x2ad   : > { %2030 = vst.msk [vmem:[#allocation3 + $0x110] sm:$0xff] %vm1394_vm3, %v1925_v47 }
 0x2b3   : > { %v1239_v50 = vpop.f32.mrf.mxu0  ;;  %v1555_v5 = vld [vmem:[#allocation2 + $0x200] ss:$2 sm:$0xff]  ;;  %v1619_v6 = vld [vmem:[#allocation2 + $0x201] ss:$2 sm:$0xff] }
 0x2b4   : > { %1461 = vst.msk [vmem:[#allocation2 + $0x210] sm:$0xff] %vm1394_vm3, %v1239_v50  ;;  %v2198_v52 = vpop.f32.mrf.mxu1  ;;  %v2064_v53 = vld [vmem:[#allocation3 + $0x10f] sm:$0xff]  ;;  %v1794_v11 = vmax.f32 %v1555_v5, %v1619_v6 }
 0x2b5   : > { %v2298_v55 = vld [vmem:[#allocation3 + $0x110] sm:$0xff]  ;;  %2261 = vst.msk [vmem:[#allocation4 + $0x60] sm:$0xff] %vm2248_vm4, %v2198_v52  ;;  %v2087_v59 = vpack.c.bf16 %v2064_v53, %v2063_v51  ;;  %v13337_v52 = vld [vmem:[%s14254_s5 + $0x178] sm:$0xff] }
 0x2b6   : > { %10660 = vmatmul.msk.bf16.gmra.mxu0 %vm865_vm2, %v13331_v49  ;;  %v2321_v56 = vpack.c.bf16 %v2298_v55, %v2297_v54 }
 0x2b7   : > { %10699 = vmatmul.msk.bf16.gmra.mxu1 %vm1394_vm3, %v2087_v59 }
 0x2b8   : > { %10727 = vmatmul.msk.bf16.gmra.mxu2 %vm1394_vm3, %v2321_v56 }
 0x2bb   : > { %v2433_v57 = vpop.f32.mrf.mxu2  ;;  %v1241_v58 = vpop.f32.mrf.mxu0 }
 0x2bc   : > { %v2495_v60 = vld [vmem:[#allocation4 + $0x60] sm:$0xff]  ;;  %1462 = vst.msk [vmem:[#allocation2 + $0x218] sm:$0xff] %vm1394_vm3, %v1241_v58  ;;  %v2200_v61 = vpop.f32.mrf.mxu1 }
 0x2bd   : > { %v2527_v62 = vadd.f32 %v2495_v60, %v2433_v57  ;;  %2262 = vst.msk [vmem:[#allocation4 + $0x68] sm:$0xff] %vm2248_vm4, %v2200_v61 }
 0x2bf   : > { %2559 = vst.msk [vmem:[#allocation4 + $0x60] sm:$0xff] %vm2248_vm4, %v2527_v62  ;;  %v13338_v62 = vld [vmem:[%s14254_s5 + $0x180] sm:$0xff] }
 0x2c3   : > { %v1244_v0 = vpop.f32.mrf.mxu0  ;;  %v2435_v1 = vpop.f32.mrf.mxu2  ;;  %v1557_v19 = vld [vmem:[#allocation2 + $0x210] ss:$2 sm:$0xff]  ;;  %v1621_v20 = vld [vmem:[#allocation2 + $0x211] ss:$2 sm:$0xff] }
 0x2c4   : > { %v2496_v2 = vld [vmem:[#allocation4 + $0x68] sm:$0xff]  ;;  %1463 = vst.msk [vmem:[#allocation2 + $0x220] sm:$0xff] %vm1394_vm3, %v1244_v0  ;;  %v1795_v24 = vmax.f32 %v1557_v19, %v1621_v20 }
 0x2c5   : > { %v2528_v3 = vadd.f32 %v2496_v2, %v2435_v1 }
 0x2c6   : > { %10661 = vmatmul.msk.bf16.gmra.mxu0 %vm865_vm2, %v13332_v63 }
 0x2c7   : > { %2560 = vst.msk [vmem:[#allocation4 + $0x68] sm:$0xff] %vm2248_vm4, %v2528_v3 }
 0x2cb   : > { %v1246_v4 = vpop.f32.mrf.mxu0 }
 0x2cc   : > { %1464 = vst.msk [vmem:[#allocation2 + $0x228] sm:$0xff] %vm1394_vm3, %v1246_v4 }
 0x2d3   : > { %v1683_v8 = vld [vmem:[#allocation2 + $0x220] ss:$2 sm:$0xff]  ;;  %v1747_v9 = vld [vmem:[#allocation2 + $0x221] ss:$2 sm:$0xff]  ;;  %v1249_v10 = vpop.f32.mrf.mxu0 }
 0x2d4   : > { %v1826_v12 = vmax.f32 %v1683_v8, %v1747_v9  ;;  %1465 = vst.msk [vmem:[#allocation2 + $0x230] sm:$0xff] %vm1394_vm3, %v1249_v10  ;;  %v13339_v10 = vld [vmem:[%s14254_s5 + $0x188] sm:$0xff] }
 0x2d6   : > { %10662 = vmatmul.msk.bf16.gmra.mxu0 %vm865_vm2, %v13333_v7  ;;  %v1858_v13 = vmax.f32 %v1794_v11, %v1826_v12 }
 0x2d8   : > { %v1894_v15 = vadd.f32 %v14721_v14, %v1858_v13 }
 0x2da   : > { %v1926_v16 = vmax.f32 %v1894_v15, 0.0 }
 0x2db   : > { %v1251_v17 = vpop.f32.mrf.mxu0 }
 0x2dc   : > { %2031 = vst.msk [vmem:[#allocation3 + $0x128] sm:$0xff] %vm1394_vm3, %v1926_v16 }
 0x2dd   : > { %1466 = vst.msk [vmem:[#allocation2 + $0x238] sm:$0xff] %vm1394_vm3, %v1251_v17 }
 0x2e3   : > { %v1254_v21 = vpop.f32.mrf.mxu0  ;;  %v2065_v32 = vld [vmem:[#allocation3 + $0x127] sm:$0xff] }
 0x2e4   : > { %v1685_v22 = vld [vmem:[#allocation2 + $0x230] ss:$2 sm:$0xff]  ;;  %v1749_v23 = vld [vmem:[#allocation2 + $0x231] ss:$2 sm:$0xff]  ;;  %1467 = vst.msk [vmem:[#allocation2 + $0x240] sm:$0xff] %vm1394_vm3, %v1254_v21  ;;  %v2299_v35 = vld [vmem:[#allocation3 + $0x128] sm:$0xff] }
 0x2e5   : > { %v1827_v25 = vmax.f32 %v1685_v22, %v1749_v23 }
 0x2e6   : > { %10663 = vmatmul.msk.bf16.gmra.mxu0 %vm865_vm2, %v13334_v18 }
 0x2e7   : > { %v1859_v26 = vmax.f32 %v1795_v24, %v1827_v25  ;;  %v13340_v25 = vld [vmem:[%s14254_s5 + $0x190] sm:$0xff] }
 0x2e9   : > { %v1895_v27 = vadd.f32 %v14721_v14, %v1859_v26 }
 0x2eb   : > { %v1927_v28 = vmax.f32 %v1895_v27, 0.0  ;;  %v1256_v29 = vpop.f32.mrf.mxu0 }
 0x2ec   : > { %1468 = vst.msk [vmem:[#allocation2 + $0x248] sm:$0xff] %vm1394_vm3, %v1256_v29 }
 0x2ed   : > { %2032 = vst.msk [vmem:[#allocation3 + $0x130] sm:$0xff] %vm1394_vm3, %v1927_v28 }
 0x2f3   : > { %v1259_v31 = vpop.f32.mrf.mxu0  ;;  %v1559_v50 = vld [vmem:[#allocation2 + $0x240] ss:$2 sm:$0xff]  ;;  %v1623_v51 = vld [vmem:[#allocation2 + $0x241] ss:$2 sm:$0xff] }
 0x2f4   : > { %1469 = vst.msk [vmem:[#allocation2 + $0x250] sm:$0xff] %vm1394_vm3, %v1259_v31  ;;  %v2203_v33 = vpop.f32.mrf.mxu1  ;;  %v2066_v34 = vld [vmem:[#allocation3 + $0x12f] sm:$0xff]  ;;  %v1796_v59 = vmax.f32 %v1559_v50, %v1623_v51 }
 0x2f5   : > { %v2300_v36 = vld [vmem:[#allocation3 + $0x130] sm:$0xff]  ;;  %2263 = vst.msk [vmem:[#allocation4 + $0x70] sm:$0xff] %vm2248_vm4, %v2203_v33  ;;  %v2088_v37 = vpack.c.bf16 %v2066_v34, %v2065_v32  ;;  %v13341_v33 = vld [vmem:[%s14254_s5 + $0x198] sm:$0xff] }
 0x2f6   : > { %10664 = vmatmul.msk.bf16.gmra.mxu0 %vm865_vm2, %v13335_v30  ;;  %v2322_v38 = vpack.c.bf16 %v2300_v36, %v2299_v35 }
 0x2f7   : > { %10700 = vmatmul.msk.bf16.gmra.mxu1 %vm1394_vm3, %v2088_v37 }
 0x2f8   : > { %10728 = vmatmul.msk.bf16.gmra.mxu2 %vm1394_vm3, %v2322_v38 }
 0x2fb   : > { %v2438_v39 = vpop.f32.mrf.mxu2  ;;  %v1261_v40 = vpop.f32.mrf.mxu0 }
 0x2fc   : > { %v2497_v41 = vld [vmem:[#allocation4 + $0x70] sm:$0xff]  ;;  %1470 = vst.msk [vmem:[#allocation2 + $0x258] sm:$0xff] %vm1394_vm3, %v1261_v40  ;;  %v2205_v42 = vpop.f32.mrf.mxu1 }
 0x2fd   : > { %v2529_v43 = vadd.f32 %v2497_v41, %v2438_v39  ;;  %2264 = vst.msk [vmem:[#allocation4 + $0x78] sm:$0xff] %vm2248_vm4, %v2205_v42 }
 0x2ff   : > { %2561 = vst.msk [vmem:[#allocation4 + $0x70] sm:$0xff] %vm2248_vm4, %v2529_v43  ;;  %v13342_v43 = vld [vmem:[%s14254_s5 + $0x1a0] sm:$0xff] }
 0x303   : > { %v1264_v45 = vpop.f32.mrf.mxu0  ;;  %v2440_v46 = vpop.f32.mrf.mxu2  ;;  %v1561_v63 = vld [vmem:[#allocation2 + $0x250] ss:$2 sm:$0xff]  ;;  %v1625_v0 = vld [vmem:[#allocation2 + $0x251] ss:$2 sm:$0xff] }
 0x304   : > { %v2498_v47 = vld [vmem:[#allocation4 + $0x78] sm:$0xff]  ;;  %1471 = vst.msk [vmem:[#allocation2 + $0x260] sm:$0xff] %vm1394_vm3, %v1264_v45  ;;  %v1797_v4 = vmax.f32 %v1561_v63, %v1625_v0 }
 0x305   : > { %v2530_v48 = vadd.f32 %v2498_v47, %v2440_v46 }
 0x306   : > { %10665 = vmatmul.msk.bf16.gmra.mxu0 %vm865_vm2, %v13336_v44 }
 0x307   : > { %2562 = vst.msk [vmem:[#allocation4 + $0x78] sm:$0xff] %vm2248_vm4, %v2530_v48 }
 0x30b   : > { %v1266_v49 = vpop.f32.mrf.mxu0 }
 0x30c   : > { %1472 = vst.msk [vmem:[#allocation2 + $0x268] sm:$0xff] %vm1394_vm3, %v1266_v49 }
 0x313   : > { %v1687_v53 = vld [vmem:[#allocation2 + $0x260] ss:$2 sm:$0xff]  ;;  %v1751_v54 = vld [vmem:[#allocation2 + $0x261] ss:$2 sm:$0xff]  ;;  %v1269_v55 = vpop.f32.mrf.mxu0 }
 0x314   : > { %v1828_v56 = vmax.f32 %v1687_v53, %v1751_v54  ;;  %1473 = vst.msk [vmem:[#allocation2 + $0x270] sm:$0xff] %vm1394_vm3, %v1269_v55  ;;  %v13343_v55 = vld [vmem:[%s14254_s5 + $0x1a8] sm:$0xff] }
 0x316   : > { %10666 = vmatmul.msk.bf16.gmra.mxu0 %vm865_vm2, %v13337_v52  ;;  %v1860_v57 = vmax.f32 %v1796_v59, %v1828_v56 }
 0x318   : > { %v1896_v58 = vadd.f32 %v14721_v14, %v1860_v57 }
 0x31a   : > { %v1928_v60 = vmax.f32 %v1896_v58, 0.0 }
 0x31b   : > { %v1271_v61 = vpop.f32.mrf.mxu0 }
 0x31c   : > { %2033 = vst.msk [vmem:[#allocation3 + $0x148] sm:$0xff] %vm1394_vm3, %v1928_v60 }
 0x31d   : > { %1474 = vst.msk [vmem:[#allocation2 + $0x278] sm:$0xff] %vm1394_vm3, %v1271_v61 }
 0x323   : > { %v1274_v1 = vpop.f32.mrf.mxu0  ;;  %v2067_v12 = vld [vmem:[#allocation3 + $0x147] sm:$0xff] }
 0x324   : > { %v1689_v2 = vld [vmem:[#allocation2 + $0x270] ss:$2 sm:$0xff]  ;;  %v1753_v3 = vld [vmem:[#allocation2 + $0x271] ss:$2 sm:$0xff]  ;;  %1475 = vst.msk [vmem:[#allocation2 + $0x280] sm:$0xff] %vm1394_vm3, %v1274_v1  ;;  %v2301_v16 = vld [vmem:[#allocation3 + $0x148] sm:$0xff] }
 0x325   : > { %v1829_v5 = vmax.f32 %v1689_v2, %v1753_v3 }
 0x326   : > { %10667 = vmatmul.msk.bf16.gmra.mxu0 %vm865_vm2, %v13338_v62 }
 0x327   : > { %v1861_v6 = vmax.f32 %v1797_v4, %v1829_v5  ;;  %v13344_v5 = vld [vmem:[%s14254_s5 + $0x1b0] sm:$0xff] }
 0x329   : > { %v1897_v7 = vadd.f32 %v14721_v14, %v1861_v6 }
 0x32b   : > { %v1929_v8 = vmax.f32 %v1897_v7, 0.0  ;;  %v1276_v9 = vpop.f32.mrf.mxu0 }
 0x32c   : > { %1476 = vst.msk [vmem:[#allocation2 + $0x288] sm:$0xff] %vm1394_vm3, %v1276_v9 }
 0x32d   : > { %2034 = vst.msk [vmem:[#allocation3 + $0x150] sm:$0xff] %vm1394_vm3, %v1929_v8 }
 0x333   : > { %v1279_v11 = vpop.f32.mrf.mxu0  ;;  %v1563_v31 = vld [vmem:[#allocation2 + $0x280] ss:$2 sm:$0xff]  ;;  %v1627_v32 = vld [vmem:[#allocation2 + $0x281] ss:$2 sm:$0xff] }
 0x334   : > { %1477 = vst.msk [vmem:[#allocation2 + $0x290] sm:$0xff] %vm1394_vm3, %v1279_v11  ;;  %v2208_v13 = vpop.f32.mrf.mxu1  ;;  %v2068_v15 = vld [vmem:[#allocation3 + $0x14f] sm:$0xff]  ;;  %v1798_v37 = vmax.f32 %v1563_v31, %v1627_v32 }
 0x335   : > { %v2302_v17 = vld [vmem:[#allocation3 + $0x150] sm:$0xff]  ;;  %2265 = vst.msk [vmem:[#allocation4 + $0x80] sm:$0xff] %vm2248_vm4, %v2208_v13  ;;  %v14762_v18 = vpack.c.bf16 %v2068_v15, %v2067_v12  ;;  %v13345_v13 = vld [vmem:[%s14254_s5 + $0x1b8] sm:$0xff] }
 0x336   : > { %10668 = vmatmul.msk.bf16.gmra.mxu0 %vm865_vm2, %v13339_v10  ;;  %v2323_v19 = vpack.c.bf16 %v2302_v17, %v2301_v16 }
 0x337   : > { %10701 = vmatmul.msk.bf16.gmra.mxu1 %vm1394_vm3, %v14762_v18 }
 0x338   : > { %10729 = vmatmul.msk.bf16.gmra.mxu2 %vm1394_vm3, %v2323_v19 }
 0x33b   : > { %v2443_v20 = vpop.f32.mrf.mxu2  ;;  %v1281_v21 = vpop.f32.mrf.mxu0 }
 0x33c   : > { %v2499_v22 = vld [vmem:[#allocation4 + $0x80] sm:$0xff]  ;;  %1478 = vst.msk [vmem:[#allocation2 + $0x298] sm:$0xff] %vm1394_vm3, %v1281_v21  ;;  %v2210_v23 = vpop.f32.mrf.mxu1 }
 0x33d   : > { %v2531_v24 = vadd.f32 %v2499_v22, %v2443_v20  ;;  %2266 = vst.msk [vmem:[#allocation4 + $0x88] sm:$0xff] %vm2248_vm4, %v2210_v23 }
 0x33f   : > { %2563 = vst.msk [vmem:[#allocation4 + $0x80] sm:$0xff] %vm2248_vm4, %v2531_v24 }
 0x343   : > { %v1284_v26 = vpop.f32.mrf.mxu0  ;;  %v2445_v27 = vpop.f32.mrf.mxu2  ;;  %v1565_v44 = vld [vmem:[#allocation2 + $0x290] ss:$2 sm:$0xff]  ;;  %v1629_v45 = vld [vmem:[#allocation2 + $0x291] ss:$2 sm:$0xff] }
 0x344   : > { %v2500_v28 = vld [vmem:[#allocation4 + $0x88] sm:$0xff]  ;;  %1479 = vst.msk [vmem:[#allocation2 + $0x2a0] sm:$0xff] %vm1394_vm3, %v1284_v26  ;;  %v1799_v49 = vmax.f32 %v1565_v44, %v1629_v45 }
 0x345   : > { %v2532_v29 = vadd.f32 %v2500_v28, %v2445_v27 }
 0x346   : > { %10669 = vmatmul.msk.bf16.gmra.mxu0 %vm865_vm2, %v13340_v25  ;;  %v13346_v25 = vld [vmem:[%s14254_s5 + $0x1c0] sm:$0xff] }
 0x347   : > { %2564 = vst.msk [vmem:[#allocation4 + $0x88] sm:$0xff] %vm2248_vm4, %v2532_v29 }
 0x34b   : > { %v1286_v30 = vpop.f32.mrf.mxu0 }
 0x34c   : > { %1480 = vst.msk [vmem:[#allocation2 + $0x2a8] sm:$0xff] %vm1394_vm3, %v1286_v30 }
 0x353   : > { %v1691_v34 = vld [vmem:[#allocation2 + $0x2a0] ss:$2 sm:$0xff]  ;;  %v1755_v35 = vld [vmem:[#allocation2 + $0x2a1] ss:$2 sm:$0xff]  ;;  %v1289_v36 = vpop.f32.mrf.mxu0 }
 0x354   : > { %v1830_v38 = vmax.f32 %v1691_v34, %v1755_v35  ;;  %1481 = vst.msk [vmem:[#allocation2 + $0x2b0] sm:$0xff] %vm1394_vm3, %v1289_v36 }
 0x356   : > { %10670 = vmatmul.msk.bf16.gmra.mxu0 %vm865_vm2, %v13341_v33  ;;  %v1862_v39 = vmax.f32 %v1798_v37, %v1830_v38  ;;  %v13347_v37 = vld [vmem:[%s14254_s5 + $0x1c8] sm:$0xff] }
 0x358   : > { %v1898_v40 = vadd.f32 %v14721_v14, %v1862_v39 }
 0x35a   : > { %v1930_v41 = vmax.f32 %v1898_v40, 0.0 }
 0x35b   : > { %v1291_v42 = vpop.f32.mrf.mxu0 }
 0x35c   : > { %2035 = vst.msk [vmem:[#allocation3 + $0x168] sm:$0xff] %vm1394_vm3, %v1930_v41 }
 0x35d   : > { %1482 = vst.msk [vmem:[#allocation2 + $0x2b8] sm:$0xff] %vm1394_vm3, %v1291_v42 }
 0x363   : > { %v1294_v46 = vpop.f32.mrf.mxu0  ;;  %v2069_v56 = vld [vmem:[#allocation3 + $0x167] sm:$0xff] }
 0x364   : > { %v1693_v47 = vld [vmem:[#allocation2 + $0x2b0] ss:$2 sm:$0xff]  ;;  %v1757_v48 = vld [vmem:[#allocation2 + $0x2b1] ss:$2 sm:$0xff]  ;;  %1483 = vst.msk [vmem:[#allocation2 + $0x2c0] sm:$0xff] %vm1394_vm3, %v1294_v46  ;;  %v2303_v60 = vld [vmem:[#allocation3 + $0x168] sm:$0xff] }
 0x365   : > { %v1831_v50 = vmax.f32 %v1693_v47, %v1757_v48 }
 0x366   : > { %10671 = vmatmul.msk.bf16.gmra.mxu0 %vm865_vm2, %v13342_v43 }
 0x367   : > { %v1863_v51 = vmax.f32 %v1799_v49, %v1831_v50 }
 0x369   : > { %v1899_v52 = vadd.f32 %v14721_v14, %v1863_v51  ;;  %v13348_v51 = vld [vmem:[%s14254_s5 + $0x1d0] sm:$0xff] }
 0x36b   : > { %v1931_v53 = vmax.f32 %v1899_v52, 0.0  ;;  %v1296_v54 = vpop.f32.mrf.mxu0 }
 0x36c   : > { %1484 = vst.msk [vmem:[#allocation2 + $0x2c8] sm:$0xff] %vm1394_vm3, %v1296_v54 }
 0x36d   : > { %2036 = vst.msk [vmem:[#allocation3 + $0x170] sm:$0xff] %vm1394_vm3, %v1931_v53 }
 0x373   : > { %v1299_v59 = vpop.f32.mrf.mxu0  ;;  %v1567_v11 = vld [vmem:[#allocation2 + $0x2c0] ss:$2 sm:$0xff]  ;;  %v1631_v12 = vld [vmem:[#allocation2 + $0x2c1] ss:$2 sm:$0xff] }
 0x374   : > { %1485 = vst.msk [vmem:[#allocation2 + $0x2d0] sm:$0xff] %vm1394_vm3, %v1299_v59  ;;  %v2213_v57 = vpop.f32.mrf.mxu1  ;;  %v2070_v58 = vld [vmem:[#allocation3 + $0x16f] sm:$0xff]  ;;  %v1800_v19 = vmax.f32 %v1567_v11, %v1631_v12 }
 0x375   : > { %v2304_v61 = vld [vmem:[#allocation3 + $0x170] sm:$0xff]  ;;  %2267 = vst.msk [vmem:[#allocation4 + $0x90] sm:$0xff] %vm2248_vm4, %v2213_v57  ;;  %v14791_v62 = vpack.c.bf16 %v2070_v58, %v2069_v56  ;;  %v13349_v58 = vld [vmem:[%s14254_s5 + $0x1d8] sm:$0xff] }
 0x376   : > { %10672 = vmatmul.msk.bf16.gmra.mxu0 %vm865_vm2, %v13343_v55  ;;  %v2324_v63 = vpack.c.bf16 %v2304_v61, %v2303_v60 }
 0x377   : > { %10702 = vmatmul.msk.bf16.gmra.mxu1 %vm1394_vm3, %v14791_v62 }
 0x378   : > { %10730 = vmatmul.msk.bf16.gmra.mxu2 %vm1394_vm3, %v2324_v63 }
 0x37b   : > { %v2448_v0 = vpop.f32.mrf.mxu2  ;;  %v1301_v1 = vpop.f32.mrf.mxu0 }
 0x37c   : > { %v2501_v2 = vld [vmem:[#allocation4 + $0x90] sm:$0xff]  ;;  %1486 = vst.msk [vmem:[#allocation2 + $0x2d8] sm:$0xff] %vm1394_vm3, %v1301_v1  ;;  %v2215_v3 = vpop.f32.mrf.mxu1 }
 0x37d   : > { %v2533_v4 = vadd.f32 %v2501_v2, %v2448_v0  ;;  %2268 = vst.msk [vmem:[#allocation4 + $0x98] sm:$0xff] %vm2248_vm4, %v2215_v3 }
 0x37f   : > { %2565 = vst.msk [vmem:[#allocation4 + $0x90] sm:$0xff] %vm2248_vm4, %v2533_v4 }
 0x383   : > { %v1304_v6 = vpop.f32.mrf.mxu0  ;;  %v2450_v7 = vpop.f32.mrf.mxu2  ;;  %v1569_v26 = vld [vmem:[#allocation2 + $0x2d0] ss:$2 sm:$0xff]  ;;  %v1633_v27 = vld [vmem:[#allocation2 + $0x2d1] ss:$2 sm:$0xff] }
 0x384   : > { %v2502_v8 = vld [vmem:[#allocation4 + $0x98] sm:$0xff]  ;;  %1487 = vst.msk [vmem:[#allocation2 + $0x2e0] sm:$0xff] %vm1394_vm3, %v1304_v6  ;;  %v1801_v31 = vmax.f32 %v1569_v26, %v1633_v27 }
 0x385   : > { %v2534_v9 = vadd.f32 %v2502_v8, %v2450_v7 }
 0x386   : > { %10673 = vmatmul.msk.bf16.gmra.mxu0 %vm865_vm2, %v13344_v5 }
 0x387   : > { %2566 = vst.msk [vmem:[#allocation4 + $0x98] sm:$0xff] %vm2248_vm4, %v2534_v9 }
 0x38b   : > { %v1306_v10 = vpop.f32.mrf.mxu0 }
 0x38c   : > { %1488 = vst.msk [vmem:[#allocation2 + $0x2e8] sm:$0xff] %vm1394_vm3, %v1306_v10 }
 0x393   : > { %v1695_v15 = vld [vmem:[#allocation2 + $0x2e0] ss:$2 sm:$0xff]  ;;  %v1759_v16 = vld [vmem:[#allocation2 + $0x2e1] ss:$2 sm:$0xff]  ;;  %v1309_v17 = vpop.f32.mrf.mxu0 }
 0x394   : > { %v1832_v20 = vmax.f32 %v1695_v15, %v1759_v16  ;;  %1489 = vst.msk [vmem:[#allocation2 + $0x2f0] sm:$0xff] %vm1394_vm3, %v1309_v17 }
 0x396   : > { %10674 = vmatmul.msk.bf16.gmra.mxu0 %vm865_vm2, %v13345_v13  ;;  %v1864_v21 = vmax.f32 %v1800_v19, %v1832_v20 }
 0x398   : > { %v1900_v22 = vadd.f32 %v14721_v14, %v1864_v21 }
 0x39a   : > { %v1932_v23 = vmax.f32 %v1900_v22, 0.0 }
 0x39b   : > { %v1311_v24 = vpop.f32.mrf.mxu0 }
 0x39c   : > { %2037 = vst.msk [vmem:[#allocation3 + $0x188] sm:$0xff] %vm1394_vm3, %v1932_v23 }
 0x39d   : > { %1490 = vst.msk [vmem:[#allocation2 + $0x2f8] sm:$0xff] %vm1394_vm3, %v1311_v24 }
 0x3a3   : > { %v1314_v28 = vpop.f32.mrf.mxu0  ;;  %v2071_v39 = vld [vmem:[#allocation3 + $0x187] sm:$0xff] }
 0x3a4   : > { %v1697_v29 = vld [vmem:[#allocation2 + $0x2f0] ss:$2 sm:$0xff]  ;;  %v1761_v30 = vld [vmem:[#allocation2 + $0x2f1] ss:$2 sm:$0xff]  ;;  %1491 = vst.msk [vmem:[#allocation2 + $0x300] sm:$0xff] %vm1394_vm3, %v1314_v28  ;;  %v2305_v42 = vld [vmem:[#allocation3 + $0x188] sm:$0xff] }
 0x3a5   : > { %v1833_v32 = vmax.f32 %v1697_v29, %v1761_v30 }
 0x3a6   : > { %10675 = vmatmul.msk.bf16.gmra.mxu0 %vm865_vm2, %v13346_v25 }
 0x3a7   : > { %v1865_v33 = vmax.f32 %v1801_v31, %v1833_v32 }
 0x3a9   : > { %v1901_v34 = vadd.f32 %v14721_v14, %v1865_v33 }
 0x3ab   : > { %v1933_v35 = vmax.f32 %v1901_v34, 0.0  ;;  %v1316_v36 = vpop.f32.mrf.mxu0 }
 0x3ac   : > { %1492 = vst.msk [vmem:[#allocation2 + $0x308] sm:$0xff] %vm1394_vm3, %v1316_v36 }
 0x3ad   : > { %2038 = vst.msk [vmem:[#allocation3 + $0x190] sm:$0xff] %vm1394_vm3, %v1933_v35 }
 0x3b3   : > { %v1319_v38 = vpop.f32.mrf.mxu0  ;;  %v1571_v56 = vld [vmem:[#allocation2 + $0x300] ss:$2 sm:$0xff]  ;;  %v1635_v57 = vld [vmem:[#allocation2 + $0x301] ss:$2 sm:$0xff] }
 0x3b4   : > { %1493 = vst.msk [vmem:[#allocation2 + $0x310] sm:$0xff] %vm1394_vm3, %v1319_v38  ;;  %v2218_v40 = vpop.f32.mrf.mxu1  ;;  %v2072_v41 = vld [vmem:[#allocation3 + $0x18f] sm:$0xff]  ;;  %v1802_v0 = vmax.f32 %v1571_v56, %v1635_v57 }
 0x3b5   : > { %v2306_v43 = vld [vmem:[#allocation3 + $0x190] sm:$0xff]  ;;  %2269 = vst.msk [vmem:[#allocation4 + $0xa0] sm:$0xff] %vm2248_vm4, %v2218_v40  ;;  %v14820_v44 = vpack.c.bf16 %v2072_v41, %v2071_v39 }
 0x3b6   : > { %10676 = vmatmul.msk.bf16.gmra.mxu0 %vm865_vm2, %v13347_v37  ;;  %v14822_v45 = vpack.c.bf16 %v2306_v43, %v2305_v42 }
 0x3b7   : > { %10703 = vmatmul.msk.bf16.gmra.mxu1 %vm1394_vm3, %v14820_v44 }
 0x3b8   : > { %10731 = vmatmul.msk.bf16.gmra.mxu2 %vm1394_vm3, %v14822_v45 }
 0x3bb   : > { %v2453_v46 = vpop.f32.mrf.mxu2  ;;  %v1321_v47 = vpop.f32.mrf.mxu0 }
 0x3bc   : > { %v2503_v48 = vld [vmem:[#allocation4 + $0xa0] sm:$0xff]  ;;  %1494 = vst.msk [vmem:[#allocation2 + $0x318] sm:$0xff] %vm1394_vm3, %v1321_v47  ;;  %v2220_v49 = vpop.f32.mrf.mxu1 }
 0x3bd   : > { %v2535_v50 = vadd.f32 %v2503_v48, %v2453_v46  ;;  %2270 = vst.msk [vmem:[#allocation4 + $0xa8] sm:$0xff] %vm2248_vm4, %v2220_v49 }
 0x3bf   : > { %2567 = vst.msk [vmem:[#allocation4 + $0xa0] sm:$0xff] %vm2248_vm4, %v2535_v50 }
 0x3c3   : > { %v1324_v52 = vpop.f32.mrf.mxu0  ;;  %v2455_v53 = vpop.f32.mrf.mxu2  ;;  %v1573_v6 = vld [vmem:[#allocation2 + $0x310] ss:$2 sm:$0xff]  ;;  %v1637_v7 = vld [vmem:[#allocation2 + $0x311] ss:$2 sm:$0xff] }
 0x3c4   : > { %v2504_v54 = vld [vmem:[#allocation4 + $0xa8] sm:$0xff]  ;;  %1495 = vst.msk [vmem:[#allocation2 + $0x320] sm:$0xff] %vm1394_vm3, %v1324_v52  ;;  %v1803_v11 = vmax.f32 %v1573_v6, %v1637_v7 }
 0x3c5   : > { %v2536_v55 = vadd.f32 %v2504_v54, %v2455_v53 }
 0x3c6   : > { %10677 = vmatmul.msk.bf16.gmra.mxu0 %vm865_vm2, %v13348_v51 }
 0x3c7   : > { %2568 = vst.msk [vmem:[#allocation4 + $0xa8] sm:$0xff] %vm2248_vm4, %v2536_v55  ;;  %v13363_v55 = vld [vmem:[%s19373_s3 + $0x38] sm:$0xff] }
 0x3c8   : > { %2996 = vmatpush.bf16.msrb.mxu1 %v13363_v55 }
 0x3cb   : > { %v1326_v59 = vpop.f32.mrf.mxu0 }
 0x3cc   : > { %1496 = vst.msk [vmem:[#allocation2 + $0x328] sm:$0xff] %vm1394_vm3, %v1326_v59 }
 0x3d3   : > { %v1699_v60 = vld [vmem:[#allocation2 + $0x320] ss:$2 sm:$0xff]  ;;  %v1763_v61 = vld [vmem:[#allocation2 + $0x321] ss:$2 sm:$0xff]  ;;  %v1329_v63 = vpop.f32.mrf.mxu0 }
 0x3d4   : > { %v1834_v1 = vmax.f32 %v1699_v60, %v1763_v61  ;;  %1497 = vst.msk [vmem:[#allocation2 + $0x330] sm:$0xff] %vm1394_vm3, %v1329_v63  ;;  %v13350_v60 = vld [vmem:[%s14254_s5 + $0x1e0] sm:$0xff] }
 0x3d6   : > { %10678 = vmatmul.msk.bf16.gmra.mxu0 %vm865_vm2, %v13349_v58  ;;  %v1866_v2 = vmax.f32 %v1802_v0, %v1834_v1  ;;  %v13362_v58 = vld [vmem:[%s19373_s3 + $0x30] sm:$0xff] }
 0x3d7   : > { %2997 = vmatpush.bf16.msrb.mxu1 %v13362_v58 }
 0x3d8   : > { %v1902_v3 = vadd.f32 %v14721_v14, %v1866_v2 }
 0x3da   : > { %v1934_v4 = vmax.f32 %v1902_v3, 0.0 }
 0x3db   : > { %v1331_v5 = vpop.f32.mrf.mxu0 }
 0x3dc   : > { %2039 = vst.msk [vmem:[#allocation3 + $0x1a8] sm:$0xff] %vm1394_vm3, %v1934_v4 }
 0x3dd   : > { %1498 = vst.msk [vmem:[#allocation2 + $0x338] sm:$0xff] %vm1394_vm3, %v1331_v5 }
 0x3e3   : > { %v1334_v8 = vpop.f32.mrf.mxu0  ;;  %v2073_v20 = vld [vmem:[#allocation3 + $0x1a7] sm:$0xff] }
 0x3e4   : > { %v1701_v9 = vld [vmem:[#allocation2 + $0x330] ss:$2 sm:$0xff]  ;;  %v1765_v10 = vld [vmem:[#allocation2 + $0x331] ss:$2 sm:$0xff]  ;;  %1499 = vst.msk [vmem:[#allocation2 + $0x340] sm:$0xff] %vm1394_vm3, %v1334_v8  ;;  %v2307_v23 = vld [vmem:[#allocation3 + $0x1a8] sm:$0xff] }
 0x3e5   : > { %v1835_v12 = vmax.f32 %v1701_v9, %v1765_v10 }
 0x3e6   : > { %10679 = vmatmul.msk.bf16.gmra.mxu0 %vm865_vm2, %v13350_v60 }
 0x3e7   : > { %v1867_v13 = vmax.f32 %v1803_v11, %v1835_v12 }
 0x3e9   : > { %v1903_v15 = vadd.f32 %v14721_v14, %v1867_v13  ;;  %v13351_v13 = vld [vmem:[%s14254_s5 + $0x1e8] sm:$0xff] }
 0x3eb   : > { %v1935_v16 = vmax.f32 %v1903_v15, 0.0  ;;  %v1336_v17 = vpop.f32.mrf.mxu0 }
 0x3ec   : > { %1500 = vst.msk [vmem:[#allocation2 + $0x348] sm:$0xff] %vm1394_vm3, %v1336_v17 }
 0x3ed   : > { %2040 = vst.msk [vmem:[#allocation3 + $0x1b0] sm:$0xff] %vm1394_vm3, %v1935_v16  ;;  %v2878_v16 = vld [vmem:[#allocation3 + $0x2f] sm:$0xff] }
 0x3f3   : > { %v1339_v19 = vpop.f32.mrf.mxu0  ;;  %v1575_v37 = vld [vmem:[#allocation2 + $0x340] ss:$2 sm:$0xff]  ;;  %v1639_v38 = vld [vmem:[#allocation2 + $0x341] ss:$2 sm:$0xff] }
 0x3f4   : > { %1501 = vst.msk [vmem:[#allocation2 + $0x350] sm:$0xff] %vm1394_vm3, %v1339_v19  ;;  %v2223_v21 = vpop.f32.mrf.mxu1  ;;  %v2074_v22 = vld [vmem:[#allocation3 + $0x1af] sm:$0xff]  ;;  %v1804_v42 = vmax.f32 %v1575_v37, %v1639_v38 }
 0x3f5   : > { %v2308_v24 = vld [vmem:[#allocation3 + $0x1b0] sm:$0xff]  ;;  %2271 = vst.msk [vmem:[#allocation4 + $0xb0] sm:$0xff] %vm2248_vm4, %v2223_v21  ;;  %v14848_v25 = vpack.c.bf16 %v2074_v22, %v2073_v20  ;;  %v2877_v21 = vld [vmem:[#allocation3 + $0x27] sm:$0xff] }
 0x3f6   : > { %v14850_v26 = vpack.c.bf16 %v2308_v24, %v2307_v23  ;;  %10680 = vmatmul.msk.bf16.gmra.mxu0 %vm865_vm2, %v13351_v13  ;;  %v2909_v23 = vpack.c.bf16 %v2878_v16, %v2877_v21  ;;  %v2580_v13 = vld [vmem:[#allocation3 + $0x11] sm:$0xff]  ;;  %v3175_v21 = vld [vmem:[#allocation3 + $0x28] sm:$0xff] }
 0x3f7   : > { %10704 = vmatmul.msk.bf16.gmra.mxu1 %vm1394_vm3, %v14848_v25 }
 0x3f8   : > { %10732 = vmatmul.msk.bf16.gmra.mxu2 %vm1394_vm3, %v14850_v26 }
 0x3fb   : > { %v2458_v27 = vpop.f32.mrf.mxu2  ;;  %v1341_v28 = vpop.f32.mrf.mxu0 }
 0x3fc   : > { %v2505_v29 = vld [vmem:[#allocation4 + $0xb0] sm:$0xff]  ;;  %1502 = vst.msk [vmem:[#allocation2 + $0x358] sm:$0xff] %vm1394_vm3, %v1341_v28  ;;  %v2225_v30 = vpop.f32.mrf.mxu1 }
 0x3fd   : > { %v2537_v31 = vadd.f32 %v2505_v29, %v2458_v27  ;;  %2272 = vst.msk [vmem:[#allocation4 + $0xb8] sm:$0xff] %vm2248_vm4, %v2225_v30  ;;  %v13352_v27 = vld [vmem:[%s14254_s5 + $0x1f0] sm:$0xff]  ;;  %s14069_s5 = scalar_lea.hbm %s19381_s11, 2 }
 0x3fe   : > { %v2880_v30 = vld [vmem:[#allocation3 + $0x4f] sm:$0xff]  ;;  %p14071_p4 = scmp.lt.s32.totalorder %s14069_s5, %s14065_s30 }
 0x3ff   : > { %2569 = vst.msk [vmem:[#allocation4 + $0xb0] sm:$0xff] %vm2248_vm4, %v2537_v31 }
 0x400   : > { %p14072_p7 = por %p14071_p4, %p14070_p3 }
 0x402   : > { %p14073_p8 = pnand %p14072_p7, %p14068_p2 }
 0x403   : > { %v1344_v32 = vpop.f32.mrf.mxu0  ;;  %v2460_v33 = vpop.f32.mrf.mxu2  ;;  %v1577_v50 = vld [vmem:[#allocation2 + $0x350] ss:$2 sm:$0xff]  ;;  %v1641_v51 = vld [vmem:[#allocation2 + $0x351] ss:$2 sm:$0xff] }
 0x404   : > { %v2506_v34 = vld [vmem:[#allocation4 + $0xb8] sm:$0xff]  ;;  %1503 = vst.msk [vmem:[#allocation2 + $0x360] sm:$0xff] %vm1394_vm3, %v1344_v32  ;;  %v1805_v59 = vmax.f32 %v1577_v50, %v1641_v51  ;;  %v2881_v51 = vld [vmem:[#allocation3 + $0x67] sm:$0xff] }
 0x405   : > { %v2538_v35 = vadd.f32 %v2506_v34, %v2460_v33 }
 0x406   : > { %10681 = vmatmul.msk.bf16.gmra.mxu0 %vm865_vm2, %v13352_v27 }
 0x407   : > { %2570 = vst.msk [vmem:[#allocation4 + $0xb8] sm:$0xff] %vm2248_vm4, %v2538_v35 }
 0x40b   : > { %v1346_v36 = vpop.f32.mrf.mxu0 }
 0x40c   : > { %1504 = vst.msk [vmem:[#allocation2 + $0x368] sm:$0xff] %vm1394_vm3, %v1346_v36  ;;  %v2879_v36 = vld [vmem:[#allocation3 + $0x47] sm:$0xff] }
 0x40d   : > { %v14900_v37 = vpack.c.bf16 %v2880_v30, %v2879_v36  ;;  %v3178_v30 = vld [vmem:[#allocation3 + $0x50] sm:$0xff] }
 0x413   : > { %v1703_v39 = vld [vmem:[#allocation2 + $0x360] ss:$2 sm:$0xff]  ;;  %v1767_v40 = vld [vmem:[#allocation2 + $0x361] ss:$2 sm:$0xff]  ;;  %v1349_v41 = vpop.f32.mrf.mxu0 }
 0x414   : > { %v1836_v43 = vmax.f32 %v1703_v39, %v1767_v40  ;;  %1505 = vst.msk [vmem:[#allocation2 + $0x370] sm:$0xff] %vm1394_vm3, %v1349_v41 }
 0x416   : > { %v1868_v46 = vmax.f32 %v1804_v42, %v1836_v43  ;;  %v13361_v42 = vld [vmem:[%s19373_s3 + $0x28] sm:$0xff] }
 0x417   : > { %v13365_v43 = vld [vmem:[%s19373_s3 + $0x48] sm:$0xff]  ;;  %2698 = vmatpush.bf16.msrb.mxu3 %v13361_v42 }
 0x418   : > { %v1904_v47 = vadd.f32 %v14721_v14, %v1868_v46  ;;  %3294 = vmatpush.bf16.msra.mxu2 %v13365_v43  ;;  %v3179_v42 = vld [vmem:[#allocation3 + $0x68] sm:$0xff] }
 0x41a   : > { %v1936_v48 = vmax.f32 %v1904_v47, 0.0 }
 0x41b   : > { %v1351_v49 = vpop.f32.mrf.mxu0 }
 0x41c   : > { %2041 = vst.msk [vmem:[#allocation3 + $0x1c8] sm:$0xff] %vm1394_vm3, %v1936_v48  ;;  %v2882_v48 = vld [vmem:[#allocation3 + $0x6f] sm:$0xff] }
 0x41d   : > { %1506 = vst.msk [vmem:[#allocation2 + $0x378] sm:$0xff] %vm1394_vm3, %v1351_v49 }
 0x423   : > { %v1354_v52 = vpop.f32.mrf.mxu0  ;;  %v2075_v2 = vld [vmem:[#allocation3 + $0x1c7] sm:$0xff] }
 0x424   : > { %v1705_v53 = vld [vmem:[#allocation2 + $0x370] ss:$2 sm:$0xff]  ;;  %v1769_v54 = vld [vmem:[#allocation2 + $0x371] ss:$2 sm:$0xff]  ;;  %1507 = vst.msk [vmem:[#allocation2 + $0x380] sm:$0xff] %vm1394_vm3, %v1354_v52  ;;  %v2309_v5 = vld [vmem:[#allocation3 + $0x1c8] sm:$0xff] }
 0x425   : > { %v1837_v56 = vmax.f32 %v1705_v53, %v1769_v54  ;;  %v14913_v54 = vpack.c.bf16 %v2882_v48, %v2881_v51  ;;  %v2585_v51 = vld [vmem:[#allocation3 + $0x69] sm:$0xff] }
 0x427   : > { %v1869_v57 = vmax.f32 %v1805_v59, %v1837_v56  ;;  %v13360_v59 = vld [vmem:[%s19373_s3 + $0x20] sm:$0xff] }
 0x428   : > { %v13364_v56 = vld [vmem:[%s19373_s3 + $0x40] sm:$0xff]  ;;  %2699 = vmatpush.bf16.msrb.mxu3 %v13360_v59 }
 0x429   : > { %v1905_v61 = vadd.f32 %v14721_v14, %v1869_v57  ;;  %3295 = vmatpush.bf16.msra.mxu2 %v13364_v56  ;;  %v3181_v56 = vld [vmem:[#allocation3 + $0x88] sm:$0xff] }
 0x42b   : > { %v1937_v63 = vmax.f32 %v1905_v61, 0.0  ;;  %v1356_v0 = vpop.f32.mrf.mxu0  ;;  %v2884_v61 = vld [vmem:[#allocation3 + $0x8f] sm:$0xff] }
 0x42c   : > { %1508 = vst.msk [vmem:[#allocation2 + $0x388] sm:$0xff] %vm1394_vm3, %v1356_v0 }
 0x42d   : > { %2042 = vst.msk [vmem:[#allocation3 + $0x1d0] sm:$0xff] %vm1394_vm3, %v1937_v63 }
 0x433   : > { %v1359_v1 = vpop.f32.mrf.mxu0  ;;  %v1579_v28 = vld [vmem:[#allocation2 + $0x380] ss:$2 sm:$0xff]  ;;  %v1643_v29 = vld [vmem:[#allocation2 + $0x381] ss:$2 sm:$0xff] }
 0x434   : > { %1509 = vst.msk [vmem:[#allocation2 + $0x390] sm:$0xff] %vm1394_vm3, %v1359_v1  ;;  %v2228_v3 = vpop.f32.mrf.mxu1  ;;  %v2076_v4 = vld [vmem:[#allocation3 + $0x1cf] sm:$0xff]  ;;  %v1806_v34 = vmax.f32 %v1579_v28, %v1643_v29 }
 0x435   : > { %v2310_v6 = vld [vmem:[#allocation3 + $0x1d0] sm:$0xff]  ;;  %2273 = vst.msk [vmem:[#allocation4 + $0xc0] sm:$0xff] %vm2248_vm4, %v2228_v3  ;;  %v14880_v7 = vpack.c.bf16 %v2076_v4, %v2075_v2 }
 0x436   : > { %v14882_v8 = vpack.c.bf16 %v2310_v6, %v2309_v5  ;;  %v2883_v5 = vld [vmem:[#allocation3 + $0x87] sm:$0xff]  ;;  %v2582_v29 = vld [vmem:[#allocation3 + $0x31] sm:$0xff] }
 0x437   : > { %10705 = vmatmul.msk.bf16.gmra.mxu1 %vm1394_vm3, %v14880_v7  ;;  %v14930_v6 = vpack.c.bf16 %v2884_v61, %v2883_v5  ;;  %v2581_v28 = vld [vmem:[#allocation3 + $0x29] sm:$0xff] }
 0x438   : > { %10733 = vmatmul.msk.bf16.gmra.mxu2 %vm1394_vm3, %v14882_v8 }
 0x43b   : > { %v2463_v9 = vpop.f32.mrf.mxu2  ;;  %v1361_v10 = vpop.f32.mrf.mxu0 }
 0x43c   : > { %v2507_v11 = vld [vmem:[#allocation4 + $0xc0] sm:$0xff]  ;;  %1510 = vst.msk [vmem:[#allocation2 + $0x398] sm:$0xff] %vm1394_vm3, %v1361_v10  ;;  %v2230_v12 = vpop.f32.mrf.mxu1 }
 0x43d   : > { %v2539_v15 = vadd.f32 %v2507_v11, %v2463_v9  ;;  %2274 = vst.msk [vmem:[#allocation4 + $0xc8] sm:$0xff] %vm2248_vm4, %v2230_v12  ;;  %v2579_v12 = vld [vmem:[#allocation3 + $0x9] sm:$0xff] }
 0x43e   : > { %v2611_v16 = vpack.c.bf16 %v2580_v13, %v2579_v12 }
 0x43f   : > { %2571 = vst.msk [vmem:[#allocation4 + $0xc0] sm:$0xff] %vm2248_vm4, %v2539_v15  ;;  %v3176_v15 = vld [vmem:[#allocation3 + $0x30] sm:$0xff] }
 0x443   : > { %v1364_v17 = vpop.f32.mrf.mxu0  ;;  %v2465_v19 = vpop.f32.mrf.mxu2  ;;  %v1581_v46 = vld [vmem:[#allocation2 + $0x390] ss:$2 sm:$0xff]  ;;  %v1645_v47 = vld [vmem:[#allocation2 + $0x391] ss:$2 sm:$0xff] }
 0x444   : > { %v2508_v20 = vld [vmem:[#allocation4 + $0xc8] sm:$0xff]  ;;  %1511 = vst.msk [vmem:[#allocation2 + $0x3a0] sm:$0xff] %vm1394_vm3, %v1364_v17  ;;  %v1807_v52 = vmax.f32 %v1581_v46, %v1645_v47 }
 0x445   : > { %v2540_v22 = vadd.f32 %v2508_v20, %v2465_v19  ;;  %v2886_v17 = vld [vmem:[#allocation3 + $0xaf] sm:$0xff]  ;;  %v2889_v46 = vld [vmem:[#allocation3 + $0xe7] sm:$0xff] }
 0x447   : > { %2572 = vst.msk [vmem:[#allocation4 + $0xc8] sm:$0xff] %vm2248_vm4, %v2540_v22  ;;  %10775 = vmatmul.msk.bf16.vlgmr.msrb.gmra.mxu1 %vm1394_vm3, %v2909_v23  ;;  %v2885_v23 = vld [vmem:[#allocation3 + $0xa7] sm:$0xff] }
 0x448   : > { %v14940_v27 = vpack.c.bf16 %v2886_v17, %v2885_v23  ;;  %v3183_v17 = vld [vmem:[#allocation3 + $0xa8] sm:$0xff] }
 0x44b   : > { %v1366_v24 = vpop.f32.mrf.mxu0 }
 0x44c   : > { %1512 = vst.msk [vmem:[#allocation2 + $0x3a8] sm:$0xff] %vm1394_vm3, %v1366_v24  ;;  %v3207_v24 = vpack.c.bf16 %v3176_v15, %v3175_v21  ;;  %v2893_v21 = vld [vmem:[#allocation3 + $0x127] sm:$0xff] }
 0x453   : > { %v1707_v31 = vld [vmem:[#allocation2 + $0x3a0] ss:$2 sm:$0xff]  ;;  %v1771_v32 = vld [vmem:[#allocation2 + $0x3a1] ss:$2 sm:$0xff]  ;;  %v1369_v33 = vpop.f32.mrf.mxu0 }
 0x454   : > { %v1838_v35 = vmax.f32 %v1707_v31, %v1771_v32  ;;  %1513 = vst.msk [vmem:[#allocation2 + $0x3b0] sm:$0xff] %vm1394_vm3, %v1369_v33  ;;  %v2888_v31 = vld [vmem:[#allocation3 + $0xcf] sm:$0xff]  ;;  %v14947_v33 = vpack.c.bf16 %v2582_v29, %v2581_v28 }
 0x455   : > { %v3177_v32 = vld [vmem:[#allocation3 + $0x48] sm:$0xff]  ;;  %v1777_v28 = vld [vmem:[#allocation2 + $0x3f1] ss:$2 sm:$0xff] }
 0x456   : > { %v1870_v38 = vmax.f32 %v1806_v34, %v1838_v35  ;;  %v2887_v34 = vld [vmem:[#allocation3 + $0xc7] sm:$0xff]  ;;  %v14949_v35 = vpack.c.bf16 %v3178_v30, %v3177_v32 }
 0x457   : > { %10776 = vmatmul.msk.bf16.gmra.mxu1 %vm1394_vm3, %v14900_v37  ;;  %v14951_v36 = vpack.c.bf16 %v2888_v31, %v2887_v34 }
 0x458   : > { %v1906_v39 = vadd.f32 %v14721_v14, %v1870_v38  ;;  %v2583_v38 = vld [vmem:[#allocation3 + $0x49] sm:$0xff] }
 0x45a   : > { %v1938_v40 = vmax.f32 %v1906_v39, 0.0  ;;  %v2584_v39 = vld [vmem:[#allocation3 + $0x51] sm:$0xff] }
 0x45b   : > { %v1371_v41 = vpop.f32.mrf.mxu0  ;;  %v14959_v43 = vpack.c.bf16 %v2584_v39, %v2583_v38 }
 0x45c   : > { %2043 = vst.msk [vmem:[#allocation3 + $0x1e8] sm:$0xff] %vm1394_vm3, %v1938_v40  ;;  %v3180_v40 = vld [vmem:[#allocation3 + $0x70] sm:$0xff] }
 0x45d   : > { %1514 = vst.msk [vmem:[#allocation2 + $0x3b8] sm:$0xff] %vm1394_vm3, %v1371_v41  ;;  %v2890_v41 = vld [vmem:[#allocation3 + $0xef] sm:$0xff]  ;;  %v14961_v47 = vpack.c.bf16 %v3180_v40, %v3179_v42  ;;  %v14016_v40 = vld [vmem:[%s19372_s2] ss:$0 sm:$0xff] }
 0x45e   : > { %v14963_v48 = vpack.c.bf16 %v2890_v41, %v2889_v46  ;;  %v2589_v42 = vld [vmem:[#allocation3 + $0xa9] sm:$0xff]  ;;  %v2590_v46 = vld [vmem:[#allocation3 + $0xb1] sm:$0xff] }
 0x463   : > { %v2077_v60 = vld [vmem:[#allocation3 + $0x1e7] sm:$0xff] }
 0x464   : > { %v1709_v49 = vld [vmem:[#allocation2 + $0x3b0] ss:$2 sm:$0xff]  ;;  %v1773_v50 = vld [vmem:[#allocation2 + $0x3b1] ss:$2 sm:$0xff]  ;;  %v2311_v1 = vld [vmem:[#allocation3 + $0x1e8] sm:$0xff] }
 0x465   : > { %v1839_v53 = vmax.f32 %v1709_v49, %v1773_v50  ;;  %v1374_v49 = vpop.f32.mrf.mxu0 }
 0x466   : > { %1515 = vst.msk [vmem:[#allocation2 + $0x3c0] sm:$0xff] %vm1394_vm3, %v1374_v49  ;;  %v3186_v49 = vld [vmem:[#allocation3 + $0xd0] sm:$0xff] }
 0x467   : > { %v1871_v55 = vmax.f32 %v1807_v52, %v1839_v53  ;;  %10777 = vmatmul.msk.bf16.gmra.mxu1 %vm1394_vm3, %v14913_v54  ;;  %v2586_v52 = vld [vmem:[#allocation3 + $0x71] sm:$0xff] }
 0x468   : > { %v3182_v53 = vld [vmem:[#allocation3 + $0x90] sm:$0xff] }
 0x469   : > { %v1907_v57 = vadd.f32 %v14721_v14, %v1871_v55  ;;  %v2892_v55 = vld [vmem:[#allocation3 + $0x10f] sm:$0xff] }
 0x46b   : > { %v1939_v58 = vmax.f32 %v1907_v57, 0.0  ;;  %v14974_v57 = vpack.c.bf16 %v2586_v52, %v2585_v51  ;;  %v3185_v52 = vld [vmem:[#allocation3 + $0xc8] sm:$0xff] }
 0x46d   : > { %2044 = vst.msk [vmem:[#allocation3 + $0x1f0] sm:$0xff] %vm1394_vm3, %v1939_v58  ;;  %v1376_v50 = vpop.f32.mrf.mxu0  ;;  %v2891_v58 = vld [vmem:[#allocation3 + $0x107] sm:$0xff] }
 0x46e   : > { %1516 = vst.msk [vmem:[#allocation2 + $0x3c8] sm:$0xff] %vm1394_vm3, %v1376_v50  ;;  %v14978_v61 = vpack.c.bf16 %v2892_v55, %v2891_v58  ;;  %v2616_v55 = vpack.c.bf16 %v2590_v46, %v2589_v42  ;;  %v2596_v42 = vld [vmem:[#allocation3 + $0x111] sm:$0xff] }
 0x46f   : > { %v3192_v46 = vld [vmem:[#allocation3 + $0x130] sm:$0xff] }
 0x474   : > { %v2233_v63 = vpop.f32.mrf.mxu1  ;;  %v2078_v0 = vld [vmem:[#allocation3 + $0x1ef] sm:$0xff] }
 0x475   : > { %v2312_v2 = vld [vmem:[#allocation3 + $0x1f0] sm:$0xff]  ;;  %2275 = vst.msk [vmem:[#allocation4 + $0xd0] sm:$0xff] %vm2248_vm4, %v2233_v63  ;;  %v14926_v3 = vpack.c.bf16 %v2078_v0, %v2077_v60  ;;  %v14976_v60 = vpack.c.bf16 %v3182_v53, %v3181_v56  ;;  %v1379_v0 = vpop.f32.mrf.mxu0  ;;  %v1583_v56 = vld [vmem:[#allocation2 + $0x3c0] ss:$2 sm:$0xff]  ;;  %v1647_v58 = vld [vmem:[#allocation2 + $0x3c1] ss:$2 sm:$0xff] }
 0x476   : > { %v14928_v4 = vpack.c.bf16 %v2312_v2, %v2311_v1  ;;  %1517 = vst.msk [vmem:[#allocation2 + $0x3d0] sm:$0xff] %vm1394_vm3, %v1379_v0 }
 0x477   : > { %10706 = vmatmul.msk.bf16.vlgmr.msra.gmra.mxu3 %vm1394_vm3, %v14926_v3  ;;  %10778 = vmatmul.msk.bf16.gmra.mxu1 %vm1394_vm3, %v14930_v6 }
 0x478   : > { %10734 = vmatmul.msk.bf16.gmra.mxu2 %vm1394_vm3, %v14928_v4 }
 0x47b   : > { %v2468_v14 = vpop.f32.mrf.mxu2 }
 0x47c   : > { %v2509_v9 = vld [vmem:[#allocation4 + $0xd0] sm:$0xff]  ;;  %v2235_v10 = vpop.f32.mrf.mxu1 }
 0x47d   : > { %v2541_v11 = vadd.f32 %v2509_v9, %v2468_v14  ;;  %2276 = vst.msk [vmem:[#allocation4 + $0xd8] sm:$0xff] %vm2248_vm4, %v2235_v10  ;;  %v2587_v14 = vld [vmem:[#allocation3 + $0x89] sm:$0xff]  ;;  %v2588_v9 = vld [vmem:[#allocation3 + $0x91] sm:$0xff]  ;;  %v1381_v12 = vpop.f32.mrf.mxu0 }
 0x47e   : > { %v3184_v10 = vld [vmem:[#allocation3 + $0xb0] sm:$0xff]  ;;  %1518 = vst.msk [vmem:[#allocation2 + $0x3d8] sm:$0xff] %vm1394_vm3, %v1381_v12 }
 0x47f   : > { %2573 = vst.msk [vmem:[#allocation4 + $0xd0] sm:$0xff] %vm2248_vm4, %v2541_v11  ;;  %v2894_v11 = vld [vmem:[#allocation3 + $0x12f] sm:$0xff] }
 0x480   : > { %v2917_v23 = vpack.c.bf16 %v2894_v11, %v2893_v21  ;;  %v2592_v11 = vld [vmem:[#allocation3 + $0xd1] sm:$0xff]  ;;  %v2593_v21 = vld [vmem:[#allocation3 + $0xe9] sm:$0xff] }
 0x481   : > { %v3188_v12 = vld [vmem:[#allocation3 + $0xf0] sm:$0xff] }
 0x483   : > { %v2470_v19 = vpop.f32.mrf.mxu2 }
 0x484   : > { %v2510_v20 = vld [vmem:[#allocation4 + $0xd8] sm:$0xff] }
 0x485   : > { %v2542_v22 = vadd.f32 %v2510_v20, %v2470_v19  ;;  %v2615_v20 = vpack.c.bf16 %v2588_v9, %v2587_v14  ;;  %v1585_v30 = vld [vmem:[#allocation2 + $0x3d0] ss:$2 sm:$0xff]  ;;  %v1649_v31 = vld [vmem:[#allocation2 + $0x3d1] ss:$2 sm:$0xff]  ;;  %v1384_v38 = vpop.f32.mrf.mxu0 }
 0x486   : > { %v1809_v34 = vmax.f32 %v1585_v30, %v1649_v31  ;;  %1519 = vst.msk [vmem:[#allocation2 + $0x3e0] sm:$0xff] %vm1394_vm3, %v1384_v38  ;;  %v2595_v38 = vld [vmem:[#allocation3 + $0x109] sm:$0xff] }
 0x487   : > { %2574 = vst.msk [vmem:[#allocation4 + $0xd8] sm:$0xff] %vm2248_vm4, %v2542_v22  ;;  %10747 = vmatmul.msk.bf16.vlgmr.msrb.gmra.mxu3 %vm1394_vm3, %v2611_v16  ;;  %10779 = vmatmul.msk.bf16.gmra.mxu1 %vm1394_vm3, %v14940_v27  ;;  %v3211_v22 = vpack.c.bf16 %v3184_v10, %v3183_v17  ;;  %v2591_v10 = vld [vmem:[#allocation3 + $0xc9] sm:$0xff] }
 0x488   : > { %10803 = vmatmul.msk.bf16.vlgmr.msra.gmra.mxu2 %vm1394_vm3, %v3207_v24  ;;  %v1713_v24 = vld [vmem:[#allocation2 + $0x3f0] ss:$2 sm:$0xff]  ;;  %v3187_v17 = vld [vmem:[#allocation3 + $0xe8] sm:$0xff] }
 0x489   : > { %v1841_v29 = vmax.f32 %v1713_v24, %v1777_v28  ;;  %v3189_v24 = vld [vmem:[#allocation3 + $0x108] sm:$0xff] }
 0x48b   : > { %v1873_v39 = vmax.f32 %v1809_v34, %v1841_v29 }
 0x48d   : > { %v1909_v41 = vadd.f32 %v14016_v40, %v1873_v39  ;;  %v1386_v53 = vpop.f32.mrf.mxu0 }
 0x48e   : > { %1520 = vst.msk [vmem:[#allocation2 + $0x3e8] sm:$0xff] %vm1394_vm3, %v1386_v53 }
 0x48f   : > { %v1941_v50 = vmax.f32 %v1909_v41, 0.0 }
 0x491   : > { %2046 = vst.msk [vmem:[#allocation3 + $0x210] sm:$0xff] %vm1394_vm3, %v1941_v50  ;;  %v3191_v50 = vld [vmem:[#allocation3 + $0x128] sm:$0xff] }
 0x492   : > { %v3215_v53 = vpack.c.bf16 %v3192_v46, %v3191_v50  ;;  %v2600_v46 = vld [vmem:[#allocation3 + $0x151] sm:$0xff] }
 0x497   : > { %10748 = vmatmul.msk.bf16.gmra.mxu3 %vm1394_vm3, %v14947_v33  ;;  %10780 = vmatmul.msk.bf16.gmra.mxu1 %vm1394_vm3, %v14951_v36 }
 0x498   : > { %10804 = vmatmul.msk.bf16.gmra.mxu2 %vm1394_vm3, %v14949_v35 }
 0x4a7   : > { %10749 = vmatmul.msk.bf16.gmra.mxu3 %vm1394_vm3, %v14959_v43  ;;  %10781 = vmatmul.msk.bf16.gmra.mxu1 %vm1394_vm3, %v14963_v48 }
 0x4a8   : > { %10805 = vmatmul.msk.bf16.gmra.mxu2 %vm1394_vm3, %v14961_v47 }
 0x4b4   : > { %v2238_v59 = vpop.f32.mrf.mxu1 }
 0x4b5   : > { %2277 = vst.msk [vmem:[#allocation4 + $0xe0] sm:$0xff] %vm2248_vm4, %v2238_v59  ;;  %v3212_v59 = vpack.c.bf16 %v3186_v49, %v3185_v52 }
 0x4b7   : > { %10750 = vmatmul.msk.bf16.gmra.mxu3 %vm1394_vm3, %v14974_v57  ;;  %10782 = vmatmul.msk.bf16.gmra.mxu1 %vm1394_vm3, %v14978_v61 }
 0x4b8   : > { %10806 = vmatmul.msk.bf16.gmra.mxu2 %vm1394_vm3, %v14976_v60 }
 0x4bb   : > { %v2473_v63 = vpop.f32.mrf.mxu2 }
 0x4bc   : > { %v2511_v1 = vld [vmem:[#allocation4 + $0xe0] sm:$0xff]  ;;  %v2240_v2 = vpop.f32.mrf.mxu1 }
 0x4bd   : > { %v2543_v5 = vadd.f32 %v2511_v1, %v2473_v63  ;;  %2278 = vst.msk [vmem:[#allocation4 + $0xe8] sm:$0xff] %vm2248_vm4, %v2240_v2  ;;  %v1808_v63 = vmax.f32 %v1583_v56, %v1647_v58  ;;  %v1711_v1 = vld [vmem:[#allocation2 + $0x3e0] ss:$2 sm:$0xff]  ;;  %v1775_v2 = vld [vmem:[#allocation2 + $0x3e1] ss:$2 sm:$0xff] }
 0x4bf   : > { %2575 = vst.msk [vmem:[#allocation4 + $0xe0] sm:$0xff] %vm2248_vm4, %v2543_v5  ;;  %v1840_v5 = vmax.f32 %v1711_v1, %v1775_v2 }
 0x4c1   : > { %v1872_v14 = vmax.f32 %v1808_v63, %v1840_v5  ;;  %v2597_v5 = vld [vmem:[#allocation3 + $0x129] sm:$0xff] }
 0x4c3   : > { %v2475_v13 = vpop.f32.mrf.mxu2  ;;  %v1908_v9 = vadd.f32 %v14016_v40, %v1872_v14 }
 0x4c4   : > { %v2512_v15 = vld [vmem:[#allocation4 + $0xe8] sm:$0xff]  ;;  %v14989_v16 = vpop.f32.mrf.mxu1 }
 0x4c5   : > { %v2544_v19 = vadd.f32 %v2512_v15, %v2475_v13  ;;  %v1940_v13 = vmax.f32 %v1908_v9, 0.0  ;;  %v2782_v9 = vld [vmem:[#allocation4 + $0x8] sm:$0xff] }
 0x4c7   : > { %2576 = vst.msk [vmem:[#allocation4 + $0xe8] sm:$0xff] %vm2248_vm4, %v2544_v19  ;;  %10751 = vmatmul.msk.bf16.gmra.mxu3 %vm1394_vm3, %v2615_v20  ;;  %10783 = vmatmul.msk.bf16.gmra.mxu1 %vm1394_vm3, %v2917_v23  ;;  %v2617_v19 = vpack.c.bf16 %v2592_v11, %v2591_v10  ;;  %v3213_v20 = vpack.c.bf16 %v3188_v12, %v3187_v17  ;;  %v3190_v23 = vld [vmem:[#allocation3 + $0x110] sm:$0xff] }
 0x4c8   : > { %10807 = vmatmul.msk.bf16.gmra.mxu2 %vm1394_vm3, %v3211_v22  ;;  %2045 = vst.msk [vmem:[#allocation3 + $0x208] sm:$0xff] %vm1394_vm3, %v1940_v13  ;;  %v2594_v22 = vld [vmem:[#allocation3 + $0xf1] sm:$0xff]  ;;  %v3214_v30 = vpack.c.bf16 %v3190_v23, %v3189_v24 }
 0x4c9   : > { %v2618_v29 = vpack.c.bf16 %v2594_v22, %v2593_v21  ;;  %v2598_v11 = vld [vmem:[#allocation3 + $0x131] sm:$0xff] }
 0x4ca   : > { %v3194_v12 = vld [vmem:[#allocation3 + $0x150] sm:$0xff] }
 0x4cb   : > { %v2783_v24 = vld [vmem:[#allocation4 + $0x10] sm:$0xff] }
 0x4cc   : > { %v14996_v32 = vpop.f32.mrf.mxu1 }
 0x4d4   : > { %v15002_v51 = vpop.f32.mrf.mxu1 }
 0x4d7   : > { %10752 = vmatmul.msk.bf16.gmra.mxu3 %vm1394_vm3, %v2616_v55  ;;  %10784 = vmatmul.msk.bf16.gmra.mxu1 %vm1394_vm3, %v14762_v18  ;;  %v2781_v55 = vld [vmem:[#allocation4] sm:$0xff] }
 0x4d8   : > { %10808 = vmatmul.msk.bf16.gmra.mxu2 %vm1394_vm3, %v3212_v59 }
 0x4dc   : > { %v15010_v0 = vpop.f32.mrf.mxu1 }
 0x4e4   : > { %v15012_v15 = vpop.f32.mrf.mxu1 }
 0x4e7   : > { %10753 = vmatmul.msk.bf16.gmra.mxu3 %vm1394_vm3, %v2617_v19  ;;  %10785 = vmatmul.msk.bf16.gmra.mxu1 %vm1394_vm3, %v14791_v62 }
 0x4e8   : > { %10809 = vmatmul.msk.bf16.gmra.mxu2 %vm1394_vm3, %v3213_v20  ;;  %v2620_v20 = vpack.c.bf16 %v2598_v11, %v2597_v5 }
 0x4ec   : > { %v15019_v18 = vpop.f32.mrf.mxu1 }
 0x4f4   : > { %v15021_v28 = vpop.f32.mrf.mxu1 }
 0x4f7   : > { %10754 = vmatmul.msk.bf16.gmra.mxu3 %vm1394_vm3, %v2618_v29  ;;  %10786 = vmatmul.msk.bf16.gmra.mxu1 %vm1394_vm3, %v14820_v44  ;;  %v2619_v44 = vpack.c.bf16 %v2596_v42, %v2595_v38  ;;  %v2599_v42 = vld [vmem:[#allocation3 + $0x149] sm:$0xff] }
 0x4f8   : > { %10810 = vmatmul.msk.bf16.gmra.mxu2 %vm1394_vm3, %v3214_v30 }
 0x4fa   : > { %v2243_v31 = vpop.f32.mrf.mxu3 }
 0x4fb   : > { %v2478_v34 = vpop.f32.mrf.mxu2  ;;  %2279 = vst.msk [vmem:[#allocation4 + $0xf0] sm:$0xff] %vm2248_vm4, %v2243_v31 }
 0x4fc   : > { %v15028_v62 = vpop.f32.mrf.mxu1 }
 0x502   : > { %v2513_v39 = vld [vmem:[#allocation4 + $0xf0] sm:$0xff]  ;;  %v2245_v40 = vpop.f32.mrf.mxu3 }
 0x503   : > { %v2480_v41 = vpop.f32.mrf.mxu2  ;;  %v2545_v49 = vadd.f32 %v2513_v39, %v2478_v34  ;;  %2280 = vst.msk [vmem:[#allocation4 + $0xf8] sm:$0xff] %vm2248_vm4, %v2245_v40  ;;  %v2784_v40 = vld [vmem:[#allocation4 + $0x18] sm:$0xff] }
 0x504   : > { %v15032_v52 = vpop.f32.mrf.mxu1 }
 0x505   : > { %2577 = vst.msk [vmem:[#allocation4 + $0xf0] sm:$0xff] %vm2248_vm4, %v2545_v49  ;;  %v3196_v49 = vld [vmem:[#allocation3 + $0x170] sm:$0xff] }
 0x507   : > { %10755 = vmatmul.msk.bf16.gmra.mxu3 %vm1394_vm3, %v2619_v44  ;;  %10787 = vmatmul.msk.bf16.gmra.mxu1 %vm1394_vm3, %v14848_v25  ;;  %v3193_v25 = vld [vmem:[#allocation3 + $0x148] sm:$0xff] }
 0x508   : > { %10811 = vmatmul.msk.bf16.gmra.mxu2 %vm1394_vm3, %v3215_v53  ;;  %v3216_v21 = vpack.c.bf16 %v3194_v12, %v3193_v25  ;;  %v3195_v53 = vld [vmem:[#allocation3 + $0x168] sm:$0xff] }
 0x509   : > { %v13369_v25 = vld [vmem:[%s19373_s3 + $0x68] sm:$0xff] }
 0x50a   : > { %v2514_v59 = vld [vmem:[#allocation4 + $0xf8] sm:$0xff]  ;;  %v2701_v56 = vpop.f32.mrf.mxu3  ;;  %3891 = vmatpush.bf16.msra.mxu1 %v13369_v25 }
 0x50b   : > { %v3297_v58 = vpop.f32.mrf.mxu2  ;;  %v2546_v63 = vadd.f32 %v2514_v59, %v2480_v41  ;;  %v2813_v1 = vadd.f32 %v2781_v55, %v2701_v56  ;;  %v2621_v59 = vpack.c.bf16 %v2600_v46, %v2599_v42  ;;  %v3217_v56 = vpack.c.bf16 %v3196_v49, %v3195_v53  ;;  %v2787_v46 = vld [vmem:[#allocation4 + $0x30] sm:$0xff] }
 0x50c   : > { %v15039_v2 = vpop.f32.mrf.mxu1 }
 0x50d   : > { %2578 = vst.msk [vmem:[#allocation4 + $0xf8] sm:$0xff] %vm2248_vm4, %v2546_v63 }
 0x50e   : > { %2845 = vst.msk [vmem:[#allocation4] sm:$0xff] %vm2248_vm4, %v2813_v1  ;;  %v2785_v1 = vld [vmem:[#allocation4 + $0x20] sm:$0xff] }
 0x512   : > { %v2703_v14 = vpop.f32.mrf.mxu3 }
 0x513   : > { %v3299_v10 = vpop.f32.mrf.mxu2  ;;  %v2814_v13 = vadd.f32 %v2782_v9, %v2703_v14 }
 0x514   : > { %v15043_v19 = vpop.f32.mrf.mxu1 }
 0x515   : > { %v3079_v17 = vld [vmem:[#allocation4] sm:$0xff]  ;;  %2846 = vst.msk [vmem:[#allocation4 + $0x8] sm:$0xff] %vm2248_vm4, %v2814_v13 }
 0x516   : > { %v3111_v22 = vadd.f32 %v3079_v17, %v14989_v16 }
 0x517   : > { %10756 = vmatmul.msk.bf16.gmra.mxu3 %vm1394_vm3, %v2620_v20  ;;  %10788 = vmatmul.msk.bf16.gmra.mxu1 %vm1394_vm3, %v14880_v7 }
 0x518   : > { %10812 = vmatmul.msk.bf16.gmra.mxu2 %vm1394_vm3, %v3216_v21  ;;  %3143 = vst.msk [vmem:[#allocation4] sm:$0xff] %vm2248_vm4, %v3111_v22  ;;  %v2601_v21 = vld [vmem:[#allocation3 + $0x169] sm:$0xff]  ;;  %v2602_v22 = vld [vmem:[#allocation3 + $0x171] sm:$0xff] }
 0x51a   : > { %v2706_v23 = vpop.f32.mrf.mxu3 }
 0x51b   : > { %v3302_v29 = vpop.f32.mrf.mxu2  ;;  %v2815_v30 = vadd.f32 %v2783_v24, %v2706_v23  ;;  %v2907_v24 = vld [vmem:[#allocation3 + $0x207] sm:$0xff] }
 0x51c   : > { %v3080_v31 = vld [vmem:[#allocation4 + $0x8] sm:$0xff]  ;;  %v15053_v38 = vpop.f32.mrf.mxu1 }
 0x51d   : > { %v3112_v34 = vadd.f32 %v3080_v31, %v14996_v32  ;;  %2847 = vst.msk [vmem:[#allocation4 + $0x10] sm:$0xff] %vm2248_vm4, %v2815_v30 }
 0x51f   : > { %v3377_v16 = vld [vmem:[#allocation4] sm:$0xff]  ;;  %3144 = vst.msk [vmem:[#allocation4 + $0x8] sm:$0xff] %vm2248_vm4, %v3112_v34 }
 0x520   : > { %v3409_v39 = vadd.f32 %v3377_v16, %v3297_v58  ;;  %v2622_v16 = vpack.c.bf16 %v2602_v22, %v2601_v21 }
 0x522   : > { %3441 = vst.msk [vmem:[#allocation4] sm:$0xff] %vm2248_vm4, %v3409_v39  ;;  %v2708_v41 = vpop.f32.mrf.mxu3 }
 0x523   : > { %v3304_v7 = vpop.f32.mrf.mxu2  ;;  %v2816_v50 = vadd.f32 %v2784_v40, %v2708_v41 }
 0x524   : > { %v3081_v44 = vld [vmem:[#allocation4 + $0x10] sm:$0xff]  ;;  %v15059_v55 = vpop.f32.mrf.mxu1 }
 0x525   : > { %v3113_v32 = vadd.f32 %v3081_v44, %v15002_v51  ;;  %2848 = vst.msk [vmem:[#allocation4 + $0x18] sm:$0xff] %vm2248_vm4, %v2816_v50 }
 0x526   : > { %v3378_v58 = vld [vmem:[#allocation4 + $0x8] sm:$0xff] }
 0x527   : > { %v3410_v63 = vadd.f32 %v3378_v58, %v3299_v10  ;;  %3145 = vst.msk [vmem:[#allocation4 + $0x10] sm:$0xff] %vm2248_vm4, %v3113_v32  ;;  %10757 = vmatmul.msk.bf16.gmra.mxu3 %vm1394_vm3, %v2621_v59  ;;  %10789 = vmatmul.msk.bf16.gmra.mxu1 %vm1394_vm3, %v14926_v3  ;;  %v13367_v3 = vld [vmem:[%s19373_s3 + $0x58] sm:$0xff] }
 0x528   : > { %10813 = vmatmul.msk.bf16.gmra.mxu2 %vm1394_vm3, %v3217_v56  ;;  %3592 = vmatpush.bf16.msra.mxu3 %v13367_v3  ;;  %v2788_v56 = vld [vmem:[#allocation4 + $0x38] sm:$0xff] }
 0x529   : > { %3442 = vst.msk [vmem:[#allocation4 + $0x8] sm:$0xff] %vm2248_vm4, %v3410_v63  ;;  %v2603_v63 = vld [vmem:[#allocation3 + $0x189] sm:$0xff] }
 0x52a   : > { %v2711_v51 = vpop.f32.mrf.mxu3 }
 0x52b   : > { %v3307_v5 = vpop.f32.mrf.mxu2  ;;  %v2817_v14 = vadd.f32 %v2785_v1, %v2711_v51  ;;  %v2604_v51 = vld [vmem:[#allocation3 + $0x191] sm:$0xff] }
 0x52c   : > { %v3082_v9 = vld [vmem:[#allocation4 + $0x18] sm:$0xff]  ;;  %v15069_v10 = vpop.f32.mrf.mxu1 }
 0x52d   : > { %v3114_v11 = vadd.f32 %v3082_v9, %v15010_v0  ;;  %2849 = vst.msk [vmem:[#allocation4 + $0x20] sm:$0xff] %vm2248_vm4, %v2817_v14  ;;  %v2786_v0 = vld [vmem:[#allocation4 + $0x28] sm:$0xff] }
 0x52e   : > { %v3379_v12 = vld [vmem:[#allocation4 + $0x10] sm:$0xff] }
 0x52f   : > { %v3411_v13 = vadd.f32 %v3379_v12, %v3302_v29  ;;  %3146 = vst.msk [vmem:[#allocation4 + $0x18] sm:$0xff] %vm2248_vm4, %v3114_v11  ;;  %v2908_v29 = vld [vmem:[#allocation3 + $0x20f] sm:$0xff]  ;;  %v2623_v11 = vpack.c.bf16 %v2604_v51, %v2603_v63 }
 0x530   : > { %v2924_v40 = vpack.c.bf16 %v2908_v29, %v2907_v24  ;;  %v2605_v24 = vld [vmem:[#allocation3 + $0x1a9] sm:$0xff]  ;;  %v2606_v29 = vld [vmem:[#allocation3 + $0x1b1] sm:$0xff] }
 0x531   : > { %3443 = vst.msk [vmem:[#allocation4 + $0x10] sm:$0xff] %vm2248_vm4, %v3411_v13  ;;  %v2789_v13 = vld [vmem:[#allocation4 + $0x40] sm:$0xff] }
 0x532   : > { %v2713_v17 = vpop.f32.mrf.mxu3 }
 0x533   : > { %v3309_v20 = vpop.f32.mrf.mxu2  ;;  %v2818_v23 = vadd.f32 %v2786_v0, %v2713_v17 }
 0x534   : > { %v3083_v30 = vld [vmem:[#allocation4 + $0x20] sm:$0xff]  ;;  %v15081_v34 = vpop.f32.mrf.mxu1 }
 0x535   : > { %v3115_v31 = vadd.f32 %v3083_v30, %v15012_v15  ;;  %2850 = vst.msk [vmem:[#allocation4 + $0x28] sm:$0xff] %vm2248_vm4, %v2818_v23  ;;  %v13368_v15 = vld [vmem:[%s19373_s3 + $0x60] sm:$0xff] }
 0x536   : > { %v3380_v39 = vld [vmem:[#allocation4 + $0x18] sm:$0xff]  ;;  %3892 = vmatpush.bf16.msra.mxu1 %v13368_v15  ;;  %v2791_v15 = vld [vmem:[#allocation4 + $0x50] sm:$0xff] }
 0x537   : > { %v3412_v41 = vadd.f32 %v3380_v39, %v3304_v7  ;;  %3147 = vst.msk [vmem:[#allocation4 + $0x20] sm:$0xff] %vm2248_vm4, %v3115_v31  ;;  %10758 = vmatmul.msk.bf16.gmra.mxu3 %vm1394_vm3, %v2622_v16  ;;  %10790 = vmatmul.msk.bf16.gmra.mxu1 %vm1394_vm3, %v2924_v40  ;;  %v2624_v39 = vpack.c.bf16 %v2606_v29, %v2605_v24 }
 0x538   : > { %10814 = vmatmul.msk.bf16.gmra.mxu2 %vm1394_vm3, %v14822_v45 }
 0x539   : > { %3444 = vst.msk [vmem:[#allocation4 + $0x18] sm:$0xff] %vm2248_vm4, %v3412_v41 }
 0x53a   : > { %v2716_v42 = vpop.f32.mrf.mxu3 }
 0x53b   : > { %v3312_v49 = vpop.f32.mrf.mxu2  ;;  %v2819_v50 = vadd.f32 %v2787_v46, %v2716_v42 }
 0x53c   : > { %v3084_v7 = vld [vmem:[#allocation4 + $0x28] sm:$0xff]  ;;  %v15094_v53 = vpop.f32.mrf.mxu1 }
 0x53d   : > { %v3116_v44 = vadd.f32 %v3084_v7, %v15019_v18  ;;  %2851 = vst.msk [vmem:[#allocation4 + $0x30] sm:$0xff] %vm2248_vm4, %v2819_v50 }
 0x53e   : > { %v3381_v45 = vld [vmem:[#allocation4 + $0x20] sm:$0xff] }
 0x53f   : > { %v3413_v32 = vadd.f32 %v3381_v45, %v3307_v5  ;;  %3148 = vst.msk [vmem:[#allocation4 + $0x28] sm:$0xff] %vm2248_vm4, %v3116_v44 }
 0x541   : > { %3445 = vst.msk [vmem:[#allocation4 + $0x20] sm:$0xff] %vm2248_vm4, %v3413_v32 }
 0x542   : > { %v2718_v59 = vpop.f32.mrf.mxu3 }
 0x543   : > { %v3314_v58 = vpop.f32.mrf.mxu2  ;;  %v2820_v1 = vadd.f32 %v2788_v56, %v2718_v59  ;;  %v2607_v59 = vld [vmem:[#allocation3 + $0x1c9] sm:$0xff]  ;;  %v2608_v56 = vld [vmem:[#allocation3 + $0x1d1] sm:$0xff] }
 0x544   : > { %v3085_v14 = vld [vmem:[#allocation4 + $0x30] sm:$0xff]  ;;  %v15100_v18 = vpop.f32.mrf.mxu1 }
 0x545   : > { %v3117_v9 = vadd.f32 %v3085_v14, %v15021_v28  ;;  %2852 = vst.msk [vmem:[#allocation4 + $0x38] sm:$0xff] %vm2248_vm4, %v2820_v1  ;;  %v2625_v1 = vpack.c.bf16 %v2608_v56, %v2607_v59 }
 0x546   : > { %v3382_v12 = vld [vmem:[#allocation4 + $0x28] sm:$0xff] }
 0x547   : > { %v3414_v5 = vadd.f32 %v3382_v12, %v3309_v20  ;;  %3149 = vst.msk [vmem:[#allocation4 + $0x30] sm:$0xff] %vm2248_vm4, %v3117_v9  ;;  %10759 = vmatmul.msk.bf16.gmra.mxu3 %vm1394_vm3, %v2623_v11  ;;  %10859 = vmatmul.msk.bf16.vlgmr.msra.gmra.mxu1 %vm1394_vm3, %v14900_v37  ;;  %v2790_v37 = vld [vmem:[#allocation4 + $0x48] sm:$0xff]  ;;  %v2793_v11 = vld [vmem:[#allocation4 + $0x60] sm:$0xff] }
 0x548   : > { %10815 = vmatmul.msk.bf16.gmra.mxu2 %vm1394_vm3, %v14850_v26 }
 0x549   : > { %3446 = vst.msk [vmem:[#allocation4 + $0x28] sm:$0xff] %vm2248_vm4, %v3414_v5 }
 0x54a   : > { %v2721_v28 = vpop.f32.mrf.mxu3 }
 0x54b   : > { %v3317_v3 = vpop.f32.mrf.mxu2  ;;  %v2821_v25 = vadd.f32 %v2789_v13, %v2721_v28 }
 0x54c   : > { %v3086_v17 = vld [vmem:[#allocation4 + $0x38] sm:$0xff]  ;;  %v15111_v20 = vpop.f32.mrf.mxu1 }
 0x54d   : > { %v3118_v0 = vadd.f32 %v3086_v17, %v15028_v62  ;;  %2853 = vst.msk [vmem:[#allocation4 + $0x40] sm:$0xff] %vm2248_vm4, %v2821_v25 }
 0x54e   : > { %v3383_v21 = vld [vmem:[#allocation4 + $0x30] sm:$0xff] }
 0x54f   : > { %v3415_v22 = vadd.f32 %v3383_v21, %v3312_v49  ;;  %3150 = vst.msk [vmem:[#allocation4 + $0x38] sm:$0xff] %vm2248_vm4, %v3118_v0  ;;  %v13371_v0 = vld [vmem:[%s19373_s3 + $0x78] sm:$0xff] }
 0x550   : > { %4189 = vmatpush.bf16.msrb.mxu2 %v13371_v0  ;;  %v2799_v0 = vld [vmem:[#allocation4 + $0x90] sm:$0xff] }
 0x551   : > { %3447 = vst.msk [vmem:[#allocation4 + $0x30] sm:$0xff] %vm2248_vm4, %v3415_v22 }
 0x552   : > { %v2723_v26 = vpop.f32.mrf.mxu3 }
 0x553   : > { %v3319_v23 = vpop.f32.mrf.mxu2  ;;  %v2822_v30 = vadd.f32 %v2790_v37, %v2723_v26  ;;  %v2610_v26 = vld [vmem:[#allocation3 + $0x1f1] sm:$0xff] }
 0x554   : > { %v3087_v31 = vld [vmem:[#allocation4 + $0x40] sm:$0xff]  ;;  %v15117_v62 = vpop.f32.mrf.mxu1  ;;  %v3206_v37 = vld [vmem:[#allocation3 + $0x210] sm:$0xff] }
 0x555   : > { %v3119_v16 = vadd.f32 %v3087_v31, %v15032_v52  ;;  %2854 = vst.msk [vmem:[#allocation4 + $0x48] sm:$0xff] %vm2248_vm4, %v2822_v30 }
 0x556   : > { %v3384_v40 = vld [vmem:[#allocation4 + $0x38] sm:$0xff] }
 0x557   : > { %v3416_v41 = vadd.f32 %v3384_v40, %v3314_v58  ;;  %3151 = vst.msk [vmem:[#allocation4 + $0x40] sm:$0xff] %vm2248_vm4, %v3119_v16  ;;  %10760 = vmatmul.msk.bf16.gmra.mxu3 %vm1394_vm3, %v2624_v39  ;;  %10860 = vmatmul.msk.bf16.gmra.mxu1 %vm1394_vm3, %v14913_v54  ;;  %v2792_v54 = vld [vmem:[#allocation4 + $0x58] sm:$0xff] }
 0x558   : > { %10816 = vmatmul.msk.bf16.gmra.mxu2 %vm1394_vm3, %v14882_v8 }
 0x559   : > { %3448 = vst.msk [vmem:[#allocation4 + $0x38] sm:$0xff] %vm2248_vm4, %v3416_v41  ;;  %v13370_v41 = vld [vmem:[%s19373_s3 + $0x70] sm:$0xff] }
 0x55a   : > { %v2726_v52 = vpop.f32.mrf.mxu3  ;;  %4190 = vmatpush.bf16.msrb.mxu2 %v13370_v41 }
 0x55b   : > { %v3322_v42 = vpop.f32.mrf.mxu2  ;;  %v2823_v46 = vadd.f32 %v2791_v15, %v2726_v52  ;;  %v2795_v15 = vld [vmem:[#allocation4 + $0x70] sm:$0xff] }
 0x55c   : > { %v3088_v49 = vld [vmem:[#allocation4 + $0x48] sm:$0xff]  ;;  %v15128_v7 = vpop.f32.mrf.mxu1 }
 0x55d   : > { %v3120_v50 = vadd.f32 %v3088_v49, %v15039_v2  ;;  %2855 = vst.msk [vmem:[#allocation4 + $0x50] sm:$0xff] %vm2248_vm4, %v2823_v46 }
 0x55e   : > { %v3385_v44 = vld [vmem:[#allocation4 + $0x40] sm:$0xff] }
 0x55f   : > { %v3417_v45 = vadd.f32 %v3385_v44, %v3317_v3  ;;  %3152 = vst.msk [vmem:[#allocation4 + $0x48] sm:$0xff] %vm2248_vm4, %v3120_v50 }
 0x561   : > { %3449 = vst.msk [vmem:[#allocation4 + $0x40] sm:$0xff] %vm2248_vm4, %v3417_v45 }
 0x562   : > { %v2728_v8 = vpop.f32.mrf.mxu3 }
 0x563   : > { %v3324_v32 = vpop.f32.mrf.mxu2  ;;  %v2824_v58 = vadd.f32 %v2792_v54, %v2728_v8  ;;  %v2796_v54 = vld [vmem:[#allocation4 + $0x78] sm:$0xff] }
 0x564   : > { %v3089_v63 = vld [vmem:[#allocation4 + $0x50] sm:$0xff]  ;;  %v15134_v2 = vpop.f32.mrf.mxu1 }
 0x565   : > { %v3121_v51 = vadd.f32 %v3089_v63, %v15043_v19  ;;  %2856 = vst.msk [vmem:[#allocation4 + $0x58] sm:$0xff] %vm2248_vm4, %v2824_v58 }
 0x566   : > { %v3386_v14 = vld [vmem:[#allocation4 + $0x48] sm:$0xff] }
 0x567   : > { %v3418_v9 = vadd.f32 %v3386_v14, %v3319_v23  ;;  %3153 = vst.msk [vmem:[#allocation4 + $0x50] sm:$0xff] %vm2248_vm4, %v3121_v51  ;;  %10761 = vmatmul.msk.bf16.gmra.mxu3 %vm1394_vm3, %v2625_v1  ;;  %10861 = vmatmul.msk.bf16.gmra.mxu1 %vm1394_vm3, %v14930_v6  ;;  %v2609_v6 = vld [vmem:[#allocation3 + $0x1e9] sm:$0xff]  ;;  %v2797_v1 = vld [vmem:[#allocation4 + $0x80] sm:$0xff] }
 0x568   : > { %10817 = vmatmul.msk.bf16.gmra.mxu2 %vm1394_vm3, %v14928_v4  ;;  %v2794_v4 = vld [vmem:[#allocation4 + $0x68] sm:$0xff]  ;;  %v2626_v31 = vpack.c.bf16 %v2610_v26, %v2609_v6 }
 0x569   : > { %3450 = vst.msk [vmem:[#allocation4 + $0x48] sm:$0xff] %vm2248_vm4, %v3418_v9 }
 0x56a   : > { %v2731_v19 = vpop.f32.mrf.mxu3 }
 0x56b   : > { %v3327_v12 = vpop.f32.mrf.mxu2  ;;  %v2825_v5 = vadd.f32 %v2793_v11, %v2731_v19 }
 0x56c   : > { %v3090_v28 = vld [vmem:[#allocation4 + $0x58] sm:$0xff]  ;;  %v15145_v3 = vpop.f32.mrf.mxu1 }
 0x56d   : > { %v3122_v13 = vadd.f32 %v3090_v28, %v15053_v38  ;;  %2857 = vst.msk [vmem:[#allocation4 + $0x60] sm:$0xff] %vm2248_vm4, %v2825_v5  ;;  %v3205_v38 = vld [vmem:[#allocation3 + $0x208] sm:$0xff] }
 0x56e   : > { %v3387_v25 = vld [vmem:[#allocation4 + $0x50] sm:$0xff]  ;;  %v3222_v16 = vpack.c.bf16 %v3206_v37, %v3205_v38 }
 0x56f   : > { %v3419_v17 = vadd.f32 %v3387_v25, %v3322_v42  ;;  %3154 = vst.msk [vmem:[#allocation4 + $0x58] sm:$0xff] %vm2248_vm4, %v3122_v13 }
 0x571   : > { %3451 = vst.msk [vmem:[#allocation4 + $0x50] sm:$0xff] %vm2248_vm4, %v3419_v17 }
 0x572   : > { %v2733_v21 = vpop.f32.mrf.mxu3 }
 0x573   : > { %v3329_v22 = vpop.f32.mrf.mxu2  ;;  %v2826_v23 = vadd.f32 %v2794_v4, %v2733_v21 }
 0x574   : > { %v3091_v24 = vld [vmem:[#allocation4 + $0x60] sm:$0xff]  ;;  %v15154_v30 = vpop.f32.mrf.mxu1 }
 0x575   : > { %v3123_v29 = vadd.f32 %v3091_v24, %v15059_v55  ;;  %2858 = vst.msk [vmem:[#allocation4 + $0x68] sm:$0xff] %vm2248_vm4, %v2826_v23  ;;  %v13366_v55 = vld [vmem:[%s19373_s3 + $0x50] sm:$0xff] }
 0x576   : > { %v3388_v39 = vld [vmem:[#allocation4 + $0x58] sm:$0xff]  ;;  %3593 = vmatpush.bf16.msra.mxu3 %v13366_v55  ;;  %v2801_v55 = vld [vmem:[#allocation4 + $0xa0] sm:$0xff] }
 0x577   : > { %v3420_v40 = vadd.f32 %v3388_v39, %v3324_v32  ;;  %3155 = vst.msk [vmem:[#allocation4 + $0x60] sm:$0xff] %vm2248_vm4, %v3123_v29  ;;  %10762 = vmatmul.msk.bf16.gmra.mxu3 %vm1394_vm3, %v2626_v31  ;;  %10862 = vmatmul.msk.bf16.gmra.mxu1 %vm1394_vm3, %v14940_v27 }
 0x578   : > { %10818 = vmatmul.msk.bf16.gmra.mxu2 %vm1394_vm3, %v3222_v16 }
 0x579   : > { %3452 = vst.msk [vmem:[#allocation4 + $0x58] sm:$0xff] %vm2248_vm4, %v3420_v40 }
 0x57a   : > { %v2736_v52 = vpop.f32.mrf.mxu3 }
 0x57b   : > { %v3332_v42 = vpop.f32.mrf.mxu2  ;;  %v2827_v46 = vadd.f32 %v2795_v15, %v2736_v52 }
 0x57c   : > { %v3092_v49 = vld [vmem:[#allocation4 + $0x68] sm:$0xff]  ;;  %v15170_v27 = vpop.f32.mrf.mxu1 }
 0x57d   : > { %v3124_v50 = vadd.f32 %v3092_v49, %v15069_v10  ;;  %2859 = vst.msk [vmem:[#allocation4 + $0x70] sm:$0xff] %vm2248_vm4, %v2827_v46  ;;  %v2802_v49 = vld [vmem:[#allocation4 + $0xa8] sm:$0xff] }
 0x57e   : > { %v3389_v44 = vld [vmem:[#allocation4 + $0x60] sm:$0xff] }
 0x57f   : > { %v3421_v45 = vadd.f32 %v3389_v44, %v3327_v12  ;;  %3156 = vst.msk [vmem:[#allocation4 + $0x68] sm:$0xff] %vm2248_vm4, %v3124_v50  ;;  %v3480_v44 = vld [vmem:[#allocation3 + $0x91] sm:$0xff] }
 0x581   : > { %3453 = vst.msk [vmem:[#allocation4 + $0x60] sm:$0xff] %vm2248_vm4, %v3421_v45  ;;  %v4077_v45 = vld [vmem:[#allocation3 + $0xb0] sm:$0xff] }
 0x582   : > { %v2738_v8 = vpop.f32.mrf.mxu3 }
 0x583   : > { %v3334_v32 = vpop.f32.mrf.mxu2  ;;  %v2828_v59 = vadd.f32 %v2796_v54, %v2738_v8  ;;  %v3787_v54 = vld [vmem:[#allocation3 + $0x12f] sm:$0xff] }
 0x584   : > { %v3093_v56 = vld [vmem:[#allocation4 + $0x70] sm:$0xff]  ;;  %v15176_v10 = vpop.f32.mrf.mxu1 }
 0x585   : > { %v3125_v58 = vadd.f32 %v3093_v56, %v15081_v34  ;;  %2860 = vst.msk [vmem:[#allocation4 + $0x78] sm:$0xff] %vm2248_vm4, %v2828_v59 }
 0x586   : > { %v3390_v63 = vld [vmem:[#allocation4 + $0x68] sm:$0xff] }
 0x587   : > { %v3422_v51 = vadd.f32 %v3390_v63, %v3329_v22  ;;  %3157 = vst.msk [vmem:[#allocation4 + $0x70] sm:$0xff] %vm2248_vm4, %v3125_v58  ;;  %10831 = vmatmul.msk.bf16.vlgmr.msra.gmra.mxu3 %vm1394_vm3, %v14947_v33  ;;  %10863 = vmatmul.msk.bf16.gmra.mxu1 %vm1394_vm3, %v14951_v36  ;;  %v2798_v36 = vld [vmem:[#allocation4 + $0x88] sm:$0xff] }
 0x588   : > { %10887 = vmatmul.msk.bf16.vlgmr.msrb.gmra.mxu2 %vm1394_vm3, %v14949_v35  ;;  %v3786_v58 = vld [vmem:[#allocation3 + $0x127] sm:$0xff] }
 0x589   : > { %3454 = vst.msk [vmem:[#allocation4 + $0x68] sm:$0xff] %vm2248_vm4, %v3422_v51 }
 0x58a   : > { %v2741_v34 = vpop.f32.mrf.mxu3 }
 0x58b   : > { %v3337_v14 = vpop.f32.mrf.mxu2  ;;  %v2829_v9 = vadd.f32 %v2797_v1, %v2741_v34  ;;  %v3811_v34 = vpack.c.bf16 %v3787_v54, %v3786_v58  ;;  %v3790_v54 = vld [vmem:[#allocation3 + $0x167] sm:$0xff]  ;;  %v13441_v58 = vld [vmem:[%s19377_s7 + $0xf4] sm:$0xf0] }
 0x58c   : > { %v3094_v19 = vld [vmem:[#allocation4 + $0x78] sm:$0xff]  ;;  %v15189_v33 = vpop.f32.mrf.mxu1 }
 0x58d   : > { %v3126_v11 = vadd.f32 %v3094_v19, %v15094_v53  ;;  %2861 = vst.msk [vmem:[#allocation4 + $0x80] sm:$0xff] %vm2248_vm4, %v2829_v9  ;;  %v2803_v9 = vld [vmem:[#allocation4 + $0xb0] sm:$0xff] }
 0x58e   : > { %v3391_v12 = vld [vmem:[#allocation4 + $0x70] sm:$0xff] }
 0x58f   : > { %v3423_v5 = vadd.f32 %v3391_v12, %v3332_v42  ;;  %3158 = vst.msk [vmem:[#allocation4 + $0x78] sm:$0xff] %vm2248_vm4, %v3126_v11 }
 0x591   : > { %3455 = vst.msk [vmem:[#allocation4 + $0x70] sm:$0xff] %vm2248_vm4, %v3423_v5 }
 0x592   : > { %v2743_v35 = vpop.f32.mrf.mxu3 }
 0x593   : > { %v3339_v28 = vpop.f32.mrf.mxu2  ;;  %v2830_v13 = vadd.f32 %v2798_v36, %v2743_v35 }
 0x594   : > { %v3095_v25 = vld [vmem:[#allocation4 + $0x80] sm:$0xff]  ;;  %v15202_v6 = vpop.f32.mrf.mxu1 }
 0x595   : > { %v3127_v17 = vadd.f32 %v3095_v25, %v15100_v18  ;;  %2862 = vst.msk [vmem:[#allocation4 + $0x88] sm:$0xff] %vm2248_vm4, %v2830_v13  ;;  %v3481_v13 = vld [vmem:[#allocation3 + $0xa9] sm:$0xff] }
 0x596   : > { %v3392_v53 = vld [vmem:[#allocation4 + $0x78] sm:$0xff] }
 0x597   : > { %v3424_v4 = vadd.f32 %v3392_v53, %v3334_v32  ;;  %3159 = vst.msk [vmem:[#allocation4 + $0x80] sm:$0xff] %vm2248_vm4, %v3127_v17  ;;  %10832 = vmatmul.msk.bf16.gmra.mxu3 %vm1394_vm3, %v14959_v43  ;;  %10864 = vmatmul.msk.bf16.gmra.mxu1 %vm1394_vm3, %v14963_v48  ;;  %v2800_v48 = vld [vmem:[#allocation4 + $0x98] sm:$0xff] }
 0x598   : > { %10888 = vmatmul.msk.bf16.gmra.mxu2 %vm1394_vm3, %v14961_v47  ;;  %v2804_v17 = vld [vmem:[#allocation4 + $0xb8] sm:$0xff] }
 0x599   : > { %3456 = vst.msk [vmem:[#allocation4 + $0x78] sm:$0xff] %vm2248_vm4, %v3424_v4  ;;  %v3482_v4 = vld [vmem:[#allocation3 + $0xb1] sm:$0xff] }
 0x59a   : > { %v2746_v18 = vpop.f32.mrf.mxu3 }
 0x59b   : > { %v3342_v21 = vpop.f32.mrf.mxu2  ;;  %v2831_v22 = vadd.f32 %v2799_v0, %v2746_v18  ;;  %v4079_v18 = vld [vmem:[#allocation3 + $0xd0] sm:$0xff] }
 0x59c   : > { %v3096_v26 = vld [vmem:[#allocation4 + $0x88] sm:$0xff]  ;;  %v15208_v24 = vpop.f32.mrf.mxu1 }
 0x59d   : > { %v3128_v38 = vadd.f32 %v3096_v26, %v15111_v20  ;;  %2863 = vst.msk [vmem:[#allocation4 + $0x90] sm:$0xff] %vm2248_vm4, %v2831_v22 }
 0x59e   : > { %v3393_v43 = vld [vmem:[#allocation4 + $0x80] sm:$0xff] }
 0x59f   : > { %v3425_v37 = vadd.f32 %v3393_v43, %v3337_v14  ;;  %3160 = vst.msk [vmem:[#allocation4 + $0x88] sm:$0xff] %vm2248_vm4, %v3128_v38  ;;  %v3509_v38 = vpack.c.bf16 %v3482_v4, %v3481_v13  ;;  %v3788_v43 = vld [vmem:[#allocation3 + $0x147] sm:$0xff]  ;;  %v2808_v13 = vld [vmem:[#allocation4 + $0xd8] sm:$0xff] }
 0x5a1   : > { %3457 = vst.msk [vmem:[#allocation4 + $0x80] sm:$0xff] %vm2248_vm4, %v3425_v37 }
 0x5a2   : > { %v2748_v47 = vpop.f32.mrf.mxu3 }
 0x5a3   : > { %v3344_v23 = vpop.f32.mrf.mxu2  ;;  %v2832_v29 = vadd.f32 %v2800_v48, %v2748_v47 }
 0x5a4   : > { %v3097_v31 = vld [vmem:[#allocation4 + $0x90] sm:$0xff]  ;;  %v15221_v42 = vpop.f32.mrf.mxu1 }
 0x5a5   : > { %v3129_v16 = vadd.f32 %v3097_v31, %v15117_v62  ;;  %2864 = vst.msk [vmem:[#allocation4 + $0x98] sm:$0xff] %vm2248_vm4, %v2832_v29 }
 0x5a6   : > { %v3394_v20 = vld [vmem:[#allocation4 + $0x88] sm:$0xff] }
 0x5a7   : > { %v3426_v39 = vadd.f32 %v3394_v20, %v3339_v28  ;;  %3161 = vst.msk [vmem:[#allocation4 + $0x90] sm:$0xff] %vm2248_vm4, %v3129_v16  ;;  %10833 = vmatmul.msk.bf16.gmra.mxu3 %vm1394_vm3, %v14974_v57  ;;  %10865 = vmatmul.msk.bf16.gmra.mxu1 %vm1394_vm3, %v14978_v61 }
 0x5a8   : > { %10889 = vmatmul.msk.bf16.gmra.mxu2 %vm1394_vm3, %v14976_v60  ;;  %v3479_v60 = vld [vmem:[#allocation3 + $0x89] sm:$0xff] }
 0x5a9   : > { %3458 = vst.msk [vmem:[#allocation4 + $0x88] sm:$0xff] %vm2248_vm4, %v3426_v39  ;;  %v3508_v56 = vpack.c.bf16 %v3480_v44, %v3479_v60  ;;  %v4081_v60 = vld [vmem:[#allocation3 + $0xf0] sm:$0xff]  ;;  %v4080_v44 = vld [vmem:[#allocation3 + $0xe8] sm:$0xff] }
 0x5aa   : > { %v2751_v40 = vpop.f32.mrf.mxu3 }
 0x5ab   : > { %v3347_v62 = vpop.f32.mrf.mxu2  ;;  %v2833_v41 = vadd.f32 %v2801_v55, %v2751_v40 }
 0x5ac   : > { %v3098_v52 = vld [vmem:[#allocation4 + $0x98] sm:$0xff]  ;;  %v15229_v14 = vpop.f32.mrf.mxu1 }
 0x5ad   : > { %v3130_v15 = vadd.f32 %v3098_v52, %v15128_v7  ;;  %2865 = vst.msk [vmem:[#allocation4 + $0xa0] sm:$0xff] %vm2248_vm4, %v2833_v41  ;;  %v4076_v7 = vld [vmem:[#allocation3 + $0xa8] sm:$0xff] }
 0x5ae   : > { %v3395_v57 = vld [vmem:[#allocation4 + $0x90] sm:$0xff]  ;;  %v4105_v63 = vpack.c.bf16 %v4077_v45, %v4076_v7 }
 0x5af   : > { %v3427_v46 = vadd.f32 %v3395_v57, %v3342_v21  ;;  %3162 = vst.msk [vmem:[#allocation4 + $0x98] sm:$0xff] %vm2248_vm4, %v3130_v15  ;;  %v3789_v21 = vld [vmem:[#allocation3 + $0x14f] sm:$0xff] }
 0x5b0   : > { %v3812_v48 = vpack.c.bf16 %v3789_v21, %v3788_v43  ;;  %v3483_v41 = vld [vmem:[#allocation3 + $0xc9] sm:$0xff] }
 0x5b1   : > { %3459 = vst.msk [vmem:[#allocation4 + $0x90] sm:$0xff] %vm2248_vm4, %v3427_v46  ;;  %v2806_v15 = vld [vmem:[#allocation4 + $0xc8] sm:$0xff]  ;;  %v3484_v46 = vld [vmem:[#allocation3 + $0xd1] sm:$0xff] }
 0x5b2   : > { %v2753_v61 = vpop.f32.mrf.mxu3 }
 0x5b3   : > { %v3349_v50 = vpop.f32.mrf.mxu2  ;;  %v2834_v8 = vadd.f32 %v2802_v49, %v2753_v61  ;;  %v3791_v49 = vld [vmem:[#allocation3 + $0x16f] sm:$0xff] }
 0x5b4   : > { %v3099_v32 = vld [vmem:[#allocation4 + $0xa0] sm:$0xff]  ;;  %v15239_v28 = vpop.f32.mrf.mxu1 }
 0x5b5   : > { %v3131_v59 = vadd.f32 %v3099_v32, %v15134_v2  ;;  %2866 = vst.msk [vmem:[#allocation4 + $0xa8] sm:$0xff] %vm2248_vm4, %v2834_v8  ;;  %v15258_v8 = vpack.c.bf16 %v3484_v46, %v3483_v41  ;;  %v4107_v32 = vpack.c.bf16 %v4081_v60, %v4080_v44  ;;  %v3795_v60 = vld [vmem:[#allocation3 + $0x1af] sm:$0xff]  ;;  %v3794_v44 = vld [vmem:[#allocation3 + $0x1a7] sm:$0xff] }
 0x5b6   : > { %v3396_v51 = vld [vmem:[#allocation4 + $0x98] sm:$0xff] }
 0x5b7   : > { %v3428_v1 = vadd.f32 %v3396_v51, %v3344_v23  ;;  %3163 = vst.msk [vmem:[#allocation4 + $0xa0] sm:$0xff] %vm2248_vm4, %v3131_v59  ;;  %10834 = vmatmul.msk.bf16.gmra.mxu3 %vm1394_vm3, %v3508_v56  ;;  %10866 = vmatmul.msk.bf16.gmra.mxu1 %vm1394_vm3, %v3811_v34  ;;  %v3813_v59 = vpack.c.bf16 %v3791_v49, %v3790_v54  ;;  %v2807_v51 = vld [vmem:[#allocation4 + $0xd0] sm:$0xff] }
 0x5b8   : > { %10890 = vmatmul.msk.bf16.gmra.mxu2 %vm1394_vm3, %v4105_v63 }
 0x5b9   : > { %3460 = vst.msk [vmem:[#allocation4 + $0x98] sm:$0xff] %vm2248_vm4, %v3428_v1 }
 0x5ba   : > { %v2756_v2 = vpop.f32.mrf.mxu3 }
 0x5bb   : > { %v3352_v19 = vpop.f32.mrf.mxu2  ;;  %v2835_v11 = vadd.f32 %v2803_v9, %v2756_v2 }
 0x5bc   : > { %v3100_v12 = vld [vmem:[#allocation4 + $0xa8] sm:$0xff]  ;;  %v15248_v16 = vpop.f32.mrf.mxu1 }
 0x5bd   : > { %v3132_v5 = vadd.f32 %v3100_v12, %v15145_v3  ;;  %2867 = vst.msk [vmem:[#allocation4 + $0xb0] sm:$0xff] %vm2248_vm4, %v2835_v11  ;;  %v4078_v3 = vld [vmem:[#allocation3 + $0xc8] sm:$0xff] }
 0x5be   : > { %v3397_v35 = vld [vmem:[#allocation4 + $0xa0] sm:$0xff]  ;;  %v4106_v37 = vpack.c.bf16 %v4079_v18, %v4078_v3  ;;  %v3793_v18 = vld [vmem:[#allocation3 + $0x18f] sm:$0xff] }
 0x5bf   : > { %v3429_v36 = vadd.f32 %v3397_v35, %v3347_v62  ;;  %3164 = vst.msk [vmem:[#allocation4 + $0xa8] sm:$0xff] %vm2248_vm4, %v3132_v5  ;;  %v3485_v35 = vld [vmem:[#allocation3 + $0xe9] sm:$0xff] }
 0x5c0   : > { %v3792_v3 = vld [vmem:[#allocation3 + $0x187] sm:$0xff] }
 0x5c1   : > { %3461 = vst.msk [vmem:[#allocation4 + $0xa0] sm:$0xff] %vm2248_vm4, %v3429_v36  ;;  %v3814_v43 = vpack.c.bf16 %v3793_v18, %v3792_v3 }
 0x5c2   : > { %v2758_v25 = vpop.f32.mrf.mxu3 }
 0x5c3   : > { %v3354_v53 = vpop.f32.mrf.mxu2  ;;  %v2836_v0 = vadd.f32 %v2804_v17, %v2758_v25  ;;  %v3486_v17 = vld [vmem:[#allocation3 + $0xf1] sm:$0xff] }
 0x5c4   : > { %v3101_v22 = vld [vmem:[#allocation4 + $0xb0] sm:$0xff]  ;;  %v15254_v45 = vpop.f32.mrf.mxu1 }
 0x5c5   : > { %v3133_v26 = vadd.f32 %v3101_v22, %v15154_v30  ;;  %2868 = vst.msk [vmem:[#allocation4 + $0xb8] sm:$0xff] %vm2248_vm4, %v2836_v0  ;;  %v2805_v30 = vld [vmem:[#allocation4 + $0xc0] sm:$0xff]  ;;  %v15280_v22 = vpack.c.bf16 %v3486_v17, %v3485_v35  ;;  %v4087_v35 = vld [vmem:[#allocation3 + $0x150] sm:$0xff]  ;;  %v4086_v17 = vld [vmem:[#allocation3 + $0x148] sm:$0xff] }
 0x5c6   : > { %v3398_v47 = vld [vmem:[#allocation4 + $0xa8] sm:$0xff]  ;;  %v4110_v18 = vpack.c.bf16 %v4087_v35, %v4086_v17 }
 0x5c7   : > { %v3430_v23 = vadd.f32 %v3398_v47, %v3349_v50  ;;  %3165 = vst.msk [vmem:[#allocation4 + $0xb0] sm:$0xff] %vm2248_vm4, %v3133_v26  ;;  %10835 = vmatmul.msk.bf16.gmra.mxu3 %vm1394_vm3, %v3509_v38  ;;  %10867 = vmatmul.msk.bf16.gmra.mxu1 %vm1394_vm3, %v3812_v48  ;;  %v2809_v48 = vld [vmem:[#allocation4 + $0xe0] sm:$0xff] }
 0x5c8   : > { %10891 = vmatmul.msk.bf16.gmra.mxu2 %vm1394_vm3, %v4106_v37 }
 0x5c9   : > { %3462 = vst.msk [vmem:[#allocation4 + $0xa8] sm:$0xff] %vm2248_vm4, %v3430_v23 }
 0x5ca   : > { %v2761_v29 = vpop.f32.mrf.mxu3 }
 0x5cb   : > { %v3357_v31 = vpop.f32.mrf.mxu2  ;;  %v2837_v20 = vadd.f32 %v2805_v30, %v2761_v29 }
 0x5cc   : > { %v3102_v39 = vld [vmem:[#allocation4 + $0xb8] sm:$0xff]  ;;  %v15274_v5 = vpop.f32.mrf.mxu1 }
 0x5cd   : > { %v3134_v40 = vadd.f32 %v3102_v39, %v15170_v27  ;;  %2869 = vst.msk [vmem:[#allocation4 + $0xc0] sm:$0xff] %vm2248_vm4, %v2837_v20 }
 0x5ce   : > { %v3399_v55 = vld [vmem:[#allocation4 + $0xb0] sm:$0xff] }
 0x5cf   : > { %v3431_v62 = vadd.f32 %v3399_v55, %v3352_v19  ;;  %3166 = vst.msk [vmem:[#allocation4 + $0xb8] sm:$0xff] %vm2248_vm4, %v3134_v40  ;;  %v3487_v40 = vld [vmem:[#allocation3 + $0x109] sm:$0xff] }
 0x5d1   : > { %3463 = vst.msk [vmem:[#allocation4 + $0xb0] sm:$0xff] %vm2248_vm4, %v3431_v62  ;;  %v2810_v62 = vld [vmem:[#allocation4 + $0xe8] sm:$0xff] }
 0x5d2   : > { %v2763_v52 = vpop.f32.mrf.mxu3 }
 0x5d3   : > { %v3359_v57 = vpop.f32.mrf.mxu2  ;;  %v2838_v61 = vadd.f32 %v2806_v15, %v2763_v52  ;;  %v3488_v52 = vld [vmem:[#allocation3 + $0x111] sm:$0xff] }
 0x5d4   : > { %v3103_v50 = vld [vmem:[#allocation4 + $0xc0] sm:$0xff]  ;;  %v4085_v15 = vld [vmem:[#allocation3 + $0x130] sm:$0xff] }
 0x5d5   : > { %v3135_v27 = vadd.f32 %v3103_v50, %v15176_v10  ;;  %2870 = vst.msk [vmem:[#allocation4 + $0xc8] sm:$0xff] %vm2248_vm4, %v2838_v61  ;;  %v11361_v10 = vld [vmem:[%s19377_s7 + $0xe8] sm:$0xf]  ;;  %v15298_v50 = vpack.c.bf16 %v3488_v52, %v3487_v40  ;;  %v3492_v40 = vld [vmem:[#allocation3 + $0x151] sm:$0xff] }
 0x5d6   : > { %v3400_v7 = vld [vmem:[#allocation4 + $0xb8] sm:$0xff]  ;;  %v11362_v1 = vor.u32 %v13441_v58, %v11361_v10 }
 0x5d7   : > { %v3432_v56 = vadd.f32 %v3400_v7, %v3354_v53  ;;  %3167 = vst.msk [vmem:[#allocation4 + $0xc0] sm:$0xff] %vm2248_vm4, %v3135_v27  ;;  %10836 = vmatmul.msk.bf16.gmra.mxu3 %vm1394_vm3, %v15258_v8  ;;  %10868 = vmatmul.msk.bf16.gmra.mxu1 %vm1394_vm3, %v3813_v59  ;;  %v4083_v53 = vld [vmem:[#allocation3 + $0x110] sm:$0xff] }
 0x5d8   : > { %10892 = vmatmul.msk.bf16.gmra.mxu2 %vm1394_vm3, %v4107_v32  ;;  %6314 = vmatpush.bf16.msrb.mxu0 %v11362_v1  ;;  %v3815_v32 = vpack.c.bf16 %v3795_v60, %v3794_v44  ;;  %v2811_v59 = vld [vmem:[#allocation4 + $0xf0] sm:$0xff]  ;;  %v3798_v60 = vld [vmem:[#allocation3 + $0x1e7] sm:$0xff] }
 0x5d9   : > { %3464 = vst.msk [vmem:[#allocation4 + $0xb8] sm:$0xff] %vm2248_vm4, %v3432_v56 }
 0x5da   : > { %v2766_v63 = vpop.f32.mrf.mxu3 }
 0x5db   : > { %v3362_v34 = vpop.f32.mrf.mxu2  ;;  %v2839_v2 = vadd.f32 %v2807_v51, %v2766_v63 }
 0x5dc   : > { %v3104_v9 = vld [vmem:[#allocation4 + $0xc8] sm:$0xff] }
 0x5dd   : > { %v3136_v19 = vadd.f32 %v3104_v9, %v15189_v33  ;;  %2871 = vst.msk [vmem:[#allocation4 + $0xd0] sm:$0xff] %vm2248_vm4, %v2839_v2  ;;  %v4082_v33 = vld [vmem:[#allocation3 + $0x108] sm:$0xff] }
 0x5de   : > { %v3401_v11 = vld [vmem:[#allocation4 + $0xc0] sm:$0xff]  ;;  %v4108_v26 = vpack.c.bf16 %v4083_v53, %v4082_v33  ;;  %v3489_v2 = vld [vmem:[#allocation3 + $0x129] sm:$0xff] }
 0x5df   : > { %v3433_v12 = vadd.f32 %v3401_v11, %v3357_v31  ;;  %3168 = vst.msk [vmem:[#allocation4 + $0xc8] sm:$0xff] %vm2248_vm4, %v3136_v19  ;;  %v2812_v19 = vld [vmem:[#allocation4 + $0xf8] sm:$0xff] }
 0x5e1   : > { %3465 = vst.msk [vmem:[#allocation4 + $0xc0] sm:$0xff] %vm2248_vm4, %v3433_v12  ;;  %v3490_v12 = vld [vmem:[#allocation3 + $0x131] sm:$0xff] }
 0x5e2   : > { %v2768_v36 = vpop.f32.mrf.mxu3  ;;  %v15314_v53 = vpack.c.bf16 %v3490_v12, %v3489_v2  ;;  %v3494_v2 = vld [vmem:[#allocation3 + $0x171] sm:$0xff] }
 0x5e3   : > { %v3364_v25 = vpop.f32.mrf.mxu2  ;;  %v2840_v4 = vadd.f32 %v2808_v13, %v2768_v36  ;;  %v3797_v13 = vld [vmem:[#allocation3 + $0x1cf] sm:$0xff] }
 0x5e4   : > { %v3105_v0 = vld [vmem:[#allocation4 + $0xd0] sm:$0xff] }
 0x5e5   : > { %v3137_v21 = vadd.f32 %v3105_v0, %v15202_v6  ;;  %2872 = vst.msk [vmem:[#allocation4 + $0xd8] sm:$0xff] %vm2248_vm4, %v2840_v4  ;;  %v15288_v6 = vpop.f32.mrf.mxu1  ;;  %v3796_v4 = vld [vmem:[#allocation3 + $0x1c7] sm:$0xff]  ;;  %v3801_v12 = vld [vmem:[#allocation3 + $0x20f] sm:$0xff] }
 0x5e6   : > { %v3402_v38 = vld [vmem:[#allocation4 + $0xc8] sm:$0xff]  ;;  %v3816_v33 = vpack.c.bf16 %v3797_v13, %v3796_v4 }
 0x5e7   : > { %v3434_v37 = vadd.f32 %v3402_v38, %v3359_v57  ;;  %3169 = vst.msk [vmem:[#allocation4 + $0xd0] sm:$0xff] %vm2248_vm4, %v3137_v21  ;;  %10837 = vmatmul.msk.bf16.gmra.mxu3 %vm1394_vm3, %v15280_v22  ;;  %10869 = vmatmul.msk.bf16.gmra.mxu1 %vm1394_vm3, %v3814_v43 }
 0x5e8   : > { %10893 = vmatmul.msk.bf16.gmra.mxu2 %vm1394_vm3, %v4108_v26  ;;  %v3675_v26 = vld [vmem:[#allocation4] sm:$0xff] }
 0x5e9   : > { %3466 = vst.msk [vmem:[#allocation4 + $0xc8] sm:$0xff] %vm2248_vm4, %v3434_v37 }
 0x5ea   : > { %v2771_v47 = vpop.f32.mrf.mxu3 }
 0x5eb   : > { %v3367_v23 = vpop.f32.mrf.mxu2  ;;  %v2841_v29 = vadd.f32 %v2809_v48, %v2771_v47 }
 0x5ec   : > { %v3106_v30 = vld [vmem:[#allocation4 + $0xd8] sm:$0xff] }
 0x5ed   : > { %v3138_v31 = vadd.f32 %v3106_v30, %v15208_v24  ;;  %2873 = vst.msk [vmem:[#allocation4 + $0xe0] sm:$0xff] %vm2248_vm4, %v2841_v29  ;;  %v15294_v57 = vpop.f32.mrf.mxu1  ;;  %v4084_v24 = vld [vmem:[#allocation3 + $0x128] sm:$0xff] }
 0x5ee   : > { %v3403_v20 = vld [vmem:[#allocation4 + $0xd0] sm:$0xff]  ;;  %v4109_v27 = vpack.c.bf16 %v4085_v15, %v4084_v24 }
 0x5ef   : > { %v3435_v39 = vadd.f32 %v3403_v20, %v3362_v34  ;;  %3170 = vst.msk [vmem:[#allocation4 + $0xd8] sm:$0xff] %vm2248_vm4, %v3138_v31  ;;  %v3491_v30 = vld [vmem:[#allocation3 + $0x149] sm:$0xff] }
 0x5f0   : > { %v3676_v20 = vld [vmem:[#allocation4 + $0x8] sm:$0xff] }
 0x5f1   : > { %3467 = vst.msk [vmem:[#allocation4 + $0xd0] sm:$0xff] %vm2248_vm4, %v3435_v39 }
 0x5f2   : > { %v2773_v55 = vpop.f32.mrf.mxu3 }
 0x5f3   : > { %v3369_v41 = vpop.f32.mrf.mxu2  ;;  %v2842_v46 = vadd.f32 %v2810_v62, %v2773_v55  ;;  %v4089_v55 = vld [vmem:[#allocation3 + $0x170] sm:$0xff] }
 0x5f4   : > { %v3107_v61 = vld [vmem:[#allocation4 + $0xe0] sm:$0xff] }
 0x5f5   : > { %v3139_v49 = vadd.f32 %v3107_v61, %v15221_v42  ;;  %2874 = vst.msk [vmem:[#allocation4 + $0xe8] sm:$0xff] %vm2248_vm4, %v2842_v46  ;;  %v15306_v63 = vpop.f32.mrf.mxu1  ;;  %v15332_v46 = vpack.c.bf16 %v3492_v40, %v3491_v30  ;;  %v3680_v30 = vld [vmem:[#allocation4 + $0x28] sm:$0xff] }
 0x5f6   : > { %v3404_v54 = vld [vmem:[#allocation4 + $0xd8] sm:$0xff] }
 0x5f7   : > { %v3436_v7 = vadd.f32 %v3404_v54, %v3364_v25  ;;  %3171 = vst.msk [vmem:[#allocation4 + $0xe0] sm:$0xff] %vm2248_vm4, %v3139_v49  ;;  %10838 = vmatmul.msk.bf16.gmra.mxu3 %vm1394_vm3, %v15298_v50  ;;  %10870 = vmatmul.msk.bf16.gmra.mxu1 %vm1394_vm3, %v3815_v32 }
 0x5f8   : > { %10894 = vmatmul.msk.bf16.gmra.mxu2 %vm1394_vm3, %v4109_v27  ;;  %v3677_v27 = vld [vmem:[#allocation4 + $0x10] sm:$0xff] }
 0x5f9   : > { %3468 = vst.msk [vmem:[#allocation4 + $0xd8] sm:$0xff] %vm2248_vm4, %v3436_v7 }
 0x5fa   : > { %v2776_v42 = vpop.f32.mrf.mxu3 }
 0x5fb   : > { %v3372_v56 = vpop.f32.mrf.mxu2  ;;  %v2843_v10 = vadd.f32 %v2811_v59, %v2776_v42 }
 0x5fc   : > { %v3108_v58 = vld [vmem:[#allocation4 + $0xe8] sm:$0xff] }
 0x5fd   : > { %v3140_v51 = vadd.f32 %v3108_v58, %v15229_v14  ;;  %2875 = vst.msk [vmem:[#allocation4 + $0xf0] sm:$0xff] %vm2248_vm4, %v2843_v10  ;;  %v15316_v21 = vpop.f32.mrf.mxu1  ;;  %v3493_v58 = vld [vmem:[#allocation3 + $0x169] sm:$0xff] }
 0x5fe   : > { %v3405_v34 = vld [vmem:[#allocation4 + $0xe0] sm:$0xff] }
 0x5ff   : > { %v3437_v1 = vadd.f32 %v3405_v34, %v3367_v23  ;;  %3172 = vst.msk [vmem:[#allocation4 + $0xe8] sm:$0xff] %vm2248_vm4, %v3140_v51  ;;  %v3678_v34 = vld [vmem:[#allocation4 + $0x18] sm:$0xff] }
 0x601   : > { %3469 = vst.msk [vmem:[#allocation4 + $0xe0] sm:$0xff] %vm2248_vm4, %v3437_v1 }
 0x602   : > { %v2778_v9 = vpop.f32.mrf.mxu3 }
 0x603   : > { %v3374_v11 = vpop.f32.mrf.mxu2  ;;  %v2844_v36 = vadd.f32 %v2812_v19, %v2778_v9  ;;  %v4091_v9 = vld [vmem:[#allocation3 + $0x190] sm:$0xff] }
 0x604   : > { %v3109_v25 = vld [vmem:[#allocation4 + $0xf0] sm:$0xff] }
 0x605   : > { %v3141_v14 = vadd.f32 %v3109_v25, %v15239_v28  ;;  %2876 = vst.msk [vmem:[#allocation4 + $0xf8] sm:$0xff] %vm2248_vm4, %v2844_v36  ;;  %v15327_v29 = vpop.f32.mrf.mxu1  ;;  %v4090_v36 = vld [vmem:[#allocation3 + $0x188] sm:$0xff]  ;;  %v15350_v25 = vpack.c.bf16 %v3494_v2, %v3493_v58  ;;  %v4095_v58 = vld [vmem:[#allocation3 + $0x1d0] sm:$0xff] }
 0x606   : > { %v3406_v0 = vld [vmem:[#allocation4 + $0xe8] sm:$0xff]  ;;  %v4112_v17 = vpack.c.bf16 %v4091_v9, %v4090_v36  ;;  %v3683_v36 = vld [vmem:[#allocation4 + $0x40] sm:$0xff] }
 0x607   : > { %v3438_v3 = vadd.f32 %v3406_v0, %v3369_v41  ;;  %3173 = vst.msk [vmem:[#allocation4 + $0xf0] sm:$0xff] %vm2248_vm4, %v3141_v14  ;;  %10839 = vmatmul.msk.bf16.gmra.mxu3 %vm1394_vm3, %v15314_v53  ;;  %10871 = vmatmul.msk.bf16.gmra.mxu1 %vm1394_vm3, %v3816_v33  ;;  %v3799_v41 = vld [vmem:[#allocation3 + $0x1ef] sm:$0xff]  ;;  %v3679_v0 = vld [vmem:[#allocation4 + $0x20] sm:$0xff] }
 0x608   : > { %10895 = vmatmul.msk.bf16.gmra.mxu2 %vm1394_vm3, %v4110_v18  ;;  %v3817_v49 = vpack.c.bf16 %v3799_v41, %v3798_v60  ;;  %v4094_v2 = vld [vmem:[#allocation3 + $0x1c8] sm:$0xff] }
 0x609   : > { %3470 = vst.msk [vmem:[#allocation4 + $0xe8] sm:$0xff] %vm2248_vm4, %v3438_v3 }
 0x60a   : > { %v3595_v28 = vpop.f32.mrf.mxu3 }
 0x60b   : > { %v4192_v38 = vpop.f32.mrf.mxu2  ;;  %v3707_v43 = vadd.f32 %v3675_v26, %v3595_v28 }
 0x60c   : > { %v3110_v37 = vld [vmem:[#allocation4 + $0xf8] sm:$0xff] }
 0x60d   : > { %v3142_v47 = vadd.f32 %v3110_v37, %v15248_v16  ;;  %3739 = vst.msk [vmem:[#allocation4] sm:$0xff] %vm2248_vm4, %v3707_v43  ;;  %v4088_v16 = vld [vmem:[#allocation3 + $0x168] sm:$0xff]  ;;  %v15340_v32 = vpop.f32.mrf.mxu1 }
 0x60e   : > { %v3407_v48 = vld [vmem:[#allocation4 + $0xf0] sm:$0xff]  ;;  %v4111_v61 = vpack.c.bf16 %v4089_v55, %v4088_v16  ;;  %v4092_v55 = vld [vmem:[#allocation3 + $0x1a8] sm:$0xff] }
 0x60f   : > { %v3439_v23 = vadd.f32 %v3407_v48, %v3372_v56  ;;  %3174 = vst.msk [vmem:[#allocation4 + $0xf8] sm:$0xff] %vm2248_vm4, %v3142_v47  ;;  %v3495_v47 = vld [vmem:[#allocation3 + $0x189] sm:$0xff] }
 0x610   : > { %v13373_v48 = vld [vmem:[%s19373_s3 + $0x88] sm:$0xff] }
 0x611   : > { %3471 = vst.msk [vmem:[#allocation4 + $0xf0] sm:$0xff] %vm2248_vm4, %v3439_v23  ;;  %4487 = vmatpush.bf16.msrb.mxu3 %v13373_v48  ;;  %v4096_v48 = vld [vmem:[#allocation3 + $0x1e8] sm:$0xff] }
 0x612   : > { %v3597_v31 = vpop.f32.mrf.mxu3 }
 0x613   : > { %v4194_v39 = vpop.f32.mrf.mxu2  ;;  %v3708_v62 = vadd.f32 %v3676_v20, %v3597_v31  ;;  %v3496_v20 = vld [vmem:[#allocation3 + $0x191] sm:$0xff] }
 0x614   : > { %v3974_v52 = vld [vmem:[#allocation4] sm:$0xff]  ;;  %v15369_v41 = vpack.c.bf16 %v3496_v20, %v3495_v47 }
 0x615   : > { %v4006_v15 = vadd.f32 %v3974_v52, %v15254_v45  ;;  %3740 = vst.msk [vmem:[#allocation4 + $0x8] sm:$0xff] %vm2248_vm4, %v3708_v62 }
 0x616   : > { %v3408_v24 = vld [vmem:[#allocation4 + $0xf8] sm:$0xff] }
 0x617   : > { %v3440_v44 = vadd.f32 %v3408_v24, %v3374_v11  ;;  %4038 = vst.msk [vmem:[#allocation4] sm:$0xff] %vm2248_vm4, %v4006_v15  ;;  %10840 = vmatmul.msk.bf16.gmra.mxu3 %vm1394_vm3, %v15332_v46  ;;  %10872 = vmatmul.msk.bf16.gmra.mxu1 %vm1394_vm3, %v3817_v49  ;;  %v3800_v11 = vld [vmem:[#allocation3 + $0x207] sm:$0xff] }
 0x618   : > { %10896 = vmatmul.msk.bf16.gmra.mxu2 %vm1394_vm3, %v4111_v61  ;;  %v3818_v4 = vpack.c.bf16 %v3801_v12, %v3800_v11 }
 0x619   : > { %3472 = vst.msk [vmem:[#allocation4 + $0xf8] sm:$0xff] %vm2248_vm4, %v3440_v44 }
 0x61a   : > { %v3600_v45 = vpop.f32.mrf.mxu3 }
 0x61b   : > { %v4197_v54 = vpop.f32.mrf.mxu2  ;;  %v3709_v7 = vadd.f32 %v3677_v27, %v3600_v45 }
 0x61c   : > { %v3975_v42 = vld [vmem:[#allocation4 + $0x8] sm:$0xff] }
 0x61d   : > { %v4007_v59 = vadd.f32 %v3975_v42, %v15274_v5  ;;  %3741 = vst.msk [vmem:[#allocation4 + $0x10] sm:$0xff] %vm2248_vm4, %v3709_v7  ;;  %v15346_v5 = vpop.f32.mrf.mxu1  ;;  %v3497_v7 = vld [vmem:[#allocation3 + $0x1a9] sm:$0xff] }
 0x61e   : > { %v4272_v56 = vld [vmem:[#allocation4] sm:$0xff] }
 0x61f   : > { %v4304_v10 = vadd.f32 %v4272_v56, %v4192_v38  ;;  %4039 = vst.msk [vmem:[#allocation4 + $0x8] sm:$0xff] %vm2248_vm4, %v4007_v59  ;;  %v3682_v59 = vld [vmem:[#allocation4 + $0x38] sm:$0xff] }
 0x621   : > { %4336 = vst.msk [vmem:[#allocation4] sm:$0xff] %vm2248_vm4, %v4304_v10  ;;  %v3498_v10 = vld [vmem:[#allocation3 + $0x1b1] sm:$0xff] }
 0x622   : > { %v3602_v51 = vpop.f32.mrf.mxu3  ;;  %v15386_v9 = vpack.c.bf16 %v3498_v10, %v3497_v7 }
 0x623   : > { %v4199_v1 = vpop.f32.mrf.mxu2  ;;  %v3710_v19 = vadd.f32 %v3678_v34, %v3602_v51 }
 0x624   : > { %v3976_v35 = vld [vmem:[#allocation4 + $0x10] sm:$0xff] }
 0x625   : > { %v4008_v13 = vadd.f32 %v3976_v35, %v15288_v6  ;;  %3742 = vst.msk [vmem:[#allocation4 + $0x18] sm:$0xff] %vm2248_vm4, %v3710_v19  ;;  %v15360_v43 = vpop.f32.mrf.mxu1  ;;  %v4114_v19 = vpack.c.bf16 %v4095_v58, %v4094_v2 }
 0x626   : > { %v4273_v14 = vld [vmem:[#allocation4 + $0x8] sm:$0xff] }
 0x627   : > { %v4305_v18 = vadd.f32 %v4273_v14, %v4194_v39  ;;  %4040 = vst.msk [vmem:[#allocation4 + $0x10] sm:$0xff] %vm2248_vm4, %v4008_v13  ;;  %10841 = vmatmul.msk.bf16.gmra.mxu3 %vm1394_vm3, %v15350_v25  ;;  %10873 = vmatmul.msk.bf16.gmra.mxu1 %vm1394_vm3, %v3818_v4 }
 0x628   : > { %10897 = vmatmul.msk.bf16.gmra.mxu2 %vm1394_vm3, %v4112_v17 }
 0x629   : > { %4337 = vst.msk [vmem:[#allocation4 + $0x8] sm:$0xff] %vm2248_vm4, %v4305_v18 }
 0x62a   : > { %v3605_v6 = vpop.f32.mrf.mxu3 }
 0x62b   : > { %v4202_v33 = vpop.f32.mrf.mxu2  ;;  %v3711_v3 = vadd.f32 %v3679_v0, %v3605_v6  ;;  %v3499_v0 = vld [vmem:[#allocation3 + $0x1c9] sm:$0xff] }
 0x62c   : > { %v3977_v28 = vld [vmem:[#allocation4 + $0x18] sm:$0xff] }
 0x62d   : > { %v4009_v26 = vadd.f32 %v3977_v28, %v15294_v57  ;;  %3743 = vst.msk [vmem:[#allocation4 + $0x20] sm:$0xff] %vm2248_vm4, %v3711_v3  ;;  %v4093_v57 = vld [vmem:[#allocation3 + $0x1b0] sm:$0xff]  ;;  %v15375_v60 = vpop.f32.mrf.mxu1  ;;  %v3684_v3 = vld [vmem:[#allocation4 + $0x48] sm:$0xff] }
 0x62e   : > { %v4274_v38 = vld [vmem:[#allocation4 + $0x10] sm:$0xff]  ;;  %v4113_v52 = vpack.c.bf16 %v4093_v57, %v4092_v55 }
 0x62f   : > { %v4306_v37 = vadd.f32 %v4274_v38, %v4197_v54  ;;  %4041 = vst.msk [vmem:[#allocation4 + $0x18] sm:$0xff] %vm2248_vm4, %v4009_v26  ;;  %v3500_v26 = vld [vmem:[#allocation3 + $0x1d1] sm:$0xff] }
 0x630   : > { %v4097_v38 = vld [vmem:[#allocation3 + $0x1f0] sm:$0xff] }
 0x631   : > { %4338 = vst.msk [vmem:[#allocation4 + $0x10] sm:$0xff] %vm2248_vm4, %v4306_v37  ;;  %v3685_v55 = vld [vmem:[#allocation4 + $0x50] sm:$0xff] }
 0x632   : > { %v3607_v23 = vpop.f32.mrf.mxu3 }
 0x633   : > { %v4204_v31 = vpop.f32.mrf.mxu2  ;;  %v3712_v39 = vadd.f32 %v3680_v30, %v3607_v23  ;;  %v4115_v30 = vpack.c.bf16 %v4097_v38, %v4096_v48  ;;  %v3802_v48 = vld [vmem:[#allocation3 + $0x227] sm:$0xff] }
 0x634   : > { %v3978_v40 = vld [vmem:[#allocation4 + $0x20] sm:$0xff] }
 0x635   : > { %v4010_v62 = vadd.f32 %v3978_v40, %v15306_v63  ;;  %3744 = vst.msk [vmem:[#allocation4 + $0x28] sm:$0xff] %vm2248_vm4, %v3712_v39  ;;  %v3681_v63 = vld [vmem:[#allocation4 + $0x30] sm:$0xff]  ;;  %v15382_v51 = vpop.f32.mrf.mxu1  ;;  %v13437_v39 = vld [vmem:[%s19377_s7 + $0xd4] sm:$0xf0] }
 0x636   : > { %v4275_v16 = vld [vmem:[#allocation4 + $0x18] sm:$0xff] }
 0x637   : > { %v4307_v15 = vadd.f32 %v4275_v16, %v4199_v1  ;;  %4042 = vst.msk [vmem:[#allocation4 + $0x20] sm:$0xff] %vm2248_vm4, %v4010_v62  ;;  %10842 = vmatmul.msk.bf16.gmra.mxu3 %vm1394_vm3, %v15369_v41 }
 0x638   : > { %10898 = vmatmul.msk.bf16.gmra.mxu2 %vm1394_vm3, %v4113_v52 }
 0x639   : > { %4339 = vst.msk [vmem:[#allocation4 + $0x18] sm:$0xff] %vm2248_vm4, %v4307_v15 }
 0x63a   : > { %v3610_v61 = vpop.f32.mrf.mxu3 }
 0x63b   : > { %v4207_v24 = vpop.f32.mrf.mxu2  ;;  %v3713_v49 = vadd.f32 %v3681_v63, %v3610_v61 }
 0x63c   : > { %v3979_v44 = vld [vmem:[#allocation4 + $0x28] sm:$0xff] }
 0x63d   : > { %v4011_v45 = vadd.f32 %v3979_v44, %v15316_v21  ;;  %3745 = vst.msk [vmem:[#allocation4 + $0x30] sm:$0xff] %vm2248_vm4, %v3713_v49  ;;  %v15393_v14 = vpop.f32.mrf.mxu1  ;;  %v3501_v44 = vld [vmem:[#allocation3 + $0x1e9] sm:$0xff] }
 0x63e   : > { %v4276_v27 = vld [vmem:[#allocation4 + $0x20] sm:$0xff] }
 0x63f   : > { %v4308_v54 = vadd.f32 %v4276_v27, %v4202_v33  ;;  %4043 = vst.msk [vmem:[#allocation4 + $0x28] sm:$0xff] %vm2248_vm4, %v4011_v45  ;;  %v3502_v45 = vld [vmem:[#allocation3 + $0x1f1] sm:$0xff] }
 0x640   : > { %v15424_v58 = vpack.c.bf16 %v3502_v45, %v3501_v44  ;;  %v4368_v44 = vld [vmem:[#allocation3 + $0x49] sm:$0xff]  ;;  %v4369_v45 = vld [vmem:[#allocation3 + $0x51] sm:$0xff] }
 0x641   : > { %4340 = vst.msk [vmem:[#allocation4 + $0x20] sm:$0xff] %vm2248_vm4, %v4308_v54  ;;  %v3686_v54 = vld [vmem:[#allocation4 + $0x58] sm:$0xff] }
 0x642   : > { %v3612_v42 = vpop.f32.mrf.mxu3 }
 0x643   : > { %v4209_v56 = vpop.f32.mrf.mxu2  ;;  %v3714_v34 = vadd.f32 %v3682_v59, %v3612_v42  ;;  %v4098_v42 = vld [vmem:[#allocation3 + $0x208] sm:$0xff]  ;;  %v4099_v59 = vld [vmem:[#allocation3 + $0x210] sm:$0xff] }
 0x644   : > { %v3980_v1 = vld [vmem:[#allocation4 + $0x30] sm:$0xff] }
 0x645   : > { %v4012_v21 = vadd.f32 %v3980_v1, %v15327_v29  ;;  %3746 = vst.msk [vmem:[#allocation4 + $0x38] sm:$0xff] %vm2248_vm4, %v3714_v34  ;;  %v15403_v20 = vpop.f32.mrf.mxu1  ;;  %v4116_v34 = vpack.c.bf16 %v4099_v59, %v4098_v42  ;;  %v4400_v42 = vpack.c.bf16 %v4369_v45, %v4368_v44 }
 0x646   : > { %v4277_v11 = vld [vmem:[#allocation4 + $0x28] sm:$0xff] }
 0x647   : > { %v4309_v12 = vadd.f32 %v4277_v11, %v4204_v31  ;;  %4044 = vst.msk [vmem:[#allocation4 + $0x30] sm:$0xff] %vm2248_vm4, %v4012_v21  ;;  %10843 = vmatmul.msk.bf16.gmra.mxu3 %vm1394_vm3, %v15386_v9 }
 0x648   : > { %10899 = vmatmul.msk.bf16.gmra.mxu2 %vm1394_vm3, %v4114_v19  ;;  %v3687_v19 = vld [vmem:[#allocation4 + $0x60] sm:$0xff] }
 0x649   : > { %4341 = vst.msk [vmem:[#allocation4 + $0x28] sm:$0xff] %vm2248_vm4, %v4309_v12 }
 0x64a   : > { %v3615_v35 = vpop.f32.mrf.mxu3 }
 0x64b   : > { %v4212_v13 = vpop.f32.mrf.mxu2  ;;  %v3715_v29 = vadd.f32 %v3683_v36, %v3615_v35 }
 0x64c   : > { %v3981_v17 = vld [vmem:[#allocation4 + $0x38] sm:$0xff] }
 0x64d   : > { %v4013_v4 = vadd.f32 %v3981_v17, %v15340_v32  ;;  %3747 = vst.msk [vmem:[#allocation4 + $0x40] sm:$0xff] %vm2248_vm4, %v3715_v29  ;;  %v15401_v32 = vpack.c.bf16 %v3500_v26, %v3499_v0  ;;  %v15419_v49 = vpop.f32.mrf.mxu1  ;;  %v3504_v0 = vld [vmem:[#allocation3 + $0x211] sm:$0xff] }
 0x64e   : > { %v4278_v18 = vld [vmem:[#allocation4 + $0x30] sm:$0xff] }
 0x64f   : > { %v4310_v6 = vadd.f32 %v4278_v18, %v4207_v24  ;;  %4045 = vst.msk [vmem:[#allocation4 + $0x38] sm:$0xff] %vm2248_vm4, %v4013_v4  ;;  %v3688_v4 = vld [vmem:[#allocation4 + $0x68] sm:$0xff] }
 0x651   : > { %4342 = vst.msk [vmem:[#allocation4 + $0x30] sm:$0xff] %vm2248_vm4, %v4310_v6  ;;  %v3503_v6 = vld [vmem:[#allocation3 + $0x209] sm:$0xff] }
 0x652   : > { %v3617_v33 = vpop.f32.mrf.mxu3 }
 0x653   : > { %v4214_v28 = vpop.f32.mrf.mxu2  ;;  %v3716_v37 = vadd.f32 %v3684_v3, %v3617_v33 }
 0x654   : > { %v3982_v47 = vld [vmem:[#allocation4 + $0x40] sm:$0xff] }
 0x655   : > { %v4014_v23 = vadd.f32 %v3982_v47, %v15346_v5  ;;  %3748 = vst.msk [vmem:[#allocation4 + $0x48] sm:$0xff] %vm2248_vm4, %v3716_v37  ;;  %v11345_v5 = vld [vmem:[%s19377_s7 + $0xc8] sm:$0xf]  ;;  %v13372_v47 = vld [vmem:[%s19373_s3 + $0x80] sm:$0xff] }
 0x656   : > { %v4279_v31 = vld [vmem:[#allocation4 + $0x38] sm:$0xff]  ;;  %v11346_v52 = vor.u32 %v13437_v39, %v11345_v5  ;;  %4488 = vmatpush.bf16.msrb.mxu3 %v13372_v47 }
 0x657   : > { %v4311_v57 = vadd.f32 %v4279_v31, %v4209_v56  ;;  %4046 = vst.msk [vmem:[#allocation4 + $0x40] sm:$0xff] %vm2248_vm4, %v4014_v23  ;;  %10844 = vmatmul.msk.bf16.gmra.mxu3 %vm1394_vm3, %v15401_v32  ;;  %v3803_v23 = vld [vmem:[#allocation3 + $0x22f] sm:$0xff] }
 0x658   : > { %10900 = vmatmul.msk.bf16.gmra.mxu2 %vm1394_vm3, %v4115_v30  ;;  %6315 = vmatpush.bf16.msrb.mxu0 %v11346_v52  ;;  %v3689_v30 = vld [vmem:[#allocation4 + $0x70] sm:$0xff] }
 0x659   : > { %4343 = vst.msk [vmem:[#allocation4 + $0x38] sm:$0xff] %vm2248_vm4, %v4311_v57  ;;  %v3819_v57 = vpack.c.bf16 %v3803_v23, %v3802_v48 }
 0x65a   : > { %v3620_v40 = vpop.f32.mrf.mxu3 }
 0x65b   : > { %v4217_v62 = vpop.f32.mrf.mxu2  ;;  %v3717_v16 = vadd.f32 %v3685_v55, %v3620_v40  ;;  %10874 = vmatmul.msk.bf16.gmra.mxu1 %vm1394_vm3, %v3819_v57 }
 0x65c   : > { %v3983_v15 = vld [vmem:[#allocation4 + $0x48] sm:$0xff] }
 0x65d   : > { %v4015_v61 = vadd.f32 %v3983_v15, %v15360_v43  ;;  %3749 = vst.msk [vmem:[#allocation4 + $0x50] sm:$0xff] %vm2248_vm4, %v3717_v16  ;;  %v4100_v16 = vld [vmem:[#allocation3 + $0x228] sm:$0xff]  ;;  %v4101_v15 = vld [vmem:[#allocation3 + $0x230] sm:$0xff] }
 0x65e   : > { %v4280_v63 = vld [vmem:[#allocation4 + $0x40] sm:$0xff] }
 0x65f   : > { %v4312_v24 = vadd.f32 %v4280_v63, %v4212_v13  ;;  %4047 = vst.msk [vmem:[#allocation4 + $0x48] sm:$0xff] %vm2248_vm4, %v4015_v61  ;;  %v3690_v63 = vld [vmem:[#allocation4 + $0x78] sm:$0xff] }
 0x661   : > { %4344 = vst.msk [vmem:[#allocation4 + $0x40] sm:$0xff] %vm2248_vm4, %v4312_v24 }
 0x662   : > { %v3622_v27 = vpop.f32.mrf.mxu3 }
 0x663   : > { %v4219_v7 = vpop.f32.mrf.mxu2  ;;  %v3718_v56 = vadd.f32 %v3686_v54, %v3622_v27  ;;  %v4117_v27 = vpack.c.bf16 %v4101_v15, %v4100_v16 }
 0x664   : > { %v3984_v10 = vld [vmem:[#allocation4 + $0x50] sm:$0xff] }
 0x665   : > { %v4016_v43 = vadd.f32 %v3984_v10, %v15375_v60  ;;  %3750 = vst.msk [vmem:[#allocation4 + $0x58] sm:$0xff] %vm2248_vm4, %v3718_v56  ;;  %v15431_v60 = vpop.f32.mrf.mxu1 }
 0x666   : > { %v4281_v1 = vld [vmem:[#allocation4 + $0x48] sm:$0xff] }
 0x667   : > { %v4313_v2 = vadd.f32 %v4281_v1, %v4214_v28  ;;  %4048 = vst.msk [vmem:[#allocation4 + $0x50] sm:$0xff] %vm2248_vm4, %v4016_v43  ;;  %10845 = vmatmul.msk.bf16.gmra.mxu3 %vm1394_vm3, %v15424_v58 }
 0x668   : > { %10901 = vmatmul.msk.bf16.gmra.mxu2 %vm1394_vm3, %v4116_v34  ;;  %v3691_v34 = vld [vmem:[#allocation4 + $0x80] sm:$0xff] }
 0x669   : > { %4345 = vst.msk [vmem:[#allocation4 + $0x48] sm:$0xff] %vm2248_vm4, %v4313_v2 }
 0x66a   : > { %v3625_v21 = vpop.f32.mrf.mxu3 }
 0x66b   : > { %v4222_v11 = vpop.f32.mrf.mxu2  ;;  %v3719_v12 = vadd.f32 %v3687_v19, %v3625_v21 }
 0x66c   : > { %v3985_v35 = vld [vmem:[#allocation4 + $0x58] sm:$0xff] }
 0x66d   : > { %v4017_v36 = vadd.f32 %v3985_v35, %v15382_v51  ;;  %3751 = vst.msk [vmem:[#allocation4 + $0x60] sm:$0xff] %vm2248_vm4, %v3719_v12  ;;  %v15437_v28 = vpop.f32.mrf.mxu1  ;;  %v15441_v51 = vpack.c.bf16 %v3504_v0, %v3503_v6  ;;  %v3692_v35 = vld [vmem:[#allocation4 + $0x88] sm:$0xff] }
 0x66e   : > { %v4282_v13 = vld [vmem:[#allocation4 + $0x50] sm:$0xff] }
 0x66f   : > { %v4314_v29 = vadd.f32 %v4282_v13, %v4217_v62  ;;  %4049 = vst.msk [vmem:[#allocation4 + $0x58] sm:$0xff] %vm2248_vm4, %v4017_v36  ;;  %v4370_v13 = vld [vmem:[#allocation3 + $0x69] sm:$0xff] }
 0x671   : > { %4346 = vst.msk [vmem:[#allocation4 + $0x50] sm:$0xff] %vm2248_vm4, %v4314_v29  ;;  %v4371_v29 = vld [vmem:[#allocation3 + $0x71] sm:$0xff] }
 0x672   : > { %v3627_v17 = vpop.f32.mrf.mxu3 }
 0x673   : > { %v4224_v18 = vpop.f32.mrf.mxu2  ;;  %v3720_v33 = vadd.f32 %v3688_v4, %v3627_v17 }
 0x674   : > { %v3986_v3 = vld [vmem:[#allocation4 + $0x60] sm:$0xff] }
 0x675   : > { %v4018_v26 = vadd.f32 %v3986_v3, %v15393_v14  ;;  %3752 = vst.msk [vmem:[#allocation4 + $0x68] sm:$0xff] %vm2248_vm4, %v3720_v33  ;;  %v3936_v62 = vpop.f32.mrf.mxu1 }
 0x676   : > { %v4283_v38 = vld [vmem:[#allocation4 + $0x58] sm:$0xff] }
 0x677   : > { %v4315_v37 = vadd.f32 %v4283_v38, %v4219_v7  ;;  %4050 = vst.msk [vmem:[#allocation4 + $0x60] sm:$0xff] %vm2248_vm4, %v4018_v26  ;;  %10846 = vmatmul.msk.bf16.gmra.mxu3 %vm1394_vm3, %v15441_v51  ;;  %v3693_v26 = vld [vmem:[#allocation4 + $0x90] sm:$0xff] }
 0x678   : > { %10902 = vmatmul.msk.bf16.gmra.mxu2 %vm1394_vm3, %v4117_v27 }
 0x679   : > { %4347 = vst.msk [vmem:[#allocation4 + $0x58] sm:$0xff] %vm2248_vm4, %v4315_v37 }
 0x67a   : > { %v3630_v14 = vpop.f32.mrf.mxu3 }
 0x67b   : > { %v4227_v31 = vpop.f32.mrf.mxu2  ;;  %v3721_v5 = vadd.f32 %v3689_v30, %v3630_v14 }
 0x67c   : > { %v3987_v39 = vld [vmem:[#allocation4 + $0x68] sm:$0xff] }
 0x67d   : > { %v4019_v40 = vadd.f32 %v3987_v39, %v15403_v20  ;;  %3753 = vst.msk [vmem:[#allocation4 + $0x70] sm:$0xff] %vm2248_vm4, %v3721_v5  ;;  %v3939_v10 = vpop.f32.mrf.mxu1  ;;  %v4372_v5 = vld [vmem:[#allocation3 + $0x89] sm:$0xff]  ;;  %v4373_v39 = vld [vmem:[#allocation3 + $0x91] sm:$0xff] }
 0x67e   : > { %v4284_v55 = vld [vmem:[#allocation4 + $0x60] sm:$0xff]  ;;  %v4402_v16 = vpack.c.bf16 %v4373_v39, %v4372_v5 }
 0x67f   : > { %v4316_v52 = vadd.f32 %v4284_v55, %v4222_v11  ;;  %4051 = vst.msk [vmem:[#allocation4 + $0x68] sm:$0xff] %vm2248_vm4, %v4019_v40 }
 0x681   : > { %4348 = vst.msk [vmem:[#allocation4 + $0x60] sm:$0xff] %vm2248_vm4, %v4316_v52 }
 0x682   : > { %v3632_v61 = vpop.f32.mrf.mxu3 }
 0x683   : > { %v4229_v24 = vpop.f32.mrf.mxu2  ;;  %v3722_v54 = vadd.f32 %v3690_v63, %v3632_v61 }
 0x684   : > { %v3988_v7 = vld [vmem:[#allocation4 + $0x70] sm:$0xff] }
 0x685   : > { %v4020_v20 = vadd.f32 %v3988_v7, %v15419_v49  ;;  %3754 = vst.msk [vmem:[#allocation4 + $0x78] sm:$0xff] %vm2248_vm4, %v3722_v54  ;;  %v3941_v17 = vpop.f32.mrf.mxu1 }
 0x686   : > { %v4285_v59 = vld [vmem:[#allocation4 + $0x68] sm:$0xff] }
 0x687   : > { %v4317_v56 = vadd.f32 %v4285_v59, %v4224_v18  ;;  %4052 = vst.msk [vmem:[#allocation4 + $0x70] sm:$0xff] %vm2248_vm4, %v4020_v20  ;;  %10915 = vmatmul.msk.bf16.vlgmr.msrb.gmra.mxu3 %vm1394_vm3, %v4400_v42 }
 0x689   : > { %4349 = vst.msk [vmem:[#allocation4 + $0x68] sm:$0xff] %vm2248_vm4, %v4317_v56  ;;  %v3696_v56 = vld [vmem:[#allocation4 + $0xa8] sm:$0xff] }
 0x68a   : > { %v3635_v43 = vpop.f32.mrf.mxu3 }
 0x68b   : > { %v4232_v1 = vpop.f32.mrf.mxu2  ;;  %v3723_v2 = vadd.f32 %v3691_v34, %v3635_v43  ;;  %v4374_v43 = vld [vmem:[#allocation3 + $0xa9] sm:$0xff]  ;;  %v4375_v34 = vld [vmem:[#allocation3 + $0xb1] sm:$0xff] }
 0x68c   : > { %v3989_v21 = vld [vmem:[#allocation4 + $0x78] sm:$0xff] }
 0x68d   : > { %v4021_v19 = vadd.f32 %v3989_v21, %v15431_v60  ;;  %3755 = vst.msk [vmem:[#allocation4 + $0x80] sm:$0xff] %vm2248_vm4, %v3723_v2  ;;  %v4401_v60 = vpack.c.bf16 %v4371_v29, %v4370_v13  ;;  %v3944_v48 = vpop.f32.mrf.mxu1 }
 0x68e   : > { %v4286_v49 = vld [vmem:[#allocation4 + $0x70] sm:$0xff] }
 0x68f   : > { %v4318_v11 = vadd.f32 %v4286_v49, %v4227_v31  ;;  %4053 = vst.msk [vmem:[#allocation4 + $0x78] sm:$0xff] %vm2248_vm4, %v4021_v19  ;;  %v3694_v31 = vld [vmem:[#allocation4 + $0x98] sm:$0xff]  ;;  %v4403_v19 = vpack.c.bf16 %v4375_v34, %v4374_v43 }
 0x690   : > { %v3702_v43 = vld [vmem:[#allocation4 + $0xd8] sm:$0xff] }
 0x691   : > { %4350 = vst.msk [vmem:[#allocation4 + $0x70] sm:$0xff] %vm2248_vm4, %v4318_v11 }
 0x692   : > { %v3637_v12 = vpop.f32.mrf.mxu3 }
 0x693   : > { %v4234_v36 = vpop.f32.mrf.mxu2  ;;  %v3724_v4 = vadd.f32 %v3692_v35, %v3637_v12  ;;  %v3697_v35 = vld [vmem:[#allocation4 + $0xb0] sm:$0xff] }
 0x694   : > { %v3990_v18 = vld [vmem:[#allocation4 + $0x80] sm:$0xff] }
 0x695   : > { %v4022_v6 = vadd.f32 %v3990_v18, %v15437_v28  ;;  %3756 = vst.msk [vmem:[#allocation4 + $0x88] sm:$0xff] %vm2248_vm4, %v3724_v4  ;;  %v3946_v15 = vpop.f32.mrf.mxu1 }
 0x696   : > { %v4287_v0 = vld [vmem:[#allocation4 + $0x78] sm:$0xff] }
 0x697   : > { %v4319_v33 = vadd.f32 %v4287_v0, %v4229_v24  ;;  %4054 = vst.msk [vmem:[#allocation4 + $0x80] sm:$0xff] %vm2248_vm4, %v4022_v6  ;;  %10916 = vmatmul.msk.bf16.gmra.mxu3 %vm1394_vm3, %v4401_v60  ;;  %v3695_v24 = vld [vmem:[#allocation4 + $0xa0] sm:$0xff]  ;;  %v3698_v0 = vld [vmem:[#allocation4 + $0xb8] sm:$0xff] }
 0x699   : > { %4351 = vst.msk [vmem:[#allocation4 + $0x78] sm:$0xff] %vm2248_vm4, %v4319_v33 }
 0x69a   : > { %v3640_v3 = vpop.f32.mrf.mxu3 }
 0x69b   : > { %v4237_v38 = vpop.f32.mrf.mxu2  ;;  %v3725_v37 = vadd.f32 %v3693_v26, %v3640_v3 }
 0x69c   : > { %v3991_v47 = vld [vmem:[#allocation4 + $0x88] sm:$0xff] }
 0x69d   : > { %v4023_v23 = vadd.f32 %v3991_v47, %v3936_v62  ;;  %3757 = vst.msk [vmem:[#allocation4 + $0x90] sm:$0xff] %vm2248_vm4, %v3725_v37  ;;  %v3949_v42 = vpop.f32.mrf.mxu1 }
 0x69e   : > { %v4288_v28 = vld [vmem:[#allocation4 + $0x80] sm:$0xff] }
 0x69f   : > { %v4320_v14 = vadd.f32 %v4288_v28, %v4232_v1  ;;  %4055 = vst.msk [vmem:[#allocation4 + $0x88] sm:$0xff] %vm2248_vm4, %v4023_v23  ;;  %v3699_v28 = vld [vmem:[#allocation4 + $0xc0] sm:$0xff] }
 0x6a1   : > { %4352 = vst.msk [vmem:[#allocation4 + $0x80] sm:$0xff] %vm2248_vm4, %v4320_v14 }
 0x6a2   : > { %v3642_v30 = vpop.f32.mrf.mxu3 }
 0x6a3   : > { %v4239_v57 = vpop.f32.mrf.mxu2  ;;  %v3726_v40 = vadd.f32 %v3694_v31, %v3642_v30 }
 0x6a4   : > { %v3992_v55 = vld [vmem:[#allocation4 + $0x90] sm:$0xff] }
 0x6a5   : > { %v4024_v52 = vadd.f32 %v3992_v55, %v3939_v10  ;;  %3758 = vst.msk [vmem:[#allocation4 + $0x98] sm:$0xff] %vm2248_vm4, %v3726_v40 }
 0x6a6   : > { %v4289_v62 = vld [vmem:[#allocation4 + $0x88] sm:$0xff] }
 0x6a7   : > { %v4321_v61 = vadd.f32 %v4289_v62, %v4234_v36  ;;  %4056 = vst.msk [vmem:[#allocation4 + $0x90] sm:$0xff] %vm2248_vm4, %v4024_v52  ;;  %10917 = vmatmul.msk.bf16.gmra.mxu3 %vm1394_vm3, %v4402_v16  ;;  %v3951_v36 = vpop.f32.mrf.mxu1  ;;  %v3700_v52 = vld [vmem:[#allocation4 + $0xc8] sm:$0xff] }
 0x6a9   : > { %4353 = vst.msk [vmem:[#allocation4 + $0x88] sm:$0xff] %vm2248_vm4, %v4321_v61 }
 0x6aa   : > { %v3645_v63 = vpop.f32.mrf.mxu3 }
 0x6ab   : > { %v4242_v44 = vpop.f32.mrf.mxu2  ;;  %v3727_v45 = vadd.f32 %v3695_v24, %v3645_v63  ;;  %v11329_v24 = vld [vmem:[%s19377_s7 + $0xa8] sm:$0xf] }
 0x6ac   : > { %v3993_v27 = vld [vmem:[#allocation4 + $0x98] sm:$0xff] }
 0x6ad   : > { %v4025_v54 = vadd.f32 %v3993_v27, %v3941_v17  ;;  %3759 = vst.msk [vmem:[#allocation4 + $0xa0] sm:$0xff] %vm2248_vm4, %v3727_v45 }
 0x6ae   : > { %v4290_v7 = vld [vmem:[#allocation4 + $0x90] sm:$0xff] }
 0x6af   : > { %v4322_v20 = vadd.f32 %v4290_v7, %v4237_v38  ;;  %4057 = vst.msk [vmem:[#allocation4 + $0x98] sm:$0xff] %vm2248_vm4, %v4025_v54  ;;  %v3954_v26 = vpop.f32.mrf.mxu1  ;;  %v3701_v54 = vld [vmem:[#allocation4 + $0xd0] sm:$0xff] }
 0x6b1   : > { %4354 = vst.msk [vmem:[#allocation4 + $0x90] sm:$0xff] %vm2248_vm4, %v4322_v20 }
 0x6b2   : > { %v3647_v59 = vpop.f32.mrf.mxu3 }
 0x6b3   : > { %v4244_v10 = vpop.f32.mrf.mxu2  ;;  %v3728_v1 = vadd.f32 %v3696_v56, %v3647_v59 }
 0x6b4   : > { %v3994_v2 = vld [vmem:[#allocation4 + $0xa0] sm:$0xff] }
 0x6b5   : > { %v4026_v21 = vadd.f32 %v3994_v2, %v3944_v48  ;;  %3760 = vst.msk [vmem:[#allocation4 + $0xa8] sm:$0xff] %vm2248_vm4, %v3728_v1 }
 0x6b6   : > { %v4291_v49 = vld [vmem:[#allocation4 + $0x98] sm:$0xff] }
 0x6b7   : > { %v4323_v11 = vadd.f32 %v4291_v49, %v4239_v57  ;;  %4058 = vst.msk [vmem:[#allocation4 + $0xa0] sm:$0xff] %vm2248_vm4, %v4026_v21  ;;  %10918 = vmatmul.msk.bf16.gmra.mxu3 %vm1394_vm3, %v4403_v19  ;;  %v3956_v5 = vpop.f32.mrf.mxu1 }
 0x6b9   : > { %4355 = vst.msk [vmem:[#allocation4 + $0x98] sm:$0xff] %vm2248_vm4, %v4323_v11 }
 0x6ba   : > { %v3650_v12 = vpop.f32.mrf.mxu3 }
 0x6bb   : > { %v3729_v13 = vadd.f32 %v3697_v35, %v3650_v12  ;;  %v4247_v17 = vpop.f32.mrf.mxu2  ;;  %v3703_v35 = vld [vmem:[#allocation4 + $0xe0] sm:$0xff] }
 0x6bc   : > { %v3995_v29 = vld [vmem:[#allocation4 + $0xa8] sm:$0xff] }
 0x6bd   : > { %v4027_v4 = vadd.f32 %v3995_v29, %v3946_v15  ;;  %3761 = vst.msk [vmem:[#allocation4 + $0xb0] sm:$0xff] %vm2248_vm4, %v3729_v13 }
 0x6be   : > { %v4292_v18 = vld [vmem:[#allocation4 + $0xa0] sm:$0xff] }
 0x6bf   : > { %v4324_v6 = vadd.f32 %v4292_v18, %v4242_v44  ;;  %4059 = vst.msk [vmem:[#allocation4 + $0xa8] sm:$0xff] %vm2248_vm4, %v4027_v4  ;;  %v3959_v63 = vpop.f32.mrf.mxu1  ;;  %v13433_v44 = vld [vmem:[%s19377_s7 + $0xb4] sm:$0xf0] }
 0x6c0   : > { %v11330_v7 = vor.u32 %v13433_v44, %v11329_v24 }
 0x6c1   : > { %4356 = vst.msk [vmem:[#allocation4 + $0xa0] sm:$0xff] %vm2248_vm4, %v4324_v6 }
 0x6c2   : > { %v3652_v60 = vpop.f32.mrf.mxu3  ;;  %6316 = vmatpush.bf16.msrb.mxu0 %v11330_v7 }
 0x6c3   : > { %v3730_v33 = vadd.f32 %v3698_v0, %v3652_v60  ;;  %v4249_v47 = vpop.f32.mrf.mxu2  ;;  %v3704_v0 = vld [vmem:[#allocation4 + $0xe8] sm:$0xff] }
 0x6c4   : > { %v3996_v3 = vld [vmem:[#allocation4 + $0xb0] sm:$0xff] }
 0x6c5   : > { %v4028_v38 = vadd.f32 %v3996_v3, %v3949_v42  ;;  %3762 = vst.msk [vmem:[#allocation4 + $0xb8] sm:$0xff] %vm2248_vm4, %v3730_v33 }
 0x6c6   : > { %v4293_v37 = vld [vmem:[#allocation4 + $0xa8] sm:$0xff] }
 0x6c7   : > { %v4325_v48 = vadd.f32 %v4293_v37, %v4244_v10  ;;  %4060 = vst.msk [vmem:[#allocation4 + $0xb0] sm:$0xff] %vm2248_vm4, %v4028_v38  ;;  %10919 = vmatmul.msk.bf16.gmra.mxu3 %vm1394_vm3, %v15258_v8  ;;  %v3961_v34 = vpop.f32.mrf.mxu1 }
 0x6c9   : > { %4357 = vst.msk [vmem:[#allocation4 + $0xa8] sm:$0xff] %vm2248_vm4, %v4325_v48 }
 0x6ca   : > { %v3655_v23 = vpop.f32.mrf.mxu3 }
 0x6cb   : > { %v3731_v14 = vadd.f32 %v3699_v28, %v3655_v23  ;;  %v4252_v40 = vpop.f32.mrf.mxu2  ;;  %v3705_v23 = vld [vmem:[#allocation4 + $0xf0] sm:$0xff] }
 0x6cc   : > { %v3997_v30 = vld [vmem:[#allocation4 + $0xb8] sm:$0xff] }
 0x6cd   : > { %v4029_v31 = vadd.f32 %v3997_v30, %v3951_v36  ;;  %3763 = vst.msk [vmem:[#allocation4 + $0xc0] sm:$0xff] %vm2248_vm4, %v3731_v14 }
 0x6ce   : > { %v4294_v57 = vld [vmem:[#allocation4 + $0xb0] sm:$0xff] }
 0x6cf   : > { %v4326_v39 = vadd.f32 %v4294_v57, %v4247_v17  ;;  %4061 = vst.msk [vmem:[#allocation4 + $0xb8] sm:$0xff] %vm2248_vm4, %v4029_v31  ;;  %v3964_v29 = vpop.f32.mrf.mxu1 }
 0x6d1   : > { %4358 = vst.msk [vmem:[#allocation4 + $0xb0] sm:$0xff] %vm2248_vm4, %v4326_v39 }
 0x6d2   : > { %v3657_v55 = vpop.f32.mrf.mxu3 }
 0x6d3   : > { %v3732_v8 = vadd.f32 %v3700_v52, %v3657_v55  ;;  %v4254_v45 = vpop.f32.mrf.mxu2 }
 0x6d4   : > { %v3998_v16 = vld [vmem:[#allocation4 + $0xc0] sm:$0xff] }
 0x6d5   : > { %v4030_v62 = vadd.f32 %v3998_v16, %v3954_v26  ;;  %3764 = vst.msk [vmem:[#allocation4 + $0xc8] sm:$0xff] %vm2248_vm4, %v3732_v8 }
 0x6d6   : > { %v4295_v15 = vld [vmem:[#allocation4 + $0xb8] sm:$0xff] }
 0x6d7   : > { %v4327_v61 = vadd.f32 %v4295_v15, %v4249_v47  ;;  %4062 = vst.msk [vmem:[#allocation4 + $0xc0] sm:$0xff] %vm2248_vm4, %v4030_v62  ;;  %10920 = vmatmul.msk.bf16.gmra.mxu3 %vm1394_vm3, %v15280_v22  ;;  %v3966_v38 = vpop.f32.mrf.mxu1 }
 0x6d9   : > { %4359 = vst.msk [vmem:[#allocation4 + $0xb8] sm:$0xff] %vm2248_vm4, %v4327_v61 }
 0x6da   : > { %v3660_v27 = vpop.f32.mrf.mxu3 }
 0x6db   : > { %v3733_v20 = vadd.f32 %v3701_v54, %v3660_v27  ;;  %v4257_v21 = vpop.f32.mrf.mxu2 }
 0x6dc   : > { %v3999_v42 = vld [vmem:[#allocation4 + $0xc8] sm:$0xff] }
 0x6dd   : > { %v4031_v59 = vadd.f32 %v3999_v42, %v3956_v5  ;;  %3765 = vst.msk [vmem:[#allocation4 + $0xd0] sm:$0xff] %vm2248_vm4, %v3733_v20  ;;  %v4571_v42 = vld [vmem:[#allocation4 + $0x8] sm:$0xff] }
 0x6de   : > { %v4296_v22 = vld [vmem:[#allocation4 + $0xc0] sm:$0xff] }
 0x6df   : > { %v4328_v56 = vadd.f32 %v4296_v22, %v4252_v40  ;;  %4063 = vst.msk [vmem:[#allocation4 + $0xc8] sm:$0xff] %vm2248_vm4, %v4031_v59  ;;  %v3969_v5 = vpop.f32.mrf.mxu1  ;;  %v13377_v22 = vld [vmem:[#allocation7 + $0x18] sm:$0xff] }
 0x6e0   : > { %4872 = vmatpush.bf16.msrb.mxu1 %v13377_v22 }
 0x6e1   : > { %4360 = vst.msk [vmem:[#allocation4 + $0xc0] sm:$0xff] %vm2248_vm4, %v4328_v56  ;;  %v13381_v56 = vld [vmem:[#allocation7 + $0x38] sm:$0xff] }
 0x6e2   : > { %v3662_v10 = vpop.f32.mrf.mxu3  ;;  %4966 = vmatpush.bf16.msra.mxu2 %v13381_v56  ;;  %v4580_v56 = vld [vmem:[#allocation4 + $0x50] sm:$0xff] }
 0x6e3   : > { %v3734_v1 = vadd.f32 %v3702_v43, %v3662_v10  ;;  %v4259_v18 = vpop.f32.mrf.mxu2 }
 0x6e4   : > { %v4000_v2 = vld [vmem:[#allocation4 + $0xd0] sm:$0xff] }
 0x6e5   : > { %v4032_v19 = vadd.f32 %v4000_v2, %v3959_v63  ;;  %3766 = vst.msk [vmem:[#allocation4 + $0xd8] sm:$0xff] %vm2248_vm4, %v3734_v1  ;;  %v4570_v63 = vld [vmem:[#allocation4] sm:$0xff]  ;;  %v4572_v1 = vld [vmem:[#allocation4 + $0x10] sm:$0xff] }
 0x6e6   : > { %v4297_v49 = vld [vmem:[#allocation4 + $0xc8] sm:$0xff] }
 0x6e7   : > { %v4329_v11 = vadd.f32 %v4297_v49, %v4254_v45  ;;  %4064 = vst.msk [vmem:[#allocation4 + $0xd0] sm:$0xff] %vm2248_vm4, %v4032_v19  ;;  %10921 = vmatmul.msk.bf16.gmra.mxu3 %vm1394_vm3, %v15298_v50  ;;  %v3971_v15 = vpop.f32.mrf.mxu1  ;;  %v13380_v19 = vld [vmem:[#allocation7 + $0x30] sm:$0xff]  ;;  %v13375_v49 = vld [vmem:[#allocation7 + $0x8] sm:$0xff] }
 0x6e8   : > { %4967 = vmatpush.bf16.msra.mxu2 %v13380_v19  ;;  %v13383_v19 = vld [vmem:[#allocation7 + $0x48] sm:$0xff] }
 0x6e9   : > { %4361 = vst.msk [vmem:[#allocation4 + $0xc8] sm:$0xff] %vm2248_vm4, %v4329_v11  ;;  %v13379_v11 = vld [vmem:[#allocation7 + $0x28] sm:$0xff] }
 0x6ea   : > { %v3665_v12 = vpop.f32.mrf.mxu3 }
 0x6eb   : > { %v3735_v36 = vadd.f32 %v3703_v35, %v3665_v12  ;;  %v4262_v47 = vpop.f32.mrf.mxu2  ;;  %v4573_v35 = vld [vmem:[#allocation4 + $0x18] sm:$0xff] }
 0x6ec   : > { %v4001_v13 = vld [vmem:[#allocation4 + $0xd8] sm:$0xff]  ;;  %4968 = vmatpush.bf16.msra.mxu2 %v13379_v11 }
 0x6ed   : > { %v4033_v17 = vadd.f32 %v4001_v13, %v3961_v34  ;;  %3767 = vst.msk [vmem:[#allocation4 + $0xe0] sm:$0xff] %vm2248_vm4, %v3735_v36  ;;  %v13378_v13 = vld [vmem:[#allocation7 + $0x20] sm:$0xff] }
 0x6ee   : > { %v4298_v4 = vld [vmem:[#allocation4 + $0xd0] sm:$0xff] }
 0x6ef   : > { %v4330_v6 = vadd.f32 %v4298_v4, %v4257_v21  ;;  %4065 = vst.msk [vmem:[#allocation4 + $0xd8] sm:$0xff] %vm2248_vm4, %v4033_v17  ;;  %v13376_v21 = vld [vmem:[#allocation7 + $0x10] sm:$0xff] }
 0x6f0   : > { %4873 = vmatpush.bf16.msrb.mxu1 %v13376_v21  ;;  %4969 = vmatpush.bf16.msra.mxu2 %v13378_v13  ;;  %v4582_v13 = vld [vmem:[#allocation4 + $0x60] sm:$0xff] }
 0x6f1   : > { %4362 = vst.msk [vmem:[#allocation4 + $0xd0] sm:$0xff] %vm2248_vm4, %v4330_v6 }
 0x6f2   : > { %v3667_v60 = vpop.f32.mrf.mxu3 }
 0x6f3   : > { %v3736_v50 = vadd.f32 %v3704_v0, %v3667_v60  ;;  %v4264_v39 = vpop.f32.mrf.mxu2 }
 0x6f4   : > { %v4002_v33 = vld [vmem:[#allocation4 + $0xe0] sm:$0xff]  ;;  %4874 = vmatpush.bf16.msrb.mxu1 %v13375_v49 }
 0x6f5   : > { %v4034_v3 = vadd.f32 %v4002_v33, %v3964_v29  ;;  %3768 = vst.msk [vmem:[#allocation4 + $0xe8] sm:$0xff] %vm2248_vm4, %v3736_v50 }
 0x6f6   : > { %v4299_v26 = vld [vmem:[#allocation4 + $0xd8] sm:$0xff] }
 0x6f7   : > { %v4331_v37 = vadd.f32 %v4299_v26, %v4259_v18  ;;  %4066 = vst.msk [vmem:[#allocation4 + $0xe0] sm:$0xff] %vm2248_vm4, %v4034_v3  ;;  %10922 = vmatmul.msk.bf16.gmra.mxu3 %vm1394_vm3, %v15314_v53  ;;  %v3706_v53 = vld [vmem:[#allocation4 + $0xf8] sm:$0xff]  ;;  %v4574_v18 = vld [vmem:[#allocation4 + $0x20] sm:$0xff] }
 0x6f8   : > { %v15544_v3 = vld [vmem:[%s19374_s4] ss:$0 sm:$0xff] }
 0x6f9   : > { %4363 = vst.msk [vmem:[#allocation4 + $0xd8] sm:$0xff] %vm2248_vm4, %v4331_v37  ;;  %v4575_v37 = vld [vmem:[#allocation4 + $0x28] sm:$0xff] }
 0x6fa   : > { %v3670_v48 = vpop.f32.mrf.mxu3 }
 0x6fb   : > { %v3737_v28 = vadd.f32 %v3705_v23, %v3670_v48  ;;  %v4267_v24 = vpop.f32.mrf.mxu2 }
 0x6fc   : > { %v4003_v14 = vld [vmem:[#allocation4 + $0xe8] sm:$0xff] }
 0x6fd   : > { %v4035_v30 = vadd.f32 %v4003_v14, %v3966_v38  ;;  %3769 = vst.msk [vmem:[#allocation4 + $0xf0] sm:$0xff] %vm2248_vm4, %v3737_v28  ;;  %v4576_v28 = vld [vmem:[#allocation4 + $0x30] sm:$0xff]  ;;  %v4812_v14 = vld [vmem:[#allocation5 + $0x7] sm:$0xff] }
 0x6fe   : > { %v4300_v31 = vld [vmem:[#allocation4 + $0xe0] sm:$0xff] }
 0x6ff   : > { %v4332_v57 = vadd.f32 %v4300_v31, %v4262_v47  ;;  %4067 = vst.msk [vmem:[#allocation4 + $0xe8] sm:$0xff] %vm2248_vm4, %v4035_v30  ;;  %v4905_v30 = vld [vmem:[#allocation5 + $0x8] sm:$0xff] }
 0x701   : > { %4364 = vst.msk [vmem:[#allocation4 + $0xe0] sm:$0xff] %vm2248_vm4, %v4332_v57 }
 0x702   : > { %v3672_v40 = vpop.f32.mrf.mxu3 }
 0x703   : > { %v3738_v55 = vadd.f32 %v3706_v53, %v3672_v40  ;;  %v4269_v59 = vpop.f32.mrf.mxu2  ;;  %v4577_v53 = vld [vmem:[#allocation4 + $0x38] sm:$0xff] }
 0x704   : > { %v4004_v52 = vld [vmem:[#allocation4 + $0xf0] sm:$0xff] }
 0x705   : > { %3770 = vst.msk [vmem:[#allocation4 + $0xf8] sm:$0xff] %vm2248_vm4, %v3738_v55  ;;  %v4036_v8 = vadd.f32 %v4004_v52, %v3969_v5 }
 0x706   : > { %v4301_v16 = vld [vmem:[#allocation4 + $0xe8] sm:$0xff] }
 0x707   : > { %v4333_v62 = vadd.f32 %v4301_v16, %v4264_v39  ;;  %4068 = vst.msk [vmem:[#allocation4 + $0xf0] sm:$0xff] %vm2248_vm4, %v4036_v8  ;;  %10923 = vmatmul.msk.bf16.gmra.mxu3 %vm1394_vm3, %v15332_v46 }
 0x709   : > { %4365 = vst.msk [vmem:[#allocation4 + $0xe8] sm:$0xff] %vm2248_vm4, %v4333_v62  ;;  %v4578_v62 = vld [vmem:[#allocation4 + $0x40] sm:$0xff] }
 0x70a   : > { %v4490_v61 = vpop.f32.mrf.mxu3 }
 0x70b   : > { %v4602_v44 = vadd.f32 %v4570_v63, %v4490_v61 }
 0x70c   : > { %v4005_v45 = vld [vmem:[#allocation4 + $0xf8] sm:$0xff] }
 0x70d   : > { %4634 = vst.msk [vmem:[#allocation4] sm:$0xff] %vm2248_vm4, %v4602_v44  ;;  %v4037_v27 = vadd.f32 %v4005_v45, %v3971_v15 }
 0x70e   : > { %v4302_v54 = vld [vmem:[#allocation4 + $0xf0] sm:$0xff] }
 0x70f   : > { %4069 = vst.msk [vmem:[#allocation4 + $0xf8] sm:$0xff] %vm2248_vm4, %v4037_v27  ;;  %v4334_v7 = vadd.f32 %v4302_v54, %v4267_v24 }
 0x711   : > { %4366 = vst.msk [vmem:[#allocation4 + $0xf0] sm:$0xff] %vm2248_vm4, %v4334_v7  ;;  %v4579_v7 = vld [vmem:[#allocation4 + $0x48] sm:$0xff] }
 0x712   : > { %v4492_v20 = vpop.f32.mrf.mxu3 }
 0x713   : > { %v4603_v46 = vadd.f32 %v4571_v42, %v4492_v20 }
 0x715   : > { %4635 = vst.msk [vmem:[#allocation4 + $0x8] sm:$0xff] %vm2248_vm4, %v4603_v46  ;;  %v13429_v46 = vld [vmem:[%s19377_s7 + $0x94] sm:$0xf0] }
 0x716   : > { %v4303_v10 = vld [vmem:[#allocation4 + $0xf8] sm:$0xff] }
 0x717   : > { %v4335_v43 = vadd.f32 %v4303_v10, %v4269_v59  ;;  %10924 = vmatmul.msk.bf16.gmra.mxu3 %vm1394_vm3, %v15350_v25  ;;  %v13374_v25 = vld [vmem:[#allocation7] sm:$0xff] }
 0x718   : > { %4875 = vmatpush.bf16.msrb.mxu1 %v13374_v25 }
 0x719   : > { %4367 = vst.msk [vmem:[#allocation4 + $0xf8] sm:$0xff] %vm2248_vm4, %v4335_v43  ;;  %v13385_v43 = vld [vmem:[#allocation7 + $0x58] sm:$0xff] }
 0x71a   : > { %v4495_v34 = vpop.f32.mrf.mxu3  ;;  %5076 = vmatpush.bf16.msra.mxu3 %v13385_v43 }
 0x71b   : > { %v4604_v2 = vadd.f32 %v4572_v1, %v4495_v34  ;;  %v13384_v34 = vld [vmem:[#allocation7 + $0x50] sm:$0xff] }
 0x71c   : > { %v4666_v29 = vld [vmem:[#allocation4] ss:$2 sm:$0xff]  ;;  %v4682_v17 = vld [vmem:[#allocation4 + $0x1] ss:$2 sm:$0xff] }
 0x71d   : > { %4636 = vst.msk [vmem:[#allocation4 + $0x10] sm:$0xff] %vm2248_vm4, %v4604_v2  ;;  %v4729_v50 = vmax.f32 %v4666_v29, %v4682_v17  ;;  %v4581_v2 = vld [vmem:[#allocation4 + $0x58] sm:$0xff] }
 0x71e   : > { %5077 = vmatpush.bf16.msra.mxu3 %v13384_v34  ;;  %v4588_v34 = vld [vmem:[#allocation4 + $0x90] sm:$0xff] }
 0x722   : > { %v4497_v12 = vpop.f32.mrf.mxu3  ;;  %5078 = vmatpush.bf16.msra.mxu3 %v13383_v19 }
 0x723   : > { %v4605_v36 = vadd.f32 %v4573_v35, %v4497_v12 }
 0x725   : > { %4637 = vst.msk [vmem:[#allocation4 + $0x18] sm:$0xff] %vm2248_vm4, %v4605_v36 }
 0x727   : > { %10925 = vmatmul.msk.bf16.gmra.mxu3 %vm1394_vm3, %v15369_v41 }
 0x72a   : > { %v4500_v4 = vpop.f32.mrf.mxu3 }
 0x72b   : > { %v4606_v6 = vadd.f32 %v4574_v18, %v4500_v4 }
 0x72c   : > { %v4698_v60 = vld [vmem:[#allocation4 + $0x10] ss:$2 sm:$0xff]  ;;  %v4714_v0 = vld [vmem:[#allocation4 + $0x11] ss:$2 sm:$0xff] }
 0x72d   : > { %v4737_v33 = vmax.f32 %v4698_v60, %v4714_v0  ;;  %4638 = vst.msk [vmem:[#allocation4 + $0x20] sm:$0xff] %vm2248_vm4, %v4606_v6 }
 0x72f   : > { %v4745_v26 = vmax.f32 %v4729_v50, %v4737_v33  ;;  %v4398_v33 = vld [vmem:[#allocation3 + $0x229] sm:$0xff] }
 0x731   : > { %v4757_v41 = vadd.f32 %v15544_v3, %v4745_v26  ;;  %v4399_v26 = vld [vmem:[#allocation3 + $0x231] sm:$0xff] }
 0x732   : > { %v4502_v38 = vpop.f32.mrf.mxu3 }
 0x733   : > { %v4765_v47 = vmax.f32 %v4757_v41, 0.0  ;;  %v4607_v48 = vadd.f32 %v4575_v37, %v4502_v38  ;;  %v4583_v37 = vld [vmem:[#allocation4 + $0x68] sm:$0xff] }
 0x735   : > { %4804 = vst.msk [vmem:[#allocation5 + $0x20] sm:$0xff] %vm2248_vm4, %v4765_v47 }
 0x736   : > { %4639 = vst.msk [vmem:[#allocation4 + $0x28] sm:$0xff] %vm2248_vm4, %v4607_v48 }
 0x737   : > { %10926 = vmatmul.msk.bf16.gmra.mxu3 %vm1394_vm3, %v15386_v9 }
 0x73a   : > { %v4505_v23 = vpop.f32.mrf.mxu3 }
 0x73b   : > { %v4608_v31 = vadd.f32 %v4576_v28, %v4505_v23  ;;  %v4415_v23 = vpack.c.bf16 %v4399_v26, %v4398_v33  ;;  %v13382_v28 = vld [vmem:[#allocation7 + $0x40] sm:$0xff] }
 0x73c   : > { %v15552_v57 = vld [vmem:[#allocation5 + $0x1f] sm:$0xff]  ;;  %5079 = vmatpush.bf16.msra.mxu3 %v13382_v28  ;;  %v4591_v28 = vld [vmem:[#allocation4 + $0xa8] sm:$0xff] }
 0x73d   : > { %v15554_v5 = vld [vmem:[#allocation5 + $0x20] sm:$0xff]  ;;  %4640 = vst.msk [vmem:[#allocation4 + $0x30] sm:$0xff] %vm2248_vm4, %v4608_v31  ;;  %v4820_v39 = vpack.c.bf16 %v15552_v57, %v4812_v14 }
 0x73e   : > { %v4913_v40 = vpack.c.bf16 %v15554_v5, %v4905_v30  ;;  %v4668_v52 = vld [vmem:[#allocation4 + $0x20] ss:$2 sm:$0xff]  ;;  %v4684_v8 = vld [vmem:[#allocation4 + $0x21] ss:$2 sm:$0xff]  ;;  %v4584_v30 = vld [vmem:[#allocation4 + $0x70] sm:$0xff] }
 0x73f   : > { %10947 = vmatmul.msk.bf16.vlgmr.msrb.gmra.mxu1 %vm2248_vm4, %v4820_v39  ;;  %v4730_v24 = vmax.f32 %v4668_v52, %v4684_v8  ;;  %v15584_v11 = vld [vmem:[#allocation5 + $0x21] sm:$0xff]  ;;  %v4585_v52 = vld [vmem:[#allocation4 + $0x78] sm:$0xff]  ;;  %v5015_v8 = vld [vmem:[#allocation5 + $0x9] sm:$0xff] }
 0x740   : > { %10967 = vmatmul.msk.bf16.vlgmr.msra.gmra.mxu2 %vm2248_vm4, %v4913_v40 }
 0x742   : > { %v4507_v9 = vpop.f32.mrf.mxu3 }
 0x743   : > { %v4609_v55 = vadd.f32 %v4577_v53, %v4507_v9 }
 0x745   : > { %4641 = vst.msk [vmem:[#allocation4 + $0x38] sm:$0xff] %vm2248_vm4, %v4609_v55 }
 0x747   : > { %10927 = vmatmul.msk.bf16.gmra.mxu3 %vm1394_vm3, %v15401_v32  ;;  %v11313_v32 = vld [vmem:[%s19377_s7 + $0x88] sm:$0xf] }
 0x748   : > { %v11314_v59 = vor.u32 %v13429_v46, %v11313_v32  ;;  %v4587_v46 = vld [vmem:[#allocation4 + $0x88] sm:$0xff] }
 0x74a   : > { %v4510_v16 = vpop.f32.mrf.mxu3  ;;  %6317 = vmatpush.bf16.msrb.mxu0 %v11314_v59 }
 0x74b   : > { %v4610_v15 = vadd.f32 %v4578_v62, %v4510_v16  ;;  %v5023_v62 = vpack.c.bf16 %v15584_v11, %v5015_v8 }
 0x74c   : > { %v4700_v61 = vld [vmem:[#allocation4 + $0x30] ss:$2 sm:$0xff]  ;;  %v4716_v63 = vld [vmem:[#allocation4 + $0x31] ss:$2 sm:$0xff] }
 0x74d   : > { %v4738_v44 = vmax.f32 %v4700_v61, %v4716_v63  ;;  %4642 = vst.msk [vmem:[#allocation4 + $0x40] sm:$0xff] %vm2248_vm4, %v4610_v15 }
 0x74f   : > { %v4746_v45 = vmax.f32 %v4730_v24, %v4738_v44  ;;  %v4586_v24 = vld [vmem:[#allocation4 + $0x80] sm:$0xff] }
 0x751   : > { %v4758_v27 = vadd.f32 %v15544_v3, %v4746_v45 }
 0x752   : > { %v4512_v54 = vpop.f32.mrf.mxu3 }
 0x753   : > { %v4766_v20 = vmax.f32 %v4758_v27, 0.0  ;;  %v4611_v42 = vadd.f32 %v4579_v7, %v4512_v54 }
 0x755   : > { %4805 = vst.msk [vmem:[#allocation5 + $0x38] sm:$0xff] %vm2248_vm4, %v4766_v20 }
 0x756   : > { %4643 = vst.msk [vmem:[#allocation4 + $0x48] sm:$0xff] %vm2248_vm4, %v4611_v42 }
 0x757   : > { %10928 = vmatmul.msk.bf16.gmra.mxu3 %vm1394_vm3, %v15424_v58 }
 0x75a   : > { %v4515_v22 = vpop.f32.mrf.mxu3 }
 0x75b   : > { %v4612_v10 = vadd.f32 %v4580_v56, %v4515_v22 }
 0x75c   : > { %v15580_v58 = vld [vmem:[#allocation5 + $0x37] sm:$0xff] }
 0x75d   : > { %4644 = vst.msk [vmem:[#allocation4 + $0x50] sm:$0xff] %vm2248_vm4, %v4612_v10  ;;  %v15582_v49 = vld [vmem:[#allocation5 + $0x38] sm:$0xff]  ;;  %v4670_v35 = vld [vmem:[#allocation4 + $0x40] ss:$2 sm:$0xff]  ;;  %v4686_v36 = vld [vmem:[#allocation4 + $0x41] ss:$2 sm:$0xff]  ;;  %v5133_v29 = vpack.c.bf16 %v15580_v58, %v15552_v57 }
 0x75e   : > { %v15586_v12 = vld [vmem:[#allocation5 + $0x39] sm:$0xff]  ;;  %v5243_v17 = vpack.c.bf16 %v15582_v49, %v15554_v5  ;;  %v4731_v60 = vmax.f32 %v4670_v35, %v4686_v36  ;;  %v13405_v5 = vld [vmem:[#allocation7 + $0xf8] sm:$0xff] }
 0x762   : > { %v4517_v1 = vpop.f32.mrf.mxu3 }
 0x763   : > { %v4613_v21 = vadd.f32 %v4581_v2, %v4517_v1 }
 0x765   : > { %4645 = vst.msk [vmem:[#allocation4 + $0x58] sm:$0xff] %vm2248_vm4, %v4613_v21  ;;  %v4589_v21 = vld [vmem:[#allocation4 + $0x98] sm:$0xff] }
 0x767   : > { %10929 = vmatmul.msk.bf16.gmra.mxu3 %vm1394_vm3, %v15441_v51  ;;  %v5353_v51 = vpack.c.bf16 %v15586_v12, %v15584_v11  ;;  %v13400_v11 = vld [vmem:[#allocation7 + $0xd0] sm:$0xff] }
 0x76a   : > { %v4520_v25 = vpop.f32.mrf.mxu3 }
 0x76b   : > { %v4614_v4 = vadd.f32 %v4582_v13, %v4520_v25 }
 0x76c   : > { %v4702_v18 = vld [vmem:[#allocation4 + $0x50] ss:$2 sm:$0xff]  ;;  %v4718_v6 = vld [vmem:[#allocation4 + $0x51] ss:$2 sm:$0xff] }
 0x76d   : > { %v4739_v0 = vmax.f32 %v4702_v18, %v4718_v6  ;;  %4646 = vst.msk [vmem:[#allocation4 + $0x60] sm:$0xff] %vm2248_vm4, %v4614_v4  ;;  %v4590_v6 = vld [vmem:[#allocation4 + $0xa0] sm:$0xff] }
 0x76f   : > { %v4747_v50 = vmax.f32 %v4731_v60, %v4739_v0 }
 0x771   : > { %v4759_v41 = vadd.f32 %v15544_v3, %v4747_v50 }
 0x772   : > { %v4522_v38 = vpop.f32.mrf.mxu3 }
 0x773   : > { %v4767_v47 = vmax.f32 %v4759_v41, 0.0  ;;  %v4615_v48 = vadd.f32 %v4583_v37, %v4522_v38 }
 0x775   : > { %4806 = vst.msk [vmem:[#allocation5 + $0x50] sm:$0xff] %vm2248_vm4, %v4767_v47 }
 0x776   : > { %4647 = vst.msk [vmem:[#allocation4 + $0x68] sm:$0xff] %vm2248_vm4, %v4615_v48 }
 0x777   : > { %10930 = vmatmul.msk.bf16.gmra.mxu3 %vm1394_vm3, %v4415_v23 }
 0x77a   : > { %v4525_v14 = vpop.f32.mrf.mxu3 }
 0x77b   : > { %v4616_v31 = vadd.f32 %v4584_v30, %v4525_v14 }
 0x77c   : > { %v15599_v39 = vld [vmem:[#allocation5 + $0x4f] sm:$0xff] }
 0x77d   : > { %v15601_v40 = vld [vmem:[#allocation5 + $0x50] sm:$0xff]  ;;  %4648 = vst.msk [vmem:[#allocation4 + $0x70] sm:$0xff] %vm2248_vm4, %v4616_v31  ;;  %v15606_v9 = vpack.c.bf16 %v15599_v39, %v15580_v58  ;;  %v4672_v15 = vld [vmem:[#allocation4 + $0x60] ss:$2 sm:$0xff]  ;;  %v4688_v61 = vld [vmem:[#allocation4 + $0x61] ss:$2 sm:$0xff] }
 0x77e   : > { %v15610_v53 = vpack.c.bf16 %v15601_v40, %v15582_v49  ;;  %v4732_v54 = vmax.f32 %v4672_v15, %v4688_v61  ;;  %v15621_v59 = vld [vmem:[#allocation5 + $0x51] sm:$0xff]  ;;  %v13409_v49 = vld [vmem:[#allocation7 + $0x118] sm:$0xff] }
 0x77f   : > { %10948 = vmatmul.msk.bf16.gmra.mxu1 %vm2248_vm4, %v15606_v9  ;;  %v15626_v10 = vpack.c.bf16 %v15621_v59, %v15586_v12  ;;  %v13404_v12 = vld [vmem:[#allocation7 + $0xf0] sm:$0xff] }
 0x780   : > { %10968 = vmatmul.msk.bf16.gmra.mxu2 %vm2248_vm4, %v15610_v53 }
 0x782   : > { %v4527_v55 = vpop.f32.mrf.mxu3 }
 0x783   : > { %v4617_v16 = vadd.f32 %v4585_v52, %v4527_v55  ;;  %v4592_v55 = vld [vmem:[#allocation4 + $0xb0] sm:$0xff] }
 0x785   : > { %4649 = vst.msk [vmem:[#allocation4 + $0x78] sm:$0xff] %vm2248_vm4, %v4617_v16 }
 0x787   : > { %10987 = vmatmul.msk.bf16.vlgmr.msra.gmra.mxu3 %vm2248_vm4, %v5023_v62 }
 0x78a   : > { %v4530_v63 = vpop.f32.mrf.mxu3 }
 0x78b   : > { %v4618_v44 = vadd.f32 %v4586_v24, %v4530_v63  ;;  %v11297_v24 = vld [vmem:[%s19377_s7 + $0x68] sm:$0xf] }
 0x78c   : > { %v4704_v45 = vld [vmem:[#allocation4 + $0x70] ss:$2 sm:$0xff]  ;;  %v4720_v27 = vld [vmem:[#allocation4 + $0x71] ss:$2 sm:$0xff] }
 0x78d   : > { %v4740_v7 = vmax.f32 %v4704_v45, %v4720_v27  ;;  %4650 = vst.msk [vmem:[#allocation4 + $0x80] sm:$0xff] %vm2248_vm4, %v4618_v44  ;;  %v13425_v44 = vld [vmem:[%s19377_s7 + $0x74] sm:$0xf0] }
 0x78e   : > { %v11298_v45 = vor.u32 %v13425_v44, %v11297_v24  ;;  %v4598_v24 = vld [vmem:[#allocation4 + $0xe0] sm:$0xff] }
 0x78f   : > { %v4748_v20 = vmax.f32 %v4732_v54, %v4740_v7  ;;  %v4593_v7 = vld [vmem:[#allocation4 + $0xb8] sm:$0xff] }
 0x790   : > { %6318 = vmatpush.bf16.msrb.mxu0 %v11298_v45 }
 0x791   : > { %v4760_v42 = vadd.f32 %v15544_v3, %v4748_v20 }
 0x792   : > { %v4532_v32 = vpop.f32.mrf.mxu3 }
 0x793   : > { %v4768_v22 = vmax.f32 %v4760_v42, 0.0  ;;  %v4619_v56 = vadd.f32 %v4587_v46, %v4532_v32 }
 0x795   : > { %4807 = vst.msk [vmem:[#allocation5 + $0x68] sm:$0xff] %vm2248_vm4, %v4768_v22 }
 0x796   : > { %4651 = vst.msk [vmem:[#allocation4 + $0x88] sm:$0xff] %vm2248_vm4, %v4619_v56 }
 0x797   : > { %10988 = vmatmul.msk.bf16.gmra.mxu3 %vm2248_vm4, %v15626_v10 }
 0x79a   : > { %v4535_v43 = vpop.f32.mrf.mxu3 }
 0x79b   : > { %v4620_v1 = vadd.f32 %v4588_v34, %v4535_v43  ;;  %v4594_v43 = vld [vmem:[#allocation4 + $0xc0] sm:$0xff] }
 0x79c   : > { %v15633_v35 = vld [vmem:[#allocation5 + $0x67] sm:$0xff] }
 0x79d   : > { %4652 = vst.msk [vmem:[#allocation4 + $0x90] sm:$0xff] %vm2248_vm4, %v4620_v1  ;;  %v15635_v36 = vld [vmem:[#allocation5 + $0x68] sm:$0xff]  ;;  %v5134_v60 = vpack.c.bf16 %v15633_v35, %v15599_v39  ;;  %v13407_v39 = vld [vmem:[#allocation7 + $0x108] sm:$0xff] }
 0x79e   : > { %v15637_v25 = vld [vmem:[#allocation5 + $0x69] sm:$0xff]  ;;  %v5244_v0 = vpack.c.bf16 %v15635_v36, %v15601_v40 }
 0x79f   : > { %v4674_v13 = vld [vmem:[#allocation4 + $0x80] ss:$2 sm:$0xff]  ;;  %v4690_v4 = vld [vmem:[#allocation4 + $0x81] ss:$2 sm:$0xff]  ;;  %v5354_v50 = vpack.c.bf16 %v15637_v25, %v15621_v59 }
 0x7a0   : > { %v4733_v38 = vmax.f32 %v4674_v13, %v4690_v4 }
 0x7a2   : > { %v4537_v2 = vpop.f32.mrf.mxu3 }
 0x7a3   : > { %v4621_v19 = vadd.f32 %v4589_v21, %v4537_v2 }
 0x7a5   : > { %4653 = vst.msk [vmem:[#allocation4 + $0x98] sm:$0xff] %vm2248_vm4, %v4621_v19 }
 0x7aa   : > { %v4540_v18 = vpop.f32.mrf.mxu3 }
 0x7ab   : > { %v4622_v33 = vadd.f32 %v4590_v6, %v4540_v18  ;;  %v4595_v6 = vld [vmem:[#allocation4 + $0xc8] sm:$0xff] }
 0x7ac   : > { %v4706_v26 = vld [vmem:[#allocation4 + $0x90] ss:$2 sm:$0xff]  ;;  %v4722_v41 = vld [vmem:[#allocation4 + $0x91] ss:$2 sm:$0xff] }
 0x7ad   : > { %v4741_v37 = vmax.f32 %v4706_v26, %v4722_v41  ;;  %4654 = vst.msk [vmem:[#allocation4 + $0xa0] sm:$0xff] %vm2248_vm4, %v4622_v33 }
 0x7af   : > { %v4749_v47 = vmax.f32 %v4733_v38, %v4741_v37  ;;  %v4596_v38 = vld [vmem:[#allocation4 + $0xd0] sm:$0xff] }
 0x7b1   : > { %v4761_v48 = vadd.f32 %v15544_v3, %v4749_v47  ;;  %v13389_v47 = vld [vmem:[#allocation7 + $0x78] sm:$0xff] }
 0x7b2   : > { %v4542_v23 = vpop.f32.mrf.mxu3  ;;  %5186 = vmatpush.bf16.msra.mxu1 %v13389_v47  ;;  %v13386_v47 = vld [vmem:[#allocation7 + $0x60] sm:$0xff] }
 0x7b3   : > { %v4769_v14 = vmax.f32 %v4761_v48, 0.0  ;;  %v4623_v30 = vadd.f32 %v4591_v28, %v4542_v23  ;;  %v13393_v48 = vld [vmem:[#allocation7 + $0x98] sm:$0xff] }
 0x7b4   : > { %v13397_v23 = vld [vmem:[#allocation7 + $0xb8] sm:$0xff]  ;;  %5296 = vmatpush.bf16.msrb.mxu2 %v13393_v48 }
 0x7b5   : > { %4808 = vst.msk [vmem:[#allocation5 + $0x80] sm:$0xff] %vm2248_vm4, %v4769_v14  ;;  %v4597_v14 = vld [vmem:[#allocation4 + $0xd8] sm:$0xff]  ;;  %5406 = vmatpush.bf16.msrb.mxu3 %v13397_v23 }
 0x7b6   : > { %4655 = vst.msk [vmem:[#allocation4 + $0xa8] sm:$0xff] %vm2248_vm4, %v4623_v30 }
 0x7ba   : > { %v4545_v31 = vpop.f32.mrf.mxu3 }
 0x7bb   : > { %v4624_v52 = vadd.f32 %v4592_v55, %v4545_v31 }
 0x7bc   : > { %v15649_v8 = vld [vmem:[#allocation5 + $0x7f] sm:$0xff]  ;;  %v4877_v27 = vpop.f32.mrf.mxu1 }
 0x7bd   : > { %v15651_v16 = vld [vmem:[#allocation5 + $0x80] sm:$0xff]  ;;  %4656 = vst.msk [vmem:[#allocation4 + $0xb0] sm:$0xff] %vm2248_vm4, %v4624_v52  ;;  %v15658_v15 = vpack.c.bf16 %v15649_v8, %v15633_v35  ;;  %v13398_v35 = vld [vmem:[#allocation7 + $0xc0] sm:$0xff] }
 0x7be   : > { %v15653_v62 = vld [vmem:[#allocation5 + $0x81] sm:$0xff]  ;;  %v15662_v61 = vpack.c.bf16 %v15651_v16, %v15635_v36  ;;  %v13402_v36 = vld [vmem:[#allocation7 + $0xe0] sm:$0xff] }
 0x7bf   : > { %v15666_v63 = vpack.c.bf16 %v15653_v62, %v15637_v25  ;;  %10949 = vmatmul.msk.bf16.gmra.mxu1 %vm2248_vm4, %v15658_v15  ;;  %v4676_v46 = vld [vmem:[#allocation4 + $0xa0] ss:$2 sm:$0xff]  ;;  %v4692_v22 = vld [vmem:[#allocation4 + $0xa1] ss:$2 sm:$0xff]  ;;  %v13406_v25 = vld [vmem:[#allocation7 + $0x100] sm:$0xff] }
 0x7c0   : > { %10969 = vmatmul.msk.bf16.gmra.mxu2 %vm2248_vm4, %v15662_v61  ;;  %v4734_v21 = vmax.f32 %v4676_v46, %v4692_v22  ;;  %v4599_v22 = vld [vmem:[#allocation4 + $0xe8] sm:$0xff] }
 0x7c1   : > { %10989 = vmatmul.msk.bf16.gmra.mxu3 %vm2248_vm4, %v15666_v63 }
 0x7c2   : > { %v4547_v54 = vpop.f32.mrf.mxu3 }
 0x7c3   : > { %v4971_v20 = vpop.f32.mrf.mxu2  ;;  %v4625_v42 = vadd.f32 %v4593_v7, %v4547_v54 }
 0x7c4   : > { %v15680_v32 = vadd.f32 %v4971_v20, %v4877_v27 }
 0x7c5   : > { %4657 = vst.msk [vmem:[#allocation4 + $0xb8] sm:$0xff] %vm2248_vm4, %v4625_v42 }
 0x7ca   : > { %v4550_v56 = vpop.f32.mrf.mxu3 }
 0x7cb   : > { %v4626_v34 = vadd.f32 %v4594_v43, %v4550_v56 }
 0x7cc   : > { %v4708_v1 = vld [vmem:[#allocation4 + $0xb0] ss:$2 sm:$0xff]  ;;  %v4724_v2 = vld [vmem:[#allocation4 + $0xb1] ss:$2 sm:$0xff] }
 0x7cd   : > { %v4742_v19 = vmax.f32 %v4708_v1, %v4724_v2  ;;  %4658 = vst.msk [vmem:[#allocation4 + $0xc0] sm:$0xff] %vm2248_vm4, %v4626_v34  ;;  %v13388_v34 = vld [vmem:[#allocation7 + $0x70] sm:$0xff] }
 0x7ce   : > { %v13392_v1 = vld [vmem:[#allocation7 + $0x90] sm:$0xff]  ;;  %5187 = vmatpush.bf16.msra.mxu1 %v13388_v34 }
 0x7cf   : > { %v4750_v13 = vmax.f32 %v4734_v21, %v4742_v19  ;;  %v13396_v2 = vld [vmem:[#allocation7 + $0xb0] sm:$0xff]  ;;  %5297 = vmatpush.bf16.msrb.mxu2 %v13392_v1  ;;  %v13387_v21 = vld [vmem:[#allocation7 + $0x68] sm:$0xff] }
 0x7d0   : > { %v13391_v19 = vld [vmem:[#allocation7 + $0x88] sm:$0xff]  ;;  %5407 = vmatpush.bf16.msrb.mxu3 %v13396_v2 }
 0x7d1   : > { %v4762_v4 = vadd.f32 %v15544_v3, %v4750_v13  ;;  %v13395_v13 = vld [vmem:[#allocation7 + $0xa8] sm:$0xff] }
 0x7d2   : > { %v4552_v18 = vpop.f32.mrf.mxu3  ;;  %5188 = vmatpush.bf16.msra.mxu1 %v13387_v21 }
 0x7d3   : > { %v4770_v33 = vmax.f32 %v4762_v4, 0.0  ;;  %v4627_v26 = vadd.f32 %v4595_v6, %v4552_v18  ;;  %v15693_v4 = vpop.f32.mrf.mxu1  ;;  %v15695_v18 = vpop.f32.mrf.mxu2  ;;  %5298 = vmatpush.bf16.msrb.mxu2 %v13391_v19 }
 0x7d4   : > { %5408 = vmatpush.bf16.msrb.mxu3 %v13395_v13 }
 0x7d5   : > { %4809 = vst.msk [vmem:[#allocation5 + $0x98] sm:$0xff] %vm2248_vm4, %v4770_v33  ;;  %v4600_v33 = vld [vmem:[#allocation4 + $0xf0] sm:$0xff] }
 0x7d6   : > { %4659 = vst.msk [vmem:[#allocation4 + $0xc8] sm:$0xff] %vm2248_vm4, %v4627_v26  ;;  %5189 = vmatpush.bf16.msra.mxu1 %v13386_v47 }
 0x7da   : > { %v4555_v41 = vpop.f32.mrf.mxu3 }
 0x7db   : > { %v4628_v37 = vadd.f32 %v4596_v38, %v4555_v41 }
 0x7dc   : > { %v15697_v26 = vld [vmem:[#allocation5 + $0x97] sm:$0xff] }
 0x7dd   : > { %4660 = vst.msk [vmem:[#allocation4 + $0xd0] sm:$0xff] %vm2248_vm4, %v4628_v37  ;;  %v4678_v31 = vld [vmem:[#allocation4 + $0xc0] ss:$2 sm:$0xff]  ;;  %v4694_v55 = vld [vmem:[#allocation4 + $0xc1] ss:$2 sm:$0xff]  ;;  %v15699_v38 = vld [vmem:[#allocation5 + $0x98] sm:$0xff]  ;;  %v5135_v40 = vpack.c.bf16 %v15697_v26, %v15649_v8 }
 0x7de   : > { %v4735_v54 = vmax.f32 %v4678_v31, %v4694_v55  ;;  %v15701_v37 = vld [vmem:[#allocation5 + $0x99] sm:$0xff]  ;;  %v13390_v55 = vld [vmem:[#allocation7 + $0x80] sm:$0xff]  ;;  %v5245_v59 = vpack.c.bf16 %v15699_v38, %v15651_v16 }
 0x7df   : > { %5299 = vmatpush.bf16.msrb.mxu2 %v13390_v55 }
 0x7e2   : > { %v4557_v28 = vpop.f32.mrf.mxu3 }
 0x7e3   : > { %v4629_v30 = vadd.f32 %v4597_v14, %v4557_v28  ;;  %5627 = vmatpush.bf16.msra.mxu2 %v13405_v5  ;;  %v13472_v5 = vld [vmem:[%s19377_s7 + $0x1ec] sm:$0xf0] }
 0x7e5   : > { %4661 = vst.msk [vmem:[#allocation4 + $0xd8] sm:$0xff] %vm2248_vm4, %v4629_v30 }
 0x7e7   : > { %5628 = vmatpush.bf16.msra.mxu2 %v13404_v12  ;;  %v11227_v12 = vld [vmem:[%s19377_s7 + $0x1f0] sm:$0xf0] }
 0x7ea   : > { %v4560_v52 = vpop.f32.mrf.mxu3 }
 0x7eb   : > { %v4630_v44 = vadd.f32 %v4598_v24, %v4560_v52  ;;  %v13394_v52 = vld [vmem:[#allocation7 + $0xa0] sm:$0xff] }
 0x7ec   : > { %v4710_v45 = vld [vmem:[#allocation4 + $0xd0] ss:$2 sm:$0xff]  ;;  %v4726_v27 = vld [vmem:[#allocation4 + $0xd1] ss:$2 sm:$0xff]  ;;  %5409 = vmatpush.bf16.msrb.mxu3 %v13394_v52 }
 0x7ed   : > { %v4743_v7 = vmax.f32 %v4710_v45, %v4726_v27  ;;  %4662 = vst.msk [vmem:[#allocation4 + $0xe0] sm:$0xff] %vm2248_vm4, %v4630_v44  ;;  %v4601_v45 = vld [vmem:[#allocation4 + $0xf8] sm:$0xff] }
 0x7ef   : > { %v4751_v20 = vmax.f32 %v4735_v54, %v4743_v7 }
 0x7f0   : > { %5737 = vmatpush.bf16.msra.mxu3 %v13409_v49  ;;  %v13470_v49 = vld [vmem:[%s19377_s7 + $0x1e4] sm:$0xf] }
 0x7f1   : > { %v4763_v42 = vadd.f32 %v15544_v3, %v4751_v20 }
 0x7f2   : > { %v4562_v46 = vpop.f32.mrf.mxu3 }
 0x7f3   : > { %v4771_v56 = vmax.f32 %v4763_v42, 0.0  ;;  %v4631_v43 = vadd.f32 %v4599_v22, %v4562_v46 }
 0x7f5   : > { %4810 = vst.msk [vmem:[#allocation5 + $0xb0] sm:$0xff] %vm2248_vm4, %v4771_v56 }
 0x7f6   : > { %4663 = vst.msk [vmem:[#allocation4 + $0xe8] sm:$0xff] %vm2248_vm4, %v4631_v43 }
 0x7fa   : > { %v4565_v6 = vpop.f32.mrf.mxu3 }
 0x7fb   : > { %v4632_v41 = vadd.f32 %v4600_v33, %v4565_v6 }
 0x7fc   : > { %v15703_v48 = vld [vmem:[#allocation5 + $0xaf] sm:$0xff]  ;;  %v4882_v24 = vpop.f32.mrf.mxu1 }
 0x7fd   : > { %v15705_v23 = vld [vmem:[#allocation5 + $0xb0] sm:$0xff]  ;;  %4664 = vst.msk [vmem:[#allocation4 + $0xf0] sm:$0xff] %vm2248_vm4, %v4632_v41  ;;  %v15712_v14 = vpack.c.bf16 %v15703_v48, %v15697_v26  ;;  %v4680_v20 = vld [vmem:[#allocation4 + $0xe0] ss:$2 sm:$0xff]  ;;  %v4696_v42 = vld [vmem:[#allocation4 + $0xe1] ss:$2 sm:$0xff] }
 0x7fe   : > { %v15707_v28 = vld [vmem:[#allocation5 + $0xb1] sm:$0xff]  ;;  %v15716_v30 = vpack.c.bf16 %v15705_v23, %v15699_v38  ;;  %v4736_v34 = vmax.f32 %v4680_v20, %v4696_v42 }
 0x7ff   : > { %v15720_v31 = vpack.c.bf16 %v15707_v28, %v15701_v37  ;;  %10950 = vmatmul.msk.bf16.gmra.mxu1 %vm2248_vm4, %v15712_v14 }
 0x800   : > { %10970 = vmatmul.msk.bf16.gmra.mxu2 %vm2248_vm4, %v15716_v30 }
 0x801   : > { %10990 = vmatmul.msk.bf16.gmra.mxu3 %vm2248_vm4, %v15720_v31 }
 0x802   : > { %v4567_v44 = vpop.f32.mrf.mxu3 }
 0x803   : > { %v4976_v27 = vpop.f32.mrf.mxu2  ;;  %v4633_v54 = vadd.f32 %v4601_v45, %v4567_v44 }
 0x804   : > { %v5001_v7 = vadd.f32 %v4976_v27, %v4882_v24  ;;  %v15777_v16 = vpop.f32.mrf.mxu1 }
 0x805   : > { %4665 = vst.msk [vmem:[#allocation4 + $0xf8] sm:$0xff] %vm2248_vm4, %v4633_v54 }
 0x80a   : > { %v5081_v46 = vpop.f32.mrf.mxu3 }
 0x80b   : > { %v15730_v22 = vadd.f32 %v5081_v46, %v15680_v32 }
 0x80c   : > { %v4712_v56 = vld [vmem:[#allocation4 + $0xf0] ss:$2 sm:$0xff]  ;;  %v4728_v43 = vld [vmem:[#allocation4 + $0xf1] ss:$2 sm:$0xff] }
 0x80d   : > { %v4744_v1 = vmax.f32 %v4712_v56, %v4728_v43 }
 0x80f   : > { %v4752_v2 = vmax.f32 %v4736_v34, %v4744_v1  ;;  %11007 = vmatmul.msk.bf16.vlgmr.msra.gmra.mxu1 %vm2248_vm4, %v5133_v29  ;;  %v13408_v29 = vld [vmem:[#allocation7 + $0x110] sm:$0xff] }
 0x810   : > { %11027 = vmatmul.msk.bf16.vlgmr.msrb.gmra.mxu2 %vm2248_vm4, %v5243_v17  ;;  %v13399_v17 = vld [vmem:[#allocation7 + $0xc8] sm:$0xff]  ;;  %5738 = vmatpush.bf16.msra.mxu3 %v13408_v29  ;;  %v11233_v29 = vld [vmem:[%s19377_s7 + $0x1e8] sm:$0xf] }
 0x811   : > { %11047 = vmatmul.msk.bf16.vlgmr.msrb.gmra.mxu3 %vm2248_vm4, %v5353_v51  ;;  %v4764_v32 = vadd.f32 %v15544_v3, %v4752_v2  ;;  %v13401_v3 = vld [vmem:[#allocation7 + $0xd8] sm:$0xff]  ;;  %v13403_v51 = vld [vmem:[#allocation7 + $0xe8] sm:$0xff] }
 0x812   : > { %v15745_v21 = vpop.f32.mrf.mxu3  ;;  %5517 = vmatpush.bf16.msrb.mxu1 %v13401_v3  ;;  %5629 = vmatpush.bf16.msra.mxu2 %v13403_v51  ;;  %v11225_v3 = vld [vmem:[%s19377_s7 + $0x1e0] sm:$0xf]  ;;  %v11230_v51 = vor.u32 %v13470_v49, %v11227_v12 }
 0x813   : > { %v4772_v19 = vmax.f32 %v4764_v32, 0.0  ;;  %v11161_v12 = vld [vmem:[%s19377_s7 + $0x160] sm:$0xf] }
 0x814   : > { %5739 = vmatpush.bf16.msra.mxu3 %v13407_v39 }
 0x815   : > { %4811 = vst.msk [vmem:[#allocation5 + $0xc8] sm:$0xff] %vm2248_vm4, %v4772_v19 }
 0x816   : > { %5518 = vmatpush.bf16.msrb.mxu1 %v13400_v11  ;;  %5630 = vmatpush.bf16.msra.mxu2 %v13402_v36  ;;  %v11226_v11 = vor.u32 %v13472_v5, %v11225_v3  ;;  %v11209_v36 = vld [vmem:[%s19377_s7 + $0x1c0] sm:$0xf]  ;;  %v11185_v3 = vld [vmem:[%s19377_s7 + $0x188] sm:$0xf]  ;;  %v13461_v5 = vld [vmem:[%s19377_s7 + $0x194] sm:$0xf0] }
 0x818   : > { %5740 = vmatpush.bf16.msra.mxu3 %v13406_v25  ;;  %v13468_v25 = vld [vmem:[%s19377_s7 + $0x1cc] sm:$0xf0] }
 0x81a   : > { %v5086_v57 = vpop.f32.mrf.mxu3  ;;  %5519 = vmatpush.bf16.msrb.mxu1 %v13399_v17  ;;  %v13473_v17 = vld [vmem:[%s19377_s7 + $0x1f4] sm:$0xf0]  ;;  %6089 = vmatpush.bf16.msrb.mxu2 %v11230_v51 }
 0x81b   : > { %v15748_v58 = vadd.f32 %v5086_v57, %v5001_v7  ;;  %v11234_v39 = vor.u32 %v13473_v17, %v11233_v29  ;;  %v13456_v29 = vld [vmem:[%s19377_s7 + $0x16c] sm:$0xf0]  ;;  %v13454_v17 = vld [vmem:[%s19377_s7 + $0x164] sm:$0xf] }
 0x81c   : > { %v5132_v13 = vld [vmem:[#allocation5 + $0xc7] sm:$0xff] }
 0x81d   : > { %v5242_v6 = vld [vmem:[#allocation5 + $0xc8] sm:$0xff]  ;;  %v5136_v41 = vpack.c.bf16 %v5132_v13, %v15703_v48  ;;  %6102 = vmatpush.bf16.msrb.mxu3 %v11234_v39  ;;  %v11162_v39 = vor.u32 %v13456_v29, %v11161_v12  ;;  %v11129_v12 = vld [vmem:[%s19377_s7 + $0x120] sm:$0xf]  ;;  %v13448_v29 = vld [vmem:[%s19377_s7 + $0x12c] sm:$0xf0] }
 0x81e   : > { %5520 = vmatpush.bf16.msrb.mxu1 %v13398_v35  ;;  %v5352_v33 = vld [vmem:[#allocation5 + $0xc9] sm:$0xff]  ;;  %v5246_v38 = vpack.c.bf16 %v5242_v6, %v15705_v23 }
 0x81f   : > { %11008 = vmatmul.msk.bf16.gmra.mxu1 %vm2248_vm4, %v5134_v60  ;;  %v5355_v60 = vpack.c.bf16 %v15701_v37, %v15653_v62  ;;  %v15779_v62 = vpop.f32.mrf.mxu2  ;;  %v5356_v37 = vpack.c.bf16 %v5352_v33, %v15707_v28 }
 0x820   : > { %11028 = vmatmul.msk.bf16.gmra.mxu2 %vm2248_vm4, %v5244_v0  ;;  %v11281_v0 = vld [vmem:[%s19377_s7 + $0x48] sm:$0xf] }
 0x821   : > { %11048 = vmatmul.msk.bf16.gmra.mxu3 %vm2248_vm4, %v5354_v50  ;;  %v13421_v50 = vld [vmem:[%s19377_s7 + $0x54] sm:$0xf0] }
 0x822   : > { %v11282_v8 = vor.u32 %v13421_v50, %v11281_v0  ;;  %v15781_v26 = vpop.f32.mrf.mxu3  ;;  %6076 = vmatpush.bf16.msra.mxu1 %v11226_v11  ;;  %v11210_v0 = vor.u32 %v13468_v25, %v11209_v36  ;;  %v11211_v50 = vld [vmem:[%s19377_s7 + $0x1d0] sm:$0xf0]  ;;  %v11186_v11 = vor.u32 %v13461_v5, %v11185_v3  ;;  %v11169_v25 = vld [vmem:[%s19377_s7 + $0x168] sm:$0xf]  ;;  %v13505_v3 = vld [vmem:[%s19377_s7 + $0x2f4] sm:$0xf0] }
 0x823   : > { %v11163_v36 = vld [vmem:[%s19377_s7 + $0x170] sm:$0xf0] }
 0x824   : > { %6319 = vmatpush.bf16.msrb.mxu0 %v11282_v8  ;;  %v11217_v8 = vld [vmem:[%s19377_s7 + $0x1c8] sm:$0xf] }
 0x826   : > { %6077 = vmatpush.bf16.msra.mxu1 %v11210_v0 }
 0x82f   : > { %11009 = vmatmul.msk.bf16.gmra.mxu1 %vm2248_vm4, %v5135_v40 }
 0x830   : > { %11029 = vmatmul.msk.bf16.gmra.mxu2 %vm2248_vm4, %v5245_v59 }
 0x831   : > { %11049 = vmatmul.msk.bf16.gmra.mxu3 %vm2248_vm4, %v5355_v60  ;;  %v13466_v60 = vld [vmem:[%s19377_s7 + $0x1c4] sm:$0xf] }
 0x83c   : > { %v4887_v47 = vpop.f32.mrf.mxu1 }
 0x83f   : > { %11010 = vmatmul.msk.bf16.gmra.mxu1 %vm2248_vm4, %v5136_v41  ;;  %v11193_v41 = vld [vmem:[%s19377_s7 + $0x1a0] sm:$0xf] }
 0x840   : > { %11030 = vmatmul.msk.bf16.gmra.mxu2 %vm2248_vm4, %v5246_v38  ;;  %v13464_v38 = vld [vmem:[%s19377_s7 + $0x1ac] sm:$0xf0] }
 0x841   : > { %11050 = vmatmul.msk.bf16.gmra.mxu3 %vm2248_vm4, %v5356_v37  ;;  %v13462_v37 = vld [vmem:[%s19377_s7 + $0x1a4] sm:$0xf] }
 0x843   : > { %v4981_v55 = vpop.f32.mrf.mxu2 }
 0x844   : > { %v5003_v52 = vadd.f32 %v4981_v55, %v4887_v47  ;;  %v5091_v24 = vpop.f32.mrf.mxu3  ;;  %v11194_v47 = vor.u32 %v13464_v38, %v11193_v41  ;;  %v11195_v55 = vld [vmem:[%s19377_s7 + $0x1b0] sm:$0xf0]  ;;  %v11145_v41 = vld [vmem:[%s19377_s7 + $0x140] sm:$0xf] }
 0x846   : > { %v15789_v44 = vadd.f32 %v5091_v24, %v5003_v52  ;;  %v11201_v52 = vld [vmem:[%s19377_s7 + $0x1a8] sm:$0xf]  ;;  %v13465_v24 = vld [vmem:[%s19377_s7 + $0x1b4] sm:$0xf0]  ;;  %6078 = vmatpush.bf16.msra.mxu1 %v11194_v47  ;;  %v13450_v47 = vld [vmem:[%s19377_s7 + $0x144] sm:$0xf] }
 0x84c   : > { %v15813_v48 = vpop.f32.mrf.mxu3 }
 0x84f   : > { %11067 = vmatmul.msk.bf16.vlgmr.msrb.gmra.mxu1 %vm2248_vm4, %v15606_v9  ;;  %v15809_v9 = vpop.f32.mrf.mxu1 }
 0x850   : > { %11087 = vmatmul.msk.bf16.vlgmr.msra.gmra.mxu2 %vm2248_vm4, %v15610_v53  ;;  %v15811_v53 = vpop.f32.mrf.mxu2 }
 0x851   : > { %11107 = vmatmul.msk.bf16.vlgmr.msra.gmra.mxu3 %vm2248_vm4, %v15626_v10  ;;  %v5463_v10 = vld [vmem:[#allocation5 + $0xdf] sm:$0xff] }
 0x85f   : > { %11068 = vmatmul.msk.bf16.gmra.mxu1 %vm2248_vm4, %v15658_v15  ;;  %v5573_v15 = vld [vmem:[#allocation5 + $0xe0] sm:$0xff] }
 0x860   : > { %11088 = vmatmul.msk.bf16.gmra.mxu2 %vm2248_vm4, %v15662_v61  ;;  %v5683_v61 = vld [vmem:[#allocation5 + $0xe1] sm:$0xff]  ;;  %v5577_v28 = vpack.c.bf16 %v5573_v15, %v5242_v6  ;;  %v11214_v6 = vor.u32 %v13466_v60, %v11211_v50  ;;  %v11202_v15 = vor.u32 %v13465_v24, %v11201_v52  ;;  %v13457_v60 = vld [vmem:[%s19377_s7 + $0x174] sm:$0xf0]  ;;  %v11166_v50 = vor.u32 %v13454_v17, %v11163_v36 }
 0x861   : > { %11108 = vmatmul.msk.bf16.gmra.mxu3 %vm2248_vm4, %v15666_v63  ;;  %v5467_v63 = vpack.c.bf16 %v5463_v10, %v5132_v13  ;;  %v5687_v45 = vpack.c.bf16 %v5683_v61, %v5352_v33  ;;  %v13469_v13 = vld [vmem:[%s19377_s7 + $0x1d4] sm:$0xf0]  ;;  %v11198_v10 = vor.u32 %v13462_v37, %v11195_v55  ;;  %v13452_v37 = vld [vmem:[%s19377_s7 + $0x14c] sm:$0xf0]  ;;  %v11147_v55 = vld [vmem:[%s19377_s7 + $0x150] sm:$0xf0]  ;;  %v11130_v36 = vor.u32 %v13448_v29, %v11129_v12 }
 0x862   : > { %v11218_v33 = vor.u32 %v13469_v13, %v11217_v8  ;;  %6090 = vmatpush.bf16.msrb.mxu2 %v11214_v6  ;;  %v11170_v8 = vor.u32 %v13457_v60, %v11169_v25  ;;  %v11265_v6 = vld [vmem:[%s19377_s7 + $0x28] sm:$0xf]  ;;  %v11146_v52 = vor.u32 %v13452_v37, %v11145_v41  ;;  %v11150_v24 = vor.u32 %v13450_v47, %v11147_v55  ;;  %v13446_v17 = vld [vmem:[%s19377_s7 + $0x124] sm:$0xf]  ;;  %v11131_v25 = vld [vmem:[%s19377_s7 + $0x130] sm:$0xf0] }
 0x863   : > { %v11137_v60 = vld [vmem:[%s19377_s7 + $0x128] sm:$0xf]  ;;  %v13501_v41 = vld [vmem:[%s19377_s7 + $0x2d4] sm:$0xf0]  ;;  %v13444_v47 = vld [vmem:[%s19377_s7 + $0x10c] sm:$0xf0] }
 0x864   : > { %6103 = vmatpush.bf16.msrb.mxu3 %v11218_v33  ;;  %v13417_v33 = vld [vmem:[%s19377_s7 + $0x34] sm:$0xf0]  ;;  %v13442_v55 = vld [vmem:[%s19377_s7 + $0x104] sm:$0xf] }
 0x865   : > { %v11266_v38 = vor.u32 %v13417_v33, %v11265_v6  ;;  %v11473_v33 = vld [vmem:[%s19377_s7 + $0x2c8] sm:$0xf] }
 0x866   : > { %6091 = vmatpush.bf16.msrb.mxu2 %v11198_v10  ;;  %v11153_v10 = vld [vmem:[%s19377_s7 + $0x148] sm:$0xf]  ;;  %v11474_v37 = vor.u32 %v13501_v41, %v11473_v33 }
 0x867   : > { %6320 = vmatpush.bf16.msrb.mxu0 %v11266_v38  ;;  %v11113_v38 = vld [vmem:[%s19377_s7 + $0x100] sm:$0xf] }
 0x868   : > { %6104 = vmatpush.bf16.msrb.mxu3 %v11202_v15  ;;  %v13453_v15 = vld [vmem:[%s19377_s7 + $0x154] sm:$0xf0] }
 0x86c   : > { %6105 = vmatpush.bf16.msrb.mxu3 %v11186_v11 }
 0x86f   : > { %11069 = vmatmul.msk.bf16.gmra.mxu1 %vm2248_vm4, %v15712_v14 }
 0x870   : > { %11089 = vmatmul.msk.bf16.gmra.mxu2 %vm2248_vm4, %v15716_v30  ;;  %6106 = vmatpush.bf16.msrb.mxu3 %v11170_v8  ;;  %v11134_v8 = vor.u32 %v13446_v17, %v11131_v25  ;;  %v11355_v25 = vld [vmem:[%s19377_s7 + $0xf0] sm:$0xf0] }
 0x871   : > { %11109 = vmatmul.msk.bf16.gmra.mxu3 %vm2248_vm4, %v15720_v31 }
 0x87c   : > { %v4892_v23 = vpop.f32.mrf.mxu1 }
 0x87f   : > { %11070 = vmatmul.msk.bf16.gmra.mxu1 %vm2248_vm4, %v5467_v63 }
 0x880   : > { %11090 = vmatmul.msk.bf16.gmra.mxu2 %vm2248_vm4, %v5577_v28  ;;  %v11177_v28 = vld [vmem:[%s19377_s7 + $0x180] sm:$0xf] }
 0x881   : > { %11110 = vmatmul.msk.bf16.gmra.mxu3 %vm2248_vm4, %v5687_v45  ;;  %v13460_v45 = vld [vmem:[%s19377_s7 + $0x18c] sm:$0xf0] }
 0x883   : > { %v4986_v14 = vpop.f32.mrf.mxu2 }
 0x884   : > { %v5005_v30 = vadd.f32 %v4986_v14, %v4892_v23  ;;  %v5096_v31 = vpop.f32.mrf.mxu3  ;;  %v15818_v27 = vpop.f32.mrf.mxu1  ;;  %v13458_v14 = vld [vmem:[%s19377_s7 + $0x184] sm:$0xf] }
 0x886   : > { %v15820_v54 = vadd.f32 %v5096_v31, %v5005_v30  ;;  %v11178_v30 = vor.u32 %v13460_v45, %v11177_v28  ;;  %v11179_v31 = vld [vmem:[%s19377_s7 + $0x190] sm:$0xf0]  ;;  %v11249_v28 = vld [vmem:[%s19377_s7 + $0x8] sm:$0xf] }
 0x887   : > { %v11182_v49 = vor.u32 %v13458_v14, %v11179_v31  ;;  %v11154_v14 = vor.u32 %v13453_v15, %v11153_v10  ;;  %v11489_v31 = vld [vmem:[%s19377_s7 + $0x2e8] sm:$0xf]  ;;  %v11114_v10 = vor.u32 %v13444_v47, %v11113_v38 }
 0x888   : > { %6079 = vmatpush.bf16.msra.mxu1 %v11178_v30  ;;  %v13413_v30 = vld [vmem:[%s19377_s7 + $0x14] sm:$0xf0]  ;;  %v11490_v11 = vor.u32 %v13505_v3, %v11489_v31 }
 0x889   : > { %6092 = vmatpush.bf16.msrb.mxu2 %v11182_v49  ;;  %v11250_v49 = vor.u32 %v13413_v30, %v11249_v28  ;;  %6107 = vmatpush.bf16.msrb.mxu3 %v11154_v14  ;;  %v11121_v28 = vld [vmem:[%s19377_s7 + $0x108] sm:$0xf]  ;;  %v13445_v14 = vld [vmem:[%s19377_s7 + $0x114] sm:$0xf0]  ;;  %v13471_v30 = vld [vmem:[%s19377_s7 + $0x1ec] sm:$0xf] }
 0x88a   : > { %v11122_v3 = vor.u32 %v13445_v14, %v11121_v28  ;;  %v13493_v28 = vld [vmem:[%s19377_s7 + $0x294] sm:$0xf0]  ;;  %v13463_v14 = vld [vmem:[%s19377_s7 + $0x1ac] sm:$0xf] }
 0x88b   : > { %v15822_v7 = vpop.f32.mrf.mxu2  ;;  %6321 = vmatpush.bf16.msrb.mxu0 %v11250_v49  ;;  %v13440_v49 = vld [vmem:[%s19377_s7 + $0xec] sm:$0xf0] }
 0x88c   : > { %v15824_v20 = vpop.f32.mrf.mxu3  ;;  %v15826_v42 = vpop.f32.mrf.mxu1  ;;  %6080 = vmatpush.bf16.msra.mxu1 %v11162_v39 }
 0x88d   : > { %6093 = vmatpush.bf16.msrb.mxu2 %v11166_v50  ;;  %v13449_v50 = vld [vmem:[%s19377_s7 + $0x134] sm:$0xf0] }
 0x88e   : > { %v11138_v6 = vor.u32 %v13449_v50, %v11137_v60  ;;  %v11457_v60 = vld [vmem:[%s19377_s7 + $0x2a8] sm:$0xf] }
 0x88f   : > { %6560 = vmatpush.bf16.msra.mxu0 %v11490_v11 }
 0x890   : > { %6081 = vmatpush.bf16.msra.mxu1 %v11146_v52  ;;  %6108 = vmatpush.bf16.msrb.mxu3 %v11138_v6  ;;  %v11115_v52 = vld [vmem:[%s19377_s7 + $0x110] sm:$0xf0]  ;;  %v13497_v6 = vld [vmem:[%s19377_s7 + $0x2b4] sm:$0xf0] }
 0x891   : > { %6094 = vmatpush.bf16.msrb.mxu2 %v11150_v24  ;;  %v5219_v24 = vadd.f32 %v15826_v42, %v15730_v22  ;;  %v11118_v15 = vor.u32 %v13442_v55, %v11115_v52  ;;  %v11235_v22 = vld [vmem:[%s19377_s7 + $0x1f8] sm:$0xf0]  ;;  %v11353_v42 = vld [vmem:[%s19377_s7 + $0xe0] sm:$0xf]  ;;  %v11458_v33 = vor.u32 %v13497_v6, %v11457_v60  ;;  %v11339_v52 = vld [vmem:[%s19377_s7 + $0xd0] sm:$0xf0] }
 0x892   : > { %v11238_v29 = vor.u32 %v13471_v30, %v11235_v22  ;;  %v11354_v17 = vor.u32 %v13440_v49, %v11353_v42  ;;  %v11203_v42 = vld [vmem:[%s19377_s7 + $0x1b8] sm:$0xf0]  ;;  %v11321_v49 = vld [vmem:[%s19377_s7 + $0xa0] sm:$0xf]  ;;  %v11323_v60 = vld [vmem:[%s19377_s7 + $0xb0] sm:$0xf0] }
 0x893   : > { %v15828_v46 = vpop.f32.mrf.mxu2  ;;  %6561 = vmatpush.bf16.msra.mxu0 %v11474_v37  ;;  %v11337_v37 = vld [vmem:[%s19377_s7 + $0xc0] sm:$0xf]  ;;  %v13489_v6 = vld [vmem:[%s19377_s7 + $0x274] sm:$0xf0] }
 0x894   : > { %v15830_v56 = vpop.f32.mrf.mxu3  ;;  %v15832_v43 = vpop.f32.mrf.mxu1  ;;  %6082 = vmatpush.bf16.msra.mxu1 %v11130_v36  ;;  %v5329_v11 = vadd.f32 %v15828_v46, %v5219_v24  ;;  %v13438_v36 = vld [vmem:[%s19377_s7 + $0xe4] sm:$0xf]  ;;  %v5000_v46 = vadd.f32 %v15695_v18, %v15693_v4  ;;  %6109 = vmatpush.bf16.msrb.mxu3 %v11122_v3  ;;  %v13467_v4 = vld [vmem:[%s19377_s7 + $0x1cc] sm:$0xf]  ;;  %v11219_v18 = vld [vmem:[%s19377_s7 + $0x1d8] sm:$0xf0] }
 0x895   : > { %6095 = vmatpush.bf16.msrb.mxu2 %v11134_v8  ;;  %v11358_v8 = vor.u32 %v13438_v36, %v11355_v25  ;;  %v11222_v55 = vor.u32 %v13467_v4, %v11219_v18  ;;  %v13430_v25 = vld [vmem:[%s19377_s7 + $0xa4] sm:$0xf]  ;;  %v13459_v4 = vld [vmem:[%s19377_s7 + $0x18c] sm:$0xf]  ;;  %v11187_v18 = vld [vmem:[%s19377_s7 + $0x198] sm:$0xf0] }
 0x896   : > { %v5110_v41 = vadd.f32 %v15745_v21, %v5000_v46  ;;  %v5439_v38 = vadd.f32 %v15830_v56, %v5329_v11  ;;  %v13436_v21 = vld [vmem:[%s19377_s7 + $0xcc] sm:$0xf0]  ;;  %v13434_v56 = vld [vmem:[%s19377_s7 + $0xc4] sm:$0xf]  ;;  %v11425_v46 = vld [vmem:[%s19377_s7 + $0x268] sm:$0xf] }
 0x897   : > { %6562 = vmatpush.bf16.msra.mxu0 %v11458_v33  ;;  %v13432_v11 = vld [vmem:[%s19377_s7 + $0xac] sm:$0xf0] }
 0x898   : > { %6083 = vmatpush.bf16.msra.mxu1 %v11114_v10  ;;  %6301 = vmatpush.bf16.msra.mxu3 %v11358_v8  ;;  %v5220_v47 = vadd.f32 %v15832_v43, %v5110_v41  ;;  %v11338_v10 = vor.u32 %v13436_v21, %v11337_v37  ;;  %v11441_v43 = vld [vmem:[%s19377_s7 + $0x288] sm:$0xf]  ;;  %v11322_v36 = vor.u32 %v13432_v11, %v11321_v49  ;;  %v13424_v11 = vld [vmem:[%s19377_s7 + $0x6c] sm:$0xf0] }
 0x899   : > { %6096 = vmatpush.bf16.msrb.mxu2 %v11118_v15  ;;  %v11342_v15 = vor.u32 %v13434_v56, %v11339_v52  ;;  %v11442_v22 = vor.u32 %v13493_v28, %v11441_v43  ;;  %v11326_v8 = vor.u32 %v13430_v25, %v11323_v60  ;;  %v11426_v41 = vor.u32 %v13489_v6, %v11425_v46  ;;  %v11393_v25 = vld [vmem:[%s19377_s7 + $0x228] sm:$0xf]  ;;  %v13481_v60 = vld [vmem:[%s19377_s7 + $0x234] sm:$0xf0] }
 0x89a   : > { %v11190_v37 = vor.u32 %v13459_v4, %v11187_v18  ;;  %v5002_v46 = vadd.f32 %v15779_v62, %v15777_v16  ;;  %v11273_v62 = vld [vmem:[%s19377_s7 + $0x40] sm:$0xf] }
 0x89b   : > { %v15834_v34 = vpop.f32.mrf.mxu2  ;;  %6563 = vmatpush.bf16.msra.mxu0 %v11442_v22 }
 0x89c   : > { %v15836_v1 = vpop.f32.mrf.mxu3  ;;  %v15838_v2 = vpop.f32.mrf.mxu1  ;;  %6115 = vmatpush.bf16.msrb.mxu1 %v11238_v29  ;;  %v5330_v30 = vadd.f32 %v15834_v34, %v5220_v47  ;;  %6302 = vmatpush.bf16.msra.mxu3 %v11342_v15  ;;  %v11206_v34 = vor.u32 %v13463_v14, %v11203_v42  ;;  %v11305_v47 = vld [vmem:[%s19377_s7 + $0x80] sm:$0xf]  ;;  %v13485_v15 = vld [vmem:[%s19377_s7 + $0x254] sm:$0xf0]  ;;  %v5112_v6 = vadd.f32 %v15781_v26, %v5002_v46  ;;  %v13420_v26 = vld [vmem:[%s19377_s7 + $0x4c] sm:$0xf0] }
 0x89d   : > { %6288 = vmatpush.bf16.msra.mxu2 %v11354_v17  ;;  %v5221_v21 = vadd.f32 %v15838_v2, %v15748_v58  ;;  %v13455_v58 = vld [vmem:[%s19377_s7 + $0x16c] sm:$0xf]  ;;  %v11171_v2 = vld [vmem:[%s19377_s7 + $0x178] sm:$0xf0] }
 0x89e   : > { %v11174_v49 = vor.u32 %v13455_v58, %v11171_v2  ;;  %v11139_v58 = vld [vmem:[%s19377_s7 + $0x138] sm:$0xf0] }
 0x89f   : > { %6564 = vmatpush.bf16.msra.mxu0 %v11426_v41  ;;  %v13451_v41 = vld [vmem:[%s19377_s7 + $0x14c] sm:$0xf]  ;;  %v11123_v46 = vld [vmem:[%s19377_s7 + $0x118] sm:$0xf0] }
 0x8a0   : > { %6116 = vmatpush.bf16.msrb.mxu1 %v11222_v55  ;;  %6303 = vmatpush.bf16.msra.mxu3 %v11326_v8  ;;  %v13426_v55 = vld [vmem:[%s19377_s7 + $0x84] sm:$0xf]  ;;  %v11394_v8 = vor.u32 %v13481_v60, %v11393_v25  ;;  %v16227_v25 = vld [vmem:[%s19376_s6] ss:$0 sm:$0xff]  ;;  %v13443_v60 = vld [vmem:[%s19377_s7 + $0x10c] sm:$0xf] }
 0x8a1   : > { %6289 = vmatpush.bf16.msra.mxu2 %v11338_v10  ;;  %v11409_v10 = vld [vmem:[%s19377_s7 + $0x248] sm:$0xf] }
 0x8a2   : > { %v11410_v14 = vor.u32 %v13485_v15, %v11409_v10 }
 0x8a3   : > { %v15840_v32 = vpop.f32.mrf.mxu2 }
 0x8a4   : > { %v15842_v19 = vpop.f32.mrf.mxu3  ;;  %v15844_v57 = vpop.f32.mrf.mxu1  ;;  %6117 = vmatpush.bf16.msrb.mxu1 %v11206_v34  ;;  %6565 = vmatpush.bf16.msra.mxu0 %v11410_v14  ;;  %v13447_v14 = vld [vmem:[%s19377_s7 + $0x12c] sm:$0xf] }
 0x8a5   : > { %6290 = vmatpush.bf16.msra.mxu2 %v11322_v36  ;;  %v5222_v4 = vadd.f32 %v15844_v57, %v5112_v6 }
 0x8a8   : > { %6118 = vmatpush.bf16.msrb.mxu1 %v11190_v37  ;;  %6566 = vmatpush.bf16.msra.mxu0 %v11394_v8  ;;  %v11274_v37 = vor.u32 %v13420_v26, %v11273_v62 }
 0x8ab   : > { %v15864_v40 = vpop.f32.mrf.mxu2 }
 0x8ac   : > { %v15866_v59 = vpop.f32.mrf.mxu3  ;;  %v15868_v35 = vpop.f32.mrf.mxu1  ;;  %6119 = vmatpush.bf16.msrb.mxu1 %v11174_v49  ;;  %v5332_v57 = vadd.f32 %v15864_v40, %v5222_v4  ;;  %v11257_v40 = vld [vmem:[%s19377_s7 + $0x20] sm:$0xf] }
 0x8b3   : > { %v15906_v61 = vpop.f32.mrf.mxu2 }
 0x8b4   : > { %v15908_v23 = vpop.f32.mrf.mxu3  ;;  %v15910_v63 = vpop.f32.mrf.mxu1 }
 0x8bb   : > { %v15939_v51 = vpop.f32.mrf.mxu2 }
 0x8bc   : > { %v15950_v0 = vpop.f32.mrf.mxu3  ;;  %v15952_v13 = vpop.f32.mrf.mxu1 }
 0x8c3   : > { %v15981_v45 = vpop.f32.mrf.mxu2 }
 0x8c4   : > { %v15992_v5 = vpop.f32.mrf.mxu3  ;;  %v16003_v39 = vpop.f32.mrf.mxu1 }
 0x8cb   : > { %v16043_v31 = vpop.f32.mrf.mxu2 }
 0x8cc   : > { %v16055_v12 = vpop.f32.mrf.mxu3  ;;  %v5522_v50 = vpop.f32.mrf.mxu1 }
 0x8cd   : > { %v5550_v24 = vadd.f32 %v5522_v50, %v5439_v38  ;;  %v5440_v38 = vadd.f32 %v15836_v1, %v5330_v30  ;;  %v13428_v1 = vld [vmem:[%s19377_s7 + $0x8c] sm:$0xf0]  ;;  %v11289_v30 = vld [vmem:[%s19377_s7 + $0x60] sm:$0xf] }
 0x8ce   : > { %v11306_v52 = vor.u32 %v13428_v1, %v11305_v47  ;;  %v11275_v47 = vld [vmem:[%s19377_s7 + $0x50] sm:$0xf0]  ;;  %v11377_v1 = vld [vmem:[%s19377_s7 + $0x208] sm:$0xf] }
 0x8d0   : > { %6291 = vmatpush.bf16.msra.mxu2 %v11306_v52 }
 0x8d3   : > { %v5632_v3 = vpop.f32.mrf.mxu2 }
 0x8d4   : > { %v5660_v29 = vadd.f32 %v5632_v3, %v5550_v24  ;;  %v5742_v17 = vpop.f32.mrf.mxu3  ;;  %v5524_v50 = vpop.f32.mrf.mxu1  ;;  %v11307_v24 = vld [vmem:[%s19377_s7 + $0x90] sm:$0xf0]  ;;  %v5331_v3 = vadd.f32 %v15840_v32, %v5221_v21  ;;  %v11290_v32 = vor.u32 %v13424_v11, %v11289_v30  ;;  %v11142_v30 = vor.u32 %v13447_v14, %v11139_v58  ;;  %v13504_v58 = vld [vmem:[%s19377_s7 + $0x2ec] sm:$0xf0] }
 0x8d5   : > { %v5551_v56 = vadd.f32 %v5524_v50, %v5440_v38  ;;  %v11310_v28 = vor.u32 %v13426_v55, %v11307_v24  ;;  %v11155_v38 = vld [vmem:[%s19377_s7 + $0x158] sm:$0xf0]  ;;  %v13477_v55 = vld [vmem:[%s19377_s7 + $0x214] sm:$0xf0] }
 0x8d6   : > { %v5770_v33 = vadd.f32 %v5742_v17, %v5660_v29  ;;  %v13422_v29 = vld [vmem:[%s19377_s7 + $0x64] sm:$0xf]  ;;  %v11291_v17 = vld [vmem:[%s19377_s7 + $0x70] sm:$0xf0]  ;;  %6292 = vmatpush.bf16.msra.mxu2 %v11290_v32  ;;  %v11158_v16 = vor.u32 %v13451_v41, %v11155_v38  ;;  %v11378_v52 = vor.u32 %v13477_v55, %v11377_v1  ;;  %v13412_v41 = vld [vmem:[%s19377_s7 + $0xc] sm:$0xf0] }
 0x8d7   : > { %6304 = vmatpush.bf16.msra.mxu3 %v11310_v28  ;;  %v11294_v36 = vor.u32 %v13422_v29, %v11291_v17  ;;  %v13410_v38 = vld [vmem:[%s19377_s7 + $0x4] sm:$0xf]  ;;  %v13537_v1 = vld [vmem:[%s19377_s7 + $0x3f4] sm:$0xf0] }
 0x8d8   : > { %5778 = vst [vmem:[#allocation6] sm:$0xff] %v5770_v33  ;;  %v5441_v33 = vadd.f32 %v15842_v19, %v5331_v3  ;;  %v13418_v19 = vld [vmem:[%s19377_s7 + $0x44] sm:$0xf]  ;;  %6120 = vmatpush.bf16.msrb.mxu1 %v11158_v16  ;;  %6567 = vmatpush.bf16.msra.mxu0 %v11378_v52  ;;  %v13416_v3 = vld [vmem:[%s19377_s7 + $0x2c] sm:$0xf0] }
 0x8d9   : > { %v11258_v29 = vor.u32 %v13416_v3, %v11257_v40  ;;  %v11243_v16 = vld [vmem:[%s19377_s7 + $0x10] sm:$0xf0]  ;;  %v13502_v40 = vld [vmem:[%s19377_s7 + $0x2e4] sm:$0xf] }
 0x8da   : > { %6293 = vmatpush.bf16.msra.mxu2 %v11274_v37 }
 0x8db   : > { %v5634_v43 = vpop.f32.mrf.mxu2  ;;  %6305 = vmatpush.bf16.msra.mxu3 %v11294_v36 }
 0x8dc   : > { %v5661_v22 = vadd.f32 %v5634_v43, %v5551_v56  ;;  %v5744_v42 = vpop.f32.mrf.mxu3  ;;  %v5527_v34 = vpop.f32.mrf.mxu1  ;;  %v11278_v56 = vor.u32 %v13418_v19, %v11275_v47  ;;  %6121 = vmatpush.bf16.msrb.mxu1 %v11142_v30  ;;  %v11246_v19 = vor.u32 %v13410_v38, %v11243_v16  ;;  %v11617_v47 = vld [vmem:[%s19377_s7 + $0x3e8] sm:$0xf]  ;;  %v13525_v16 = vld [vmem:[%s19377_s7 + $0x394] sm:$0xf0] }
 0x8dd   : > { %v5552_v18 = vadd.f32 %v5527_v34, %v5441_v33  ;;  %v5442_v34 = vadd.f32 %v15866_v59, %v5332_v57  ;;  %v11241_v59 = vld [vmem:[%s19377_s7] sm:$0xf]  ;;  %v11126_v33 = vor.u32 %v13443_v60, %v11123_v46  ;;  %v11601_v57 = vld [vmem:[%s19377_s7 + $0x3c8] sm:$0xf]  ;;  %v11347_v46 = vld [vmem:[%s19377_s7 + $0xd8] sm:$0xf0] }
 0x8de   : > { %v5771_v50 = vadd.f32 %v5744_v42, %v5661_v22  ;;  %v13414_v22 = vld [vmem:[%s19377_s7 + $0x24] sm:$0xf]  ;;  %v11259_v42 = vld [vmem:[%s19377_s7 + $0x30] sm:$0xf0]  ;;  %6294 = vmatpush.bf16.msra.mxu2 %v11258_v29  ;;  %v11242_v26 = vor.u32 %v13412_v41, %v11241_v59  ;;  %v11465_v59 = vld [vmem:[%s19377_s7 + $0x2c0] sm:$0xf] }
 0x8df   : > { %v5786_v15 = vld [vmem:[#allocation6] ss:$2 sm:$0xf]  ;;  %v5794_v43 = vld [vmem:[#allocation6 + $0x1] ss:$2 sm:$0xf]  ;;  %6306 = vmatpush.bf16.msra.mxu3 %v11278_v56  ;;  %v11262_v17 = vor.u32 %v13414_v22, %v11259_v42 }
 0x8e0   : > { %5779 = vst [vmem:[#allocation6 + $0x8] sm:$0xff] %v5771_v50  ;;  %v5817_v32 = vmax.f32 %v5786_v15, %v5794_v43  ;;  %v5223_v50 = vadd.f32 %v15868_v35, %v15789_v44  ;;  %v5004_v44 = vadd.f32 %v15811_v53, %v15809_v9  ;;  %6122 = vmatpush.bf16.msrb.mxu1 %v11126_v33  ;;  %v11363_v43 = vld [vmem:[%s19377_s7 + $0xf8] sm:$0xf0]  ;;  %v11467_v33 = vld [vmem:[%s19377_s7 + $0x2d0] sm:$0xf0] }
 0x8e1   : > { %v11618_v53 = vor.u32 %v13537_v1, %v11617_v47  ;;  %v11569_v38 = vld [vmem:[%s19377_s7 + $0x388] sm:$0xf]  ;;  %v13496_v47 = vld [vmem:[%s19377_s7 + $0x2ac] sm:$0xf0]  ;;  %v13494_v1 = vld [vmem:[%s19377_s7 + $0x2a4] sm:$0xf] }
 0x8e2   : > { %v5333_v35 = vadd.f32 %v15906_v61, %v5223_v50  ;;  %6295 = vmatpush.bf16.msra.mxu2 %v11242_v26  ;;  %v5114_v61 = vadd.f32 %v15813_v48, %v5004_v44 }
 0x8e3   : > { %v5637_v21 = vpop.f32.mrf.mxu2  ;;  %6307 = vmatpush.bf16.msra.mxu3 %v11262_v17 }
 0x8e4   : > { %v5662_v24 = vadd.f32 %v5637_v21, %v5552_v18  ;;  %v5747_v10 = vpop.f32.mrf.mxu3  ;;  %v5529_v28 = vpop.f32.mrf.mxu1  ;;  %v5443_v56 = vadd.f32 %v15908_v23, %v5333_v35  ;;  %v13439_v23 = vld [vmem:[%s19377_s7 + $0xec] sm:$0xf] }
 0x8e5   : > { %v5553_v8 = vadd.f32 %v5529_v28, %v5442_v34  ;;  %v11481_v28 = vld [vmem:[%s19377_s7 + $0x2e0] sm:$0xf]  ;;  %v11366_v17 = vor.u32 %v13439_v23, %v11363_v43  ;;  %v13435_v34 = vld [vmem:[%s19377_s7 + $0xcc] sm:$0xf]  ;;  %v13492_v43 = vld [vmem:[%s19377_s7 + $0x28c] sm:$0xf0] }
 0x8e6   : > { %v5772_v2 = vadd.f32 %v5747_v10, %v5662_v24  ;;  %v13533_v24 = vld [vmem:[%s19377_s7 + $0x3d4] sm:$0xf0]  ;;  %v5224_v10 = vadd.f32 %v15910_v63, %v5114_v61  ;;  %v13431_v35 = vld [vmem:[%s19377_s7 + $0xac] sm:$0xf]  ;;  %v11553_v61 = vld [vmem:[%s19377_s7 + $0x368] sm:$0xf] }
 0x8e7   : > { %v5802_v49 = vld [vmem:[#allocation6 + $0x8] ss:$2 sm:$0xf]  ;;  %v5810_v11 = vld [vmem:[#allocation6 + $0x9] ss:$2 sm:$0xf]  ;;  %6308 = vmatpush.bf16.msra.mxu3 %v11246_v19  ;;  %v11602_v63 = vor.u32 %v13533_v24, %v11601_v57 }
 0x8e8   : > { %5780 = vst [vmem:[#allocation6 + $0x10] sm:$0xff] %v5772_v2  ;;  %v5821_v36 = vmax.f32 %v5802_v49, %v5810_v11  ;;  %v11483_v2 = vld [vmem:[%s19377_s7 + $0x2f0] sm:$0xf0]  ;;  %v5334_v30 = vadd.f32 %v15939_v51, %v5224_v10  ;;  %v11585_v49 = vld [vmem:[%s19377_s7 + $0x3a8] sm:$0xf] }
 0x8e9   : > { %v13529_v11 = vld [vmem:[%s19377_s7 + $0x3b4] sm:$0xf0]  ;;  %v11486_v60 = vor.u32 %v13502_v40, %v11483_v2 }
 0x8ea   : > { %v5825_v6 = vmax.f32 %v5817_v32, %v5821_v36  ;;  %v11482_v36 = vor.u32 %v13504_v58, %v11481_v28  ;;  %v11586_v50 = vor.u32 %v13529_v11, %v11585_v49  ;;  %v5444_v41 = vadd.f32 %v15950_v0, %v5334_v30  ;;  %v13490_v28 = vld [vmem:[%s19377_s7 + $0x284] sm:$0xf]  ;;  %v11537_v30 = vld [vmem:[%s19377_s7 + $0x348] sm:$0xf]  ;;  %v11299_v11 = vld [vmem:[%s19377_s7 + $0x78] sm:$0xf0] }
 0x8eb   : > { %v5639_v62 = vpop.f32.mrf.mxu2  ;;  %v11350_v0 = vor.u32 %v13435_v34, %v11347_v46  ;;  %v13486_v46 = vld [vmem:[%s19377_s7 + $0x264] sm:$0xf] }
 0x8ec   : > { %v5663_v4 = vadd.f32 %v5639_v62, %v5553_v8  ;;  %v5749_v18 = vpop.f32.mrf.mxu3  ;;  %v5833_v37 = vadd.f32 %v16227_v25, %v5825_v6  ;;  %v5532_v55 = vpop.f32.mrf.mxu1  ;;  %v13500_v8 = vld [vmem:[%s19377_s7 + $0x2cc] sm:$0xf0]  ;;  %v13498_v6 = vld [vmem:[%s19377_s7 + $0x2c4] sm:$0xf]  ;;  %v5225_v62 = vadd.f32 %v15952_v13, %v15820_v54  ;;  %v11449_v54 = vld [vmem:[%s19377_s7 + $0x2a0] sm:$0xf]  ;;  %v5006_v13 = vadd.f32 %v15822_v7, %v15818_v27 }
 0x8ed   : > { %v5554_v15 = vadd.f32 %v5532_v55, %v5443_v56  ;;  %v11466_v19 = vor.u32 %v13500_v8, %v11465_v59  ;;  %v11470_v44 = vor.u32 %v13498_v6, %v11467_v33  ;;  %v11451_v55 = vld [vmem:[%s19377_s7 + $0x2b0] sm:$0xf0]  ;;  %v13521_v56 = vld [vmem:[%s19377_s7 + $0x374] sm:$0xf0]  ;;  %v11450_v24 = vor.u32 %v13496_v47, %v11449_v54  ;;  %v11745_v47 = vld [vmem:[%s19377_s7 + $0x4e8] sm:$0xf] }
 0x8ee   : > { %v5773_v21 = vadd.f32 %v5749_v18, %v5663_v4  ;;  %v5837_v9 = vmax.f32 %v5833_v37, 0.0  ;;  %v11331_v4 = vld [vmem:[%s19377_s7 + $0xb8] sm:$0xf0]  ;;  %v11570_v37 = vor.u32 %v13525_v16, %v11569_v38  ;;  %v11454_v10 = vor.u32 %v13494_v1, %v11451_v55  ;;  %v11419_v59 = vld [vmem:[%s19377_s7 + $0x270] sm:$0xf0] }
 0x8ef   : > { %v11334_v7 = vor.u32 %v13431_v35, %v11331_v4  ;;  %v5116_v23 = vadd.f32 %v15824_v20, %v5006_v13  ;;  %v11554_v58 = vor.u32 %v13521_v56, %v11553_v61  ;;  %v11422_v16 = vor.u32 %v13486_v46, %v11419_v59  ;;  %v13482_v35 = vld [vmem:[%s19377_s7 + $0x244] sm:$0xf]  ;;  %v11403_v4 = vld [vmem:[%s19377_s7 + $0x250] sm:$0xf0]  ;;  %v13509_v54 = vld [vmem:[%s19377_s7 + $0x314] sm:$0xf0] }
 0x8f0   : > { %5781 = vst [vmem:[#allocation6 + $0x18] sm:$0xff] %v5773_v21  ;;  %v16261_v52 = vpack.c.bf16 %v5837_v9, %v5837_v9  ;;  %v5335_v21 = vadd.f32 %v15981_v45, %v5225_v62  ;;  %v13427_v45 = vld [vmem:[%s19377_s7 + $0x8c] sm:$0xf]  ;;  %v11283_v62 = vld [vmem:[%s19377_s7 + $0x58] sm:$0xf0] }
 0x8f1   : > { %v5226_v40 = vadd.f32 %v16003_v39, %v5116_v23  ;;  %v13423_v39 = vld [vmem:[%s19377_s7 + $0x6c] sm:$0xf]  ;;  %v13569_v1 = vld [vmem:[%s19377_s7 + $0x4f4] sm:$0xf0] }
 0x8f2   : > { %6322 = vmatmul.bf16.vlgmr.msrb.gmra.mxu0 %v16261_v52  ;;  %v5910_v48 = vunpack.c.l.b16 %v16261_v52  ;;  %v11302_v6 = vor.u32 %v13423_v39, %v11299_v11  ;;  %v13415_v55 = vld [vmem:[%s19377_s7 + $0x2c] sm:$0xf]  ;;  %v11609_v39 = vld [vmem:[%s19377_s7 + $0x3e0] sm:$0xf]  ;;  %v13536_v11 = vld [vmem:[%s19377_s7 + $0x3ec] sm:$0xf0] }
 0x8f3   : > { %v5642_v14 = vpop.f32.mrf.mxu2  ;;  %6810 = vmatpush.bf16.msrb.mxu0 %v11618_v53  ;;  %v5336_v34 = vadd.f32 %v16043_v31, %v5226_v40  ;;  %v13513_v31 = vld [vmem:[%s19377_s7 + $0x334] sm:$0xf0]  ;;  %v13411_v23 = vld [vmem:[%s19377_s7 + $0xc] sm:$0xf]  ;;  %v13476_v40 = vld [vmem:[%s19377_s7 + $0x20c] sm:$0xf0]  ;;  %v11610_v59 = vor.u32 %v13536_v11, %v11609_v39 }
 0x8f4   : > { %v5664_v3 = vadd.f32 %v5642_v14, %v5554_v15  ;;  %v5752_v22 = vpop.f32.mrf.mxu3  ;;  %v16291_v42 = vpack.c.b16 %v5910_v48, %v5910_v48  ;;  %v5534_v29 = vpop.f32.mrf.mxu1  ;;  %v11315_v15 = vld [vmem:[%s19377_s7 + $0x98] sm:$0xf0]  ;;  %v11433_v48 = vld [vmem:[%s19377_s7 + $0x280] sm:$0xf]  ;;  %v11435_v14 = vld [vmem:[%s19377_s7 + $0x290] sm:$0xf0] }
 0x8f5   : > { %v5555_v26 = vadd.f32 %v5534_v29, %v5444_v41  ;;  %v11318_v2 = vor.u32 %v13427_v45, %v11315_v15  ;;  %v11438_v49 = vor.u32 %v13490_v28, %v11435_v14  ;;  %v11417_v29 = vld [vmem:[%s19377_s7 + $0x260] sm:$0xf]  ;;  %v13419_v41 = vld [vmem:[%s19377_s7 + $0x4c] sm:$0xf]  ;;  %v11746_v45 = vor.u32 %v13569_v1, %v11745_v47  ;;  %v11729_v15 = vld [vmem:[%s19377_s7 + $0x4c8] sm:$0xf] }
 0x8f6   : > { %v5774_v32 = vadd.f32 %v5752_v22, %v5664_v3  ;;  %v16303_v51 = vshrl.u32 %v16291_v42, 16  ;;  %v16381_v20 = vrot.slane %v16291_v42, 1  ;;  %v13517_v3 = vld [vmem:[%s19377_s7 + $0x354] sm:$0xf0]  ;;  %v11681_v47 = vld [vmem:[%s19377_s7 + $0x468] sm:$0xf] }
 0x8f7   : > { %6811 = vmatpush.bf16.msrb.mxu0 %v11602_v63  ;;  %v5445_v63 = vadd.f32 %v15992_v5, %v5335_v21  ;;  %v11434_v5 = vor.u32 %v13492_v43, %v11433_v48  ;;  %v13565_v48 = vld [vmem:[%s19377_s7 + $0x4d4] sm:$0xf0]  ;;  %v13491_v1 = vld [vmem:[%s19377_s7 + $0x28c] sm:$0xf] }
 0x8f8   : > { %5782 = vst [vmem:[#allocation6 + $0x20] sm:$0xff] %v5774_v32  ;;  %6084 = vmatmul.bf16.vlgmr.msra.gmra.mxu1 %v16303_v51  ;;  %6097 = vmatmul.bf16.vlgmr.msrb.gmra.mxu2 %v16303_v51  ;;  %v13545_v11 = vld [vmem:[%s19377_s7 + $0x434] sm:$0xf0] }
 0x8f9   : > { %6110 = vmatmul.bf16.vlgmr.msrb.gmra.mxu3 %v16303_v51  ;;  %6327 = vmatpush.bf16.msra.mxu1 %v11366_v17  ;;  %v13488_v17 = vld [vmem:[%s19377_s7 + $0x26c] sm:$0xf0] }
 0x8fa   : > { %6534 = vmatpush.bf16.msrb.mxu2 %v11482_v36  ;;  %6547 = vmatpush.bf16.msrb.mxu3 %v11486_v60  ;;  %v11538_v60 = vor.u32 %v13517_v3, %v11537_v30  ;;  %v11418_v33 = vor.u32 %v13488_v17, %v11417_v29  ;;  %v13474_v30 = vld [vmem:[%s19377_s7 + $0x204] sm:$0xf]  ;;  %v11371_v3 = vld [vmem:[%s19377_s7 + $0x210] sm:$0xf0] }
 0x8fb   : > { %v5644_v18 = vpop.f32.mrf.mxu2  ;;  %6812 = vmatpush.bf16.msrb.mxu0 %v11586_v50  ;;  %v11521_v50 = vld [vmem:[%s19377_s7 + $0x328] sm:$0xf]  ;;  %v13534_v29 = vld [vmem:[%s19377_s7 + $0x3e4] sm:$0xf] }
 0x8fc   : > { %v5665_v9 = vadd.f32 %v5644_v18, %v5555_v26  ;;  %v5754_v53 = vpop.f32.mrf.mxu3  ;;  %v5537_v27 = vpop.f32.mrf.mxu1  ;;  %v13484_v26 = vld [vmem:[%s19377_s7 + $0x24c] sm:$0xf0]  ;;  %v11286_v18 = vor.u32 %v13419_v41, %v11283_v62  ;;  %v11697_v62 = vld [vmem:[%s19377_s7 + $0x488] sm:$0xf] }
 0x8fd   : > { %6328 = vmatpush.bf16.msra.mxu1 %v11350_v0  ;;  %v5556_v22 = vadd.f32 %v5537_v27, %v5445_v63  ;;  %v11401_v0 = vld [vmem:[%s19377_s7 + $0x240] sm:$0xf]  ;;  %v11251_v63 = vld [vmem:[%s19377_s7 + $0x18] sm:$0xf0]  ;;  %v13532_v41 = vld [vmem:[%s19377_s7 + $0x3cc] sm:$0xf0] }
 0x8fe   : > { %v5775_v57 = vadd.f32 %v5754_v53, %v5665_v9  ;;  %6535 = vmatpush.bf16.msrb.mxu2 %v11466_v19  ;;  %6548 = vmatpush.bf16.msrb.mxu3 %v11470_v44  ;;  %v5446_v19 = vadd.f32 %v16055_v12, %v5336_v34  ;;  %v11522_v44 = vor.u32 %v13513_v31, %v11521_v50  ;;  %v11505_v12 = vld [vmem:[%s19377_s7 + $0x308] sm:$0xf]  ;;  %v11267_v53 = vld [vmem:[%s19377_s7 + $0x38] sm:$0xf0]  ;;  %v11385_v27 = vld [vmem:[%s19377_s7 + $0x220] sm:$0xf] }
 0x8ff   : > { %6813 = vmatpush.bf16.msrb.mxu0 %v11570_v37  ;;  %v11402_v37 = vor.u32 %v13484_v26, %v11401_v0  ;;  %v11406_v9 = vor.u32 %v13482_v35, %v11403_v4  ;;  %v11506_v56 = vor.u32 %v13509_v54, %v11505_v12  ;;  %v11270_v28 = vor.u32 %v13415_v55, %v11267_v53  ;;  %v13499_v31 = vld [vmem:[%s19377_s7 + $0x2cc] sm:$0xf]  ;;  %v13557_v0 = vld [vmem:[%s19377_s7 + $0x494] sm:$0xf0]  ;;  %v11459_v4 = vld [vmem:[%s19377_s7 + $0x2b8] sm:$0xf0] }
 0x900   : > { %5783 = vst [vmem:[#allocation6 + $0x28] sm:$0xff] %v5775_v57  ;;  %v13478_v57 = vld [vmem:[%s19377_s7 + $0x224] sm:$0xf]  ;;  %v11254_v17 = vor.u32 %v13411_v23, %v11251_v63  ;;  %v11577_v12 = vld [vmem:[%s19377_s7 + $0x3a0] sm:$0xf] }
 0x901   : > { %6329 = vmatpush.bf16.msra.mxu1 %v11334_v7  ;;  %v13480_v7 = vld [vmem:[%s19377_s7 + $0x22c] sm:$0xf0]  ;;  %v11443_v55 = vld [vmem:[%s19377_s7 + $0x298] sm:$0xf0] }
 0x902   : > { %6536 = vmatpush.bf16.msrb.mxu2 %v11450_v24  ;;  %6549 = vmatpush.bf16.msrb.mxu3 %v11454_v10  ;;  %v11387_v24 = vld [vmem:[%s19377_s7 + $0x230] sm:$0xf0]  ;;  %v11386_v14 = vor.u32 %v13480_v7, %v11385_v27  ;;  %v13528_v54 = vld [vmem:[%s19377_s7 + $0x3ac] sm:$0xf0]  ;;  %v13522_v27 = vld [vmem:[%s19377_s7 + $0x384] sm:$0xf] }
 0x903   : > { %v5647_v42 = vpop.f32.mrf.mxu2  ;;  %6568 = vmatmul.bf16.vlgmr.msra.gmra.mxu0 %v16381_v20  ;;  %v13524_v53 = vld [vmem:[%s19377_s7 + $0x38c] sm:$0xf0]  ;;  %v11578_v7 = vor.u32 %v13528_v54, %v11577_v12  ;;  %v5796_v23 = vld [vmem:[#allocation6 + $0x11] ss:$2 sm:$0xf] }
 0x904   : > { %v5666_v32 = vadd.f32 %v5647_v42, %v5556_v22  ;;  %v5757_v36 = vpop.f32.mrf.mxu3  ;;  %6814 = vmatpush.bf16.msrb.mxu0 %v11554_v58  ;;  %v5539_v38 = vpop.f32.mrf.mxu1  ;;  %v11369_v58 = vld [vmem:[%s19377_s7 + $0x200] sm:$0xf]  ;;  %v13503_v22 = vld [vmem:[%s19377_s7 + $0x2ec] sm:$0xf]  ;;  %v11730_v42 = vor.u32 %v13565_v48, %v11729_v15  ;;  %v13549_v15 = vld [vmem:[%s19377_s7 + $0x454] sm:$0xf0] }
 0x905   : > { %6330 = vmatpush.bf16.msra.mxu1 %v11318_v2  ;;  %v5557_v13 = vadd.f32 %v5539_v38, %v5446_v19  ;;  %v11390_v2 = vor.u32 %v13478_v57, %v11387_v24  ;;  %v11370_v34 = vor.u32 %v13476_v40, %v11369_v58  ;;  %v13530_v38 = vld [vmem:[%s19377_s7 + $0x3c4] sm:$0xf]  ;;  %v13495_v19 = vld [vmem:[%s19377_s7 + $0x2ac] sm:$0xf]  ;;  %v11427_v40 = vld [vmem:[%s19377_s7 + $0x278] sm:$0xf0] }
 0x906   : > { %v5776_v8 = vadd.f32 %v5757_v36, %v5666_v32  ;;  %6537 = vmatpush.bf16.msrb.mxu2 %v11434_v5  ;;  %6550 = vmatpush.bf16.msrb.mxu3 %v11438_v49  ;;  %v16495_v5 = vrot.slane %v16303_v51, 1  ;;  %v11491_v49 = vld [vmem:[%s19377_s7 + $0x2f8] sm:$0xf0]  ;;  %v11713_v32 = vld [vmem:[%s19377_s7 + $0x4a8] sm:$0xf] }
 0x907   : > { %v13561_v36 = vld [vmem:[%s19377_s7 + $0x4b4] sm:$0xf0]  ;;  %v11494_v46 = vor.u32 %v13503_v22, %v11491_v49  ;;  %v5812_v57 = vld [vmem:[#allocation6 + $0x19] ss:$2 sm:$0xf] }
 0x908   : > { %5784 = vst [vmem:[#allocation6 + $0x30] sm:$0xff] %v5776_v8  ;;  %6815 = vmatpush.bf16.msrb.mxu0 %v11538_v60  ;;  %6123 = vmatmul.bf16.vlgmr.msrb.gmra.mxu1 %v16303_v51  ;;  %v11611_v51 = vld [vmem:[%s19377_s7 + $0x3f0] sm:$0xf0]  ;;  %v11374_v60 = vor.u32 %v13474_v30, %v11371_v3  ;;  %v11475_v8 = vld [vmem:[%s19377_s7 + $0x2d8] sm:$0xf0] }
 0x909   : > { %6296 = vmatmul.bf16.vlgmr.msra.gmra.mxu2 %v16261_v52  ;;  %6309 = vmatmul.bf16.vlgmr.msra.gmra.mxu3 %v16261_v52  ;;  %v11614_v50 = vor.u32 %v13534_v29, %v11611_v51  ;;  %v11478_v26 = vor.u32 %v13499_v31, %v11475_v8  ;;  %v5788_v48 = vld [vmem:[#allocation6 + $0x10] ss:$2 sm:$0xf]  ;;  %v13487_v58 = vld [vmem:[%s19377_s7 + $0x26c] sm:$0xf] }
 0x90a   : > { %6331 = vmatpush.bf16.msra.mxu1 %v11302_v6  ;;  %6538 = vmatpush.bf16.msrb.mxu2 %v11418_v33  ;;  %v11593_v6 = vld [vmem:[%s19377_s7 + $0x3c0] sm:$0xf]  ;;  %v11714_v33 = vor.u32 %v13561_v36, %v11713_v32  ;;  %v13520_v3 = vld [vmem:[%s19377_s7 + $0x36c] sm:$0xf0]  ;;  %v13518_v22 = vld [vmem:[%s19377_s7 + $0x364] sm:$0xf]  ;;  %v5818_v39 = vmax.f32 %v5788_v48, %v5796_v23  ;;  %v11430_v29 = vor.u32 %v13487_v58, %v11427_v40 }
 0x90b   : > { %v5649_v21 = vpop.f32.mrf.mxu2  ;;  %6551 = vmatpush.bf16.msrb.mxu3 %v11422_v16  ;;  %v11595_v16 = vld [vmem:[%s19377_s7 + $0x3d0] sm:$0xf0]  ;;  %v13483_v32 = vld [vmem:[%s19377_s7 + $0x24c] sm:$0xf]  ;;  %v11411_v36 = vld [vmem:[%s19377_s7 + $0x258] sm:$0xf0] }
 0x90c   : > { %v5667_v61 = vadd.f32 %v5649_v21, %v5557_v13  ;;  %6816 = vmatpush.bf16.msrb.mxu0 %v11522_v44  ;;  %v5759_v10 = vpop.f32.mrf.mxu3  ;;  %v11594_v44 = vor.u32 %v13532_v41, %v11593_v6  ;;  %v11598_v35 = vor.u32 %v13530_v38, %v11595_v16  ;;  %v11698_v13 = vor.u32 %v13557_v0, %v11697_v62  ;;  %v11547_v49 = vld [vmem:[%s19377_s7 + $0x370] sm:$0xf0]  ;;  %v11633_v8 = vld [vmem:[%s19377_s7 + $0x408] sm:$0xf]  ;;  %v13541_v6 = vld [vmem:[%s19377_s7 + $0x414] sm:$0xf0] }
 0x90d   : > { %v11462_v21 = vor.u32 %v13495_v19, %v11459_v4  ;;  %v11531_v31 = vld [vmem:[%s19377_s7 + $0x350] sm:$0xf0]  ;;  %v11873_v41 = vld [vmem:[%s19377_s7 + $0x5e8] sm:$0xf]  ;;  %v13601_v38 = vld [vmem:[%s19377_s7 + $0x5f4] sm:$0xf0] }
 0x90e   : > { %v5777_v43 = vadd.f32 %v5759_v10, %v5667_v61  ;;  %6332 = vmatpush.bf16.msra.mxu1 %v11286_v18  ;;  %6539 = vmatpush.bf16.msrb.mxu2 %v11402_v37  ;;  %v13526_v18 = vld [vmem:[%s19377_s7 + $0x3a4] sm:$0xf]  ;;  %v11579_v37 = vld [vmem:[%s19377_s7 + $0x3b0] sm:$0xf0]  ;;  %v11395_v19 = vld [vmem:[%s19377_s7 + $0x238] sm:$0xf0]  ;;  %v11874_v54 = vor.u32 %v13601_v38, %v11873_v41 }
 0x90f   : > { %6552 = vmatpush.bf16.msrb.mxu3 %v11406_v9  ;;  %v11561_v9 = vld [vmem:[%s19377_s7 + $0x380] sm:$0xf]  ;;  %v11582_v61 = vor.u32 %v13526_v18, %v11579_v37  ;;  %v11563_v10 = vld [vmem:[%s19377_s7 + $0x390] sm:$0xf0]  ;;  %v13510_v4 = vld [vmem:[%s19377_s7 + $0x324] sm:$0xf] }
 0x910   : > { %5785 = vst [vmem:[#allocation6 + $0x38] sm:$0xff] %v5777_v43  ;;  %6817 = vmatpush.bf16.msrb.mxu0 %v11506_v56  ;;  %v5804_v56 = vld [vmem:[#allocation6 + $0x18] ss:$2 sm:$0xf]  ;;  %v11446_v43 = vor.u32 %v13491_v1, %v11443_v55  ;;  %v11566_v63 = vor.u32 %v13522_v27, %v11563_v10  ;;  %v11515_v12 = vld [vmem:[%s19377_s7 + $0x330] sm:$0xf0] }
 0x911   : > { %v11518_v55 = vor.u32 %v13510_v4, %v11515_v12  ;;  %v13506_v27 = vld [vmem:[%s19377_s7 + $0x304] sm:$0xf]  ;;  %v13568_v10 = vld [vmem:[%s19377_s7 + $0x4ec] sm:$0xf0]  ;;  %v11739_v23 = vld [vmem:[%s19377_s7 + $0x4f0] sm:$0xf0] }
 0x912   : > { %6333 = vmatpush.bf16.msra.mxu1 %v11270_v28  ;;  %6540 = vmatpush.bf16.msrb.mxu2 %v11386_v14  ;;  %v5822_v28 = vmax.f32 %v5804_v56, %v5812_v57  ;;  %v11562_v14 = vor.u32 %v13524_v53, %v11561_v9  ;;  %v11497_v9 = vld [vmem:[%s19377_s7 + $0x300] sm:$0xf]  ;;  %v13508_v53 = vld [vmem:[%s19377_s7 + $0x30c] sm:$0xf0]  ;;  %v11619_v57 = vld [vmem:[%s19377_s7 + $0x3f8] sm:$0xf0] }
 0x913   : > { %6553 = vmatpush.bf16.msrb.mxu3 %v11390_v2  ;;  %6818 = vmatmul.bf16.vlgmr.msrb.gmra.mxu0 %v16495_v5  ;;  %v11545_v2 = vld [vmem:[%s19377_s7 + $0x360] sm:$0xf]  ;;  %v13566_v48 = vld [vmem:[%s19377_s7 + $0x4e4] sm:$0xf]  ;;  %v11841_v58 = vld [vmem:[%s19377_s7 + $0x5a8] sm:$0xf] }
 0x914   : > { %7058 = vmatpush.bf16.msra.mxu0 %v11746_v45  ;;  %v11665_v45 = vld [vmem:[%s19377_s7 + $0x448] sm:$0xf]  ;;  %v5826_v51 = vmax.f32 %v5818_v39, %v5822_v28  ;;  %v13593_v40 = vld [vmem:[%s19377_s7 + $0x5b4] sm:$0xf0]  ;;  %v13562_v39 = vld [vmem:[%s19377_s7 + $0x4c4] sm:$0xf] }
 0x915   : > { %v11666_v30 = vor.u32 %v13549_v15, %v11665_v45  ;;  %v13585_v41 = vld [vmem:[%s19377_s7 + $0x574] sm:$0xf0]  ;;  %v13523_v38 = vld [vmem:[%s19377_s7 + $0x38c] sm:$0xf]  ;;  %v11793_v12 = vld [vmem:[%s19377_s7 + $0x548] sm:$0xf] }
 0x916   : > { %6334 = vmatpush.bf16.msra.mxu1 %v11254_v17  ;;  %6541 = vmatpush.bf16.msrb.mxu2 %v11370_v34  ;;  %v11546_v17 = vor.u32 %v13520_v3, %v11545_v2  ;;  %v11550_v34 = vor.u32 %v13518_v22, %v11547_v49  ;;  %v5834_v16 = vadd.f32 %v16227_v25, %v5826_v51  ;;  %v13512_v25 = vld [vmem:[%s19377_s7 + $0x32c] sm:$0xf0]  ;;  %v13531_v2 = vld [vmem:[%s19377_s7 + $0x3cc] sm:$0xf]  ;;  %v11603_v3 = vld [vmem:[%s19377_s7 + $0x3d8] sm:$0xf0] }
 0x917   : > { %6554 = vmatpush.bf16.msrb.mxu3 %v11374_v60  ;;  %v11529_v60 = vld [vmem:[%s19377_s7 + $0x340] sm:$0xf]  ;;  %v13564_v49 = vld [vmem:[%s19377_s7 + $0x4cc] sm:$0xf0] }
 0x918   : > { %7059 = vmatpush.bf16.msra.mxu0 %v11730_v42  ;;  %v11649_v42 = vld [vmem:[%s19377_s7 + $0x428] sm:$0xf]  ;;  %v5838_v37 = vmax.f32 %v5834_v16, 0.0  ;;  %v11721_v22 = vld [vmem:[%s19377_s7 + $0x4c0] sm:$0xf] }
 0x919   : > { %6335 = vmatmul.bf16.vlgmr.msra.gmra.mxu1 %v16261_v52  ;;  %6542 = vmatmul.bf16.vlgmr.msrb.gmra.mxu2 %v16381_v20  ;;  %v13553_v52 = vld [vmem:[%s19377_s7 + $0x474] sm:$0xf0]  ;;  %v11722_v51 = vor.u32 %v13564_v49, %v11721_v22  ;;  %v11523_v22 = vld [vmem:[%s19377_s7 + $0x338] sm:$0xf0]  ;;  %v11641_v49 = vld [vmem:[%s19377_s7 + $0x420] sm:$0xf] }
 0x91a   : > { %6573 = vmatpush.bf16.msrb.mxu1 %v11494_v46  ;;  %6784 = vmatpush.bf16.msra.mxu2 %v11610_v59  ;;  %v11682_v24 = vor.u32 %v13553_v52, %v11681_v47  ;;  %v11650_v46 = vor.u32 %v13545_v11, %v11649_v42  ;;  %v13516_v59 = vld [vmem:[%s19377_s7 + $0x34c] sm:$0xf0]  ;;  %v13597_v47 = vld [vmem:[%s19377_s7 + $0x5d4] sm:$0xf0]  ;;  %v13475_v52 = vld [vmem:[%s19377_s7 + $0x20c] sm:$0xf]  ;;  %v16703_v45 = vpack.c.bf16 %v5838_v37, %v5838_v37 }
 0x91b   : > { %6797 = vmatpush.bf16.msra.mxu3 %v11614_v50  ;;  %v13514_v50 = vld [vmem:[%s19377_s7 + $0x344] sm:$0xf]  ;;  %v11530_v62 = vor.u32 %v13516_v59, %v11529_v60  ;;  %v11723_v42 = vld [vmem:[%s19377_s7 + $0x4d0] sm:$0xf0]  ;;  %v11842_v11 = vor.u32 %v13593_v40, %v11841_v58  ;;  %v11587_v60 = vld [vmem:[%s19377_s7 + $0x3b8] sm:$0xf0] }
 0x91c   : > { %7060 = vmatpush.bf16.msra.mxu0 %v11714_v33  ;;  %6555 = vmatmul.bf16.vlgmr.msrb.gmra.mxu3 %v16381_v20  ;;  %v11414_v33 = vor.u32 %v13483_v32, %v11411_v36  ;;  %v11534_v0 = vor.u32 %v13514_v50, %v11531_v31  ;;  %v13527_v32 = vld [vmem:[%s19377_s7 + $0x3ac] sm:$0xf]  ;;  %v11726_v36 = vor.u32 %v13562_v39, %v11723_v42  ;;  %v13560_v59 = vld [vmem:[%s19377_s7 + $0x4ac] sm:$0xf0]  ;;  %v11707_v50 = vld [vmem:[%s19377_s7 + $0x4b0] sm:$0xf0] }
 0x91d   : > { %v11555_v37 = vld [vmem:[%s19377_s7 + $0x378] sm:$0xf0]  ;;  %v12001_v58 = vld [vmem:[%s19377_s7 + $0x6e8] sm:$0xf]  ;;  %v13633_v40 = vld [vmem:[%s19377_s7 + $0x6f4] sm:$0xf0] }
 0x91e   : > { %6574 = vmatpush.bf16.msrb.mxu1 %v11478_v26  ;;  %6785 = vmatpush.bf16.msra.mxu2 %v11594_v44  ;;  %v13479_v26 = vld [vmem:[%s19377_s7 + $0x22c] sm:$0xf]  ;;  %v11513_v44 = vld [vmem:[%s19377_s7 + $0x320] sm:$0xf]  ;;  %v13544_v39 = vld [vmem:[%s19377_s7 + $0x42c] sm:$0xf0] }
 0x91f   : > { %6798 = vmatpush.bf16.msra.mxu3 %v11598_v35  ;;  %v11634_v35 = vor.u32 %v13541_v6, %v11633_v8  ;;  %v11398_v18 = vor.u32 %v13479_v26, %v11395_v19  ;;  %v11514_v1 = vor.u32 %v13512_v25, %v11513_v44  ;;  %v11590_v8 = vor.u32 %v13527_v32, %v11587_v60  ;;  %v13556_v26 = vld [vmem:[%s19377_s7 + $0x48c] sm:$0xf0]  ;;  %v13554_v19 = vld [vmem:[%s19377_s7 + $0x484] sm:$0xf]  ;;  %v11691_v44 = vld [vmem:[%s19377_s7 + $0x490] sm:$0xf0] }
 0x920   : > { %7061 = vmatpush.bf16.msra.mxu0 %v11698_v13  ;;  %v11857_v13 = vld [vmem:[%s19377_s7 + $0x5c8] sm:$0xf]  ;;  %v13542_v42 = vld [vmem:[%s19377_s7 + $0x424] sm:$0xf]  ;;  %v13507_v60 = vld [vmem:[%s19377_s7 + $0x30c] sm:$0xf] }
 0x921   : > { %v11858_v56 = vor.u32 %v13597_v47, %v11857_v13  ;;  %v13519_v13 = vld [vmem:[%s19377_s7 + $0x36c] sm:$0xf]  ;;  %v11673_v47 = vld [vmem:[%s19377_s7 + $0x460] sm:$0xf]  ;;  %v11985_v32 = vld [vmem:[%s19377_s7 + $0x6c8] sm:$0xf] }
 0x922   : > { %6575 = vmatpush.bf16.msrb.mxu1 %v11462_v21  ;;  %6786 = vmatpush.bf16.msra.mxu2 %v11578_v7  ;;  %v11379_v21 = vld [vmem:[%s19377_s7 + $0x218] sm:$0xf0]  ;;  %v11499_v7 = vld [vmem:[%s19377_s7 + $0x310] sm:$0xf0] }
 0x923   : > { %6799 = vmatpush.bf16.msra.mxu3 %v11582_v61  ;;  %v13535_v61 = vld [vmem:[%s19377_s7 + $0x3ec] sm:$0xf]  ;;  %v11382_v15 = vor.u32 %v13475_v52, %v11379_v21  ;;  %v11502_v28 = vor.u32 %v13506_v27, %v11499_v7  ;;  %v13552_v52 = vld [vmem:[%s19377_s7 + $0x46c] sm:$0xf0]  ;;  %v11777_v27 = vld [vmem:[%s19377_s7 + $0x528] sm:$0xf] }
 0x924   : > { %7062 = vmatpush.bf16.msra.mxu0 %v11682_v24  ;;  %v11737_v24 = vld [vmem:[%s19377_s7 + $0x4e0] sm:$0xf]  ;;  %v13577_v7 = vld [vmem:[%s19377_s7 + $0x534] sm:$0xf0] }
 0x926   : > { %6576 = vmatpush.bf16.msrb.mxu1 %v11446_v43  ;;  %6787 = vmatpush.bf16.msra.mxu2 %v11562_v14  ;;  %v11498_v43 = vor.u32 %v13508_v53, %v11497_v9  ;;  %v11622_v14 = vor.u32 %v13535_v61, %v11619_v57  ;;  %v11558_v9 = vor.u32 %v13519_v13, %v11555_v37  ;;  %v13515_v61 = vld [vmem:[%s19377_s7 + $0x34c] sm:$0xf]  ;;  %v11539_v57 = vld [vmem:[%s19377_s7 + $0x358] sm:$0xf0]  ;;  %v13625_v13 = vld [vmem:[%s19377_s7 + $0x6b4] sm:$0xf0] }
 0x927   : > { %6800 = vmatpush.bf16.msra.mxu3 %v11566_v63  ;;  %v11738_v63 = vor.u32 %v13568_v10, %v11737_v24  ;;  %v11674_v53 = vor.u32 %v13552_v52, %v11673_v47  ;;  %v11657_v24 = vld [vmem:[%s19377_s7 + $0x440] sm:$0xf]  ;;  %v13548_v10 = vld [vmem:[%s19377_s7 + $0x44c] sm:$0xf0]  ;;  %v11731_v47 = vld [vmem:[%s19377_s7 + $0x4d8] sm:$0xf0] }
 0x928   : > { %7063 = vmatpush.bf16.msra.mxu0 %v11666_v30  ;;  %v11742_v30 = vor.u32 %v13566_v48, %v11739_v23  ;;  %v11659_v48 = vld [vmem:[%s19377_s7 + $0x450] sm:$0xf0]  ;;  %v11778_v23 = vor.u32 %v13577_v7, %v11777_v27  ;;  %v11849_v52 = vld [vmem:[%s19377_s7 + $0x5c0] sm:$0xf]  ;;  %v11953_v7 = vld [vmem:[%s19377_s7 + $0x688] sm:$0xf] }
 0x92a   : > { %6577 = vmatpush.bf16.msrb.mxu1 %v11430_v29  ;;  %6788 = vmatpush.bf16.msra.mxu2 %v11546_v17  ;;  %v11606_v29 = vor.u32 %v13531_v2, %v11603_v3  ;;  %v11825_v17 = vld [vmem:[%s19377_s7 + $0x588] sm:$0xf]  ;;  %v7121_v2 = vunpack.c.l.b16 %v16703_v45  ;;  %v13511_v3 = vld [vmem:[%s19377_s7 + $0x32c] sm:$0xf] }
 0x92b   : > { %6801 = vmatpush.bf16.msra.mxu3 %v11550_v34  ;;  %v13589_v34 = vld [vmem:[%s19377_s7 + $0x594] sm:$0xf0] }
 0x92c   : > { %7064 = vmatpush.bf16.msra.mxu0 %v11650_v46  ;;  %v11705_v46 = vld [vmem:[%s19377_s7 + $0x4a0] sm:$0xf]  ;;  %v11826_v31 = vor.u32 %v13589_v34, %v11825_v17  ;;  %v11526_v17 = vor.u32 %v13511_v3, %v11523_v22  ;;  %v16866_v34 = vpack.c.b16 %v7121_v2, %v7121_v2  ;;  %v11699_v2 = vld [vmem:[%s19377_s7 + $0x498] sm:$0xf0]  ;;  %v13588_v3 = vld [vmem:[%s19377_s7 + $0x58c] sm:$0xf0] }
 0x92d   : > { %v11706_v6 = vor.u32 %v13560_v59, %v11705_v46  ;;  %v11642_v46 = vor.u32 %v13544_v39, %v11641_v49  ;;  %v13586_v22 = vld [vmem:[%s19377_s7 + $0x584] sm:$0xf]  ;;  %v11819_v49 = vld [vmem:[%s19377_s7 + $0x590] sm:$0xf0] }
 0x92e   : > { %6578 = vmatpush.bf16.msrb.mxu1 %v11414_v33  ;;  %6789 = vmatpush.bf16.msra.mxu2 %v11530_v62  ;;  %v11809_v33 = vld [vmem:[%s19377_s7 + $0x568] sm:$0xf]  ;;  %v11571_v62 = vld [vmem:[%s19377_s7 + $0x398] sm:$0xf0] }
 0x92f   : > { %6802 = vmatpush.bf16.msra.mxu3 %v11534_v0  ;;  %v11689_v0 = vld [vmem:[%s19377_s7 + $0x480] sm:$0xf]  ;;  %v11574_v25 = vor.u32 %v13523_v38, %v11571_v62  ;;  %v16905_v62 = vshrl.u32 %v16866_v34, 16 }
 0x930   : > { %7065 = vmatpush.bf16.msra.mxu0 %v11634_v35  ;;  %v11810_v35 = vor.u32 %v13585_v41, %v11809_v33  ;;  %v11690_v4 = vor.u32 %v13556_v26, %v11689_v0  ;;  %v13567_v33 = vld [vmem:[%s19377_s7 + $0x4ec] sm:$0xf]  ;;  %v11747_v41 = vld [vmem:[%s19377_s7 + $0x4f8] sm:$0xf0]  ;;  %v11865_v38 = vld [vmem:[%s19377_s7 + $0x5e0] sm:$0xf] }
 0x932   : > { %6579 = vmatpush.bf16.msrb.mxu1 %v11398_v18  ;;  %6790 = vmatpush.bf16.msra.mxu2 %v11514_v1  ;;  %v11694_v18 = vor.u32 %v13554_v19, %v11691_v44  ;;  %v13550_v1 = vld [vmem:[%s19377_s7 + $0x464] sm:$0xf]  ;;  %v11867_v44 = vld [vmem:[%s19377_s7 + $0x5f0] sm:$0xf0] }
 0x933   : > { %6803 = vmatpush.bf16.msra.mxu3 %v11518_v55  ;;  %7066 = vmatmul.bf16.vlgmr.msra.gmra.mxu0 %v16703_v45  ;;  %v11675_v55 = vld [vmem:[%s19377_s7 + $0x470] sm:$0xf0]  ;;  %v13598_v19 = vld [vmem:[%s19377_s7 + $0x5e4] sm:$0xf] }
 0x934   : > { %7313 = vmatpush.bf16.msrb.mxu0 %v11874_v54  ;;  %v13581_v54 = vld [vmem:[%s19377_s7 + $0x554] sm:$0xf0]  ;;  %v11870_v37 = vor.u32 %v13598_v19, %v11867_v44  ;;  %v13578_v19 = vld [vmem:[%s19377_s7 + $0x544] sm:$0xf]  ;;  %v11787_v44 = vld [vmem:[%s19377_s7 + $0x550] sm:$0xf0] }
 0x935   : > { %v11794_v21 = vor.u32 %v13581_v54, %v11793_v12  ;;  %v11969_v54 = vld [vmem:[%s19377_s7 + $0x6a8] sm:$0xf] }
 0x936   : > { %6580 = vmatpush.bf16.msrb.mxu1 %v11382_v15  ;;  %6791 = vmatpush.bf16.msra.mxu2 %v11498_v43  ;;  %v13546_v15 = vld [vmem:[%s19377_s7 + $0x444] sm:$0xf]  ;;  %v11761_v43 = vld [vmem:[%s19377_s7 + $0x508] sm:$0xf] }
 0x937   : > { %6804 = vmatpush.bf16.msra.mxu3 %v11502_v28  ;;  %v11542_v28 = vor.u32 %v13515_v61, %v11539_v57  ;;  %v13621_v61 = vld [vmem:[%s19377_s7 + $0x694] sm:$0xf0] }
 0x938   : > { %7314 = vmatpush.bf16.msrb.mxu0 %v11858_v56  ;;  %v11678_v56 = vor.u32 %v13550_v1, %v11675_v55  ;;  %v13596_v1 = vld [vmem:[%s19377_s7 + $0x5cc] sm:$0xf0]  ;;  %v13594_v55 = vld [vmem:[%s19377_s7 + $0x5c4] sm:$0xf] }
 0x939   : > { %6581 = vmatmul.bf16.vlgmr.msrb.gmra.mxu1 %v16381_v20  ;;  %6792 = vmatmul.bf16.vlgmr.msra.gmra.mxu2 %v16495_v5  ;;  %v13558_v20 = vld [vmem:[%s19377_s7 + $0x4a4] sm:$0xf]  ;;  %v11850_v27 = vor.u32 %v13596_v1, %v11849_v52  ;;  %v11651_v52 = vld [vmem:[%s19377_s7 + $0x438] sm:$0xf0]  ;;  %v11769_v1 = vld [vmem:[%s19377_s7 + $0x520] sm:$0xf] }
 0x93a   : > { %6823 = vmatpush.bf16.msra.mxu1 %v11622_v14  ;;  %7032 = vmatpush.bf16.msrb.mxu2 %v11738_v63  ;;  %v11710_v16 = vor.u32 %v13558_v20, %v11707_v50  ;;  %v11658_v14 = vor.u32 %v13548_v10, %v11657_v24  ;;  %v13573_v63 = vld [vmem:[%s19377_s7 + $0x514] sm:$0xf0]  ;;  %v11507_v20 = vld [vmem:[%s19377_s7 + $0x318] sm:$0xf0]  ;;  %v11625_v50 = vld [vmem:[%s19377_s7 + $0x400] sm:$0xf] }
 0x93b   : > { %7045 = vmatpush.bf16.msrb.mxu3 %v11742_v30  ;;  %v11662_v30 = vor.u32 %v13546_v15, %v11659_v48  ;;  %v11510_v26 = vor.u32 %v13507_v60, %v11507_v20  ;;  %v11715_v24 = vld [vmem:[%s19377_s7 + $0x4b8] sm:$0xf0]  ;;  %v11833_v10 = vld [vmem:[%s19377_s7 + $0x5a0] sm:$0xf]  ;;  %v13592_v15 = vld [vmem:[%s19377_s7 + $0x5ac] sm:$0xf0] }
 0x93c   : > { %6805 = vmatmul.bf16.vlgmr.msra.gmra.mxu3 %v16495_v5  ;;  %7315 = vmatpush.bf16.msrb.mxu0 %v11842_v11  ;;  %v11643_v11 = vld [vmem:[%s19377_s7 + $0x430] sm:$0xf0]  ;;  %v11801_v60 = vld [vmem:[%s19377_s7 + $0x560] sm:$0xf] }
 0x93d   : > { %v11646_v59 = vor.u32 %v13542_v42, %v11643_v11  ;;  %v11835_v48 = vld [vmem:[%s19377_s7 + $0x5b0] sm:$0xf0] }
 0x93e   : > { %6824 = vmatpush.bf16.msra.mxu1 %v11606_v29  ;;  %7033 = vmatpush.bf16.msrb.mxu2 %v11722_v51  ;;  %v11762_v29 = vor.u32 %v13573_v63, %v11761_v43  ;;  %v12002_v51 = vor.u32 %v13633_v40, %v12001_v58  ;;  %v13617_v63 = vld [vmem:[%s19377_s7 + $0x674] sm:$0xf0]  ;;  %v13555_v58 = vld [vmem:[%s19377_s7 + $0x48c] sm:$0xf]  ;;  %v11803_v20 = vld [vmem:[%s19377_s7 + $0x570] sm:$0xf0] }
 0x93f   : > { %7046 = vmatpush.bf16.msrb.mxu3 %v11726_v36  ;;  %v13629_v36 = vld [vmem:[%s19377_s7 + $0x6d4] sm:$0xf0]  ;;  %v11702_v42 = vor.u32 %v13555_v58, %v11699_v2  ;;  %v13632_v58 = vld [vmem:[%s19377_s7 + $0x6ec] sm:$0xf0] }
 0x940   : > { %7316 = vmatpush.bf16.msrb.mxu0 %v11826_v31  ;;  %v13540_v31 = vld [vmem:[%s19377_s7 + $0x40c] sm:$0xf0]  ;;  %v11986_v0 = vor.u32 %v13629_v36, %v11985_v32  ;;  %v11822_v32 = vor.u32 %v13586_v22, %v11819_v49  ;;  %v11683_v36 = vld [vmem:[%s19377_s7 + $0x478] sm:$0xf0]  ;;  %v11995_v22 = vld [vmem:[%s19377_s7 + $0x6f0] sm:$0xf0] }
 0x942   : > { %6825 = vmatpush.bf16.msra.mxu1 %v11590_v8  ;;  %7034 = vmatpush.bf16.msrb.mxu2 %v11706_v6  ;;  %v13538_v8 = vld [vmem:[%s19377_s7 + $0x404] sm:$0xf]  ;;  %v11627_v6 = vld [vmem:[%s19377_s7 + $0x410] sm:$0xf0] }
 0x943   : > { %7047 = vmatpush.bf16.msrb.mxu3 %v11710_v16  ;;  %v13600_v16 = vld [vmem:[%s19377_s7 + $0x5ec] sm:$0xf0] }
 0x944   : > { %7317 = vmatpush.bf16.msrb.mxu0 %v11810_v35  ;;  %v11626_v35 = vor.u32 %v13540_v31, %v11625_v50  ;;  %v11866_v12 = vor.u32 %v13600_v16, %v11865_v38  ;;  %v11667_v16 = vld [vmem:[%s19377_s7 + $0x458] sm:$0xf0] }
 0x946   : > { %6826 = vmatpush.bf16.msra.mxu1 %v11574_v25  ;;  %7035 = vmatpush.bf16.msrb.mxu2 %v11690_v4  ;;  %v11630_v25 = vor.u32 %v13538_v8, %v11627_v6  ;;  %v11750_v4 = vor.u32 %v13567_v33, %v11747_v41  ;;  %v11905_v6 = vld [vmem:[%s19377_s7 + $0x628] sm:$0xf]  ;;  %v13609_v33 = vld [vmem:[%s19377_s7 + $0x634] sm:$0xf0]  ;;  %v13547_v41 = vld [vmem:[%s19377_s7 + $0x44c] sm:$0xf] }
 0x947   : > { %7048 = vmatpush.bf16.msrb.mxu3 %v11694_v18  ;;  %v13563_v18 = vld [vmem:[%s19377_s7 + $0x4cc] sm:$0xf] }
 0x948   : > { %7318 = vmatpush.bf16.msrb.mxu0 %v11794_v21  ;;  %v11851_v21 = vld [vmem:[%s19377_s7 + $0x5d0] sm:$0xf0] }
 0x949   : > { %v11854_v57 = vor.u32 %v13594_v55, %v11851_v21  ;;  %v13576_v55 = vld [vmem:[%s19377_s7 + $0x52c] sm:$0xf0]  ;;  %v13574_v21 = vld [vmem:[%s19377_s7 + $0x524] sm:$0xf] }
 0x94a   : > { %6827 = vmatpush.bf16.msra.mxu1 %v11558_v9  ;;  %7036 = vmatpush.bf16.msrb.mxu2 %v11674_v53  ;;  %v11970_v9 = vor.u32 %v13625_v13, %v11969_v54  ;;  %v11734_v53 = vor.u32 %v13563_v18, %v11731_v47  ;;  %v13605_v54 = vld [vmem:[%s19377_s7 + $0x614] sm:$0xf0]  ;;  %v12129_v13 = vld [vmem:[%s19377_s7 + $0x7e8] sm:$0xf]  ;;  %v13543_v47 = vld [vmem:[%s19377_s7 + $0x42c] sm:$0xf] }
 0x94b   : > { %7049 = vmatpush.bf16.msrb.mxu3 %v11678_v56  ;;  %v13559_v56 = vld [vmem:[%s19377_s7 + $0x4ac] sm:$0xf]  ;;  %v13665_v18 = vld [vmem:[%s19377_s7 + $0x7f4] sm:$0xf0] }
 0x94c   : > { %7319 = vmatpush.bf16.msrb.mxu0 %v11778_v23  ;;  %v11954_v23 = vor.u32 %v13621_v61, %v11953_v7  ;;  %v11718_v43 = vor.u32 %v13559_v56, %v11715_v24  ;;  %v11654_v7 = vor.u32 %v13543_v47, %v11651_v52  ;;  %v12113_v61 = vld [vmem:[%s19377_s7 + $0x7c8] sm:$0xf]  ;;  %v13661_v56 = vld [vmem:[%s19377_s7 + $0x7d4] sm:$0xf0]  ;;  %v11770_v24 = vor.u32 %v13576_v55, %v11769_v1  ;;  %v11945_v47 = vld [vmem:[%s19377_s7 + $0x680] sm:$0xf] }
 0x94d   : > { %v12114_v2 = vor.u32 %v13661_v56, %v12113_v61  ;;  %v13620_v52 = vld [vmem:[%s19377_s7 + $0x68c] sm:$0xf0]  ;;  %v13618_v55 = vld [vmem:[%s19377_s7 + $0x684] sm:$0xf]  ;;  %v13645_v61 = vld [vmem:[%s19377_s7 + $0x754] sm:$0xf0] }
 0x94e   : > { %6828 = vmatpush.bf16.msra.mxu1 %v11542_v28  ;;  %7037 = vmatpush.bf16.msrb.mxu2 %v11658_v14  ;;  %v11834_v28 = vor.u32 %v13592_v15, %v11833_v10  ;;  %v11937_v14 = vld [vmem:[%s19377_s7 + $0x668] sm:$0xf]  ;;  %v11635_v15 = vld [vmem:[%s19377_s7 + $0x418] sm:$0xf0]  ;;  %v13583_v56 = vld [vmem:[%s19377_s7 + $0x56c] sm:$0xf] }
 0x94f   : > { %7050 = vmatpush.bf16.msrb.mxu3 %v11662_v30  ;;  %v11817_v30 = vld [vmem:[%s19377_s7 + $0x580] sm:$0xf]  ;;  %v11938_v39 = vor.u32 %v13617_v63, %v11937_v14  ;;  %v11875_v14 = vld [vmem:[%s19377_s7 + $0x5f8] sm:$0xf0] }
 0x950   : > { %7320 = vmatpush.bf16.msrb.mxu0 %v11762_v29  ;;  %v11818_v11 = vor.u32 %v13588_v3, %v11817_v30  ;;  %v11921_v29 = vld [vmem:[%s19377_s7 + $0x648] sm:$0xf]  ;;  %v11993_v63 = vld [vmem:[%s19377_s7 + $0x6e0] sm:$0xf]  ;;  %v13630_v3 = vld [vmem:[%s19377_s7 + $0x6e4] sm:$0xf] }
 0x952   : > { %6829 = vmatpush.bf16.msra.mxu1 %v11526_v17  ;;  %7038 = vmatpush.bf16.msrb.mxu2 %v11642_v46  ;;  %v13551_v17 = vld [vmem:[%s19377_s7 + $0x46c] sm:$0xf]  ;;  %v13584_v46 = vld [vmem:[%s19377_s7 + $0x56c] sm:$0xf0] }
 0x953   : > { %7051 = vmatpush.bf16.msrb.mxu3 %v11646_v59  ;;  %7321 = vmatmul.bf16.vlgmr.msrb.gmra.mxu0 %v16905_v62  ;;  %v13582_v59 = vld [vmem:[%s19377_s7 + $0x564] sm:$0xf]  ;;  %v11686_v31 = vor.u32 %v13551_v17, %v11683_v36  ;;  %v11802_v8 = vor.u32 %v13584_v46, %v11801_v60  ;;  %v11998_v17 = vor.u32 %v13630_v3, %v11995_v22  ;;  %v11977_v36 = vld [vmem:[%s19377_s7 + $0x6c0] sm:$0xf]  ;;  %v13628_v60 = vld [vmem:[%s19377_s7 + $0x6cc] sm:$0xf0] }
 0x954   : > { %7563 = vmatpush.bf16.msra.mxu0 %v12002_v51  ;;  %v13613_v51 = vld [vmem:[%s19377_s7 + $0x654] sm:$0xf0]  ;;  %v11806_v38 = vor.u32 %v13582_v59, %v11803_v20  ;;  %v13626_v59 = vld [vmem:[%s19377_s7 + $0x6c4] sm:$0xf]  ;;  %v11979_v20 = vld [vmem:[%s19377_s7 + $0x6d0] sm:$0xf0] }
 0x955   : > { %v11922_v50 = vor.u32 %v13613_v51, %v11921_v29  ;;  %v13657_v29 = vld [vmem:[%s19377_s7 + $0x7b4] sm:$0xf0]  ;;  %v13595_v51 = vld [vmem:[%s19377_s7 + $0x5cc] sm:$0xf] }
 0x956   : > { %6830 = vmatpush.bf16.msra.mxu1 %v11510_v26  ;;  %7039 = vmatpush.bf16.msrb.mxu2 %v11626_v35  ;;  %v13580_v26 = vld [vmem:[%s19377_s7 + $0x54c] sm:$0xf0]  ;;  %v11906_v35 = vor.u32 %v13609_v33, %v11905_v6  ;;  %v12081_v6 = vld [vmem:[%s19377_s7 + $0x788] sm:$0xf]  ;;  %v13653_v33 = vld [vmem:[%s19377_s7 + $0x794] sm:$0xf0] }
 0x957   : > { %7052 = vmatpush.bf16.msrb.mxu3 %v11630_v25  ;;  %v11889_v25 = vld [vmem:[%s19377_s7 + $0x608] sm:$0xf]  ;;  %v13641_v3 = vld [vmem:[%s19377_s7 + $0x734] sm:$0xf0]  ;;  %v13579_v22 = vld [vmem:[%s19377_s7 + $0x54c] sm:$0xf] }
 0x958   : > { %7564 = vmatpush.bf16.msra.mxu0 %v11986_v0  ;;  %v11785_v0 = vld [vmem:[%s19377_s7 + $0x540] sm:$0xf] }
 0x959   : > { %6831 = vmatmul.bf16.vlgmr.msra.gmra.mxu1 %v16495_v5  ;;  %7040 = vmatmul.bf16.vlgmr.msrb.gmra.mxu2 %v16703_v45  ;;  %v13590_v5 = vld [vmem:[%s19377_s7 + $0x5a4] sm:$0xf] }
 0x95a   : > { %7071 = vmatpush.bf16.msrb.mxu1 %v11750_v4  ;;  %7287 = vmatpush.bf16.msra.mxu2 %v11866_v12  ;;  %v11838_v40 = vor.u32 %v13590_v5, %v11835_v48  ;;  %v11670_v4 = vor.u32 %v13547_v41, %v11667_v16  ;;  %v11786_v12 = vor.u32 %v13580_v26, %v11785_v0  ;;  %v11753_v5 = vld [vmem:[%s19377_s7 + $0x500] sm:$0xf]  ;;  %v13572_v48 = vld [vmem:[%s19377_s7 + $0x50c] sm:$0xf0]  ;;  %v13591_v41 = vld [vmem:[%s19377_s7 + $0x5ac] sm:$0xf] }
 0x95b   : > { %7300 = vmatpush.bf16.msra.mxu3 %v11870_v37  ;;  %v11790_v37 = vor.u32 %v13578_v19, %v11787_v44  ;;  %v11754_v49 = vor.u32 %v13572_v48, %v11753_v5  ;;  %v11843_v16 = vld [vmem:[%s19377_s7 + $0x5b8] sm:$0xf0]  ;;  %v11961_v0 = vld [vmem:[%s19377_s7 + $0x6a0] sm:$0xf]  ;;  %v13624_v26 = vld [vmem:[%s19377_s7 + $0x6ac] sm:$0xf0]  ;;  %v12082_v44 = vor.u32 %v13653_v33, %v12081_v6 }
 0x95c   : > { %7053 = vmatmul.bf16.vlgmr.msrb.gmra.mxu3 %v16703_v45  ;;  %7565 = vmatpush.bf16.msra.mxu0 %v11970_v9  ;;  %v11771_v9 = vld [vmem:[%s19377_s7 + $0x530] sm:$0xf0]  ;;  %v13614_v48 = vld [vmem:[%s19377_s7 + $0x664] sm:$0xf]  ;;  %v11779_v6 = vld [vmem:[%s19377_s7 + $0x538] sm:$0xf0] }
 0x95d   : > { %v11774_v10 = vor.u32 %v13574_v21, %v11771_v9  ;;  %v11963_v19 = vld [vmem:[%s19377_s7 + $0x6b0] sm:$0xf0]  ;;  %v11897_v33 = vld [vmem:[%s19377_s7 + $0x620] sm:$0xf] }
 0x95e   : > { %7072 = vmatpush.bf16.msrb.mxu1 %v11734_v53  ;;  %7288 = vmatpush.bf16.msra.mxu2 %v11850_v27  ;;  %v11890_v53 = vor.u32 %v13605_v54, %v11889_v25  ;;  %v12130_v27 = vor.u32 %v13665_v18, %v12129_v13  ;;  %v11962_v25 = vor.u32 %v13624_v26, %v11961_v0  ;;  %v13649_v54 = vld [vmem:[%s19377_s7 + $0x774] sm:$0xf0]  ;;  %v13587_v13 = vld [vmem:[%s19377_s7 + $0x58c] sm:$0xf]  ;;  %v11947_v21 = vld [vmem:[%s19377_s7 + $0x690] sm:$0xf0] }
 0x95f   : > { %7301 = vmatpush.bf16.msra.mxu3 %v11854_v57  ;;  %v13539_v57 = vld [vmem:[%s19377_s7 + $0x40c] sm:$0xf]  ;;  %v11899_v0 = vld [vmem:[%s19377_s7 + $0x630] sm:$0xf0] }
 0x960   : > { %7566 = vmatpush.bf16.msra.mxu0 %v11954_v23  ;;  %v13570_v23 = vld [vmem:[%s19377_s7 + $0x504] sm:$0xf]  ;;  %v11638_v30 = vor.u32 %v13539_v57, %v11635_v15  ;;  %v11950_v57 = vor.u32 %v13618_v55, %v11947_v21  ;;  %v13616_v15 = vld [vmem:[%s19377_s7 + $0x66c] sm:$0xf0]  ;;  %v11883_v55 = vld [vmem:[%s19377_s7 + $0x610] sm:$0xf0] }
 0x961   : > { %v13631_v21 = vld [vmem:[%s19377_s7 + $0x6ec] sm:$0xf] }
 0x962   : > { %7073 = vmatpush.bf16.msrb.mxu1 %v11718_v43  ;;  %7289 = vmatpush.bf16.msra.mxu2 %v11834_v28  ;;  %v11755_v43 = vld [vmem:[%s19377_s7 + $0x510] sm:$0xf0]  ;;  %v13599_v28 = vld [vmem:[%s19377_s7 + $0x5ec] sm:$0xf] }
 0x963   : > { %7302 = vmatpush.bf16.msra.mxu3 %v11838_v40  ;;  %v17104_v40 = vrot.slane %v16866_v34, 1  ;;  %v12097_v34 = vld [vmem:[%s19377_s7 + $0x7a8] sm:$0xf] }
 0x964   : > { %7567 = vmatpush.bf16.msra.mxu0 %v11938_v39  ;;  %v11758_v39 = vor.u32 %v13570_v23, %v11755_v43  ;;  %v11931_v23 = vld [vmem:[%s19377_s7 + $0x670] sm:$0xf0] }
 0x966   : > { %7074 = vmatpush.bf16.msrb.mxu1 %v11702_v42  ;;  %7290 = vmatpush.bf16.msra.mxu2 %v11818_v11  ;;  %v11878_v42 = vor.u32 %v13599_v28, %v11875_v14  ;;  %v11994_v11 = vor.u32 %v13632_v58, %v11993_v63 }
 0x967   : > { %7303 = vmatpush.bf16.msra.mxu3 %v11822_v32  ;;  %v11859_v32 = vld [vmem:[%s19377_s7 + $0x5d8] sm:$0xf0] }
 0x968   : > { %7568 = vmatpush.bf16.msra.mxu0 %v11922_v50  ;;  %v12098_v50 = vor.u32 %v13657_v29, %v12097_v34  ;;  %v13610_v34 = vld [vmem:[%s19377_s7 + $0x644] sm:$0xf]  ;;  %v11915_v29 = vld [vmem:[%s19377_s7 + $0x650] sm:$0xf0] }
 0x96a   : > { %7075 = vmatpush.bf16.msrb.mxu1 %v11686_v31  ;;  %7291 = vmatpush.bf16.msra.mxu2 %v11802_v8  ;;  %v11862_v31 = vor.u32 %v13595_v51, %v11859_v32  ;;  %v11978_v8 = vor.u32 %v13628_v60, %v11977_v36  ;;  %v12017_v32 = vld [vmem:[%s19377_s7 + $0x708] sm:$0xf] }
 0x96b   : > { %7304 = vmatpush.bf16.msra.mxu3 %v11806_v38  ;;  %v11982_v38 = vor.u32 %v13626_v59, %v11979_v20  ;;  %v13637_v59 = vld [vmem:[%s19377_s7 + $0x714] sm:$0xf0]  ;;  %v12257_v20 = vld [vmem:[%s19377_s7 + $0x8e8] sm:$0xf] }
 0x96c   : > { %7569 = vmatpush.bf16.msra.mxu0 %v11906_v35  ;;  %v11846_v35 = vor.u32 %v13591_v41, %v11843_v16  ;;  %v13606_v16 = vld [vmem:[%s19377_s7 + $0x624] sm:$0xf]  ;;  %v12018_v26 = vor.u32 %v13637_v59, %v12017_v32  ;;  %v13685_v32 = vld [vmem:[%s19377_s7 + $0x894] sm:$0xf0] }
 0x96e   : > { %7076 = vmatpush.bf16.msrb.mxu1 %v11670_v4  ;;  %7292 = vmatpush.bf16.msra.mxu2 %v11786_v12  ;;  %v12065_v12 = vld [vmem:[%s19377_s7 + $0x768] sm:$0xf] }
 0x96f   : > { %7305 = vmatpush.bf16.msra.mxu3 %v11790_v37  ;;  %v17131_v46 = vpop.f32.mrf.mxu0  ;;  %v11827_v37 = vld [vmem:[%s19377_s7 + $0x598] sm:$0xf0]  ;;  %v12066_v9 = vor.u32 %v13649_v54, %v12065_v12  ;;  %v13693_v12 = vld [vmem:[%s19377_s7 + $0x8d4] sm:$0xf0]  ;;  %v13571_v54 = vld [vmem:[%s19377_s7 + $0x50c] sm:$0xf] }
 0x970   : > { %7570 = vmatpush.bf16.msra.mxu0 %v11890_v53  ;;  %v11830_v53 = vor.u32 %v13587_v13, %v11827_v37  ;;  %v11763_v37 = vld [vmem:[%s19377_s7 + $0x518] sm:$0xf0] }
 0x972   : > { %7077 = vmatpush.bf16.msrb.mxu1 %v11654_v7  ;;  %7293 = vmatpush.bf16.msra.mxu2 %v11770_v24  ;;  %v12049_v7 = vld [vmem:[%s19377_s7 + $0x748] sm:$0xf]  ;;  %v11811_v24 = vld [vmem:[%s19377_s7 + $0x578] sm:$0xf0] }
 0x973   : > { %7306 = vmatpush.bf16.msra.mxu3 %v11774_v10  ;;  %7571 = vmatmul.bf16.vlgmr.msra.gmra.mxu0 %v17104_v40  ;;  %v11929_v10 = vld [vmem:[%s19377_s7 + $0x660] sm:$0xf]  ;;  %v12050_v43 = vor.u32 %v13645_v61, %v12049_v7  ;;  %v11814_v63 = vor.u32 %v13583_v56, %v11811_v24  ;;  %v13664_v7 = vld [vmem:[%s19377_s7 + $0x7ec] sm:$0xf0]  ;;  %v17314_v61 = vrot.slane %v16905_v62, 1 }
 0x974   : > { %7813 = vmatpush.bf16.msrb.mxu0 %v12130_v27  ;;  %v11946_v27 = vor.u32 %v13620_v52, %v11945_v47  ;;  %v11930_v58 = vor.u32 %v13616_v15, %v11929_v10  ;;  %v11881_v47 = vld [vmem:[%s19377_s7 + $0x600] sm:$0xf]  ;;  %v13604_v52 = vld [vmem:[%s19377_s7 + $0x60c] sm:$0xf0]  ;;  %v13662_v24 = vld [vmem:[%s19377_s7 + $0x7e4] sm:$0xf] }
 0x975   : > { %v17166_v4 = vpop.f32.mrf.mxu1  ;;  %v12123_v10 = vld [vmem:[%s19377_s7 + $0x7f0] sm:$0xf0]  ;;  %v11882_v15 = vor.u32 %v13604_v52, %v11881_v47  ;;  %v13650_v47 = vld [vmem:[%s19377_s7 + $0x784] sm:$0xf] }
 0x976   : > { %7078 = vmatpush.bf16.msrb.mxu1 %v11638_v30  ;;  %7294 = vmatpush.bf16.msra.mxu2 %v11754_v49  ;;  %v12033_v30 = vld [vmem:[%s19377_s7 + $0x728] sm:$0xf]  ;;  %v11934_v49 = vor.u32 %v13614_v48, %v11931_v23  ;;  %v12075_v52 = vld [vmem:[%s19377_s7 + $0x790] sm:$0xf0] }
 0x977   : > { %7307 = vmatpush.bf16.msra.mxu3 %v11758_v39  ;;  %v6325_v1 = vpop.f32.mrf.mxu0  ;;  %v11795_v39 = vld [vmem:[%s19377_s7 + $0x558] sm:$0xf0]  ;;  %v12034_v51 = vor.u32 %v13641_v3, %v12033_v30 }
 0x978   : > { %7814 = vmatpush.bf16.msrb.mxu0 %v12114_v2  ;;  %v11798_v60 = vor.u32 %v13579_v22, %v11795_v39  ;;  %v13602_v1 = vld [vmem:[%s19377_s7 + $0x604] sm:$0xf]  ;;  %v11987_v3 = vld [vmem:[%s19377_s7 + $0x6d8] sm:$0xf0]  ;;  %v12105_v22 = vld [vmem:[%s19377_s7 + $0x7c0] sm:$0xf] }
 0x979   : > { %7079 = vmatmul.bf16.vlgmr.msrb.gmra.mxu1 %v16703_v45  ;;  %7295 = vmatmul.bf16.vlgmr.msra.gmra.mxu2 %v16905_v62  ;;  %v13622_v45 = vld [vmem:[%s19377_s7 + $0x6a4] sm:$0xf]  ;;  %v11886_v48 = vor.u32 %v13602_v1, %v11883_v55 }
 0x97a   : > { %7326 = vmatpush.bf16.msra.mxu1 %v11878_v42  ;;  %7537 = vmatpush.bf16.msrb.mxu2 %v11994_v11  ;;  %v11966_v18 = vor.u32 %v13622_v45, %v11963_v19  ;;  %v11913_v42 = vld [vmem:[%s19377_s7 + $0x640] sm:$0xf]  ;;  %v13612_v11 = vld [vmem:[%s19377_s7 + $0x64c] sm:$0xf0] }
 0x97b   : > { %7550 = vmatpush.bf16.msrb.mxu3 %v11998_v17  ;;  %v17210_v5 = vpop.f32.mrf.mxu2 }
 0x97c   : > { %7308 = vmatmul.bf16.vlgmr.msra.gmra.mxu3 %v16905_v62  ;;  %7815 = vmatpush.bf16.msrb.mxu0 %v12098_v50  ;;  %v6111_v28 = vpop.f32.mrf.mxu3  ;;  %v13697_v50 = vld [vmem:[%s19377_s7 + $0x8f4] sm:$0xf0] }
 0x97d   : > { %v6324_v14 = vadd.f32 %v17131_v46, %v6111_v28  ;;  %v6087_v2 = vpop.f32.mrf.mxu1  ;;  %v11914_v46 = vor.u32 %v13612_v11, %v11913_v42  ;;  %v12258_v19 = vor.u32 %v13697_v50, %v12257_v20  ;;  %v12225_v28 = vld [vmem:[%s19377_s7 + $0x8a8] sm:$0xf]  ;;  %v11971_v20 = vld [vmem:[%s19377_s7 + $0x6b8] sm:$0xf0]  ;;  %v12089_v50 = vld [vmem:[%s19377_s7 + $0x7a0] sm:$0xf] }
 0x97e   : > { %7327 = vmatpush.bf16.msra.mxu1 %v11862_v31  ;;  %7538 = vmatpush.bf16.msrb.mxu2 %v11978_v8  ;;  %v11918_v31 = vor.u32 %v13610_v34, %v11915_v29  ;;  %v13575_v8 = vld [vmem:[%s19377_s7 + $0x52c] sm:$0xf]  ;;  %v13658_v34 = vld [vmem:[%s19377_s7 + $0x7c4] sm:$0xf]  ;;  %v12107_v29 = vld [vmem:[%s19377_s7 + $0x7d0] sm:$0xf0] }
 0x97f   : > { %7551 = vmatpush.bf16.msrb.mxu3 %v11982_v38  ;;  %v13608_v38 = vld [vmem:[%s19377_s7 + $0x62c] sm:$0xf0] }
 0x980   : > { %7816 = vmatpush.bf16.msrb.mxu0 %v12082_v44  ;;  %v6569_v17 = vpop.f32.mrf.mxu0  ;;  %v11782_v44 = vor.u32 %v13575_v8, %v11779_v6  ;;  %v11898_v13 = vor.u32 %v13608_v38, %v11897_v33  ;;  %v13654_v8 = vld [vmem:[%s19377_s7 + $0x7a4] sm:$0xf]  ;;  %v12091_v6 = vld [vmem:[%s19377_s7 + $0x7b0] sm:$0xf0] }
 0x981   : > { %v17246_v36 = vadd.f32 %v6569_v17, %v6324_v14  ;;  %v13689_v14 = vld [vmem:[%s19377_s7 + $0x8b4] sm:$0xf0] }
 0x982   : > { %7328 = vmatpush.bf16.msra.mxu1 %v11846_v35  ;;  %7539 = vmatpush.bf16.msrb.mxu2 %v11962_v25  ;;  %v12241_v25 = vld [vmem:[%s19377_s7 + $0x8c8] sm:$0xf]  ;;  %v5814_v38 = vld [vmem:[#allocation6 + $0x29] ss:$2 sm:$0xf] }
 0x983   : > { %7552 = vmatpush.bf16.msrb.mxu3 %v11966_v18  ;;  %v6100_v41 = vpop.f32.mrf.mxu2  ;;  %v11902_v18 = vor.u32 %v13606_v16, %v11899_v0  ;;  %v12242_v56 = vor.u32 %v13693_v12, %v12241_v25  ;;  %v12094_v25 = vor.u32 %v13654_v8, %v12091_v6 }
 0x984   : > { %7817 = vmatpush.bf16.msrb.mxu0 %v12066_v9  ;;  %v6113_v45 = vpop.f32.mrf.mxu3  ;;  %v5806_v41 = vld [vmem:[#allocation6 + $0x28] ss:$2 sm:$0xf] }
 0x985   : > { %v17275_v35 = vpop.f32.mrf.mxu1  ;;  %v13619_v45 = vld [vmem:[%s19377_s7 + $0x68c] sm:$0xf] }
 0x986   : > { %7329 = vmatpush.bf16.msra.mxu1 %v11830_v53  ;;  %7540 = vmatpush.bf16.msrb.mxu2 %v11946_v27  ;;  %v12003_v53 = vld [vmem:[%s19377_s7 + $0x6f8] sm:$0xf0]  ;;  %v12121_v27 = vld [vmem:[%s19377_s7 + $0x7e0] sm:$0xf] }
 0x987   : > { %7553 = vmatpush.bf16.msrb.mxu3 %v11950_v57  ;;  %v11766_v57 = vor.u32 %v13571_v54, %v11763_v37  ;;  %v12006_v23 = vor.u32 %v13631_v21, %v12003_v53  ;;  %v13652_v37 = vld [vmem:[%s19377_s7 + $0x78c] sm:$0xf0]  ;;  %v5823_v21 = vmax.f32 %v5806_v41, %v5814_v38  ;;  %v13607_v38 = vld [vmem:[%s19377_s7 + $0x62c] sm:$0xf] }
 0x988   : > { %7818 = vmatpush.bf16.msrb.mxu0 %v12050_v43  ;;  %v6571_v9 = vpop.f32.mrf.mxu0  ;;  %v12122_v43 = vor.u32 %v13664_v7, %v12121_v27  ;;  %v12177_v7 = vld [vmem:[%s19377_s7 + $0x848] sm:$0xf] }
 0x98a   : > { %7330 = vmatpush.bf16.msra.mxu1 %v11814_v63  ;;  %7541 = vmatpush.bf16.msrb.mxu2 %v11930_v58  ;;  %v13627_v63 = vld [vmem:[%s19377_s7 + $0x6cc] sm:$0xf]  ;;  %v12126_v58 = vor.u32 %v13662_v24, %v12123_v10  ;;  %v12078_v24 = vor.u32 %v13650_v47, %v12075_v52  ;;  %v11891_v52 = vld [vmem:[%s19377_s7 + $0x618] sm:$0xf0] }
 0x98b   : > { %7554 = vmatpush.bf16.msrb.mxu3 %v11934_v49  ;;  %v13660_v49 = vld [vmem:[%s19377_s7 + $0x7cc] sm:$0xf0]  ;;  %v11990_v17 = vor.u32 %v13627_v63, %v11987_v3  ;;  %v13673_v3 = vld [vmem:[%s19377_s7 + $0x834] sm:$0xf0] }
 0x98c   : > { %7819 = vmatpush.bf16.msrb.mxu0 %v12034_v51  ;;  %v6297_v2 = vpop.f32.mrf.mxu2  ;;  %v6310_v30 = vpop.f32.mrf.mxu3  ;;  %v12226_v51 = vor.u32 %v13689_v14, %v12225_v28  ;;  %v12059_v28 = vld [vmem:[%s19377_s7 + $0x770] sm:$0xf0] }
 0x98d   : > { %v17342_v39 = vadd.f32 %v6297_v2, %v17166_v4  ;;  %v17345_v42 = vadd.f32 %v6310_v30, %v17210_v5  ;;  %v6126_v11 = vpop.f32.mrf.mxu1  ;;  %v12106_v4 = vor.u32 %v13660_v49, %v12105_v22  ;;  %v12209_v5 = vld [vmem:[%s19377_s7 + $0x888] sm:$0xf]  ;;  %v13611_v22 = vld [vmem:[%s19377_s7 + $0x64c] sm:$0xf] }
 0x98e   : > { %7331 = vmatpush.bf16.msra.mxu1 %v11798_v60  ;;  %7542 = vmatpush.bf16.msrb.mxu2 %v11914_v46  ;;  %v13623_v60 = vld [vmem:[%s19377_s7 + $0x6ac] sm:$0xf]  ;;  %v12110_v46 = vor.u32 %v13658_v34, %v12107_v29  ;;  %v12210_v33 = vor.u32 %v13685_v32, %v12209_v5  ;;  %v12161_v30 = vld [vmem:[%s19377_s7 + $0x828] sm:$0xf]  ;;  %v11923_v11 = vld [vmem:[%s19377_s7 + $0x658] sm:$0xf0] }
 0x98f   : > { %7555 = vmatpush.bf16.msrb.mxu3 %v11918_v31  ;;  %v13656_v31 = vld [vmem:[%s19377_s7 + $0x7ac] sm:$0xf0]  ;;  %v11974_v16 = vor.u32 %v13623_v60, %v11971_v20  ;;  %v12041_v34 = vld [vmem:[%s19377_s7 + $0x740] sm:$0xf]  ;;  %v12043_v5 = vld [vmem:[%s19377_s7 + $0x750] sm:$0xf0]  ;;  %v11926_v8 = vor.u32 %v13611_v22, %v11923_v11 }
 0x990   : > { %7820 = vmatpush.bf16.msrb.mxu0 %v12018_v26  ;;  %v6819_v59 = vpop.f32.mrf.mxu0  ;;  %v12090_v0 = vor.u32 %v13656_v31, %v12089_v50  ;;  %v13681_v26 = vld [vmem:[%s19377_s7 + $0x874] sm:$0xf0]  ;;  %v13644_v29 = vld [vmem:[%s19377_s7 + $0x74c] sm:$0xf0]  ;;  %v12145_v20 = vld [vmem:[%s19377_s7 + $0x808] sm:$0xf] }
 0x991   : > { %v14017_v50 = vld [vmem:[%s19376_s6] ss:$0 sm:$0xff]  ;;  %v12042_v6 = vor.u32 %v13644_v29, %v12041_v34  ;;  %v13692_v34 = vld [vmem:[%s19377_s7 + $0x8cc] sm:$0xf0]  ;;  %v13690_v29 = vld [vmem:[%s19377_s7 + $0x8c4] sm:$0xf] }
 0x992   : > { %7332 = vmatpush.bf16.msra.mxu1 %v11782_v44  ;;  %7543 = vmatpush.bf16.msrb.mxu2 %v11898_v13  ;;  %v5798_v44 = vld [vmem:[#allocation6 + $0x21] ss:$2 sm:$0xf]  ;;  %v11955_v13 = vld [vmem:[%s19377_s7 + $0x698] sm:$0xf0] }
 0x993   : > { %7556 = vmatpush.bf16.msrb.mxu3 %v11902_v18  ;;  %7821 = vmatmul.bf16.vlgmr.msrb.gmra.mxu0 %v17314_v61  ;;  %v12073_v18 = vld [vmem:[%s19377_s7 + $0x780] sm:$0xf]  ;;  %v11958_v53 = vor.u32 %v13619_v45, %v11955_v13  ;;  %v12027_v45 = vld [vmem:[%s19377_s7 + $0x730] sm:$0xf0]  ;;  %v13725_v13 = vld [vmem:[%s19377_s7 + $0x9d4] sm:$0xf0] }
 0x994   : > { %8061 = vmatpush.bf16.msra.mxu0 %v12258_v19  ;;  %v5790_v19 = vld [vmem:[#allocation6 + $0x20] ss:$2 sm:$0xf]  ;;  %v6299_v12 = vpop.f32.mrf.mxu2  ;;  %v6312_v54 = vpop.f32.mrf.mxu3  ;;  %v12074_v27 = vor.u32 %v13652_v37, %v12073_v18  ;;  %v13603_v18 = vld [vmem:[%s19377_s7 + $0x60c] sm:$0xf] }
 0x995   : > { %v12369_v54 = vld [vmem:[%s19377_s7 + $0x9c8] sm:$0xf]  ;;  %v12233_v11 = vld [vmem:[%s19377_s7 + $0x8c0] sm:$0xf] }
 0x996   : > { %7333 = vmatpush.bf16.msra.mxu1 %v11766_v57  ;;  %7544 = vmatpush.bf16.msrb.mxu2 %v11882_v15  ;;  %v6336_v55 = vpop.f32.mrf.mxu1  ;;  %v13615_v57 = vld [vmem:[%s19377_s7 + $0x66c] sm:$0xf]  ;;  %v12057_v15 = vld [vmem:[%s19377_s7 + $0x760] sm:$0xf] }
 0x997   : > { %7557 = vmatpush.bf16.msrb.mxu3 %v11886_v48  ;;  %v17408_v9 = vadd.f32 %v6336_v55, %v17275_v35  ;;  %v11939_v35 = vld [vmem:[%s19377_s7 + $0x678] sm:$0xf0]  ;;  %v13648_v48 = vld [vmem:[%s19377_s7 + $0x76c] sm:$0xf0] }
 0x998   : > { %8062 = vmatpush.bf16.msra.mxu0 %v12242_v56  ;;  %v13677_v56 = vld [vmem:[%s19377_s7 + $0x854] sm:$0xf0]  ;;  %v6821_v10 = vpop.f32.mrf.mxu0  ;;  %v12058_v2 = vor.u32 %v13648_v48, %v12057_v15  ;;  %v13636_v55 = vld [vmem:[%s19377_s7 + $0x70c] sm:$0xf0]  ;;  %v12370_v15 = vor.u32 %v13725_v13, %v12369_v54  ;;  %v11894_v48 = vor.u32 %v13603_v18, %v11891_v52  ;;  %v12203_v54 = vld [vmem:[%s19377_s7 + $0x890] sm:$0xf0] }
 0x999   : > { %7334 = vmatmul.bf16.vlgmr.msra.gmra.mxu1 %v16905_v62  ;;  %7545 = vmatmul.bf16.vlgmr.msrb.gmra.mxu2 %v17104_v40  ;;  %v17375_v62 = vadd.f32 %v6819_v59, %v17246_v36  ;;  %v12193_v36 = vld [vmem:[%s19377_s7 + $0x868] sm:$0xf]  ;;  %v12178_v14 = vor.u32 %v13677_v56, %v12177_v7  ;;  %v12011_v7 = vld [vmem:[%s19377_s7 + $0x710] sm:$0xf0]  ;;  %v13663_v56 = vld [vmem:[%s19377_s7 + $0x7ec] sm:$0xf] }
 0x99a   : > { %7576 = vmatpush.bf16.msrb.mxu1 %v12006_v23  ;;  %7787 = vmatpush.bf16.msra.mxu2 %v12122_v43  ;;  %v12194_v1 = vor.u32 %v13681_v26, %v12193_v36  ;;  %v5819_v23 = vmax.f32 %v5790_v19, %v5798_v44  ;;  %v13646_v43 = vld [vmem:[%s19377_s7 + $0x764] sm:$0xf]  ;;  %v13640_v36 = vld [vmem:[%s19377_s7 + $0x72c] sm:$0xf0]  ;;  %v12305_v52 = vld [vmem:[%s19377_s7 + $0x948] sm:$0xf] }
 0x99b   : > { %7800 = vmatpush.bf16.msra.mxu3 %v12126_v58  ;;  %v11942_v58 = vor.u32 %v13615_v57, %v11939_v35  ;;  %v12062_v49 = vor.u32 %v13646_v43, %v12059_v28  ;;  %v13638_v26 = vld [vmem:[%s19377_s7 + $0x724] sm:$0xf]  ;;  %v12131_v57 = vld [vmem:[%s19377_s7 + $0x7f8] sm:$0xf0]  ;;  %v13696_v10 = vld [vmem:[%s19377_s7 + $0x8ec] sm:$0xf0] }
 0x99c   : > { %7558 = vmatmul.bf16.vlgmr.msrb.gmra.mxu3 %v17104_v40  ;;  %8063 = vmatpush.bf16.msra.mxu0 %v12226_v51  ;;  %v5827_v63 = vmax.f32 %v5819_v23, %v5823_v21  ;;  %v6543_v51 = vpop.f32.mrf.mxu2  ;;  %v12030_v47 = vor.u32 %v13638_v26, %v12027_v45  ;;  %v13694_v23 = vld [vmem:[%s19377_s7 + $0x8e4] sm:$0xf]  ;;  %v12251_v43 = vld [vmem:[%s19377_s7 + $0x8f0] sm:$0xf0]  ;;  %v12083_v45 = vld [vmem:[%s19377_s7 + $0x798] sm:$0xf0] }
 0x99d   : > { %v17459_v32 = vadd.f32 %v6543_v51, %v17342_v39  ;;  %v13669_v39 = vld [vmem:[%s19377_s7 + $0x814] sm:$0xf0]  ;;  %v12254_v22 = vor.u32 %v13694_v23, %v12251_v43  ;;  %v12235_v51 = vld [vmem:[%s19377_s7 + $0x8d0] sm:$0xf0]  ;;  %v13643_v43 = vld [vmem:[%s19377_s7 + $0x74c] sm:$0xf] }
 0x99e   : > { %7577 = vmatpush.bf16.msrb.mxu1 %v11990_v17  ;;  %7788 = vmatpush.bf16.msra.mxu2 %v12106_v4  ;;  %v13642_v4 = vld [vmem:[%s19377_s7 + $0x744] sm:$0xf]  ;;  %v6338_v59 = vpop.f32.mrf.mxu1  ;;  %v5835_v31 = vadd.f32 %v14017_v50, %v5827_v63  ;;  %v12146_v19 = vor.u32 %v13669_v39, %v12145_v20  ;;  %v12134_v63 = vor.u32 %v13663_v56, %v12131_v57  ;;  %v13655_v20 = vld [vmem:[%s19377_s7 + $0x7ac] sm:$0xf]  ;;  %v13688_v39 = vld [vmem:[%s19377_s7 + $0x8ac] sm:$0xf0] }
 0x99f   : > { %7801 = vmatpush.bf16.msra.mxu3 %v12110_v46  ;;  %v6556_v17 = vpop.f32.mrf.mxu3  ;;  %v12162_v46 = vor.u32 %v13673_v3, %v12161_v30  ;;  %v12046_v41 = vor.u32 %v13642_v4, %v12043_v5  ;;  %v13721_v30 = vld [vmem:[%s19377_s7 + $0x9b4] sm:$0xf0]  ;;  %v13659_v3 = vld [vmem:[%s19377_s7 + $0x7cc] sm:$0xf]  ;;  %v12234_v5 = vor.u32 %v13692_v34, %v12233_v11  ;;  %v12238_v50 = vor.u32 %v13690_v29, %v12235_v51  ;;  %v13678_v56 = vld [vmem:[%s19377_s7 + $0x864] sm:$0xf] }
 0x9a0   : > { %8064 = vmatpush.bf16.msra.mxu0 %v12210_v33  ;;  %v17462_v60 = vadd.f32 %v6556_v17, %v17345_v42  ;;  %v12385_v42 = vld [vmem:[%s19377_s7 + $0x9e8] sm:$0xf]  ;;  %v13729_v33 = vld [vmem:[%s19377_s7 + $0x9f4] sm:$0xf0]  ;;  %v5839_v44 = vmax.f32 %v5835_v31, 0.0 }
 0x9a1   : > { %v13717_v59 = vld [vmem:[%s19377_s7 + $0x994] sm:$0xf0]  ;;  %v12187_v57 = vld [vmem:[%s19377_s7 + $0x870] sm:$0xf0]  ;;  %v13674_v11 = vld [vmem:[%s19377_s7 + $0x844] sm:$0xf] }
 0x9a2   : > { %7578 = vmatpush.bf16.msrb.mxu1 %v11974_v16  ;;  %7789 = vmatpush.bf16.msra.mxu2 %v12090_v0  ;;  %v11907_v16 = vld [vmem:[%s19377_s7 + $0x638] sm:$0xf0]  ;;  %v12025_v0 = vld [vmem:[%s19377_s7 + $0x720] sm:$0xf]  ;;  %v17533_v35 = vpack.c.bf16 %v5839_v44, %v5839_v44  ;;  %v13684_v44 = vld [vmem:[%s19377_s7 + $0x88c] sm:$0xf0] }
 0x9a3   : > { %7802 = vmatpush.bf16.msra.mxu3 %v12094_v25  ;;  %v12386_v25 = vor.u32 %v13729_v33, %v12385_v42  ;;  %v11910_v12 = vor.u32 %v13607_v38, %v11907_v16  ;;  %v12026_v37 = vor.u32 %v13640_v36, %v12025_v0  ;;  %v13686_v42 = vld [vmem:[%s19377_s7 + $0x8a4] sm:$0xf]  ;;  %v12219_v33 = vld [vmem:[%s19377_s7 + $0x8b0] sm:$0xf0]  ;;  %v12321_v0 = vld [vmem:[%s19377_s7 + $0x968] sm:$0xf] }
 0x9a4   : > { %8065 = vmatpush.bf16.msra.mxu0 %v12194_v1  ;;  %v12009_v1 = vld [vmem:[%s19377_s7 + $0x700] sm:$0xf]  ;;  %v6545_v21 = vpop.f32.mrf.mxu2  ;;  %v13651_v36 = vld [vmem:[%s19377_s7 + $0x78c] sm:$0xf]  ;;  %v12222_v26 = vor.u32 %v13686_v42, %v12219_v33  ;;  %v13705_v23 = vld [vmem:[%s19377_s7 + $0x934] sm:$0xf0] }
 0x9a5   : > { %v12010_v28 = vor.u32 %v13636_v55, %v12009_v1  ;;  %v13709_v1 = vld [vmem:[%s19377_s7 + $0x954] sm:$0xf0]  ;;  %v13647_v55 = vld [vmem:[%s19377_s7 + $0x76c] sm:$0xf]  ;;  %v12171_v34 = vld [vmem:[%s19377_s7 + $0x850] sm:$0xf0] }
 0x9a6   : > { %7579 = vmatpush.bf16.msrb.mxu1 %v11958_v53  ;;  %7790 = vmatpush.bf16.msra.mxu2 %v12074_v27  ;;  %v13634_v27 = vld [vmem:[%s19377_s7 + $0x704] sm:$0xf]  ;;  %v12273_v51 = vld [vmem:[%s19377_s7 + $0x908] sm:$0xf] }
 0x9a7   : > { %7803 = vmatpush.bf16.msra.mxu3 %v12078_v24  ;;  %v6558_v53 = vpop.f32.mrf.mxu3  ;;  %v12249_v24 = vld [vmem:[%s19377_s7 + $0x8e0] sm:$0xf] }
 0x9a8   : > { %8066 = vmatpush.bf16.msra.mxu0 %v12178_v14  ;;  %v12014_v14 = vor.u32 %v13634_v27, %v12011_v7  ;;  %v12067_v53 = vld [vmem:[%s19377_s7 + $0x778] sm:$0xf0]  ;;  %v12185_v27 = vld [vmem:[%s19377_s7 + $0x860] sm:$0xf]  ;;  %v13680_v7 = vld [vmem:[%s19377_s7 + $0x86c] sm:$0xf0] }
 0x9aa   : > { %7580 = vmatpush.bf16.msrb.mxu1 %v11942_v58  ;;  %7791 = vmatpush.bf16.msra.mxu2 %v12058_v2  ;;  %v12250_v58 = vor.u32 %v13696_v10, %v12249_v24  ;;  %v12353_v2 = vld [vmem:[%s19377_s7 + $0x9a8] sm:$0xf]  ;;  %v12306_v24 = vor.u32 %v13709_v1, %v12305_v52  ;;  %v12070_v10 = vor.u32 %v13647_v55, %v12067_v53  ;;  %v12377_v52 = vld [vmem:[%s19377_s7 + $0x9e0] sm:$0xf]  ;;  %v13728_v1 = vld [vmem:[%s19377_s7 + $0x9ec] sm:$0xf0] }
 0x9ab   : > { %7804 = vmatpush.bf16.msra.mxu3 %v12062_v49  ;;  %v12115_v49 = vld [vmem:[%s19377_s7 + $0x7d8] sm:$0xf0]  ;;  %v12354_v17 = vor.u32 %v13721_v30, %v12353_v2  ;;  %v12169_v2 = vld [vmem:[%s19377_s7 + $0x840] sm:$0xf]  ;;  %v13676_v30 = vld [vmem:[%s19377_s7 + $0x84c] sm:$0xf0] }
 0x9ac   : > { %8067 = vmatpush.bf16.msra.mxu0 %v12162_v46  ;;  %v12118_v4 = vor.u32 %v13659_v3, %v12115_v49  ;;  %v12337_v46 = vld [vmem:[%s19377_s7 + $0x988] sm:$0xf]  ;;  %v13726_v53 = vld [vmem:[%s19377_s7 + $0x9e4] sm:$0xf] }
 0x9ae   : > { %7581 = vmatpush.bf16.msrb.mxu1 %v11926_v8  ;;  %7792 = vmatpush.bf16.msra.mxu2 %v12042_v6  ;;  %v12099_v8 = vld [vmem:[%s19377_s7 + $0x7b8] sm:$0xf0]  ;;  %v12217_v6 = vld [vmem:[%s19377_s7 + $0x8a0] sm:$0xf] }
 0x9af   : > { %7805 = vmatpush.bf16.msra.mxu3 %v12046_v41  ;;  %v12338_v41 = vor.u32 %v13717_v59, %v12337_v46  ;;  %v12102_v38 = vor.u32 %v13655_v20, %v12099_v8  ;;  %v12218_v16 = vor.u32 %v13688_v39, %v12217_v6  ;;  %v8124_v46 = vunpack.c.l.b16 %v17533_v35  ;;  %v13639_v20 = vld [vmem:[%s19377_s7 + $0x72c] sm:$0xf]  ;;  %v13672_v8 = vld [vmem:[%s19377_s7 + $0x82c] sm:$0xf0]  ;;  %v13670_v6 = vld [vmem:[%s19377_s7 + $0x824] sm:$0xf] }
 0x9b0   : > { %8068 = vmatpush.bf16.msra.mxu0 %v12146_v19  ;;  %v7067_v31 = vpop.f32.mrf.mxu0  ;;  %v12201_v19 = vld [vmem:[%s19377_s7 + $0x880] sm:$0xf]  ;;  %v12174_v59 = vor.u32 %v13674_v11, %v12171_v34  ;;  %v12155_v39 = vld [vmem:[%s19377_s7 + $0x830] sm:$0xf0]  ;;  %v12465_v11 = vld [vmem:[%s19377_s7 + $0xa88] sm:$0xf] }
 0x9b1   : > { %v13749_v34 = vld [vmem:[%s19377_s7 + $0xa94] sm:$0xf0] }
 0x9b2   : > { %7582 = vmatpush.bf16.msrb.mxu1 %v11910_v12  ;;  %7793 = vmatpush.bf16.msra.mxu2 %v12026_v37  ;;  %v13682_v12 = vld [vmem:[%s19377_s7 + $0x884] sm:$0xf]  ;;  %v12086_v37 = vor.u32 %v13651_v36, %v12083_v45 }
 0x9b3   : > { %7806 = vmatpush.bf16.msra.mxu3 %v12030_v47  ;;  %8069 = vmatmul.bf16.vlgmr.msra.gmra.mxu0 %v17533_v35  ;;  %v12202_v47 = vor.u32 %v13684_v44, %v12201_v19  ;;  %v12206_v21 = vor.u32 %v13682_v12, %v12203_v54  ;;  %v12019_v44 = vld [vmem:[%s19377_s7 + $0x718] sm:$0xf0]  ;;  %v13668_v12 = vld [vmem:[%s19377_s7 + $0x80c] sm:$0xf0]  ;;  %v13666_v54 = vld [vmem:[%s19377_s7 + $0x804] sm:$0xf] }
 0x9b4   : > { %8316 = vmatpush.bf16.msrb.mxu0 %v12386_v25 }
 0x9b6   : > { %7583 = vmatpush.bf16.msrb.mxu1 %v11894_v48  ;;  %7794 = vmatpush.bf16.msra.mxu2 %v12010_v28  ;;  %v6582_v25 = vpop.f32.mrf.mxu1  ;;  %v12289_v48 = vld [vmem:[%s19377_s7 + $0x928] sm:$0xf]  ;;  %v12190_v28 = vor.u32 %v13678_v56, %v12187_v57 }
 0x9b7   : > { %7807 = vmatpush.bf16.msra.mxu3 %v12014_v14  ;;  %v17621_v18 = vadd.f32 %v6582_v25, %v17408_v9  ;;  %v12290_v29 = vor.u32 %v13705_v23, %v12289_v48  ;;  %v12137_v25 = vld [vmem:[%s19377_s7 + $0x800] sm:$0xf]  ;;  %v13691_v48 = vld [vmem:[%s19377_s7 + $0x8cc] sm:$0xf] }
 0x9b8   : > { %8317 = vmatpush.bf16.msrb.mxu0 %v12370_v15  ;;  %v7069_v9 = vpop.f32.mrf.mxu0  ;;  %v12186_v15 = vor.u32 %v13680_v7, %v12185_v27  ;;  %v12379_v27 = vld [vmem:[%s19377_s7 + $0x9f0] sm:$0xf0]  ;;  %v12138_v7 = vor.u32 %v13668_v12, %v12137_v25  ;;  %v13679_v25 = vld [vmem:[%s19377_s7 + $0x86c] sm:$0xf] }
 0x9b9   : > { %7584 = vmatmul.bf16.vlgmr.msrb.gmra.mxu1 %v17104_v40  ;;  %7795 = vmatmul.bf16.vlgmr.msra.gmra.mxu2 %v17314_v61  ;;  %v17588_v40 = vadd.f32 %v7067_v31, %v17375_v62  ;;  %v13713_v62 = vld [vmem:[%s19377_s7 + $0x974] sm:$0xf0]  ;;  %v12153_v31 = vld [vmem:[%s19377_s7 + $0x820] sm:$0xf]  ;;  %v12382_v23 = vor.u32 %v13726_v53, %v12379_v27  ;;  %v12417_v53 = vld [vmem:[%s19377_s7 + $0xa28] sm:$0xf] }
 0x9ba   : > { %7826 = vmatpush.bf16.msra.mxu1 %v12134_v63  ;;  %8035 = vmatpush.bf16.msrb.mxu2 %v12250_v58  ;;  %v12322_v13 = vor.u32 %v13713_v62, %v12321_v0  ;;  %v12051_v58 = vld [vmem:[%s19377_s7 + $0x758] sm:$0xf0]  ;;  %v13757_v0 = vld [vmem:[%s19377_s7 + $0xad4] sm:$0xf0]  ;;  %v13635_v62 = vld [vmem:[%s19377_s7 + $0x70c] sm:$0xf]  ;;  %v12154_v36 = vor.u32 %v13672_v8, %v12153_v31 }
 0x9bb   : > { %8048 = vmatpush.bf16.msrb.mxu3 %v12254_v22  ;;  %v12022_v9 = vor.u32 %v13635_v62, %v12019_v44  ;;  %v12449_v31 = vld [vmem:[%s19377_s7 + $0xa68] sm:$0xf]  ;;  %v13683_v8 = vld [vmem:[%s19377_s7 + $0x88c] sm:$0xf]  ;;  %v13741_v44 = vld [vmem:[%s19377_s7 + $0xa54] sm:$0xf0] }
 0x9bc   : > { %7808 = vmatmul.bf16.vlgmr.msra.gmra.mxu3 %v17314_v61  ;;  %8318 = vmatpush.bf16.msrb.mxu0 %v12354_v17  ;;  %v6793_v14 = vpop.f32.mrf.mxu2  ;;  %v13701_v17 = vld [vmem:[%s19377_s7 + $0x914] sm:$0xf0] }
 0x9bd   : > { %v17666_v3 = vadd.f32 %v6793_v14, %v17459_v32  ;;  %v12054_v32 = vor.u32 %v13643_v43, %v12051_v58  ;;  %v12274_v42 = vor.u32 %v13701_v17, %v12273_v51  ;;  %v12243_v43 = vld [vmem:[%s19377_s7 + $0x8d8] sm:$0xf0]  ;;  %v13724_v14 = vld [vmem:[%s19377_s7 + $0x9cc] sm:$0xf0]  ;;  %v12363_v58 = vld [vmem:[%s19377_s7 + $0x9d0] sm:$0xf0] }
 0x9be   : > { %7827 = vmatpush.bf16.msra.mxu1 %v12118_v4  ;;  %8036 = vmatpush.bf16.msrb.mxu2 %v12234_v5  ;;  %v6584_v49 = vpop.f32.mrf.mxu1  ;;  %v12513_v4 = vld [vmem:[%s19377_s7 + $0xae8] sm:$0xf]  ;;  %v13761_v5 = vld [vmem:[%s19377_s7 + $0xaf4] sm:$0xf0]  ;;  %v12345_v17 = vld [vmem:[%s19377_s7 + $0x9a0] sm:$0xf] }
 0x9bf   : > { %8049 = vmatpush.bf16.msrb.mxu3 %v12238_v50  ;;  %v6806_v63 = vpop.f32.mrf.mxu3  ;;  %v12035_v50 = vld [vmem:[%s19377_s7 + $0x738] sm:$0xf0]  ;;  %v12514_v33 = vor.u32 %v13761_v5, %v12513_v4  ;;  %v13720_v4 = vld [vmem:[%s19377_s7 + $0x9ac] sm:$0xf0]  ;;  %v13718_v5 = vld [vmem:[%s19377_s7 + $0x9a4] sm:$0xf] }
 0x9c0   : > { %8319 = vmatpush.bf16.msrb.mxu0 %v12338_v41  ;;  %v17669_v22 = vadd.f32 %v6806_v63, %v17462_v60  ;;  %v12170_v60 = vor.u32 %v13676_v30, %v12169_v2  ;;  %v12038_v41 = vor.u32 %v13639_v20, %v12035_v50  ;;  %v13722_v63 = vld [vmem:[%s19377_s7 + $0x9c4] sm:$0xf]  ;;  %v12246_v30 = vor.u32 %v13691_v48, %v12243_v43  ;;  %v13737_v27 = vld [vmem:[%s19377_s7 + $0xa34] sm:$0xf0]  ;;  %v13708_v48 = vld [vmem:[%s19377_s7 + $0x94c] sm:$0xf0] }
 0x9c1   : > { %v12366_v51 = vor.u32 %v13722_v63, %v12363_v58  ;;  %v12346_v50 = vor.u32 %v13720_v4, %v12345_v17  ;;  %v12299_v63 = vld [vmem:[%s19377_s7 + $0x950] sm:$0xf0]  ;;  %v12418_v58 = vor.u32 %v13737_v27, %v12417_v53  ;;  %v13702_v17 = vld [vmem:[%s19377_s7 + $0x924] sm:$0xf]  ;;  %v12371_v53 = vld [vmem:[%s19377_s7 + $0x9d8] sm:$0xf0] }
 0x9c2   : > { %7828 = vmatpush.bf16.msra.mxu1 %v12102_v38  ;;  %8037 = vmatpush.bf16.msrb.mxu2 %v12218_v16  ;;  %v17708_v38 = vpack.c.b16 %v8124_v46, %v8124_v46  ;;  %v12497_v16 = vld [vmem:[%s19377_s7 + $0xac8] sm:$0xf]  ;;  %v12347_v46 = vld [vmem:[%s19377_s7 + $0x9b0] sm:$0xf0]  ;;  %v12489_v27 = vld [vmem:[%s19377_s7 + $0xac0] sm:$0xf] }
 0x9c3   : > { %8050 = vmatpush.bf16.msrb.mxu3 %v12222_v26  ;;  %v12158_v26 = vor.u32 %v13670_v6, %v12155_v39  ;;  %v12350_v6 = vor.u32 %v13718_v5, %v12347_v46  ;;  %v12211_v39 = vld [vmem:[%s19377_s7 + $0x898] sm:$0xf0]  ;;  %v12283_v4 = vld [vmem:[%s19377_s7 + $0x930] sm:$0xf0] }
 0x9c4   : > { %8320 = vmatpush.bf16.msrb.mxu0 %v12322_v13  ;;  %v6795_v45 = vpop.f32.mrf.mxu2  ;;  %v12139_v13 = vld [vmem:[%s19377_s7 + $0x810] sm:$0xf0]  ;;  %v17747_v55 = vshrl.u32 %v17708_v38, 16 }
 0x9c5   : > { %v12142_v56 = vor.u32 %v13666_v54, %v12139_v13  ;;  %v12195_v54 = vld [vmem:[%s19377_s7 + $0x878] sm:$0xf0]  ;;  %v12313_v13 = vld [vmem:[%s19377_s7 + $0x960] sm:$0xf] }
 0x9c6   : > { %7829 = vmatpush.bf16.msra.mxu1 %v12086_v37  ;;  %8038 = vmatpush.bf16.msrb.mxu2 %v12202_v47  ;;  %v13695_v37 = vld [vmem:[%s19377_s7 + $0x8ec] sm:$0xf]  ;;  %v12259_v47 = vld [vmem:[%s19377_s7 + $0x8f8] sm:$0xf0] }
 0x9c7   : > { %8051 = vmatpush.bf16.msrb.mxu3 %v12206_v21  ;;  %v6808_v19 = vpop.f32.mrf.mxu3  ;;  %v12498_v21 = vor.u32 %v13757_v0, %v12497_v16  ;;  %v12262_v57 = vor.u32 %v13695_v37, %v12259_v47  ;;  %v13714_v16 = vld [vmem:[%s19377_s7 + $0x984] sm:$0xf]  ;;  %v12331_v0 = vld [vmem:[%s19377_s7 + $0x990] sm:$0xf0]  ;;  %v13712_v37 = vld [vmem:[%s19377_s7 + $0x96c] sm:$0xf0] }
 0x9c8   : > { %8321 = vmatpush.bf16.msrb.mxu0 %v12306_v24  ;;  %v12378_v24 = vor.u32 %v13728_v1, %v12377_v52  ;;  %v12433_v19 = vld [vmem:[%s19377_s7 + $0xa48] sm:$0xf]  ;;  %v12334_v12 = vor.u32 %v13714_v16, %v12331_v0  ;;  %v13710_v47 = vld [vmem:[%s19377_s7 + $0x964] sm:$0xf]  ;;  %v12315_v52 = vld [vmem:[%s19377_s7 + $0x970] sm:$0xf0] }
 0x9c9   : > { %v12434_v1 = vor.u32 %v13741_v44, %v12433_v19  ;;  %v13698_v16 = vld [vmem:[%s19377_s7 + $0x904] sm:$0xf]  ;;  %v12267_v0 = vld [vmem:[%s19377_s7 + $0x910] sm:$0xf0]  ;;  %v13760_v19 = vld [vmem:[%s19377_s7 + $0xaec] sm:$0xf0] }
 0x9ca   : > { %7830 = vmatpush.bf16.msra.mxu1 %v12070_v10  ;;  %8039 = vmatpush.bf16.msrb.mxu2 %v12186_v15  ;;  %v12481_v10 = vld [vmem:[%s19377_s7 + $0xaa8] sm:$0xf]  ;;  %v13753_v15 = vld [vmem:[%s19377_s7 + $0xab4] sm:$0xf0]  ;;  %v17958_v44 = vrot.slane %v17708_v38, 1 }
 0x9cb   : > { %8052 = vmatpush.bf16.msrb.mxu3 %v12190_v28  ;;  %v12361_v28 = vld [vmem:[%s19377_s7 + $0x9c0] sm:$0xf]  ;;  %v12482_v2 = vor.u32 %v13753_v15, %v12481_v10  ;;  %v12179_v10 = vld [vmem:[%s19377_s7 + $0x858] sm:$0xf0]  ;;  %v12609_v38 = vld [vmem:[%s19377_s7 + $0xba8] sm:$0xf] }
 0x9cc   : > { %8322 = vmatpush.bf16.msrb.mxu0 %v12290_v29  ;;  %v12362_v49 = vor.u32 %v13724_v14, %v12361_v28  ;;  %v13687_v29 = vld [vmem:[%s19377_s7 + $0x8ac] sm:$0xf]  ;;  %v12297_v15 = vld [vmem:[%s19377_s7 + $0x940] sm:$0xf]  ;;  %v13706_v14 = vld [vmem:[%s19377_s7 + $0x944] sm:$0xf] }
 0x9ce   : > { %7831 = vmatpush.bf16.msra.mxu1 %v12054_v32  ;;  %8040 = vmatpush.bf16.msrb.mxu2 %v12170_v60  ;;  %v12227_v60 = vld [vmem:[%s19377_s7 + $0x8b8] sm:$0xf0] }
 0x9cf   : > { %8053 = vmatpush.bf16.msrb.mxu3 %v12174_v59  ;;  %v12466_v59 = vor.u32 %v13749_v34, %v12465_v11  ;;  %v12230_v20 = vor.u32 %v13687_v29, %v12227_v60  ;;  %v13793_v11 = vld [vmem:[%s19377_s7 + $0xbf4] sm:$0xf0]  ;;  %v12302_v34 = vor.u32 %v13706_v14, %v12299_v63  ;;  %v13671_v29 = vld [vmem:[%s19377_s7 + $0x82c] sm:$0xf]  ;;  %v13704_v60 = vld [vmem:[%s19377_s7 + $0x92c] sm:$0xf0] }
 0x9d0   : > { %8323 = vmatpush.bf16.msrb.mxu0 %v12274_v42  ;;  %v7322_v32 = vpop.f32.mrf.mxu0  ;;  %v12329_v42 = vld [vmem:[%s19377_s7 + $0x980] sm:$0xf]  ;;  %v13719_v14 = vld [vmem:[%s19377_s7 + $0x9ac] sm:$0xf] }
 0x9d2   : > { %7832 = vmatpush.bf16.msra.mxu1 %v12038_v41  ;;  %8041 = vmatpush.bf16.msrb.mxu2 %v12154_v36 }
 0x9d3   : > { %8054 = vmatpush.bf16.msrb.mxu3 %v12158_v26  ;;  %8324 = vmatmul.bf16.vlgmr.msrb.gmra.mxu0 %v17747_v55  ;;  %v12214_v26 = vor.u32 %v13683_v8, %v12211_v39  ;;  %v12286_v8 = vor.u32 %v13702_v17, %v12283_v4  ;;  %v12339_v17 = vld [vmem:[%s19377_s7 + $0x998] sm:$0xf0]  ;;  %v12457_v4 = vld [vmem:[%s19377_s7 + $0xa80] sm:$0xf] }
 0x9d4   : > { %8566 = vmatpush.bf16.msra.mxu0 %v12514_v33  ;;  %v13716_v33 = vld [vmem:[%s19377_s7 + $0x98c] sm:$0xf0] }
 0x9d5   : > { %v12330_v45 = vor.u32 %v13716_v33, %v12329_v42  ;;  %v12147_v42 = vld [vmem:[%s19377_s7 + $0x818] sm:$0xf0]  ;;  %v12265_v33 = vld [vmem:[%s19377_s7 + $0x900] sm:$0xf] }
 0x9d6   : > { %7833 = vmatpush.bf16.msra.mxu1 %v12022_v9  ;;  %8042 = vmatpush.bf16.msrb.mxu2 %v12138_v7  ;;  %v6832_v41 = vpop.f32.mrf.mxu1  ;;  %v12314_v9 = vor.u32 %v13712_v37, %v12313_v13  ;;  %v13675_v7 = vld [vmem:[%s19377_s7 + $0x84c] sm:$0xf]  ;;  %v12270_v37 = vor.u32 %v13698_v16, %v12267_v0  ;;  %v12441_v16 = vld [vmem:[%s19377_s7 + $0xa60] sm:$0xf]  ;;  %v13744_v0 = vld [vmem:[%s19377_s7 + $0xa6c] sm:$0xf0] }
 0x9d7   : > { %8055 = vmatpush.bf16.msrb.mxu3 %v12142_v56  ;;  %v17835_v36 = vadd.f32 %v6832_v41, %v17621_v18  ;;  %v12318_v56 = vor.u32 %v13710_v47, %v12315_v52  ;;  %v13700_v41 = vld [vmem:[%s19377_s7 + $0x90c] sm:$0xf0] }
 0x9d8   : > { %8567 = vmatpush.bf16.msra.mxu0 %v12498_v21  ;;  %v7324_v18 = vpop.f32.mrf.mxu0  ;;  %v12198_v21 = vor.u32 %v13679_v25, %v12195_v54  ;;  %v12507_v54 = vld [vmem:[%s19377_s7 + $0xaf0] sm:$0xf0]  ;;  %v12266_v13 = vor.u32 %v13700_v41, %v12265_v33  ;;  %v12323_v41 = vld [vmem:[%s19377_s7 + $0x978] sm:$0xf0] }
 0x9d9   : > { %7834 = vmatmul.bf16.vlgmr.msra.gmra.mxu1 %v17314_v61  ;;  %8043 = vmatmul.bf16.vlgmr.msrb.gmra.mxu2 %v17533_v35  ;;  %v17802_v61 = vadd.f32 %v7322_v32, %v17588_v40  ;;  %v13745_v40 = vld [vmem:[%s19377_s7 + $0xa74] sm:$0xf0]  ;;  %v12281_v32 = vld [vmem:[%s19377_s7 + $0x920] sm:$0xf]  ;;  %v13758_v18 = vld [vmem:[%s19377_s7 + $0xae4] sm:$0xf] }
 0x9da   : > { %8074 = vmatpush.bf16.msrb.mxu1 %v12262_v57  ;;  %8290 = vmatpush.bf16.msra.mxu2 %v12378_v24  ;;  %v12450_v62 = vor.u32 %v13745_v40, %v12449_v31  ;;  %v13667_v31 = vld [vmem:[%s19377_s7 + $0x80c] sm:$0xf]  ;;  %v12282_v40 = vor.u32 %v13704_v60, %v12281_v32 }
 0x9db   : > { %8303 = vmatpush.bf16.msra.mxu3 %v12382_v23  ;;  %v13715_v32 = vld [vmem:[%s19377_s7 + $0x98c] sm:$0xf] }
 0x9dc   : > { %8056 = vmatmul.bf16.vlgmr.msrb.gmra.mxu3 %v17533_v35  ;;  %8568 = vmatpush.bf16.msra.mxu0 %v12482_v2  ;;  %v7041_v57 = vpop.f32.mrf.mxu2  ;;  %v12401_v2 = vld [vmem:[%s19377_s7 + $0xa08] sm:$0xf] }
 0x9dd   : > { %v17880_v23 = vadd.f32 %v7041_v57, %v17666_v3  ;;  %v12182_v3 = vor.u32 %v13675_v7, %v12179_v10  ;;  %v13756_v7 = vld [vmem:[%s19377_s7 + $0xacc] sm:$0xf0]  ;;  %v12491_v57 = vld [vmem:[%s19377_s7 + $0xad0] sm:$0xf0] }
 0x9de   : > { %8075 = vmatpush.bf16.msrb.mxu1 %v12246_v30  ;;  %8291 = vmatpush.bf16.msra.mxu2 %v12362_v49  ;;  %v6834_v28 = vpop.f32.mrf.mxu1  ;;  %v13733_v30 = vld [vmem:[%s19377_s7 + $0xa14] sm:$0xf0]  ;;  %v12641_v49 = vld [vmem:[%s19377_s7 + $0xbe8] sm:$0xf] }
 0x9df   : > { %8304 = vmatpush.bf16.msra.mxu3 %v12366_v51  ;;  %v7054_v24 = vpop.f32.mrf.mxu3  ;;  %v12163_v51 = vld [vmem:[%s19377_s7 + $0x838] sm:$0xf0]  ;;  %v12402_v5 = vor.u32 %v13733_v30, %v12401_v2  ;;  %v12642_v46 = vor.u32 %v13793_v11, %v12641_v49  ;;  %v13781_v28 = vld [vmem:[%s19377_s7 + $0xb94] sm:$0xf0]  ;;  %v13750_v30 = vld [vmem:[%s19377_s7 + $0xaa4] sm:$0xf] }
 0x9e0   : > { %8569 = vmatpush.bf16.msra.mxu0 %v12466_v59  ;;  %v17883_v43 = vadd.f32 %v7054_v24, %v17669_v22  ;;  %v12298_v22 = vor.u32 %v13708_v48, %v12297_v15  ;;  %v12166_v59 = vor.u32 %v13671_v29, %v12163_v51  ;;  %v12490_v15 = vor.u32 %v13756_v7, %v12489_v27  ;;  %v12593_v48 = vld [vmem:[%s19377_s7 + $0xb88] sm:$0xf]  ;;  %v12355_v2 = vld [vmem:[%s19377_s7 + $0x9b8] sm:$0xf0]  ;;  %v12475_v49 = vld [vmem:[%s19377_s7 + $0xab0] sm:$0xf0] }
 0x9e1   : > { %v12594_v11 = vor.u32 %v13781_v28, %v12593_v48  ;;  %v12577_v51 = vld [vmem:[%s19377_s7 + $0xb68] sm:$0xf]  ;;  %v12478_v60 = vor.u32 %v13750_v30, %v12475_v49  ;;  %v13738_v27 = vld [vmem:[%s19377_s7 + $0xa44] sm:$0xf]  ;;  %v12427_v7 = vld [vmem:[%s19377_s7 + $0xa50] sm:$0xf0] }
 0x9e2   : > { %8076 = vmatpush.bf16.msrb.mxu1 %v12230_v20  ;;  %8292 = vmatpush.bf16.msra.mxu2 %v12346_v50  ;;  %v12625_v20 = vld [vmem:[%s19377_s7 + $0xbc8] sm:$0xf]  ;;  %v13789_v50 = vld [vmem:[%s19377_s7 + $0xbd4] sm:$0xf0]  ;;  %v12430_v48 = vor.u32 %v13738_v27, %v12427_v7  ;;  %v13703_v28 = vld [vmem:[%s19377_s7 + $0x92c] sm:$0xf] }
 0x9e3   : > { %8305 = vmatpush.bf16.msra.mxu3 %v12350_v6  ;;  %v12626_v25 = vor.u32 %v13789_v50, %v12625_v20  ;;  %v12459_v20 = vld [vmem:[%s19377_s7 + $0xa90] sm:$0xf0]  ;;  %v13751_v27 = vld [vmem:[%s19377_s7 + $0xaac] sm:$0xf] }
 0x9e4   : > { %8570 = vmatpush.bf16.msra.mxu0 %v12450_v62  ;;  %v7043_v6 = vpop.f32.mrf.mxu2  ;;  %v13727_v62 = vld [vmem:[%s19377_s7 + $0x9ec] sm:$0xf] }
 0x9e5   : > { %v12561_v6 = vld [vmem:[%s19377_s7 + $0xb48] sm:$0xf] }
 0x9e6   : > { %8077 = vmatpush.bf16.msrb.mxu1 %v12214_v26  ;;  %8293 = vmatpush.bf16.msra.mxu2 %v12330_v45  ;;  %v12387_v26 = vld [vmem:[%s19377_s7 + $0x9f8] sm:$0xf0]  ;;  %v12505_v45 = vld [vmem:[%s19377_s7 + $0xae0] sm:$0xf] }
 0x9e7   : > { %8306 = vmatpush.bf16.msra.mxu3 %v12334_v12  ;;  %v7056_v39 = vpop.f32.mrf.mxu3  ;;  %v12150_v12 = vor.u32 %v13667_v31, %v12147_v42  ;;  %v12390_v47 = vor.u32 %v13727_v62, %v12387_v26  ;;  %v12506_v52 = vor.u32 %v13760_v19, %v12505_v45  ;;  %v13711_v42 = vld [vmem:[%s19377_s7 + $0x96c] sm:$0xf]  ;;  %v13742_v62 = vld [vmem:[%s19377_s7 + $0xa64] sm:$0xf]  ;;  %v12443_v26 = vld [vmem:[%s19377_s7 + $0xa70] sm:$0xf0] }
 0x9e8   : > { %8571 = vmatpush.bf16.msra.mxu0 %v12434_v1  ;;  %v13785_v1 = vld [vmem:[%s19377_s7 + $0xbb4] sm:$0xf0]  ;;  %v12326_v19 = vor.u32 %v13711_v42, %v12323_v41 }
 0x9e9   : > { %v12610_v24 = vor.u32 %v13785_v1, %v12609_v38  ;;  %v13773_v39 = vld [vmem:[%s19377_s7 + $0xb54] sm:$0xf0]  ;;  %v12425_v38 = vld [vmem:[%s19377_s7 + $0xa40] sm:$0xf]  ;;  %v13740_v1 = vld [vmem:[%s19377_s7 + $0xa4c] sm:$0xf0] }
 0x9ea   : > { %8078 = vmatpush.bf16.msrb.mxu1 %v12198_v21  ;;  %8294 = vmatpush.bf16.msra.mxu2 %v12314_v9  ;;  %v13723_v21 = vld [vmem:[%s19377_s7 + $0x9cc] sm:$0xf]  ;;  %v12510_v9 = vor.u32 %v13758_v18, %v12507_v54  ;;  %v12562_v45 = vor.u32 %v13773_v39, %v12561_v6  ;;  %v13769_v18 = vld [vmem:[%s19377_s7 + $0xb34] sm:$0xf0]  ;;  %v18169_v6 = vrot.slane %v17747_v55, 1 }
 0x9eb   : > { %8307 = vmatpush.bf16.msra.mxu3 %v12318_v56  ;;  %v13754_v56 = vld [vmem:[%s19377_s7 + $0xac4] sm:$0xf]  ;;  %v12374_v10 = vor.u32 %v13723_v21, %v12371_v53  ;;  %v13707_v54 = vld [vmem:[%s19377_s7 + $0x94c] sm:$0xf] }
 0x9ec   : > { %8572 = vmatpush.bf16.msra.mxu0 %v12418_v58  ;;  %v12494_v63 = vor.u32 %v13754_v56, %v12491_v57  ;;  %v12529_v57 = vld [vmem:[%s19377_s7 + $0xb08] sm:$0xf] }
 0x9ee   : > { %8079 = vmatpush.bf16.msrb.mxu1 %v12182_v3  ;;  %8295 = vmatpush.bf16.msra.mxu2 %v12298_v22  ;;  %v12473_v3 = vld [vmem:[%s19377_s7 + $0xaa0] sm:$0xf]  ;;  %v13752_v22 = vld [vmem:[%s19377_s7 + $0xaac] sm:$0xf0] }
 0x9ef   : > { %8308 = vmatpush.bf16.msra.mxu3 %v12302_v34  ;;  %v12358_v34 = vor.u32 %v13719_v14, %v12355_v2  ;;  %v12474_v29 = vor.u32 %v13752_v22, %v12473_v3  ;;  %v12291_v14 = vld [vmem:[%s19377_s7 + $0x938] sm:$0xf0]  ;;  %v13734_v2 = vld [vmem:[%s19377_s7 + $0xa24] sm:$0xf]  ;;  %v12411_v3 = vld [vmem:[%s19377_s7 + $0xa30] sm:$0xf0] }
 0x9f0   : > { %8573 = vmatpush.bf16.msra.mxu0 %v12402_v5  ;;  %v7572_v58 = vpop.f32.mrf.mxu0  ;;  %v13748_v5 = vld [vmem:[%s19377_s7 + $0xa8c] sm:$0xf0]  ;;  %v12294_v49 = vor.u32 %v13703_v28, %v12291_v14  ;;  %v5816_v28 = vld [vmem:[#allocation6 + $0x39] ss:$2 sm:$0xf] }
 0x9f2   : > { %8080 = vmatpush.bf16.msrb.mxu1 %v12166_v59  ;;  %8296 = vmatpush.bf16.msra.mxu2 %v12282_v40  ;;  %v13746_v59 = vld [vmem:[%s19377_s7 + $0xa84] sm:$0xf]  ;;  %v12342_v40 = vor.u32 %v13715_v32, %v12339_v17  ;;  %v12275_v17 = vld [vmem:[%s19377_s7 + $0x918] sm:$0xf0] }
 0x9f3   : > { %8309 = vmatpush.bf16.msra.mxu3 %v12286_v8  ;;  %8574 = vmatmul.bf16.vlgmr.msra.gmra.mxu0 %v17958_v44  ;;  %v12458_v8 = vor.u32 %v13748_v5, %v12457_v4  ;;  %v12462_v33 = vor.u32 %v13746_v59, %v12459_v20  ;;  %v12393_v4 = vld [vmem:[%s19377_s7 + $0xa00] sm:$0xf]  ;;  %v13732_v5 = vld [vmem:[%s19377_s7 + $0xa0c] sm:$0xf0]  ;;  %v12395_v59 = vld [vmem:[%s19377_s7 + $0xa10] sm:$0xf0] }
 0x9f4   : > { %8816 = vmatpush.bf16.msrb.mxu0 %v12642_v46  ;;  %v13759_v20 = vld [vmem:[%s19377_s7 + $0xaec] sm:$0xf]  ;;  %v12394_v41 = vor.u32 %v13732_v5, %v12393_v4 }
 0x9f6   : > { %8081 = vmatpush.bf16.msrb.mxu1 %v12150_v12  ;;  %8297 = vmatpush.bf16.msra.mxu2 %v12266_v13  ;;  %v7080_v46 = vpop.f32.mrf.mxu1  ;;  %v12545_v12 = vld [vmem:[%s19377_s7 + $0xb28] sm:$0xf]  ;;  %v12446_v13 = vor.u32 %v13742_v62, %v12443_v26 }
 0x9f7   : > { %8310 = vmatpush.bf16.msra.mxu3 %v12270_v37  ;;  %v18046_v31 = vadd.f32 %v7080_v46, %v17835_v36  ;;  %v12546_v56 = vor.u32 %v13769_v18, %v12545_v12  ;;  %v13730_v46 = vld [vmem:[%s19377_s7 + $0xa04] sm:$0xf]  ;;  %v12737_v26 = vld [vmem:[%s19377_s7 + $0xca8] sm:$0xf]  ;;  %v12499_v12 = vld [vmem:[%s19377_s7 + $0xad8] sm:$0xf0] }
 0x9f8   : > { %8817 = vmatpush.bf16.msrb.mxu0 %v12626_v25  ;;  %v7574_v36 = vpop.f32.mrf.mxu0  ;;  %v12442_v25 = vor.u32 %v13744_v0, %v12441_v16  ;;  %v12398_v16 = vor.u32 %v13730_v46, %v12395_v59  ;;  %v12617_v18 = vld [vmem:[%s19377_s7 + $0xbc0] sm:$0xf]  ;;  %v12689_v46 = vld [vmem:[%s19377_s7 + $0xc48] sm:$0xf]  ;;  %v13805_v59 = vld [vmem:[%s19377_s7 + $0xc54] sm:$0xf0] }
 0x9f9   : > { %8082 = vmatmul.bf16.vlgmr.msrb.gmra.mxu1 %v17533_v35  ;;  %8298 = vmatmul.bf16.vlgmr.msra.gmra.mxu2 %v17747_v55  ;;  %v18013_v35 = vadd.f32 %v7572_v58, %v17802_v61  ;;  %v13777_v61 = vld [vmem:[%s19377_s7 + $0xb74] sm:$0xf0]  ;;  %v13736_v58 = vld [vmem:[%s19377_s7 + $0xa2c] sm:$0xf0]  ;;  %v12635_v36 = vld [vmem:[%s19377_s7 + $0xbf0] sm:$0xf0] }
 0x9fa   : > { %8329 = vmatpush.bf16.msra.mxu1 %v12390_v47  ;;  %8540 = vmatpush.bf16.msrb.mxu2 %v12506_v52  ;;  %v12578_v50 = vor.u32 %v13777_v61, %v12577_v51  ;;  %v12307_v52 = vld [vmem:[%s19377_s7 + $0x958] sm:$0xf0]  ;;  %v12414_v61 = vor.u32 %v13734_v2, %v12411_v3  ;;  %v13747_v2 = vld [vmem:[%s19377_s7 + $0xa8c] sm:$0xf] }
 0x9fb   : > { %8553 = vmatpush.bf16.msrb.mxu3 %v12510_v9  ;;  %v5792_v3 = vld [vmem:[#allocation6 + $0x30] ss:$2 sm:$0xf] }
 0x9fc   : > { %8311 = vmatmul.bf16.vlgmr.msra.gmra.mxu3 %v17747_v55  ;;  %8818 = vmatpush.bf16.msrb.mxu0 %v12610_v24  ;;  %v7296_v37 = vpop.f32.mrf.mxu2  ;;  %v13765_v24 = vld [vmem:[%s19377_s7 + $0xb14] sm:$0xf0] }
 0x9fd   : > { %v18091_v21 = vadd.f32 %v7296_v37, %v17880_v23  ;;  %v12310_v23 = vor.u32 %v13707_v54, %v12307_v52  ;;  %v12530_v22 = vor.u32 %v13765_v24, %v12529_v57  ;;  %v13788_v54 = vld [vmem:[%s19377_s7 + $0xbcc] sm:$0xf0]  ;;  %v12619_v37 = vld [vmem:[%s19377_s7 + $0xbd0] sm:$0xf0]  ;;  %v12483_v57 = vld [vmem:[%s19377_s7 + $0xab8] sm:$0xf0] }
 0x9fe   : > { %8330 = vmatpush.bf16.msra.mxu1 %v12374_v10  ;;  %8541 = vmatpush.bf16.msrb.mxu2 %v12490_v15  ;;  %v7082_v53 = vpop.f32.mrf.mxu1  ;;  %v12769_v10 = vld [vmem:[%s19377_s7 + $0xce8] sm:$0xf]  ;;  %v13825_v15 = vld [vmem:[%s19377_s7 + $0xcf4] sm:$0xf0]  ;;  %v13782_v24 = vld [vmem:[%s19377_s7 + $0xba4] sm:$0xf]  ;;  %v12486_v14 = vor.u32 %v13751_v27, %v12483_v57 }
 0x9ff   : > { %8554 = vmatpush.bf16.msrb.mxu3 %v12494_v63  ;;  %v7309_v47 = vpop.f32.mrf.mxu3  ;;  %v12409_v63 = vld [vmem:[%s19377_s7 + $0xa20] sm:$0xf]  ;;  %v12770_v30 = vor.u32 %v13825_v15, %v12769_v10  ;;  %v13813_v53 = vld [vmem:[%s19377_s7 + $0xc94] sm:$0xf0]  ;;  %v12603_v10 = vld [vmem:[%s19377_s7 + $0xbb0] sm:$0xf0] }
 0xa00   : > { %8819 = vmatpush.bf16.msrb.mxu0 %v12594_v11  ;;  %v18094_v9 = vadd.f32 %v7309_v47, %v17883_v43  ;;  %v12426_v43 = vor.u32 %v13740_v1, %v12425_v38  ;;  %v12753_v11 = vld [vmem:[%s19377_s7 + $0xcc8] sm:$0xf]  ;;  %v12410_v51 = vor.u32 %v13736_v58, %v12409_v63  ;;  %v12618_v38 = vor.u32 %v13788_v54, %v12617_v18  ;;  %v13809_v58 = vld [vmem:[%s19377_s7 + $0xc74] sm:$0xf0]  ;;  %v12435_v54 = vld [vmem:[%s19377_s7 + $0xa58] sm:$0xf0] }
 0xa01   : > { %v12721_v1 = vld [vmem:[%s19377_s7 + $0xc88] sm:$0xf] }
 0xa02   : > { %8331 = vmatpush.bf16.msra.mxu1 %v12358_v34  ;;  %8542 = vmatpush.bf16.msrb.mxu2 %v12474_v29  ;;  %v13821_v34 = vld [vmem:[%s19377_s7 + $0xcd4] sm:$0xf0]  ;;  %v13699_v29 = vld [vmem:[%s19377_s7 + $0x90c] sm:$0xf]  ;;  %v12722_v15 = vor.u32 %v13813_v53, %v12721_v1  ;;  %v13770_v1 = vld [vmem:[%s19377_s7 + $0xb44] sm:$0xf] }
 0xa03   : > { %8555 = vmatpush.bf16.msrb.mxu3 %v12478_v60  ;;  %v12754_v39 = vor.u32 %v13821_v34, %v12753_v11  ;;  %v12278_v42 = vor.u32 %v13699_v29, %v12275_v17  ;;  %v12585_v11 = vld [vmem:[%s19377_s7 + $0xb80] sm:$0xf]  ;;  %v13780_v34 = vld [vmem:[%s19377_s7 + $0xb8c] sm:$0xf0]  ;;  %v12555_v53 = vld [vmem:[%s19377_s7 + $0xb50] sm:$0xf0] }
 0xa04   : > { %8820 = vmatpush.bf16.msrb.mxu0 %v12578_v50  ;;  %v7298_v32 = vpop.f32.mrf.mxu2  ;;  %v12515_v50 = vld [vmem:[%s19377_s7 + $0xaf8] sm:$0xf0]  ;;  %v12586_v5 = vor.u32 %v13780_v34, %v12585_v11  ;;  %v13731_v11 = vld [vmem:[%s19377_s7 + $0xa0c] sm:$0xf] }
 0xa05   : > { %v12518_v0 = vor.u32 %v13759_v20, %v12515_v50  ;;  %v13743_v20 = vld [vmem:[%s19377_s7 + $0xa6c] sm:$0xf] }
 0xa06   : > { %8332 = vmatpush.bf16.msra.mxu1 %v12342_v40  ;;  %8543 = vmatpush.bf16.msrb.mxu2 %v12458_v8  ;;  %v12633_v40 = vld [vmem:[%s19377_s7 + $0xbe0] sm:$0xf]  ;;  %v13792_v8 = vld [vmem:[%s19377_s7 + $0xbec] sm:$0xf0] }
 0xa07   : > { %8556 = vmatpush.bf16.msrb.mxu3 %v12462_v33  ;;  %v7311_v60 = vpop.f32.mrf.mxu3  ;;  %v13790_v33 = vld [vmem:[%s19377_s7 + $0xbe4] sm:$0xf]  ;;  %v12634_v62 = vor.u32 %v13792_v8, %v12633_v40  ;;  %v12451_v40 = vld [vmem:[%s19377_s7 + $0xa78] sm:$0xf0]  ;;  %v12569_v8 = vld [vmem:[%s19377_s7 + $0xb60] sm:$0xf] }
 0xa08   : > { %8821 = vmatpush.bf16.msrb.mxu0 %v12562_v45  ;;  %v13817_v45 = vld [vmem:[%s19377_s7 + $0xcb4] sm:$0xf0] }
 0xa09   : > { %v12738_v47 = vor.u32 %v13817_v45, %v12737_v26  ;;  %v12673_v26 = vld [vmem:[%s19377_s7 + $0xc28] sm:$0xf]  ;;  %v13801_v45 = vld [vmem:[%s19377_s7 + $0xc34] sm:$0xf0] }
 0xa0a   : > { %8333 = vmatpush.bf16.msra.mxu1 %v12326_v19  ;;  %8544 = vmatpush.bf16.msrb.mxu2 %v12442_v25  ;;  %v13755_v19 = vld [vmem:[%s19377_s7 + $0xacc] sm:$0xf]  ;;  %v12638_v25 = vor.u32 %v13790_v33, %v12635_v36  ;;  %v13774_v33 = vld [vmem:[%s19377_s7 + $0xb64] sm:$0xf]  ;;  %v12571_v36 = vld [vmem:[%s19377_s7 + $0xb70] sm:$0xf0]  ;;  %v12674_v27 = vor.u32 %v13801_v45, %v12673_v26 }
 0xa0b   : > { %8557 = vmatpush.bf16.msrb.mxu3 %v12446_v13  ;;  %v13786_v13 = vld [vmem:[%s19377_s7 + $0xbc4] sm:$0xf]  ;;  %v12502_v52 = vor.u32 %v13755_v19, %v12499_v12  ;;  %v13739_v19 = vld [vmem:[%s19377_s7 + $0xa4c] sm:$0xf]  ;;  %v13849_v26 = vld [vmem:[%s19377_s7 + $0xdb4] sm:$0xf0] }
 0xa0c   : > { %8822 = vmatpush.bf16.msrb.mxu0 %v12546_v56  ;;  %v12622_v7 = vor.u32 %v13786_v13, %v12619_v37  ;;  %v12553_v13 = vld [vmem:[%s19377_s7 + $0xb40] sm:$0xf]  ;;  %v13772_v37 = vld [vmem:[%s19377_s7 + $0xb4c] sm:$0xf0]  ;;  %v13787_v45 = vld [vmem:[%s19377_s7 + $0xbcc] sm:$0xf] }
 0xa0d   : > { %v12554_v57 = vor.u32 %v13772_v37, %v12553_v13  ;;  %v12747_v13 = vld [vmem:[%s19377_s7 + $0xcd0] sm:$0xf0] }
 0xa0e   : > { %8334 = vmatpush.bf16.msra.mxu1 %v12310_v23  ;;  %8545 = vmatpush.bf16.msrb.mxu2 %v12426_v43  ;;  %v12601_v23 = vld [vmem:[%s19377_s7 + $0xba0] sm:$0xf]  ;;  %v13784_v43 = vld [vmem:[%s19377_s7 + $0xbac] sm:$0xf0] }
 0xa0f   : > { %8558 = vmatpush.bf16.msrb.mxu3 %v12430_v48  ;;  %v5808_v48 = vld [vmem:[#allocation6 + $0x38] ss:$2 sm:$0xf]  ;;  %v12602_v63 = vor.u32 %v13784_v43, %v12601_v23  ;;  %v13797_v23 = vld [vmem:[%s19377_s7 + $0xc14] sm:$0xf0] }
 0xa10   : > { %8823 = vmatpush.bf16.msrb.mxu0 %v12530_v22  ;;  %v7822_v56 = vpop.f32.mrf.mxu0  ;;  %v5800_v22 = vld [vmem:[#allocation6 + $0x31] ss:$2 sm:$0xf]  ;;  %v5824_v17 = vmax.f32 %v5808_v48, %v5816_v28  ;;  %v12897_v43 = vld [vmem:[%s19377_s7 + $0xde8] sm:$0xf] }
 0xa11   : > { %v12419_v48 = vld [vmem:[%s19377_s7 + $0xa38] sm:$0xf0]  ;;  %v12537_v28 = vld [vmem:[%s19377_s7 + $0xb20] sm:$0xf] }
 0xa12   : > { %8335 = vmatpush.bf16.msra.mxu1 %v12294_v49  ;;  %8546 = vmatpush.bf16.msrb.mxu2 %v12410_v51  ;;  %v12467_v49 = vld [vmem:[%s19377_s7 + $0xa98] sm:$0xf0]  ;;  %v13778_v51 = vld [vmem:[%s19377_s7 + $0xb84] sm:$0xf] }
 0xa13   : > { %8559 = vmatpush.bf16.msrb.mxu3 %v12414_v61  ;;  %8824 = vmatmul.bf16.vlgmr.msrb.gmra.mxu0 %v18169_v6  ;;  %v12587_v61 = vld [vmem:[%s19377_s7 + $0xb90] sm:$0xf0]  ;;  %v12470_v4 = vor.u32 %v13747_v2, %v12467_v49  ;;  %v13853_v49 = vld [vmem:[%s19377_s7 + $0xdd4] sm:$0xf0] }
 0xa14   : > { %9064 = vmatpush.bf16.msra.mxu0 %v12770_v30  ;;  %v12606_v30 = vor.u32 %v13782_v24, %v12603_v10  ;;  %v13857_v24 = vld [vmem:[%s19377_s7 + $0xdf4] sm:$0xf0]  ;;  %v12558_v10 = vor.u32 %v13770_v1, %v12555_v53  ;;  %v12849_v53 = vld [vmem:[%s19377_s7 + $0xd88] sm:$0xf] }
 0xa16   : > { %8336 = vmatpush.bf16.msra.mxu1 %v12278_v42  ;;  %8547 = vmatpush.bf16.msrb.mxu2 %v12394_v41  ;;  %v7335_v29 = vpop.f32.mrf.mxu1  ;;  %v5820_v42 = vmax.f32 %v5792_v3, %v5800_v22  ;;  %v12690_v41 = vor.u32 %v13805_v59, %v12689_v46  ;;  %v12898_v3 = vor.u32 %v13857_v24, %v12897_v43  ;;  %v12523_v46 = vld [vmem:[%s19377_s7 + $0xb10] sm:$0xf0]  ;;  %v13791_v59 = vld [vmem:[%s19377_s7 + $0xbec] sm:$0xf]  ;;  %v13814_v43 = vld [vmem:[%s19377_s7 + $0xca4] sm:$0xf] }
 0xa17   : > { %8560 = vmatpush.bf16.msrb.mxu3 %v12398_v16  ;;  %v18257_v60 = vadd.f32 %v7335_v29, %v18046_v31  ;;  %v12590_v31 = vor.u32 %v13778_v51, %v12587_v61  ;;  %v12731_v24 = vld [vmem:[%s19377_s7 + $0xcb0] sm:$0xf0] }
 0xa18   : > { %9065 = vmatpush.bf16.msra.mxu0 %v12754_v39  ;;  %v7824_v50 = vpop.f32.mrf.mxu0  ;;  %v13776_v39 = vld [vmem:[%s19377_s7 + $0xb6c] sm:$0xf0]  ;;  %v5828_v16 = vmax.f32 %v5820_v42, %v5824_v17  ;;  %v12521_v17 = vld [vmem:[%s19377_s7 + $0xb00] sm:$0xf]  ;;  %v13822_v42 = vld [vmem:[%s19377_s7 + $0xce4] sm:$0xf] }
 0xa19   : > { %8337 = vmatmul.bf16.vlgmr.msra.gmra.mxu1 %v17747_v55  ;;  %8548 = vmatmul.bf16.vlgmr.msrb.gmra.mxu2 %v17958_v44  ;;  %v18224_v55 = vadd.f32 %v7822_v56, %v18013_v35  ;;  %v12705_v35 = vld [vmem:[%s19377_s7 + $0xc68] sm:$0xf]  ;;  %v12438_v56 = vor.u32 %v13739_v19, %v12435_v54  ;;  %v13824_v50 = vld [vmem:[%s19377_s7 + $0xcec] sm:$0xf0]  ;;  %v13818_v54 = vld [vmem:[%s19377_s7 + $0xcc4] sm:$0xf] }
 0xa1a   : > { %8579 = vmatpush.bf16.msrb.mxu1 %v12518_v0  ;;  %8790 = vmatpush.bf16.msra.mxu2 %v12634_v62  ;;  %v12706_v32 = vor.u32 %v13809_v58, %v12705_v35  ;;  %v12454_v0 = vor.u32 %v13743_v20, %v12451_v40  ;;  %v12570_v62 = vor.u32 %v13776_v39, %v12569_v8  ;;  %v12539_v35 = vld [vmem:[%s19377_s7 + $0xb30] sm:$0xf0]  ;;  %v12643_v20 = vld [vmem:[%s19377_s7 + $0xbf8] sm:$0xf0] }
 0xa1b   : > { %8803 = vmatpush.bf16.msra.mxu3 %v12638_v25  ;;  %v12574_v25 = vor.u32 %v13774_v33, %v12571_v36  ;;  %v12763_v33 = vld [vmem:[%s19377_s7 + $0xcf0] sm:$0xf0] }
 0xa1c   : > { %8561 = vmatmul.bf16.vlgmr.msrb.gmra.mxu3 %v17958_v44  ;;  %9066 = vmatpush.bf16.msra.mxu0 %v12738_v47  ;;  %v7546_v12 = vpop.f32.mrf.mxu2  ;;  %v12766_v19 = vor.u32 %v13822_v42, %v12763_v33  ;;  %v13833_v42 = vld [vmem:[%s19377_s7 + $0xd34] sm:$0xf0]  ;;  %v13771_v33 = vld [vmem:[%s19377_s7 + $0xb4c] sm:$0xf] }
 0xa1d   : > { %v18302_v47 = vadd.f32 %v7546_v12, %v18091_v21  ;;  %v14018_v21 = vld [vmem:[%s19376_s6] ss:$0 sm:$0xff] }
 0xa1e   : > { %8580 = vmatpush.bf16.msrb.mxu1 %v12502_v52  ;;  %8791 = vmatpush.bf16.msra.mxu2 %v12618_v38  ;;  %v7337_v38 = vpop.f32.mrf.mxu1  ;;  %v12745_v12 = vld [vmem:[%s19377_s7 + $0xcc0] sm:$0xf] }
 0xa1f   : > { %8804 = vmatpush.bf16.msra.mxu3 %v12622_v7  ;;  %v7559_v18 = vpop.f32.mrf.mxu3  ;;  %v12657_v7 = vld [vmem:[%s19377_s7 + $0xc08] sm:$0xf] }
 0xa20   : > { %9067 = vmatpush.bf16.msra.mxu0 %v12722_v15  ;;  %v18305_v52 = vadd.f32 %v7559_v18, %v18094_v9  ;;  %v5836_v9 = vadd.f32 %v14018_v21, %v5828_v16  ;;  %v13735_v15 = vld [vmem:[%s19377_s7 + $0xa2c] sm:$0xf]  ;;  %v12658_v58 = vor.u32 %v13797_v23, %v12657_v7  ;;  %v12646_v16 = vor.u32 %v13791_v59, %v12643_v20  ;;  %v13820_v18 = vld [vmem:[%s19377_s7 + $0xccc] sm:$0xf0]  ;;  %v13806_v59 = vld [vmem:[%s19377_s7 + $0xc64] sm:$0xf] }
 0xa21   : > { %v12422_v22 = vor.u32 %v13735_v15, %v12419_v48  ;;  %v12746_v1 = vor.u32 %v13820_v18, %v12745_v12  ;;  %v13783_v7 = vld [vmem:[%s19377_s7 + $0xbac] sm:$0xf]  ;;  %v12750_v21 = vor.u32 %v13818_v54, %v12747_v13  ;;  %v13816_v23 = vld [vmem:[%s19377_s7 + $0xcac] sm:$0xf0]  ;;  %v12699_v20 = vld [vmem:[%s19377_s7 + $0xc70] sm:$0xf0] }
 0xa22   : > { %8581 = vmatpush.bf16.msrb.mxu1 %v12486_v14  ;;  %8792 = vmatpush.bf16.msra.mxu2 %v12602_v63  ;;  %v13768_v14 = vld [vmem:[%s19377_s7 + $0xb2c] sm:$0xf0]  ;;  %v13766_v63 = vld [vmem:[%s19377_s7 + $0xb24] sm:$0xf]  ;;  %v5840_v2 = vmax.f32 %v5836_v9, 0.0 }
 0xa23   : > { %8805 = vmatpush.bf16.msra.mxu3 %v12606_v30  ;;  %v12881_v30 = vld [vmem:[%s19377_s7 + $0xdc8] sm:$0xf]  ;;  %v12538_v34 = vor.u32 %v13768_v14, %v12537_v28  ;;  %v12542_v29 = vor.u32 %v13766_v63, %v12539_v35  ;;  %v13779_v14 = vld [vmem:[%s19377_s7 + $0xb8c] sm:$0xf]  ;;  %v12734_v63 = vor.u32 %v13814_v43, %v12731_v24  ;;  %v12595_v35 = vld [vmem:[%s19377_s7 + $0xb98] sm:$0xf0] }
 0xa24   : > { %9068 = vmatpush.bf16.msra.mxu0 %v12706_v32  ;;  %v7548_v51 = vpop.f32.mrf.mxu2  ;;  %v12403_v32 = vld [vmem:[%s19377_s7 + $0xa18] sm:$0xf0]  ;;  %v18382_v40 = vpack.c.bf16 %v5840_v2, %v5840_v2  ;;  %v12882_v8 = vor.u32 %v13853_v49, %v12881_v30  ;;  %v12833_v28 = vld [vmem:[%s19377_s7 + $0xd68] sm:$0xf]  ;;  %v13812_v2 = vld [vmem:[%s19377_s7 + $0xc8c] sm:$0xf0] }
 0xa25   : > { %v12406_v39 = vor.u32 %v13731_v11, %v12403_v32  ;;  %v12715_v30 = vld [vmem:[%s19377_s7 + $0xc90] sm:$0xf0]  ;;  %v12817_v51 = vld [vmem:[%s19377_s7 + $0xd48] sm:$0xf]  ;;  %v13775_v32 = vld [vmem:[%s19377_s7 + $0xb6c] sm:$0xf] }
 0xa26   : > { %8582 = vmatpush.bf16.msrb.mxu1 %v12470_v4  ;;  %8793 = vmatpush.bf16.msra.mxu2 %v12586_v5  ;;  %v13764_v4 = vld [vmem:[%s19377_s7 + $0xb0c] sm:$0xf0]  ;;  %v13762_v5 = vld [vmem:[%s19377_s7 + $0xb04] sm:$0xf]  ;;  %v12683_v18 = vld [vmem:[%s19377_s7 + $0xc50] sm:$0xf0] }
 0xa27   : > { %8806 = vmatpush.bf16.msra.mxu3 %v12590_v31  ;;  %v7561_v61 = vpop.f32.mrf.mxu3  ;;  %v12761_v31 = vld [vmem:[%s19377_s7 + $0xce0] sm:$0xf]  ;;  %v12522_v36 = vor.u32 %v13764_v4, %v12521_v17  ;;  %v12579_v4 = vld [vmem:[%s19377_s7 + $0xb78] sm:$0xf0]  ;;  %v13802_v12 = vld [vmem:[%s19377_s7 + $0xc44] sm:$0xf] }
 0xa28   : > { %9069 = vmatpush.bf16.msra.mxu0 %v12690_v41  ;;  %v12526_v41 = vor.u32 %v13762_v5, %v12523_v46  ;;  %v13837_v61 = vld [vmem:[%s19377_s7 + $0xd54] sm:$0xf0]  ;;  %v12697_v5 = vld [vmem:[%s19377_s7 + $0xc60] sm:$0xf]  ;;  %v13808_v46 = vld [vmem:[%s19377_s7 + $0xc6c] sm:$0xf0] }
 0xa29   : > { %v12785_v13 = vld [vmem:[%s19377_s7 + $0xd08] sm:$0xf] }
 0xa2a   : > { %8583 = vmatpush.bf16.msrb.mxu1 %v12454_v0  ;;  %8794 = vmatpush.bf16.msra.mxu2 %v12570_v62  ;;  %v12762_v0 = vor.u32 %v13824_v50, %v12761_v31  ;;  %v12865_v62 = vld [vmem:[%s19377_s7 + $0xda8] sm:$0xf]  ;;  %v12818_v31 = vor.u32 %v13837_v61, %v12817_v51  ;;  %v12582_v50 = vor.u32 %v13775_v32, %v12579_v4  ;;  %v12889_v51 = vld [vmem:[%s19377_s7 + $0xde0] sm:$0xf]  ;;  %v13856_v61 = vld [vmem:[%s19377_s7 + $0xdec] sm:$0xf0] }
 0xa2b   : > { %8807 = vmatpush.bf16.msra.mxu3 %v12574_v25  ;;  %v12627_v25 = vld [vmem:[%s19377_s7 + $0xbd8] sm:$0xf0]  ;;  %v12866_v37 = vor.u32 %v13849_v26, %v12865_v62  ;;  %v12681_v62 = vld [vmem:[%s19377_s7 + $0xc40] sm:$0xf]  ;;  %v13804_v26 = vld [vmem:[%s19377_s7 + $0xc4c] sm:$0xf0] }
 0xa2c   : > { %9070 = vmatpush.bf16.msra.mxu0 %v12674_v27  ;;  %v12630_v38 = vor.u32 %v13787_v45, %v12627_v25  ;;  %v13845_v27 = vld [vmem:[%s19377_s7 + $0xd94] sm:$0xf0]  ;;  %v13854_v4 = vld [vmem:[%s19377_s7 + $0xde4] sm:$0xf] }
 0xa2e   : > { %8584 = vmatpush.bf16.msrb.mxu1 %v12438_v56  ;;  %8795 = vmatpush.bf16.msra.mxu2 %v12554_v57  ;;  %v12611_v56 = vld [vmem:[%s19377_s7 + $0xbb8] sm:$0xf0]  ;;  %v12729_v57 = vld [vmem:[%s19377_s7 + $0xca0] sm:$0xf] }
 0xa2f   : > { %8808 = vmatpush.bf16.msra.mxu3 %v12558_v10  ;;  %v12850_v10 = vor.u32 %v13845_v27, %v12849_v53  ;;  %v12614_v15 = vor.u32 %v13783_v7, %v12611_v56  ;;  %v12730_v48 = vor.u32 %v13816_v23, %v12729_v57  ;;  %v9127_v53 = vunpack.c.l.b16 %v18382_v40  ;;  %v13767_v7 = vld [vmem:[%s19377_s7 + $0xb2c] sm:$0xf]  ;;  %v13800_v56 = vld [vmem:[%s19377_s7 + $0xc2c] sm:$0xf0]  ;;  %v13798_v57 = vld [vmem:[%s19377_s7 + $0xc24] sm:$0xf] }
 0xa30   : > { %9071 = vmatpush.bf16.msra.mxu0 %v12658_v58  ;;  %v8070_v9 = vpop.f32.mrf.mxu0  ;;  %v12713_v58 = vld [vmem:[%s19377_s7 + $0xc80] sm:$0xf]  ;;  %v12686_v27 = vor.u32 %v13802_v12, %v12683_v18  ;;  %v12667_v23 = vld [vmem:[%s19377_s7 + $0xc30] sm:$0xf0]  ;;  %v12977_v12 = vld [vmem:[%s19377_s7 + $0xe88] sm:$0xf] }
 0xa31   : > { %v13877_v18 = vld [vmem:[%s19377_s7 + $0xe94] sm:$0xf0] }
 0xa32   : > { %8585 = vmatpush.bf16.msrb.mxu1 %v12422_v22  ;;  %8796 = vmatpush.bf16.msra.mxu2 %v12538_v34  ;;  %v13810_v22 = vld [vmem:[%s19377_s7 + $0xc84] sm:$0xf]  ;;  %v12598_v34 = vor.u32 %v13779_v14, %v12595_v35 }
 0xa33   : > { %8809 = vmatpush.bf16.msra.mxu3 %v12542_v29  ;;  %9072 = vmatmul.bf16.vlgmr.msra.gmra.mxu0 %v18382_v40  ;;  %v12714_v29 = vor.u32 %v13812_v2, %v12713_v58  ;;  %v12718_v17 = vor.u32 %v13810_v22, %v12715_v30  ;;  %v12531_v2 = vld [vmem:[%s19377_s7 + $0xb18] sm:$0xf0]  ;;  %v13796_v22 = vld [vmem:[%s19377_s7 + $0xc0c] sm:$0xf0]  ;;  %v13794_v30 = vld [vmem:[%s19377_s7 + $0xc04] sm:$0xf] }
 0xa34   : > { %9319 = vmatpush.bf16.msrb.mxu0 %v12898_v3 }
 0xa36   : > { %8586 = vmatpush.bf16.msrb.mxu1 %v12406_v39  ;;  %8797 = vmatpush.bf16.msra.mxu2 %v12522_v36  ;;  %v7585_v3 = vpop.f32.mrf.mxu1  ;;  %v12801_v39 = vld [vmem:[%s19377_s7 + $0xd28] sm:$0xf]  ;;  %v12702_v36 = vor.u32 %v13806_v59, %v12699_v20 }
 0xa37   : > { %8810 = vmatpush.bf16.msra.mxu3 %v12526_v41  ;;  %v18470_v11 = vadd.f32 %v7585_v3, %v18257_v60  ;;  %v12802_v54 = vor.u32 %v13833_v42, %v12801_v39  ;;  %v12649_v3 = vld [vmem:[%s19377_s7 + $0xc00] sm:$0xf]  ;;  %v13819_v39 = vld [vmem:[%s19377_s7 + $0xccc] sm:$0xf] }
 0xa38   : > { %9320 = vmatpush.bf16.msrb.mxu0 %v12882_v8  ;;  %v8072_v60 = vpop.f32.mrf.mxu0  ;;  %v12698_v8 = vor.u32 %v13808_v46, %v12697_v5  ;;  %v12891_v5 = vld [vmem:[%s19377_s7 + $0xdf0] sm:$0xf0]  ;;  %v12650_v46 = vor.u32 %v13796_v22, %v12649_v3  ;;  %v13807_v3 = vld [vmem:[%s19377_s7 + $0xc6c] sm:$0xf] }
 0xa39   : > { %8587 = vmatmul.bf16.vlgmr.msrb.gmra.mxu1 %v17958_v44  ;;  %8798 = vmatmul.bf16.vlgmr.msra.gmra.mxu2 %v18169_v6  ;;  %v18437_v44 = vadd.f32 %v8070_v9, %v18224_v55  ;;  %v13841_v55 = vld [vmem:[%s19377_s7 + $0xd74] sm:$0xf0]  ;;  %v12665_v9 = vld [vmem:[%s19377_s7 + $0xc20] sm:$0xf]  ;;  %v12894_v42 = vor.u32 %v13854_v4, %v12891_v5  ;;  %v12929_v4 = vld [vmem:[%s19377_s7 + $0xe28] sm:$0xf] }
 0xa3a   : > { %8829 = vmatpush.bf16.msra.mxu1 %v12646_v16  ;;  %9038 = vmatpush.bf16.msrb.mxu2 %v12762_v0  ;;  %v12834_v49 = vor.u32 %v13841_v55, %v12833_v28  ;;  %v12563_v0 = vld [vmem:[%s19377_s7 + $0xb58] sm:$0xf0]  ;;  %v13885_v28 = vld [vmem:[%s19377_s7 + $0xed4] sm:$0xf0]  ;;  %v13763_v55 = vld [vmem:[%s19377_s7 + $0xb0c] sm:$0xf]  ;;  %v12666_v14 = vor.u32 %v13800_v56, %v12665_v9 }
 0xa3b   : > { %9051 = vmatpush.bf16.msrb.mxu3 %v12766_v19  ;;  %v12534_v60 = vor.u32 %v13763_v55, %v12531_v2  ;;  %v12961_v9 = vld [vmem:[%s19377_s7 + $0xe68] sm:$0xf]  ;;  %v13811_v56 = vld [vmem:[%s19377_s7 + $0xc8c] sm:$0xf]  ;;  %v13869_v2 = vld [vmem:[%s19377_s7 + $0xe54] sm:$0xf0] }
 0xa3c   : > { %8811 = vmatmul.bf16.vlgmr.msra.gmra.mxu3 %v18169_v6  ;;  %9321 = vmatpush.bf16.msrb.mxu0 %v12866_v37  ;;  %v7796_v41 = vpop.f32.mrf.mxu2  ;;  %v13829_v37 = vld [vmem:[%s19377_s7 + $0xd14] sm:$0xf0] }
 0xa3d   : > { %v18515_v45 = vadd.f32 %v7796_v41, %v18302_v47  ;;  %v12566_v47 = vor.u32 %v13771_v33, %v12563_v0  ;;  %v12786_v43 = vor.u32 %v13829_v37, %v12785_v13  ;;  %v12755_v33 = vld [vmem:[%s19377_s7 + $0xcd8] sm:$0xf0]  ;;  %v13852_v41 = vld [vmem:[%s19377_s7 + $0xdcc] sm:$0xf0]  ;;  %v12875_v0 = vld [vmem:[%s19377_s7 + $0xdd0] sm:$0xf0] }
 0xa3e   : > { %8830 = vmatpush.bf16.msra.mxu1 %v12630_v38  ;;  %9039 = vmatpush.bf16.msrb.mxu2 %v12746_v1  ;;  %v7587_v25 = vpop.f32.mrf.mxu1  ;;  %v13025_v38 = vld [vmem:[%s19377_s7 + $0xee8] sm:$0xf]  ;;  %v13889_v1 = vld [vmem:[%s19377_s7 + $0xef4] sm:$0xf0]  ;;  %v12857_v37 = vld [vmem:[%s19377_s7 + $0xda0] sm:$0xf] }
 0xa3f   : > { %9052 = vmatpush.bf16.msrb.mxu3 %v12750_v21  ;;  %v7809_v16 = vpop.f32.mrf.mxu3  ;;  %v12547_v21 = vld [vmem:[%s19377_s7 + $0xb38] sm:$0xf0]  ;;  %v13026_v24 = vor.u32 %v13889_v1, %v13025_v38  ;;  %v13848_v38 = vld [vmem:[%s19377_s7 + $0xdac] sm:$0xf0]  ;;  %v13846_v1 = vld [vmem:[%s19377_s7 + $0xda4] sm:$0xf] }
 0xa40   : > { %9322 = vmatpush.bf16.msrb.mxu0 %v12850_v10  ;;  %v18518_v19 = vadd.f32 %v7809_v16, %v18305_v52  ;;  %v12682_v52 = vor.u32 %v13804_v26, %v12681_v62  ;;  %v12550_v10 = vor.u32 %v13767_v7, %v12547_v21  ;;  %v13850_v16 = vld [vmem:[%s19377_s7 + $0xdc4] sm:$0xf]  ;;  %v12758_v26 = vor.u32 %v13819_v39, %v12755_v33  ;;  %v13865_v5 = vld [vmem:[%s19377_s7 + $0xe34] sm:$0xf0]  ;;  %v13836_v39 = vld [vmem:[%s19377_s7 + $0xd4c] sm:$0xf0] }
 0xa41   : > { %v12878_v13 = vor.u32 %v13850_v16, %v12875_v0  ;;  %v12858_v21 = vor.u32 %v13848_v38, %v12857_v37  ;;  %v12811_v16 = vld [vmem:[%s19377_s7 + $0xd50] sm:$0xf0]  ;;  %v12930_v0 = vor.u32 %v13865_v5, %v12929_v4  ;;  %v13830_v37 = vld [vmem:[%s19377_s7 + $0xd24] sm:$0xf]  ;;  %v12883_v4 = vld [vmem:[%s19377_s7 + $0xdd8] sm:$0xf0] }
 0xa42   : > { %8831 = vmatpush.bf16.msra.mxu1 %v12614_v15  ;;  %9040 = vmatpush.bf16.msrb.mxu2 %v12730_v48  ;;  %v18557_v15 = vpack.c.b16 %v9127_v53, %v9127_v53  ;;  %v13009_v48 = vld [vmem:[%s19377_s7 + $0xec8] sm:$0xf]  ;;  %v12859_v53 = vld [vmem:[%s19377_s7 + $0xdb0] sm:$0xf0]  ;;  %v13001_v5 = vld [vmem:[%s19377_s7 + $0xec0] sm:$0xf] }
 0xa43   : > { %9053 = vmatpush.bf16.msrb.mxu3 %v12734_v63  ;;  %v12670_v63 = vor.u32 %v13798_v57, %v12667_v23  ;;  %v12862_v57 = vor.u32 %v13846_v1, %v12859_v53  ;;  %v12723_v23 = vld [vmem:[%s19377_s7 + $0xc98] sm:$0xf0]  ;;  %v12795_v38 = vld [vmem:[%s19377_s7 + $0xd30] sm:$0xf0] }
 0xa44   : > { %9323 = vmatpush.bf16.msrb.mxu0 %v12834_v49  ;;  %v7798_v35 = vpop.f32.mrf.mxu2  ;;  %v12651_v49 = vld [vmem:[%s19377_s7 + $0xc10] sm:$0xf0]  ;;  %v18596_v32 = vshrl.u32 %v18557_v15, 16 }
 0xa45   : > { %v12654_v59 = vor.u32 %v13794_v30, %v12651_v49  ;;  %v12707_v30 = vld [vmem:[%s19377_s7 + $0xc78] sm:$0xf0]  ;;  %v12825_v49 = vld [vmem:[%s19377_s7 + $0xd60] sm:$0xf] }
 0xa46   : > { %8832 = vmatpush.bf16.msra.mxu1 %v12598_v34  ;;  %9041 = vmatpush.bf16.msrb.mxu2 %v12714_v29  ;;  %v13823_v34 = vld [vmem:[%s19377_s7 + $0xcec] sm:$0xf]  ;;  %v12771_v29 = vld [vmem:[%s19377_s7 + $0xcf8] sm:$0xf0] }
 0xa47   : > { %9054 = vmatpush.bf16.msrb.mxu3 %v12718_v17  ;;  %v7811_v58 = vpop.f32.mrf.mxu3  ;;  %v13010_v17 = vor.u32 %v13885_v28, %v13009_v48  ;;  %v12774_v20 = vor.u32 %v13823_v34, %v12771_v29  ;;  %v13842_v48 = vld [vmem:[%s19377_s7 + $0xd84] sm:$0xf]  ;;  %v12843_v28 = vld [vmem:[%s19377_s7 + $0xd90] sm:$0xf0]  ;;  %v13840_v34 = vld [vmem:[%s19377_s7 + $0xd6c] sm:$0xf0] }
 0xa48   : > { %9324 = vmatpush.bf16.msrb.mxu0 %v12818_v31  ;;  %v12890_v31 = vor.u32 %v13856_v61, %v12889_v51  ;;  %v12945_v58 = vld [vmem:[%s19377_s7 + $0xe48] sm:$0xf]  ;;  %v12846_v22 = vor.u32 %v13842_v48, %v12843_v28  ;;  %v13838_v29 = vld [vmem:[%s19377_s7 + $0xd64] sm:$0xf]  ;;  %v12827_v51 = vld [vmem:[%s19377_s7 + $0xd70] sm:$0xf0] }
 0xa49   : > { %v12946_v61 = vor.u32 %v13869_v2, %v12945_v58  ;;  %v13826_v48 = vld [vmem:[%s19377_s7 + $0xd04] sm:$0xf]  ;;  %v12779_v28 = vld [vmem:[%s19377_s7 + $0xd10] sm:$0xf0]  ;;  %v13888_v58 = vld [vmem:[%s19377_s7 + $0xeec] sm:$0xf0] }
 0xa4a   : > { %8833 = vmatpush.bf16.msra.mxu1 %v12582_v50  ;;  %9042 = vmatpush.bf16.msrb.mxu2 %v12698_v8  ;;  %v12993_v50 = vld [vmem:[%s19377_s7 + $0xea8] sm:$0xf]  ;;  %v13881_v8 = vld [vmem:[%s19377_s7 + $0xeb4] sm:$0xf0]  ;;  %v18807_v2 = vrot.slane %v18557_v15, 1 }
 0xa4b   : > { %9055 = vmatpush.bf16.msrb.mxu3 %v12702_v36  ;;  %v12873_v36 = vld [vmem:[%s19377_s7 + $0xdc0] sm:$0xf]  ;;  %v12994_v62 = vor.u32 %v13881_v8, %v12993_v50  ;;  %v12691_v50 = vld [vmem:[%s19377_s7 + $0xc58] sm:$0xf0]  ;;  %v13121_v15 = vld [vmem:[%s19377_s7 + $0xfa8] sm:$0xf] }
 0xa4c   : > { %9325 = vmatpush.bf16.msrb.mxu0 %v12802_v54  ;;  %v12874_v25 = vor.u32 %v13852_v41, %v12873_v36  ;;  %v13815_v54 = vld [vmem:[%s19377_s7 + $0xcac] sm:$0xf]  ;;  %v12809_v8 = vld [vmem:[%s19377_s7 + $0xd40] sm:$0xf]  ;;  %v13834_v41 = vld [vmem:[%s19377_s7 + $0xd44] sm:$0xf] }
 0xa4e   : > { %8834 = vmatpush.bf16.msra.mxu1 %v12566_v47  ;;  %9043 = vmatpush.bf16.msrb.mxu2 %v12682_v52  ;;  %v12739_v52 = vld [vmem:[%s19377_s7 + $0xcb8] sm:$0xf0] }
 0xa4f   : > { %9056 = vmatpush.bf16.msrb.mxu3 %v12686_v27  ;;  %v12978_v27 = vor.u32 %v13877_v18, %v12977_v12  ;;  %v12742_v7 = vor.u32 %v13815_v54, %v12739_v52  ;;  %v13921_v12 = vld [vmem:[%s19377_s7 + $0xff4] sm:$0xf0]  ;;  %v12814_v18 = vor.u32 %v13834_v41, %v12811_v16  ;;  %v13799_v54 = vld [vmem:[%s19377_s7 + $0xc2c] sm:$0xf]  ;;  %v13832_v52 = vld [vmem:[%s19377_s7 + $0xd2c] sm:$0xf0] }
 0xa50   : > { %9326 = vmatpush.bf16.msrb.mxu0 %v12786_v43  ;;  %v8325_v47 = vpop.f32.mrf.mxu0  ;;  %v12841_v43 = vld [vmem:[%s19377_s7 + $0xd80] sm:$0xf]  ;;  %v13847_v41 = vld [vmem:[%s19377_s7 + $0xdac] sm:$0xf] }
 0xa52   : > { %8835 = vmatpush.bf16.msra.mxu1 %v12550_v10  ;;  %9044 = vmatpush.bf16.msrb.mxu2 %v12666_v14 }
 0xa53   : > { %9057 = vmatpush.bf16.msrb.mxu3 %v12670_v63  ;;  %9327 = vmatmul.bf16.vlgmr.msrb.gmra.mxu0 %v18596_v32  ;;  %v12726_v63 = vor.u32 %v13811_v56, %v12723_v23  ;;  %v12798_v56 = vor.u32 %v13830_v37, %v12795_v38  ;;  %v12851_v37 = vld [vmem:[%s19377_s7 + $0xd98] sm:$0xf0]  ;;  %v12969_v38 = vld [vmem:[%s19377_s7 + $0xe80] sm:$0xf] }
 0xa54   : > { %9569 = vmatpush.bf16.msra.mxu0 %v13026_v24  ;;  %v13844_v24 = vld [vmem:[%s19377_s7 + $0xd8c] sm:$0xf0] }
 0xa55   : > { %v12842_v35 = vor.u32 %v13844_v24, %v12841_v43  ;;  %v12659_v43 = vld [vmem:[%s19377_s7 + $0xc18] sm:$0xf0]  ;;  %v12777_v24 = vld [vmem:[%s19377_s7 + $0xd00] sm:$0xf] }
 0xa56   : > { %8836 = vmatpush.bf16.msra.mxu1 %v12534_v60  ;;  %9045 = vmatpush.bf16.msrb.mxu2 %v12650_v46  ;;  %v7835_v10 = vpop.f32.mrf.mxu1  ;;  %v12826_v60 = vor.u32 %v13840_v34, %v12825_v49  ;;  %v13803_v46 = vld [vmem:[%s19377_s7 + $0xc4c] sm:$0xf]  ;;  %v12782_v34 = vor.u32 %v13826_v48, %v12779_v28  ;;  %v12953_v48 = vld [vmem:[%s19377_s7 + $0xe60] sm:$0xf]  ;;  %v13872_v28 = vld [vmem:[%s19377_s7 + $0xe6c] sm:$0xf0] }
 0xa57   : > { %9058 = vmatpush.bf16.msrb.mxu3 %v12654_v59  ;;  %v18684_v14 = vadd.f32 %v7835_v10, %v18470_v11  ;;  %v12830_v59 = vor.u32 %v13838_v29, %v12827_v51  ;;  %v13828_v10 = vld [vmem:[%s19377_s7 + $0xd0c] sm:$0xf0] }
 0xa58   : > { %9570 = vmatpush.bf16.msra.mxu0 %v13010_v17  ;;  %v8327_v11 = vpop.f32.mrf.mxu0  ;;  %v12710_v17 = vor.u32 %v13807_v3, %v12707_v30  ;;  %v13019_v30 = vld [vmem:[%s19377_s7 + $0xef0] sm:$0xf0]  ;;  %v12778_v49 = vor.u32 %v13828_v10, %v12777_v24  ;;  %v12835_v10 = vld [vmem:[%s19377_s7 + $0xd78] sm:$0xf0] }
 0xa59   : > { %8837 = vmatmul.bf16.vlgmr.msra.gmra.mxu1 %v18169_v6  ;;  %9046 = vmatmul.bf16.vlgmr.msrb.gmra.mxu2 %v18382_v40  ;;  %v18651_v6 = vadd.f32 %v8325_v47, %v18437_v44  ;;  %v13873_v44 = vld [vmem:[%s19377_s7 + $0xe74] sm:$0xf0]  ;;  %v12793_v47 = vld [vmem:[%s19377_s7 + $0xd20] sm:$0xf]  ;;  %v13886_v11 = vld [vmem:[%s19377_s7 + $0xee4] sm:$0xf] }
 0xa5a   : > { %9077 = vmatpush.bf16.msrb.mxu1 %v12774_v20  ;;  %9293 = vmatpush.bf16.msra.mxu2 %v12890_v31  ;;  %v12962_v55 = vor.u32 %v13873_v44, %v12961_v9  ;;  %v13795_v9 = vld [vmem:[%s19377_s7 + $0xc0c] sm:$0xf]  ;;  %v12794_v44 = vor.u32 %v13832_v52, %v12793_v47 }
 0xa5b   : > { %9306 = vmatpush.bf16.msra.mxu3 %v12894_v42  ;;  %v13843_v47 = vld [vmem:[%s19377_s7 + $0xd8c] sm:$0xf] }
 0xa5c   : > { %9059 = vmatmul.bf16.vlgmr.msrb.gmra.mxu3 %v18382_v40  ;;  %9571 = vmatpush.bf16.msra.mxu0 %v12994_v62  ;;  %v8044_v20 = vpop.f32.mrf.mxu2  ;;  %v12913_v62 = vld [vmem:[%s19377_s7 + $0xe08] sm:$0xf] }
 0xa5d   : > { %v18729_v42 = vadd.f32 %v8044_v20, %v18515_v45  ;;  %v12694_v45 = vor.u32 %v13803_v46, %v12691_v50  ;;  %v13884_v46 = vld [vmem:[%s19377_s7 + $0xecc] sm:$0xf0]  ;;  %v13003_v20 = vld [vmem:[%s19377_s7 + $0xed0] sm:$0xf0] }
 0xa5e   : > { %9078 = vmatpush.bf16.msrb.mxu1 %v12758_v26  ;;  %9294 = vmatpush.bf16.msra.mxu2 %v12874_v25  ;;  %v7837_v36 = vpop.f32.mrf.mxu1  ;;  %v13861_v26 = vld [vmem:[%s19377_s7 + $0xe14] sm:$0xf0]  ;;  %v13153_v25 = vld [vmem:[%s19377_s7 + $0xfe8] sm:$0xf] }
 0xa5f   : > { %9307 = vmatpush.bf16.msra.mxu3 %v12878_v13  ;;  %v8057_v31 = vpop.f32.mrf.mxu3  ;;  %v12675_v13 = vld [vmem:[%s19377_s7 + $0xc38] sm:$0xf0]  ;;  %v12914_v1 = vor.u32 %v13861_v26, %v12913_v62  ;;  %v13154_v53 = vor.u32 %v13921_v12, %v13153_v25  ;;  %v13909_v36 = vld [vmem:[%s19377_s7 + $0xf94] sm:$0xf0]  ;;  %v13878_v26 = vld [vmem:[%s19377_s7 + $0xea4] sm:$0xf] }
 0xa60   : > { %9572 = vmatpush.bf16.msra.mxu0 %v12978_v27  ;;  %v18732_v33 = vadd.f32 %v8057_v31, %v18518_v19  ;;  %v12810_v19 = vor.u32 %v13836_v39, %v12809_v8  ;;  %v12678_v27 = vor.u32 %v13799_v54, %v12675_v13  ;;  %v13002_v8 = vor.u32 %v13884_v46, %v13001_v5  ;;  %v13105_v39 = vld [vmem:[%s19377_s7 + $0xf88] sm:$0xf]  ;;  %v12867_v62 = vld [vmem:[%s19377_s7 + $0xdb8] sm:$0xf0]  ;;  %v12987_v25 = vld [vmem:[%s19377_s7 + $0xeb0] sm:$0xf0] }
 0xa61   : > { %v13106_v12 = vor.u32 %v13909_v36, %v13105_v39  ;;  %v13089_v13 = vld [vmem:[%s19377_s7 + $0xf68] sm:$0xf]  ;;  %v12990_v52 = vor.u32 %v13878_v26, %v12987_v25  ;;  %v13866_v5 = vld [vmem:[%s19377_s7 + $0xe44] sm:$0xf]  ;;  %v12939_v46 = vld [vmem:[%s19377_s7 + $0xe50] sm:$0xf0] }
 0xa62   : > { %9079 = vmatpush.bf16.msrb.mxu1 %v12742_v7  ;;  %9295 = vmatpush.bf16.msra.mxu2 %v12858_v21  ;;  %v13137_v7 = vld [vmem:[%s19377_s7 + $0xfc8] sm:$0xf]  ;;  %v13917_v21 = vld [vmem:[%s19377_s7 + $0xfd4] sm:$0xf0]  ;;  %v12803_v39 = vld [vmem:[%s19377_s7 + $0xd38] sm:$0xf0] }
 0xa63   : > { %9308 = vmatpush.bf16.msra.mxu3 %v12862_v57  ;;  %v13138_v3 = vor.u32 %v13917_v21, %v13137_v7  ;;  %v12971_v7 = vld [vmem:[%s19377_s7 + $0xe90] sm:$0xf0]  ;;  %v12921_v36 = vld [vmem:[%s19377_s7 + $0xe20] sm:$0xf]  ;;  %v13827_v26 = vld [vmem:[%s19377_s7 + $0xd0c] sm:$0xf] }
 0xa64   : > { %9573 = vmatpush.bf16.msra.mxu0 %v12962_v55  ;;  %v8046_v57 = vpop.f32.mrf.mxu2  ;;  %v13855_v55 = vld [vmem:[%s19377_s7 + $0xdec] sm:$0xf]  ;;  %v12787_v25 = vld [vmem:[%s19377_s7 + $0xd18] sm:$0xf0] }
 0xa65   : > { %v13073_v57 = vld [vmem:[%s19377_s7 + $0xf48] sm:$0xf] }
 0xa66   : > { %9080 = vmatpush.bf16.msrb.mxu1 %v12726_v63  ;;  %9296 = vmatpush.bf16.msra.mxu2 %v12842_v35  ;;  %v12899_v63 = vld [vmem:[%s19377_s7 + $0xdf8] sm:$0xf0]  ;;  %v13017_v35 = vld [vmem:[%s19377_s7 + $0xee0] sm:$0xf] }
 0xa67   : > { %9309 = vmatpush.bf16.msra.mxu3 %v12846_v22  ;;  %v8059_v23 = vpop.f32.mrf.mxu3  ;;  %v12662_v22 = vor.u32 %v13795_v9, %v12659_v43  ;;  %v12902_v29 = vor.u32 %v13855_v55, %v12899_v63  ;;  %v13018_v51 = vor.u32 %v13888_v58, %v13017_v35  ;;  %v13839_v43 = vld [vmem:[%s19377_s7 + $0xd6c] sm:$0xf]  ;;  %v13870_v55 = vld [vmem:[%s19377_s7 + $0xe64] sm:$0xf]  ;;  %v12955_v63 = vld [vmem:[%s19377_s7 + $0xe70] sm:$0xf0] }
 0xa68   : > { %9574 = vmatpush.bf16.msra.mxu0 %v12946_v61  ;;  %v13913_v61 = vld [vmem:[%s19377_s7 + $0xfb4] sm:$0xf0]  ;;  %v12838_v58 = vor.u32 %v13839_v43, %v12835_v10  ;;  %v13011_v10 = vld [vmem:[%s19377_s7 + $0xed8] sm:$0xf0] }
 0xa69   : > { %v13122_v31 = vor.u32 %v13913_v61, %v13121_v15  ;;  %v13901_v23 = vld [vmem:[%s19377_s7 + $0xf54] sm:$0xf0]  ;;  %v12937_v15 = vld [vmem:[%s19377_s7 + $0xe40] sm:$0xf]  ;;  %v13868_v61 = vld [vmem:[%s19377_s7 + $0xe4c] sm:$0xf0] }
 0xa6a   : > { %9081 = vmatpush.bf16.msrb.mxu1 %v12710_v17  ;;  %9297 = vmatpush.bf16.msra.mxu2 %v12826_v60  ;;  %v13851_v17 = vld [vmem:[%s19377_s7 + $0xdcc] sm:$0xf]  ;;  %v13022_v60 = vor.u32 %v13886_v11, %v13019_v30  ;;  %v13074_v35 = vor.u32 %v13901_v23, %v13073_v57  ;;  %v13897_v11 = vld [vmem:[%s19377_s7 + $0xf34] sm:$0xf0] }
 0xa6b   : > { %9310 = vmatpush.bf16.msra.mxu3 %v12830_v59  ;;  %v13882_v59 = vld [vmem:[%s19377_s7 + $0xec4] sm:$0xf]  ;;  %v12886_v50 = vor.u32 %v13851_v17, %v12883_v4  ;;  %v13835_v30 = vld [vmem:[%s19377_s7 + $0xd4c] sm:$0xf] }
 0xa6c   : > { %9575 = vmatpush.bf16.msra.mxu0 %v12930_v0  ;;  %v13006_v16 = vor.u32 %v13882_v59, %v13003_v20 }
 0xa6e   : > { %9082 = vmatpush.bf16.msrb.mxu1 %v12694_v45  ;;  %9298 = vmatpush.bf16.msra.mxu2 %v12810_v19  ;;  %v12985_v45 = vld [vmem:[%s19377_s7 + $0xea0] sm:$0xf]  ;;  %v13880_v19 = vld [vmem:[%s19377_s7 + $0xeac] sm:$0xf0] }
 0xa6f   : > { %9311 = vmatpush.bf16.msra.mxu3 %v12814_v18  ;;  %v12870_v18 = vor.u32 %v13847_v41, %v12867_v62  ;;  %v12986_v54 = vor.u32 %v13880_v19, %v12985_v45  ;;  %v13864_v41 = vld [vmem:[%s19377_s7 + $0xe2c] sm:$0xf0] }
 0xa70   : > { %9576 = vmatpush.bf16.msra.mxu0 %v12914_v1  ;;  %v8575_v0 = vpop.f32.mrf.mxu0  ;;  %v13876_v1 = vld [vmem:[%s19377_s7 + $0xe8c] sm:$0xf0]  ;;  %v12922_v19 = vor.u32 %v13864_v41, %v12921_v36  ;;  %v13871_v36 = vld [vmem:[%s19377_s7 + $0xe6c] sm:$0xf]  ;;  %v12963_v41 = vld [vmem:[%s19377_s7 + $0xe78] sm:$0xf0] }
 0xa72   : > { %9083 = vmatpush.bf16.msrb.mxu1 %v12678_v27  ;;  %9299 = vmatpush.bf16.msra.mxu2 %v12794_v44  ;;  %v13874_v27 = vld [vmem:[%s19377_s7 + $0xe84] sm:$0xf]  ;;  %v12854_v44 = vor.u32 %v13843_v47, %v12851_v37  ;;  %v13887_v37 = vld [vmem:[%s19377_s7 + $0xeec] sm:$0xf] }
 0xa73   : > { %9312 = vmatpush.bf16.msra.mxu3 %v12798_v56  ;;  %9577 = vmatmul.bf16.vlgmr.msra.gmra.mxu0 %v18807_v2  ;;  %v12970_v56 = vor.u32 %v13876_v1, %v12969_v38  ;;  %v12974_v24 = vor.u32 %v13874_v27, %v12971_v7  ;;  %v13858_v47 = vld [vmem:[%s19377_s7 + $0xe04] sm:$0xf]  ;;  %v13027_v38 = vld [vmem:[%s19377_s7 + $0xef8] sm:$0xf0]  ;;  %v13145_v1 = vld [vmem:[%s19377_s7 + $0xfe0] sm:$0xf] }
 0xa74   : > { %9819 = vmatpush.bf16.msrb.mxu0 %v13154_v53  ;;  %v13918_v27 = vld [vmem:[%s19377_s7 + $0xfe4] sm:$0xf]  ;;  %v13147_v7 = vld [vmem:[%s19377_s7 + $0xff0] sm:$0xf0]  ;;  %v13030_v23 = vor.u32 %v13887_v37, %v13027_v38 }
 0xa75   : > { %v13067_v37 = vld [vmem:[%s19377_s7 + $0xf50] sm:$0xf0] }
 0xa76   : > { %9084 = vmatpush.bf16.msrb.mxu1 %v12662_v22  ;;  %9300 = vmatpush.bf16.msra.mxu2 %v12778_v49  ;;  %v8083_v53 = vpop.f32.mrf.mxu1  ;;  %v13057_v22 = vld [vmem:[%s19377_s7 + $0xf28] sm:$0xf]  ;;  %v12958_v49 = vor.u32 %v13870_v55, %v12955_v63  ;;  %v13914_v55 = vld [vmem:[%s19377_s7 + $0xfc4] sm:$0xf]  ;;  %v13131_v63 = vld [vmem:[%s19377_s7 + $0xfd0] sm:$0xf0] }
 0xa77   : > { %9313 = vmatpush.bf16.msra.mxu3 %v12782_v34  ;;  %v18895_v9 = vadd.f32 %v8083_v53, %v18684_v14  ;;  %v13058_v59 = vor.u32 %v13897_v11, %v13057_v22  ;;  %v13920_v53 = vld [vmem:[%s19377_s7 + $0xfec] sm:$0xf0]  ;;  %v13879_v22 = vld [vmem:[%s19377_s7 + $0xeac] sm:$0xf]  ;;  %v12995_v11 = vld [vmem:[%s19377_s7 + $0xeb8] sm:$0xf0] }
 0xa78   : > { %9820 = vmatpush.bf16.msrb.mxu0 %v13138_v3  ;;  %v8577_v14 = vpop.f32.mrf.mxu0  ;;  %v12954_v3 = vor.u32 %v13872_v28, %v12953_v48  ;;  %v13146_v43 = vor.u32 %v13920_v53, %v13145_v1  ;;  %v13129_v48 = vld [vmem:[%s19377_s7 + $0xfc0] sm:$0xf]  ;;  %v13916_v28 = vld [vmem:[%s19377_s7 + $0xfcc] sm:$0xf0] }
 0xa79   : > { %9085 = vmatmul.bf16.vlgmr.msrb.gmra.mxu1 %v18382_v40  ;;  %9301 = vmatmul.bf16.vlgmr.msra.gmra.mxu2 %v18596_v32  ;;  %v18862_v40 = vadd.f32 %v8575_v0, %v18651_v6  ;;  %v13905_v6 = vld [vmem:[%s19377_s7 + $0xf74] sm:$0xf0]  ;;  %v12923_v0 = vld [vmem:[%s19377_s7 + $0xe30] sm:$0xf0]  ;;  %v13883_v14 = vld [vmem:[%s19377_s7 + $0xecc] sm:$0xf] }
 0xa7a   : > { %9332 = vmatpush.bf16.msra.mxu1 %v12902_v29  ;;  %9543 = vmatpush.bf16.msrb.mxu2 %v13018_v51  ;;  %v13090_v21 = vor.u32 %v13905_v6, %v13089_v13  ;;  %v12819_v51 = vld [vmem:[%s19377_s7 + $0xd58] sm:$0xf0]  ;;  %v13860_v6 = vld [vmem:[%s19377_s7 + $0xe0c] sm:$0xf0] }
 0xa7b   : > { %9556 = vmatpush.bf16.msrb.mxu3 %v13022_v60  ;;  %v12822_v20 = vor.u32 %v13835_v30, %v12819_v51  ;;  %v13113_v30 = vld [vmem:[%s19377_s7 + $0xfa0] sm:$0xf]  ;;  %v13115_v51 = vld [vmem:[%s19377_s7 + $0xfb0] sm:$0xf0] }
 0xa7c   : > { %9314 = vmatmul.bf16.vlgmr.msra.gmra.mxu3 %v18596_v32  ;;  %9821 = vmatpush.bf16.msrb.mxu0 %v13122_v31  ;;  %v8299_v34 = vpop.f32.mrf.mxu2  ;;  %v12938_v31 = vor.u32 %v13868_v61, %v12937_v15 }
 0xa7d   : > { %v18940_v17 = vadd.f32 %v8299_v34, %v18729_v42  ;;  %v13041_v42 = vld [vmem:[%s19377_s7 + $0xf08] sm:$0xf]  ;;  %v13912_v34 = vld [vmem:[%s19377_s7 + $0xfac] sm:$0xf0] }
 0xa7e   : > { %9333 = vmatpush.bf16.msra.mxu1 %v12886_v50  ;;  %9544 = vmatpush.bf16.msrb.mxu2 %v13002_v8  ;;  %v8085_v4 = vpop.f32.mrf.mxu1  ;;  %v13831_v50 = vld [vmem:[%s19377_s7 + $0xd2c] sm:$0xf]  ;;  %v12942_v8 = vor.u32 %v13866_v5, %v12939_v46  ;;  %v13114_v61 = vor.u32 %v13912_v34, %v13113_v30  ;;  %v12979_v46 = vld [vmem:[%s19377_s7 + $0xe98] sm:$0xf0] }
 0xa7f   : > { %9557 = vmatpush.bf16.msrb.mxu3 %v13006_v16  ;;  %v8312_v29 = vpop.f32.mrf.mxu3  ;;  %v13862_v16 = vld [vmem:[%s19377_s7 + $0xe24] sm:$0xf]  ;;  %v12806_v45 = vor.u32 %v13831_v50, %v12803_v39  ;;  %v13875_v5 = vld [vmem:[%s19377_s7 + $0xe8c] sm:$0xf]  ;;  %v13155_v30 = vld [vmem:[%s19377_s7 + $0xff8] sm:$0xf0] }
 0xa80   : > { %9822 = vmatpush.bf16.msrb.mxu0 %v13106_v12  ;;  %v18943_v60 = vadd.f32 %v8312_v29, %v18732_v33  ;;  %v13893_v33 = vld [vmem:[%s19377_s7 + $0xf14] sm:$0xf0]  ;;  %v12905_v12 = vld [vmem:[%s19377_s7 + $0xe00] sm:$0xf]  ;;  %v13910_v29 = vld [vmem:[%s19377_s7 + $0xfa4] sm:$0xf]  ;;  %v12982_v50 = vor.u32 %v13875_v5, %v12979_v46 }
 0xa81   : > { %v13042_v62 = vor.u32 %v13893_v33, %v13041_v42  ;;  %v13118_v4 = vor.u32 %v13910_v29, %v13115_v51  ;;  %v13911_v5 = vld [vmem:[%s19377_s7 + $0xfac] sm:$0xf]  ;;  %v13123_v46 = vld [vmem:[%s19377_s7 + $0xfb8] sm:$0xf0] }
 0xa82   : > { %9334 = vmatpush.bf16.msra.mxu1 %v12870_v18  ;;  %9545 = vmatpush.bf16.msrb.mxu2 %v12986_v54  ;;  %v12926_v18 = vor.u32 %v13862_v16, %v12923_v0  ;;  %v13081_v16 = vld [vmem:[%s19377_s7 + $0xf60] sm:$0xf] }
 0xa83   : > { %9558 = vmatpush.bf16.msrb.mxu3 %v12990_v52  ;;  %v12907_v52 = vld [vmem:[%s19377_s7 + $0xe10] sm:$0xf0] }
 0xa84   : > { %9823 = vmatpush.bf16.msrb.mxu0 %v13090_v21  ;;  %v8301_v54 = vpop.f32.mrf.mxu2  ;;  %v19012_v21 = vrot.slane %v18596_v32, 1  ;;  %v12910_v57 = vor.u32 %v13858_v47, %v12907_v52  ;;  %v13900_v47 = vld [vmem:[%s19377_s7 + $0xf4c] sm:$0xf0]  ;;  %v13898_v52 = vld [vmem:[%s19377_s7 + $0xf44] sm:$0xf] }
 0xa85   : > { %v13065_v54 = vld [vmem:[%s19377_s7 + $0xf40] sm:$0xf] }
 0xa86   : > { %9335 = vmatpush.bf16.msra.mxu1 %v12854_v44  ;;  %9546 = vmatpush.bf16.msrb.mxu2 %v12970_v56  ;;  %v12790_v44 = vor.u32 %v13827_v26, %v12787_v25  ;;  %v12906_v56 = vor.u32 %v13860_v6, %v12905_v12  ;;  %v13867_v12 = vld [vmem:[%s19377_s7 + $0xe4c] sm:$0xf] }
 0xa87   : > { %9559 = vmatpush.bf16.msrb.mxu3 %v12974_v24  ;;  %v8314_v13 = vpop.f32.mrf.mxu3  ;;  %v13150_v24 = vor.u32 %v13918_v27, %v13147_v7  ;;  %v13066_v7 = vor.u32 %v13900_v47, %v13065_v54  ;;  %v13891_v54 = vld [vmem:[%s19377_s7 + $0xf0c] sm:$0xf] }
 0xa88   : > { %9824 = vmatpush.bf16.msrb.mxu0 %v13074_v35  ;;  %v13014_v35 = vor.u32 %v13883_v14, %v13011_v10 }
 0xa8a   : > { %9336 = vmatpush.bf16.msra.mxu1 %v12838_v58  ;;  %9547 = vmatpush.bf16.msrb.mxu2 %v12954_v3  ;;  %v13130_v58 = vor.u32 %v13916_v28, %v13129_v48  ;;  %v13134_v3 = vor.u32 %v13914_v55, %v13131_v63  ;;  %v13859_v48 = vld [vmem:[%s19377_s7 + $0xe0c] sm:$0xf]  ;;  %v12915_v28 = vld [vmem:[%s19377_s7 + $0xe18] sm:$0xf0]  ;;  %v13033_v55 = vld [vmem:[%s19377_s7 + $0xf00] sm:$0xf] }
 0xa8b   : > { %9560 = vmatpush.bf16.msrb.mxu3 %v12958_v49 }
 0xa8c   : > { %9825 = vmatpush.bf16.msrb.mxu0 %v13058_v59  ;;  %v13097_v59 = vld [vmem:[%s19377_s7 + $0xf80] sm:$0xf] }
 0xa8e   : > { %9337 = vmatpush.bf16.msra.mxu1 %v12822_v20  ;;  %9548 = vmatpush.bf16.msrb.mxu2 %v12938_v31  ;;  %v13906_v20 = vld [vmem:[%s19377_s7 + $0xf84] sm:$0xf]  ;;  %v13099_v31 = vld [vmem:[%s19377_s7 + $0xf90] sm:$0xf0] }
 0xa8f   : > { %9561 = vmatpush.bf16.msrb.mxu3 %v12942_v8  ;;  %v13102_v39 = vor.u32 %v13906_v20, %v13099_v31  ;;  %v13126_v20 = vor.u32 %v13911_v5, %v13123_v46  ;;  %v13107_v31 = vld [vmem:[%s19377_s7 + $0xf98] sm:$0xf0]  ;;  %v13926_v5 = vld [vmem:[%s19379_s9 + $0x20] sm:$0xff] }
 0xa90   : > { %9826 = vmatpush.bf16.msrb.mxu0 %v13042_v62  ;;  %v8825_v49 = vpop.f32.mrf.mxu0  ;;  %v13902_v62 = vld [vmem:[%s19377_s7 + $0xf64] sm:$0xf] }
 0xa91   : > { %v19055_v15 = vadd.f32 %v8825_v49, %v18862_v40  ;;  %v13908_v40 = vld [vmem:[%s19377_s7 + $0xf8c] sm:$0xf0]  ;;  %v12918_v49 = vor.u32 %v13859_v48, %v12915_v28  ;;  %v13934_v46 = vld [vmem:[%s19379_s9 + $0x60] sm:$0xff] }
 0xa92   : > { %9338 = vmatpush.bf16.msra.mxu1 %v12806_v45  ;;  %9549 = vmatpush.bf16.msrb.mxu2 %v12922_v19  ;;  %v13098_v8 = vor.u32 %v13908_v40, %v13097_v59  ;;  %v13083_v45 = vld [vmem:[%s19377_s7 + $0xf70] sm:$0xf0]  ;;  %v12966_v19 = vor.u32 %v13871_v36, %v12963_v41 }
 0xa93   : > { %9562 = vmatpush.bf16.msrb.mxu3 %v12926_v18  ;;  %9827 = vmatmul.bf16.vlgmr.msrb.gmra.mxu0 %v19012_v21  ;;  %v13086_v25 = vor.u32 %v13902_v62, %v13083_v45  ;;  %v12947_v18 = vld [vmem:[%s19377_s7 + $0xe58] sm:$0xf0] }
 0xa94   : > { %v12950_v27 = vor.u32 %v13867_v12, %v12947_v18  ;;  %v13059_v12 = vld [vmem:[%s19377_s7 + $0xf38] sm:$0xf0] }
 0xa96   : > { %9339 = vmatpush.bf16.msra.mxu1 %v12790_v44  ;;  %9550 = vmatpush.bf16.msrb.mxu2 %v12906_v56  ;;  %v8338_v42 = vpop.f32.mrf.mxu1  ;;  %v13070_v44 = vor.u32 %v13898_v52, %v13067_v37  ;;  %v13863_v56 = vld [vmem:[%s19377_s7 + $0xe2c] sm:$0xf] }
 0xa97   : > { %9563 = vmatpush.bf16.msrb.mxu3 %v12910_v57  ;;  %v19076_v33 = vadd.f32 %v8338_v42, %v18895_v9  ;;  %v13904_v9 = vld [vmem:[%s19377_s7 + $0xf6c] sm:$0xf0]  ;;  %v12931_v57 = vld [vmem:[%s19377_s7 + $0xe38] sm:$0xf0] }
 0xa98   : > { %v8827_v0 = vpop.f32.mrf.mxu0  ;;  %v13082_v26 = vor.u32 %v13904_v9, %v13081_v16  ;;  %v13899_v16 = vld [vmem:[%s19377_s7 + $0xf4c] sm:$0xf] }
 0xa99   : > { %9340 = vmatmul.bf16.vlgmr.msra.gmra.mxu1 %v18596_v32  ;;  %9551 = vmatmul.bf16.vlgmr.msrb.gmra.mxu2 %v18807_v2  ;;  %v12998_v32 = vor.u32 %v13879_v22, %v12995_v11  ;;  %v13035_v22 = vld [vmem:[%s19377_s7 + $0xf10] sm:$0xf0]  ;;  %v13919_v11 = vld [vmem:[%s19377_s7 + $0xfec] sm:$0xf] }
 0xa9a   : > { %9582 = vmatpush.bf16.msrb.mxu1 %v13030_v23  ;;  %9793 = vmatpush.bf16.msra.mxu2 %v13146_v43  ;;  %v13894_v23 = vld [vmem:[%s19377_s7 + $0xf24] sm:$0xf]  ;;  %v13051_v43 = vld [vmem:[%s19377_s7 + $0xf30] sm:$0xf0]  ;;  %v13158_v51 = vor.u32 %v13919_v11, %v13155_v30 }
 0xa9b   : > { %9806 = vmatpush.bf16.msra.mxu3 %v13150_v24  ;;  %v12934_v24 = vor.u32 %v13863_v56, %v12931_v57  ;;  %v13054_v10 = vor.u32 %v13894_v23, %v13051_v43  ;;  %v13942_v23 = vld [vmem:[%s19379_s9 + $0xa0] sm:$0xff]  ;;  %v13941_v43 = vld [vmem:[%s19379_s9 + $0x98] sm:$0xff] }
 0xa9c   : > { %9564 = vmatmul.bf16.vlgmr.msrb.gmra.mxu3 %v18807_v2  ;;  %v8549_v13 = vpop.f32.mrf.mxu2 }
 0xa9d   : > { %v19115_v38 = vadd.f32 %v8549_v13, %v18940_v17  ;;  %v13049_v17 = vld [vmem:[%s19377_s7 + $0xf20] sm:$0xf]  ;;  %v13043_v13 = vld [vmem:[%s19377_s7 + $0xf18] sm:$0xf0] }
 0xa9e   : > { %9583 = vmatpush.bf16.msrb.mxu1 %v13014_v35  ;;  %9794 = vmatpush.bf16.msra.mxu2 %v13130_v58  ;;  %v8340_v53 = vpop.f32.mrf.mxu1  ;;  %v13892_v58 = vld [vmem:[%s19377_s7 + $0xf0c] sm:$0xf0]  ;;  %v13046_v52 = vor.u32 %v13891_v54, %v13043_v13  ;;  %v13930_v13 = vld [vmem:[%s19379_s9 + $0x40] sm:$0xff] }
 0xa9f   : > { %9807 = vmatpush.bf16.msra.mxu3 %v13134_v3  ;;  %v8562_v6 = vpop.f32.mrf.mxu3  ;;  %v13890_v3 = vld [vmem:[%s19377_s7 + $0xf04] sm:$0xf]  ;;  %v13034_v34 = vor.u32 %v13892_v58, %v13033_v55  ;;  %v13939_v55 = vld [vmem:[%s19379_s9 + $0x88] sm:$0xff] }
 0xaa0   : > { %v19118_v1 = vadd.f32 %v8562_v6, %v18943_v60  ;;  %v13896_v60 = vld [vmem:[%s19377_s7 + $0xf2c] sm:$0xf0]  ;;  %v13038_v29 = vor.u32 %v13890_v3, %v13035_v22  ;;  %v13929_v3 = vld [vmem:[%s19379_s9 + $0x38] sm:$0xff] }
 0xaa1   : > { %v13050_v14 = vor.u32 %v13896_v60, %v13049_v17  ;;  %v13937_v22 = vld [vmem:[%s19379_s9 + $0x78] sm:$0xff] }
 0xaa2   : > { %9584 = vmatpush.bf16.msrb.mxu1 %v12998_v32  ;;  %9795 = vmatpush.bf16.msra.mxu2 %v13114_v61  ;;  %v13915_v32 = vld [vmem:[%s19377_s7 + $0xfcc] sm:$0xf]  ;;  %v13139_v61 = vld [vmem:[%s19377_s7 + $0xfd8] sm:$0xf0] }
 0xaa3   : > { %9808 = vmatpush.bf16.msra.mxu3 %v13118_v4  ;;  %v13142_v4 = vor.u32 %v13915_v32, %v13139_v61  ;;  %v13927_v61 = vld [vmem:[%s19379_s9 + $0x28] sm:$0xff] }
 0xaa4   : > { %v8551_v63 = vpop.f32.mrf.mxu2 }
 0xaa6   : > { %9585 = vmatpush.bf16.msrb.mxu1 %v12982_v50  ;;  %9796 = vmatpush.bf16.msra.mxu2 %v13098_v8 }
 0xaa7   : > { %9809 = vmatpush.bf16.msra.mxu3 %v13102_v39  ;;  %v8564_v35 = vpop.f32.mrf.mxu3  ;;  %v13091_v39 = vld [vmem:[%s19377_s7 + $0xf78] sm:$0xf0] }
 0xaa8   : > { %v13938_v35 = vld [vmem:[%s19379_s9 + $0x80] sm:$0xff] }
 0xaaa   : > { %9586 = vmatpush.bf16.msrb.mxu1 %v12966_v19  ;;  %9797 = vmatpush.bf16.msra.mxu2 %v13082_v26 }
 0xaab   : > { %9810 = vmatpush.bf16.msra.mxu3 %v13086_v25  ;;  %v13895_v25 = vld [vmem:[%s19377_s7 + $0xf2c] sm:$0xf] }
 0xaac   : > { %v13062_v18 = vor.u32 %v13895_v25, %v13059_v12  ;;  %v13931_v25 = vld [vmem:[%s19379_s9 + $0x48] sm:$0xff]  ;;  %v13952_v12 = vld [vmem:[%s19379_s9 + $0xf0] sm:$0xff] }
 0xaae   : > { %9587 = vmatpush.bf16.msrb.mxu1 %v12950_v27  ;;  %9798 = vmatpush.bf16.msra.mxu2 %v13066_v7  ;;  %v13944_v27 = vld [vmem:[%s19379_s9 + $0xb0] sm:$0xff] }
 0xaaf   : > { %9811 = vmatpush.bf16.msra.mxu3 %v13070_v44  ;;  %v13943_v44 = vld [vmem:[%s19379_s9 + $0xa8] sm:$0xff] }
 0xab0   : > { %v9073_v59 = vpop.f32.mrf.mxu0 }
 0xab1   : > { %v19178_v40 = vadd.f32 %v9073_v59, %v19055_v15  ;;  %v13903_v15 = vld [vmem:[%s19377_s7 + $0xf6c] sm:$0xf]  ;;  %v19275_v59 = vld [vmem:[%s19378_s8] sm:$0xf] }
 0xab2   : > { %9588 = vmatpush.bf16.msrb.mxu1 %v12934_v24  ;;  %9799 = vmatpush.bf16.msra.mxu2 %v13050_v14  ;;  %v13094_v41 = vor.u32 %v13903_v15, %v13091_v39  ;;  %v13925_v15 = vld [vmem:[%s19379_s9 + $0x18] sm:$0xff] }
 0xab3   : > { %9812 = vmatpush.bf16.msra.mxu3 %v13054_v10  ;;  %v13940_v10 = vld [vmem:[%s19379_s9 + $0x90] sm:$0xff]  ;;  %v13933_v39 = vld [vmem:[%s19379_s9 + $0x58] sm:$0xff] }
 0xab6   : > { %9589 = vmatpush.bf16.msrb.mxu1 %v12918_v49  ;;  %9800 = vmatpush.bf16.msra.mxu2 %v13034_v34  ;;  %v8588_v42 = vpop.f32.mrf.mxu1  ;;  %v13928_v34 = vld [vmem:[%s19379_s9 + $0x30] sm:$0xff] }
 0xab7   : > { %9813 = vmatpush.bf16.msra.mxu3 %v13038_v29  ;;  %v8595_v50 = vadd.f32 %v8588_v42, %v19076_v33  ;;  %v13075_v33 = vld [vmem:[%s19377_s7 + $0xf58] sm:$0xf0]  ;;  %v13936_v29 = vld [vmem:[%s19379_s9 + $0x70] sm:$0xff] }
 0xab8   : > { %v9075_v36 = vpop.f32.mrf.mxu0  ;;  %v13078_v26 = vor.u32 %v13899_v16, %v13075_v33  ;;  %v13932_v16 = vld [vmem:[%s19379_s9 + $0x50] sm:$0xff] }
 0xab9   : > { %9590 = vmatmul.bf16.vlgmr.msrb.gmra.mxu1 %v18807_v2  ;;  %9801 = vmatmul.bf16.vlgmr.msra.gmra.mxu2 %v19012_v21  ;;  %v13907_v2 = vld [vmem:[%s19377_s7 + $0xf8c] sm:$0xf] }
 0xaba   : > { %9832 = vmatpush.bf16.msra.mxu1 %v13158_v51  ;;  %9814 = vmatmul.bf16.vlgmr.msra.gmra.mxu3 %v19012_v21  ;;  %v13110_v8 = vor.u32 %v13907_v2, %v13107_v31  ;;  %v9853_v31 = vperm.slane %v19275_v59, 2 }
 0xabb   : > { %10128 = vmatpush.bf16.msrb.mxu2 %v13929_v3  ;;  %10141 = vmatpush.bf16.msrb.mxu3 %v13937_v22 }
 0xabc   : > { %v8799_v0 = vpop.f32.mrf.mxu2 }
 0xabd   : > { %v8842_v62 = vadd.f32 %v8799_v0, %v19115_v38  ;;  %v13945_v38 = vld [vmem:[%s19379_s9 + $0xb8] sm:$0xff] }
 0xabe   : > { %9833 = vmatpush.bf16.msra.mxu1 %v13142_v4  ;;  %v8590_v19 = vpop.f32.mrf.mxu1  ;;  %10154 = vmatpush.bf16.msra.mxu0 %v13945_v38  ;;  %v13935_v4 = vld [vmem:[%s19379_s9 + $0x68] sm:$0xff] }
 0xabf   : > { %v8812_v9 = vpop.f32.mrf.mxu3  ;;  %10129 = vmatpush.bf16.msrb.mxu2 %v13928_v34  ;;  %10142 = vmatpush.bf16.msrb.mxu3 %v13936_v29  ;;  %v13953_v19 = vld [vmem:[%s19379_s9 + $0xf8] sm:$0xff] }
 0xac0   : > { %v8843_v45 = vadd.f32 %v8812_v9, %v19118_v1 }
 0xac2   : > { %9834 = vmatpush.bf16.msra.mxu1 %v13126_v20  ;;  %10155 = vmatpush.bf16.msra.mxu0 %v13944_v27 }
 0xac3   : > { %10130 = vmatpush.bf16.msrb.mxu2 %v13927_v61  ;;  %10143 = vmatpush.bf16.msrb.mxu3 %v13935_v4 }
 0xac4   : > { %v8801_v6 = vpop.f32.mrf.mxu2 }
 0xac6   : > { %9835 = vmatpush.bf16.msra.mxu1 %v13110_v8  ;;  %10156 = vmatpush.bf16.msra.mxu0 %v13943_v44 }
 0xac7   : > { %v8814_v47 = vpop.f32.mrf.mxu3  ;;  %10131 = vmatpush.bf16.msrb.mxu2 %v13926_v5  ;;  %10144 = vmatpush.bf16.msrb.mxu3 %v13934_v46 }
 0xac8   : > { %v13951_v47 = vld [vmem:[%s19379_s9 + $0xe8] sm:$0xff] }
 0xaca   : > { %9836 = vmatpush.bf16.msra.mxu1 %v13094_v41  ;;  %10157 = vmatpush.bf16.msra.mxu0 %v13942_v23 }
 0xacb   : > { %10132 = vmatpush.bf16.msrb.mxu2 %v13925_v15  ;;  %10145 = vmatpush.bf16.msrb.mxu3 %v13933_v39 }
 0xace   : > { %9837 = vmatpush.bf16.msra.mxu1 %v13078_v26  ;;  %10158 = vmatpush.bf16.msra.mxu0 %v13941_v43  ;;  %v13923_v26 = vld [vmem:[%s19379_s9 + $0x8] sm:$0xff] }
 0xacf   : > { %10146 = vmatpush.bf16.msrb.mxu3 %v13932_v16 }
 0xad0   : > { %v9328_v37 = vpop.f32.mrf.mxu0 }
 0xad1   : > { %v9347_v20 = vadd.f32 %v9328_v37, %v19178_v40  ;;  %v13924_v40 = vld [vmem:[%s19379_s9 + $0x10] sm:$0xff]  ;;  %v13949_v37 = vld [vmem:[%s19379_s9 + $0xd8] sm:$0xff] }
 0xad2   : > { %9838 = vmatpush.bf16.msra.mxu1 %v13062_v18  ;;  %10159 = vmatpush.bf16.msra.mxu0 %v13940_v10  ;;  %v13922_v18 = vld [vmem:[%s19379_s9] sm:$0xff] }
 0xad3   : > { %10133 = vmatpush.bf16.msrb.mxu2 %v13924_v40  ;;  %10147 = vmatpush.bf16.msrb.mxu3 %v13931_v25 }
 0xad6   : > { %9839 = vmatpush.bf16.msra.mxu1 %v13046_v52  ;;  %v8838_v1 = vpop.f32.mrf.mxu1  ;;  %10160 = vmatpush.bf16.msra.mxu0 %v13939_v55  ;;  %v13950_v52 = vld [vmem:[%s19379_s9 + $0xe0] sm:$0xff] }
 0xad7   : > { %v8845_v53 = vadd.f32 %v8838_v1, %v8595_v50  ;;  %10134 = vmatpush.bf16.msrb.mxu2 %v13923_v26  ;;  %10148 = vmatpush.bf16.msrb.mxu3 %v13930_v13  ;;  %v13948_v1 = vld [vmem:[%s19379_s9 + $0xd0] sm:$0xff] }
 0xad8   : > { %v9330_v7 = vpop.f32.mrf.mxu0 }
 0xad9   : > { %9840 = vmatmul.bf16.vlgmr.msra.gmra.mxu1 %v19012_v21  ;;  %v13947_v7 = vld [vmem:[%s19379_s9 + $0xc8] sm:$0xff] }
 0xada   : > { %10161 = vmatpush.bf16.msra.mxu0 %v13938_v35  ;;  %10167 = vmatpush.bf16.msrb.mxu1 %v13953_v19 }
 0xadb   : > { %10135 = vmatpush.bf16.msrb.mxu2 %v13922_v18 }
 0xadc   : > { %v9047_v56 = vpop.f32.mrf.mxu2 }
 0xadd   : > { %v19223_v57 = vadd.f32 %v9047_v56, %v8842_v62 }
 0xade   : > { %v8840_v60 = vpop.f32.mrf.mxu1  ;;  %10168 = vmatpush.bf16.msrb.mxu1 %v13952_v12 }
 0xadf   : > { %v9060_v21 = vpop.f32.mrf.mxu3  ;;  %v9852_v60 = vperm.slane %v19275_v59, 1 }
 0xae0   : > { %v19225_v17 = vadd.f32 %v9060_v21, %v8843_v45  ;;  %v9851_v21 = vperm.slane %v19275_v59, 0 }
 0xae2   : > { %10169 = vmatpush.bf16.msrb.mxu1 %v13951_v47 }
 0xae4   : > { %v9049_v24 = vpop.f32.mrf.mxu2 }
 0xae6   : > { %10170 = vmatpush.bf16.msrb.mxu1 %v13950_v52 }
 0xae7   : > { %v9062_v14 = vpop.f32.mrf.mxu3 }
 0xaea   : > { %10171 = vmatpush.bf16.msrb.mxu1 %v13949_v37 }
 0xaee   : > { %10172 = vmatpush.bf16.msrb.mxu1 %v13948_v1 }
 0xaf0   : > { %v9578_v48 = vpop.f32.mrf.mxu0 }
 0xaf1   : > { %v9597_v2 = vadd.f32 %v9578_v48, %v9347_v20 }
 0xaf2   : > { %10173 = vmatpush.bf16.msrb.mxu1 %v13947_v7 }
 0xaf6   : > { %v9086_v28 = vpop.f32.mrf.mxu1 }
 0xaf7   : > { %v19239_v63 = vadd.f32 %v9086_v28, %v8845_v53 }
 0xaf8   : > { %v9580_v58 = vpop.f32.mrf.mxu0 }
 0xafc   : > { %v19250_v11 = vpop.f32.mrf.mxu2 }
 0xafd   : > { %v9345_v53 = vadd.f32 %v19250_v11, %v19223_v57  ;;  %v13946_v57 = vld [vmem:[%s19379_s9 + $0xc0] sm:$0xff] }
 0xafe   : > { %v9088_v49 = vpop.f32.mrf.mxu1  ;;  %10174 = vmatpush.bf16.msrb.mxu1 %v13946_v57 }
 0xaff   : > { %v19252_v30 = vpop.f32.mrf.mxu3  ;;  %v9854_v49 = vperm.slane %v19275_v59, 3 }
 0xb00   : > { %v9346_v27 = vadd.f32 %v19252_v30, %v19225_v17 }
 0xb04   : > { %v9304_v51 = vpop.f32.mrf.mxu2 }
 0xb07   : > { %v9317_v32 = vpop.f32.mrf.mxu3 }
 0xb10   : > { %v9828_v42 = vpop.f32.mrf.mxu0 }
 0xb11   : > { %v9847_v50 = vadd.f32 %v9828_v42, %v9597_v2 }
 0xb13   : > { %v9861_v8 = vadd.f32 %v9853_v31, %v9847_v50 }
 0xb15   : > { %v9865_v36 = vmax.f32 %v9861_v8, 0.0 }
 0xb16   : > { %v9341_v41 = vpop.f32.mrf.mxu1 }
 0xb17   : > { %v9869_v33 = vpack.c.bf16 %v9865_v36, %v9865_v36  ;;  %v9348_v11 = vadd.f32 %v9341_v41, %v19239_v63  ;;  %v9935_v63 = vld [vmem:[%s19380_s10] sm:$0x1] }
 0xb18   : > { %v9830_v0 = vpop.f32.mrf.mxu0 }
 0xb19   : > { %10162 = vmatmul.bf16.vlgmr.msra.gmra.mxu0 %v9869_v33 }
 0xb1c   : > { %v9552_v9 = vpop.f32.mrf.mxu2 }
 0xb1d   : > { %v9595_v44 = vadd.f32 %v9552_v9, %v9345_v53 }
 0xb1e   : > { %v9343_v45 = vpop.f32.mrf.mxu1 }
 0xb1f   : > { %v9565_v62 = vpop.f32.mrf.mxu3 }
 0xb20   : > { %v9596_v56 = vadd.f32 %v9565_v62, %v9346_v27 }
 0xb24   : > { %v9554_v54 = vpop.f32.mrf.mxu2 }
 0xb27   : > { %v9567_v6 = vpop.f32.mrf.mxu3 }
 0xb36   : > { %v9591_v38 = vpop.f32.mrf.mxu1 }
 0xb37   : > { %v9598_v30 = vadd.f32 %v9591_v38, %v9348_v11 }
 0xb3c   : > { %v9802_v23 = vpop.f32.mrf.mxu2 }
 0xb3d   : > { %v9815_v43 = vpop.f32.mrf.mxu3  ;;  %v9845_v24 = vadd.f32 %v9802_v23, %v9595_v44 }
 0xb3e   : > { %v9846_v14 = vadd.f32 %v9815_v43, %v9596_v56  ;;  %v9593_v10 = vpop.f32.mrf.mxu1 }
 0xb3f   : > { %v9859_v17 = vadd.f32 %v9851_v21, %v9845_v24 }
 0xb40   : > { %v9860_v48 = vadd.f32 %v9852_v60, %v9846_v14 }
 0xb41   : > { %v9863_v28 = vmax.f32 %v9859_v17, 0.0 }
 0xb42   : > { %v9864_v55 = vmax.f32 %v9860_v48, 0.0 }
 0xb43   : > { %v9867_v35 = vpack.c.bf16 %v9863_v28, %v9863_v28 }
 0xb44   : > { %v9868_v58 = vpack.c.bf16 %v9864_v55, %v9864_v55  ;;  %v9804_v3 = vpop.f32.mrf.mxu2 }
 0xb45   : > { %v9817_v22 = vpop.f32.mrf.mxu3  ;;  %10136 = vmatmul.bf16.vlgmr.msrb.gmra.mxu2 %v9867_v35 }
 0xb46   : > { %10149 = vmatmul.bf16.vlgmr.msrb.gmra.mxu3 %v9868_v58 }
 0xb56   : > { %v9841_v34 = vpop.f32.mrf.mxu1 }
 0xb57   : > { %v9848_v29 = vadd.f32 %v9841_v34, %v9598_v30 }
 0xb59   : > { %v9862_v51 = vadd.f32 %v9854_v49, %v9848_v29 }
 0xb5b   : > { %v9866_v32 = vmax.f32 %v9862_v51, 0.0 }
 0xb5d   : > { %v9870_v61 = vpack.c.bf16 %v9866_v32, %v9866_v32 }
 0xb5e   : > { %v9843_v4 = vpop.f32.mrf.mxu1 }
 0xb5f   : > { %10175 = vmatmul.bf16.vlgmr.msrb.gmra.mxu1 %v9870_v61 }
 0xb96   : > { %v10163_v5 = vpop.f32.mrf.mxu0 }
 0xb9e   : > { %v10165_v46 = vpop.f32.mrf.mxu0 }
 0xbc8   : > { %v10137_v20 = vpop.f32.mrf.mxu2 }
 0xbc9   : > { %v10150_v2 = vpop.f32.mrf.mxu3  ;;  %v10138_v31 = vadd.f32 %v10137_v20, %v9935_v63 }
 0xbcb   : > { %v10151_v50 = vadd.f32 %v10150_v2, %v10138_v31 }
 0xbcd   : > { %v10164_v8 = vadd.f32 %v10163_v5, %v10151_v50 }
 0xbd0   : > { %v10139_v42 = vpop.f32.mrf.mxu2 }
 0xbd1   : > { %v10152_v59 = vpop.f32.mrf.mxu3 }
 0xbdc   : > { %v10176_v15 = vpop.f32.mrf.mxu1 }
 0xbdd   : > { %v10177_v39 = vadd.f32 %v10176_v15, %v10164_v8 }
 0xbdf   : > { %10181 = vst.msk [vmem:[%s395_s22] sm:$0x1] %vm10180_vm5, %v10177_v39 }
 0xbe0   : > { %14076 = shalt.err (!%p14073_p8)
}
 0xbe1   : > { %13962 = dma.vmem_to_hbm [thread:$0]  (%p14220_p5), %s10194_s24, 16, %s10196_s0, %s10183_s25  }
 0xbe4   : > { %v10178_v36 = vpop.f32.mrf.mxu1 }
 0xbe5 PF: > { %p13974_p9 = scmp.ge.s32.totalorder %s14115_s20, 2  ;;  %s10207_s13 = sand.u32 1, %s14103_s17  }
 0xbe6   : > { %s10208_s16 = scalar_lea.sflag [#allocation9], %s10207_s13 }
 0xbe7   : > { %p13969_p10 = pnand %p13974_p9, %p14224_p6 }
 0xbe9   : > { %p13970_p11 = pneg %p13969_p10 }
 0xbeb   : > { %14098 = dma.done.wait (%p13970_p11), %s10208_s16, 16  }
 0xbec   : > { %14100 = vsyncadd (%p13970_p11), %s10208_s16, 4294967280  ;;  %p22_p12 = scmp.ge.s32.totalorder %s14207_s23, 4   ;;  %s19388_s17 = smov %s14107_s18 }
 0xbed   : > { %s19389_s18 = smov %s14111_s19  ;;  %s19390_s19 = smov %s14218_s26 }
 0xbee   : > { %s19391_s20 = smov %s14207_s23  ;;  %24 = sbr.rel (!%p22_p12) target bundleno = 7 (0x7), region = 297 }
 0xbf3   :  { %10213 = vsyncpa [#allocation8], 1 }
 0xbf4   :  { %10215 = vsyncpa [#allocation8 + $0x1], 1 }
 0xbf5   :  { %10216 = vsyncpa [#allocation9], 1 }
 0xbf6   :  { %10218 = vsyncpa [#allocation9 + $0x1], 1 }

</bundles_post_ra>
